<compile_context>
chip_gen: v7x
topology: tpu7x:2x2x1
jax: 0.10.0
libtpu: 0.0.40
codegen_flags: <defaults>
</compile_context>

<pallas_src>
import functools

import numpy as np

import jax
import jax.numpy as jnp
from jax.experimental import pallas as pl
from jax.experimental.pallas import tpu as pltpu

M_LATENT = 4        # "M" in the torch script
_PAD = 128          # tile-aligned margin in the shared shift scratch


# ----------------------------------------------------------------------------
# In-kernel helpers.  Activation layout: (C, B*H*W) with channels on sublanes,
# pixels on the lane axis, flat pixel index p = b*H*W + i*W + j.
# ----------------------------------------------------------------------------
def _row_col(P, H, W):
    # H, W are powers of two -> shifts/ands instead of integer div/rem.
    pos = jax.lax.broadcasted_iota(jnp.int32, (1, P), 1)
    col = pos & (W - 1)
    row = (pos >> (W.bit_length() - 1)) & (H - 1)
    return row, col


def _shifted_taps(x, pad_ref, H, W):
    """Yield the 9 spatially shifted, boundary-masked 3x3 taps of x.

    x is staged once into the shared VMEM scratch at a tile-aligned offset; each
    tap is a static shifted slice of that scratch.  Out-of-image taps are masked
    to 0.0 via iota row/col masks, so the scratch margins never need zero-fill
    (masked garbage never enters the arithmetic) and all reads stay inside the
    scratch allocation.
    """
    C, P = x.shape
    pad_ref[0:C, _PAD:_PAD + P] = x
    row, col = _row_col(P, H, W)
    for di in (-1, 0, 1):
        for dj in (-1, 0, 1):
            off = di * W + dj
            tap = pad_ref[0:C, _PAD + off:_PAD + off + P]
            valid = ((row + di >= 0) & (row + di < H) &
                     (col + dj >= 0) & (col + dj < W))
            yield (di, dj), jnp.where(valid, tap, 0.0)


def _conv3x3_bn_relu(x, pad_ref, w, bias, H, W):
    """Conv2d(Cin,Cout,3,1,1) + folded BatchNorm + ReLU via VPU broadcast-FMAs.

    w: (Cout, 9*Cin) with column index = ((di+1)*3 + (dj+1))*Cin + ci, already
    scaled by the BN scale; bias: (Cout, 1) folded BN bias.
    """
    Cin, P = x.shape
    Cout = w.shape[0]
    acc = jnp.broadcast_to(bias, (Cout, P))
    for (di, dj), tap in _shifted_taps(x, pad_ref, H, W):
        t = (di + 1) * 3 + (dj + 1)
        for ci in range(Cin):
            k = t * Cin + ci
            # (Cout,1) x (1,P) broadcast-FMA; the MXU would be >90% padding here.
            acc = acc + w[:, k:k + 1] * tap[ci:ci + 1, :]
    return jnp.maximum(acc, 0.0)


def _maxpool3x3_s2p1(x, pad_ref, sel, H, W):
    """MaxPool2d(kernel=3, stride=2, padding=1) on a post-ReLU (C, B*H*W) value.

    Full-resolution 3x3 window max (0.0 mask fill == -inf padding since x >= 0),
    then the stride-2 window centers are gathered with a 0/1 selection matmul so
    pixels stay dense on the lane axis.
    """
    y = x
    for _, tap in _shifted_taps(x, pad_ref, H, W):
        y = jnp.maximum(y, tap)
    return jnp.dot(y, sel, preferred_element_type=jnp.float32)


def _fused_cnn_kernel(x_ref, w1_ref, b1_ref, w2_ref, b2_ref, w3_ref, b3_ref,
                      w4_ref, b4_ref, sel1_ref, sel2_ref, avg_ref,
                      wl_ref, bl_ref, noise_ref,
                      out_ref, pad_ref, flat_ref, *, batch, snr_db):
    # ---- SE ----
    x = _conv3x3_bn_relu(x_ref[...], pad_ref, w1_ref[...], b1_ref[...], 16, 16)
    x = _maxpool3x3_s2p1(x, pad_ref, sel1_ref[...], 16, 16)            # (8, B*64)
    x = _conv3x3_bn_relu(x, pad_ref, w2_ref[...], b2_ref[...], 8, 8)
    x = _maxpool3x3_s2p1(x, pad_ref, sel2_ref[...], 8, 8)              # (8, B*16)

    # ---- CE ----
    x = _conv3x3_bn_relu(x, pad_ref, w3_ref[...], b3_ref[...], 4, 4)
    x = jnp.dot(x, avg_ref[...], preferred_element_type=jnp.float32)   # (M, B*4)

    # ---- AWGN channel ----
    total = x.shape[0] * x.shape[1]                                    # B*C*h*w
    p_sum = jnp.sum(jnp.sum(x * x, axis=1, keepdims=True), axis=0, keepdims=True)
    n_power = p_sum * (10.0 ** (-snr_db / 10.0) / total)               # (1, 1)
    x = x + jnp.sqrt(n_power) * noise_ref[...]

    # ---- CD ----
    x = _conv3x3_bn_relu(x, pad_ref, w4_ref[...], b4_ref[...], 2, 2)   # (M, B*4)

    # ---- classifier: Dropout = identity (inference), Linear(16,10), Softmax ----
    c_cd, p_cd = x.shape
    hw = p_cd // batch
    for b in range(batch):              # flatten in torch NCHW x.view(B,-1) order
        for c in range(c_cd):
            flat_ref[b:b + 1, c * hw:(c + 1) * hw] = x[c:c + 1, b * hw:(b + 1) * hw]
    logits = jnp.dot(flat_ref[...], wl_ref[...],
                     preferred_element_type=jnp.float32) + bl_ref[...]
    m = jnp.max(logits, axis=-1, keepdims=True)
    e = jnp.exp(logits - m)
    s = jnp.sum(e, axis=-1, keepdims=True)
    out_ref[...] = e * pl.reciprocal(s, approx=True)


# ----------------------------------------------------------------------------
# Host-side parameter preparation (layout / BN folding / pooling matrices)
# ----------------------------------------------------------------------------
def _fold_conv_bn(w, b, gamma, beta, rmean, rvar, eps=1e-5):
    scale = gamma / jnp.sqrt(rvar + eps)                         # (Cout,)
    bias = beta + scale * (b - rmean)                            # (Cout,)
    # torch weight (Cout, Cin, 3, 3) -> (Cout, 9*Cin), col = (kh*3+kw)*Cin + ci,
    # pre-scaled by the BN scale so the kernel only does FMA + bias + ReLU.
    wmat = jnp.transpose(w, (0, 2, 3, 1)).reshape(w.shape[0], -1) * scale[:, None]
    return wmat.astype(jnp.float32), bias[:, None].astype(jnp.float32)


def _center_select_matrix(B, H, W):
    # 0/1 matrix gathering the (2*oi, 2*oj) window centers (stride-2 subsample).
    Ho, Wo = H // 2, W // 2
    S = np.zeros((B * H * W, B * Ho * Wo), np.float32)
    for b in range(B):
        for oi in range(Ho):
            for oj in range(Wo):
                S[b * H * W + (2 * oi) * W + 2 * oj,
                  b * Ho * Wo + oi * Wo + oj] = 1.0
    return jnp.asarray(S)


def _avgpool2_matrix(B, H, W):
    # AdaptiveAvgPool2d(2) on an HxW map == 2x2 average pool, stride 2.
    Ho, Wo = H // 2, W // 2
    A = np.zeros((B * H * W, B * Ho * Wo), np.float32)
    for b in range(B):
        for oi in range(Ho):
            for oj in range(Wo):
                q = b * Ho * Wo + oi * Wo + oj
                for di in range(2):
                    for dj in range(2):
                        A[b * H * W + (2 * oi + di) * W + 2 * oj + dj, q] = 0.25
    return jnp.asarray(A)


# ----------------------------------------------------------------------------
# Parameters (deterministic synthetic init, same structure as the torch module)
# ----------------------------------------------------------------------------
def _conv_bn_params(key, cin, cout):
    k1, k2, k3, k4, k5, k6 = jax.random.split(key, 6)
    w = 0.1 * jax.random.normal(k1, (cout, cin, 3, 3), jnp.float32)
    b = 0.1 * jax.random.normal(k2, (cout,), jnp.float32)
    gamma = 1.0 + 0.1 * jax.random.normal(k3, (cout,), jnp.float32)
    beta = 0.1 * jax.random.normal(k4, (cout,), jnp.float32)
    rmean = 0.1 * jax.random.normal(k5, (cout,), jnp.float32)
    rvar = 1.0 + 0.1 * jnp.abs(jax.random.normal(k6, (cout,), jnp.float32))
    return (w, b, gamma, beta, rmean, rvar)


def init_params(key):
    k1, k2, k3, k4, k5, k6 = jax.random.split(key, 6)
    return {
        "se_conv1": _conv_bn_params(k1, 1, 8),
        "se_conv2": _conv_bn_params(k2, 8, 8),
        "ce_conv": _conv_bn_params(k3, 8, M_LATENT),
        "cd_conv": _conv_bn_params(k4, M_LATENT, M_LATENT),
        # nn.Linear(16, 10): weight (10, 16), bias (10,)
        "lin_w": 0.1 * jax.random.normal(k5, (10, 16), jnp.float32),
        "lin_b": 0.1 * jax.random.normal(k6, (10,), jnp.float32),
    }


# ----------------------------------------------------------------------------
# Full forward pass: one fused pallas_call
# ----------------------------------------------------------------------------
def cnn_forward(x_nchw, params, noise_key, snr_db=20.0):
    B, cin, H, W = x_nchw.shape
    assert (cin, H, W) == (1, 16, 16)

    # One-time input layout prep (NCHW -> (Cin=1, B*H*W) pixels-on-lanes).
    x_flat = jnp.transpose(x_nchw.astype(jnp.float32),
                           (1, 0, 2, 3)).reshape(1, B * H * W)

    w1, b1 = _fold_conv_bn(*params["se_conv1"])
    w2, b2 = _fold_conv_bn(*params["se_conv2"])
    w3, b3 = _fold_conv_bn(*params["ce_conv"])
    w4, b4 = _fold_conv_bn(*params["cd_conv"])
    wl = params["lin_w"].T.astype(jnp.float32)                   # (16, 10)
    bl = params["lin_b"].reshape(1, -1).astype(jnp.float32)      # (1, 10)

    sel1 = _center_select_matrix(B, 16, 16)                      # (B*256, B*64)
    sel2 = _center_select_matrix(B, 8, 8)                        # (B*64,  B*16)
    avgm = _avgpool2_matrix(B, 4, 4)                             # (B*16,  B*4)

    # Unit-variance Gaussian, scaled by sqrt(n_power) inside the kernel.
    noise = jax.random.normal(noise_key, (M_LATENT, B * 4), jnp.float32)

    kernel = functools.partial(_fused_cnn_kernel, batch=B, snr_db=snr_db)
    vmem_spec = lambda: pl.BlockSpec(memory_space=pltpu.MemorySpace.VMEM)
    pad_width = _PAD + B * H * W + _PAD                          # shared shift scratch

    return pl.pallas_call(
        kernel,
        out_shape=jax.ShapeDtypeStruct((B, 10), jnp.float32),
        in_specs=[vmem_spec() for _ in range(15)],
        out_specs=vmem_spec(),
        scratch_shapes=[
            pltpu.VMEM((8, pad_width), jnp.float32),   # shared conv/pool shift buffer
            pltpu.VMEM((B, 16), jnp.float32),          # NCHW-order flatten buffer
        ],
    )(x_flat, w1, b1, w2, b2, w3, b3, w4, b4, sel1, sel2, avgm, wl, bl, noise)


if __name__ == "__main__":
    key = jax.random.PRNGKey(0)
    k_params, k_input, k_noise = jax.random.split(key, 3)

    params = init_params(k_params)
    # small NCHW input: batch=2, 1 channel, 16x16 spatial
    x = jax.random.normal(k_input, (2, 1, 16, 16), jnp.float32)

    fwd = jax.jit(cnn_forward, static_argnames=("snr_db",))
    out = jax.block_until_ready(fwd(x, params, k_noise))

    assert out.shape == (2, 10)
    assert bool(jnp.all(jnp.isfinite(out)))
    # softmax rows sum to ~1 (loose tol: approx reciprocal on the EUP in-kernel)
    assert bool(jnp.allclose(jnp.sum(out, axis=-1), 1.0, atol=2e-3))
    print("KERNEL_OK")
</pallas_src>

<mosaic_0001>
module attributes {stable_mosaic.version = 11 : i64} {
  func.func @_fused_cnn_kernel(%arg0: memref<1x512xf32, #tpu.memory_space<vmem>>, %arg1: memref<8x9xf32, #tpu.memory_space<vmem>>, %arg2: memref<8x1xf32, #tpu.memory_space<vmem>>, %arg3: memref<8x72xf32, #tpu.memory_space<vmem>>, %arg4: memref<8x1xf32, #tpu.memory_space<vmem>>, %arg5: memref<4x72xf32, #tpu.memory_space<vmem>>, %arg6: memref<4x1xf32, #tpu.memory_space<vmem>>, %arg7: memref<4x36xf32, #tpu.memory_space<vmem>>, %arg8: memref<4x1xf32, #tpu.memory_space<vmem>>, %arg9: memref<512x128xf32, #tpu.memory_space<vmem>>, %arg10: memref<128x32xf32, #tpu.memory_space<vmem>>, %arg11: memref<32x8xf32, #tpu.memory_space<vmem>>, %arg12: memref<16x10xf32, #tpu.memory_space<vmem>>, %arg13: memref<1x10xf32, #tpu.memory_space<vmem>>, %arg14: memref<4x8xf32, #tpu.memory_space<vmem>>, %arg15: memref<2x10xf32, #tpu.memory_space<vmem>>, %arg16: memref<8x768xf32, #tpu.memory_space<vmem>>, %arg17: memref<2x16xf32, #tpu.memory_space<vmem>>) attributes {dimension_semantics = [], scalar_prefetch = 0 : i64, scratch_operands = 2 : i64, tpu.core_type = #tpu.core_type<tc>} {
    %c0 = arith.constant 0 : index
    %c0_0 = arith.constant 0 : index
    %0 = vector.load %arg0[%c0, %c0_0] : memref<1x512xf32, #tpu.memory_space<vmem>>, vector<1x512xf32>
    %c0_1 = arith.constant 0 : index
    %c0_2 = arith.constant 0 : index
    %1 = vector.load %arg1[%c0_1, %c0_2] : memref<8x9xf32, #tpu.memory_space<vmem>>, vector<8x9xf32>
    %c0_3 = arith.constant 0 : index
    %c0_4 = arith.constant 0 : index
    %2 = vector.load %arg2[%c0_3, %c0_4] : memref<8x1xf32, #tpu.memory_space<vmem>>, vector<8x1xf32>
    %3 = vector.shape_cast %2 : vector<8x1xf32> to vector<8x1xf32>
    %4 = vector.broadcast %3 : vector<8x1xf32> to vector<8x512xf32>
    %c0_5 = arith.constant 0 : index
    %c128 = arith.constant 128 : index
    %5 = vector.load %arg16[%c0_5, %c128] : memref<8x768xf32, #tpu.memory_space<vmem>>, vector<1x512xf32>
    tpu.vector_store %arg16[%c0_5, %c128], %0 {strides = array<i32>} : memref<8x768xf32, #tpu.memory_space<vmem>>, vector<1x512xf32>,
    %6 = tpu.iota {dimensions = array<i32: 1>} : vector<1x512xi32>
    %c15_i32 = arith.constant 15 : i32
    %7 = vector.broadcast %c15_i32 : i32 to vector<1x512xi32>
    %8 = arith.andi %6, %7 : vector<1x512xi32>
    %c4_i32 = arith.constant 4 : i32
    %9 = vector.broadcast %c4_i32 : i32 to vector<1x512xi32>
    %10 = arith.shrsi %6, %9 : vector<1x512xi32>
    %c15_i32_6 = arith.constant 15 : i32
    %11 = vector.broadcast %c15_i32_6 : i32 to vector<1x512xi32>
    %12 = arith.andi %10, %11 : vector<1x512xi32>
    %c0_7 = arith.constant 0 : index
    %c111 = arith.constant 111 : index
    %13 = vector.load %arg16[%c0_7, %c111] : memref<8x768xf32, #tpu.memory_space<vmem>>, vector<1x512xf32>
    %c-1_i32 = arith.constant -1 : i32
    %14 = vector.broadcast %c-1_i32 : i32 to vector<1x512xi32>
    %15 = arith.addi %12, %14 : vector<1x512xi32>
    %c0_i32 = arith.constant 0 : i32
    %16 = vector.broadcast %c0_i32 : i32 to vector<1x512xi32>
    %17 = arith.cmpi sge, %15, %16 : vector<1x512xi32>
    %c-1_i32_8 = arith.constant -1 : i32
    %18 = vector.broadcast %c-1_i32_8 : i32 to vector<1x512xi32>
    %19 = arith.addi %12, %18 : vector<1x512xi32>
    %c16_i32 = arith.constant 16 : i32
    %20 = vector.broadcast %c16_i32 : i32 to vector<1x512xi32>
    %21 = arith.cmpi slt, %19, %20 : vector<1x512xi32>
    %22 = arith.andi %17, %21 : vector<1x512xi1>
    %c-1_i32_9 = arith.constant -1 : i32
    %23 = vector.broadcast %c-1_i32_9 : i32 to vector<1x512xi32>
    %24 = arith.addi %8, %23 : vector<1x512xi32>
    %c0_i32_10 = arith.constant 0 : i32
    %25 = vector.broadcast %c0_i32_10 : i32 to vector<1x512xi32>
    %26 = arith.cmpi sge, %24, %25 : vector<1x512xi32>
    %27 = arith.andi %22, %26 : vector<1x512xi1>
    %c-1_i32_11 = arith.constant -1 : i32
    %28 = vector.broadcast %c-1_i32_11 : i32 to vector<1x512xi32>
    %29 = arith.addi %8, %28 : vector<1x512xi32>
    %c16_i32_12 = arith.constant 16 : i32
    %30 = vector.broadcast %c16_i32_12 : i32 to vector<1x512xi32>
    %31 = arith.cmpi slt, %29, %30 : vector<1x512xi32>
    %32 = arith.andi %27, %31 : vector<1x512xi1>
    %cst = arith.constant 0.000000e+00 : f32
    %33 = vector.broadcast %cst : f32 to vector<1x512xf32>
    %34 = arith.select %32, %13, %33 : vector<1x512xi1>, vector<1x512xf32>
    %35 = vector.extract_strided_slice %1 {offsets = [0, 0], sizes = [8, 1], strides = [1, 1]} : vector<8x9xf32> to vector<8x1xf32>
    %36 = vector.broadcast %35 : vector<8x1xf32> to vector<8x512xf32>
    %37 = vector.broadcast %34 : vector<1x512xf32> to vector<8x512xf32>
    %38 = arith.mulf %36, %37 : vector<8x512xf32>
    %39 = arith.addf %4, %38 : vector<8x512xf32>
    %c0_13 = arith.constant 0 : index
    %c112 = arith.constant 112 : index
    %40 = vector.load %arg16[%c0_13, %c112] : memref<8x768xf32, #tpu.memory_space<vmem>>, vector<1x512xf32>
    %c-1_i32_14 = arith.constant -1 : i32
    %41 = vector.broadcast %c-1_i32_14 : i32 to vector<1x512xi32>
    %42 = arith.addi %12, %41 : vector<1x512xi32>
    %c0_i32_15 = arith.constant 0 : i32
    %43 = vector.broadcast %c0_i32_15 : i32 to vector<1x512xi32>
    %44 = arith.cmpi sge, %42, %43 : vector<1x512xi32>
    %c-1_i32_16 = arith.constant -1 : i32
    %45 = vector.broadcast %c-1_i32_16 : i32 to vector<1x512xi32>
    %46 = arith.addi %12, %45 : vector<1x512xi32>
    %c16_i32_17 = arith.constant 16 : i32
    %47 = vector.broadcast %c16_i32_17 : i32 to vector<1x512xi32>
    %48 = arith.cmpi slt, %46, %47 : vector<1x512xi32>
    %49 = arith.andi %44, %48 : vector<1x512xi1>
    %c0_i32_18 = arith.constant 0 : i32
    %50 = vector.broadcast %c0_i32_18 : i32 to vector<1x512xi32>
    %51 = arith.addi %8, %50 : vector<1x512xi32>
    %c0_i32_19 = arith.constant 0 : i32
    %52 = vector.broadcast %c0_i32_19 : i32 to vector<1x512xi32>
    %53 = arith.cmpi sge, %51, %52 : vector<1x512xi32>
    %54 = arith.andi %49, %53 : vector<1x512xi1>
    %c0_i32_20 = arith.constant 0 : i32
    %55 = vector.broadcast %c0_i32_20 : i32 to vector<1x512xi32>
    %56 = arith.addi %8, %55 : vector<1x512xi32>
    %c16_i32_21 = arith.constant 16 : i32
    %57 = vector.broadcast %c16_i32_21 : i32 to vector<1x512xi32>
    %58 = arith.cmpi slt, %56, %57 : vector<1x512xi32>
    %59 = arith.andi %54, %58 : vector<1x512xi1>
    %cst_22 = arith.constant 0.000000e+00 : f32
    %60 = vector.broadcast %cst_22 : f32 to vector<1x512xf32>
    %61 = arith.select %59, %40, %60 : vector<1x512xi1>, vector<1x512xf32>
    %62 = vector.extract_strided_slice %1 {offsets = [0, 1], sizes = [8, 1], strides = [1, 1]} : vector<8x9xf32> to vector<8x1xf32>
    %63 = vector.broadcast %62 : vector<8x1xf32> to vector<8x512xf32>
    %64 = vector.broadcast %61 : vector<1x512xf32> to vector<8x512xf32>
    %65 = arith.mulf %63, %64 : vector<8x512xf32>
    %66 = arith.addf %39, %65 : vector<8x512xf32>
    %c0_23 = arith.constant 0 : index
    %c113 = arith.constant 113 : index
    %67 = vector.load %arg16[%c0_23, %c113] : memref<8x768xf32, #tpu.memory_space<vmem>>, vector<1x512xf32>
    %c-1_i32_24 = arith.constant -1 : i32
    %68 = vector.broadcast %c-1_i32_24 : i32 to vector<1x512xi32>
    %69 = arith.addi %12, %68 : vector<1x512xi32>
    %c0_i32_25 = arith.constant 0 : i32
    %70 = vector.broadcast %c0_i32_25 : i32 to vector<1x512xi32>
    %71 = arith.cmpi sge, %69, %70 : vector<1x512xi32>
    %c-1_i32_26 = arith.constant -1 : i32
    %72 = vector.broadcast %c-1_i32_26 : i32 to vector<1x512xi32>
    %73 = arith.addi %12, %72 : vector<1x512xi32>
    %c16_i32_27 = arith.constant 16 : i32
    %74 = vector.broadcast %c16_i32_27 : i32 to vector<1x512xi32>
    %75 = arith.cmpi slt, %73, %74 : vector<1x512xi32>
    %76 = arith.andi %71, %75 : vector<1x512xi1>
    %c1_i32 = arith.constant 1 : i32
    %77 = vector.broadcast %c1_i32 : i32 to vector<1x512xi32>
    %78 = arith.addi %8, %77 : vector<1x512xi32>
    %c0_i32_28 = arith.constant 0 : i32
    %79 = vector.broadcast %c0_i32_28 : i32 to vector<1x512xi32>
    %80 = arith.cmpi sge, %78, %79 : vector<1x512xi32>
    %81 = arith.andi %76, %80 : vector<1x512xi1>
    %c1_i32_29 = arith.constant 1 : i32
    %82 = vector.broadcast %c1_i32_29 : i32 to vector<1x512xi32>
    %83 = arith.addi %8, %82 : vector<1x512xi32>
    %c16_i32_30 = arith.constant 16 : i32
    %84 = vector.broadcast %c16_i32_30 : i32 to vector<1x512xi32>
    %85 = arith.cmpi slt, %83, %84 : vector<1x512xi32>
    %86 = arith.andi %81, %85 : vector<1x512xi1>
    %cst_31 = arith.constant 0.000000e+00 : f32
    %87 = vector.broadcast %cst_31 : f32 to vector<1x512xf32>
    %88 = arith.select %86, %67, %87 : vector<1x512xi1>, vector<1x512xf32>
    %89 = vector.extract_strided_slice %1 {offsets = [0, 2], sizes = [8, 1], strides = [1, 1]} : vector<8x9xf32> to vector<8x1xf32>
    %90 = vector.broadcast %89 : vector<8x1xf32> to vector<8x512xf32>
    %91 = vector.broadcast %88 : vector<1x512xf32> to vector<8x512xf32>
    %92 = arith.mulf %90, %91 : vector<8x512xf32>
    %93 = arith.addf %66, %92 : vector<8x512xf32>
    %c0_32 = arith.constant 0 : index
    %c127 = arith.constant 127 : index
    %94 = vector.load %arg16[%c0_32, %c127] : memref<8x768xf32, #tpu.memory_space<vmem>>, vector<1x512xf32>
    %c0_i32_33 = arith.constant 0 : i32
    %95 = vector.broadcast %c0_i32_33 : i32 to vector<1x512xi32>
    %96 = arith.addi %12, %95 : vector<1x512xi32>
    %c0_i32_34 = arith.constant 0 : i32
    %97 = vector.broadcast %c0_i32_34 : i32 to vector<1x512xi32>
    %98 = arith.cmpi sge, %96, %97 : vector<1x512xi32>
    %c0_i32_35 = arith.constant 0 : i32
    %99 = vector.broadcast %c0_i32_35 : i32 to vector<1x512xi32>
    %100 = arith.addi %12, %99 : vector<1x512xi32>
    %c16_i32_36 = arith.constant 16 : i32
    %101 = vector.broadcast %c16_i32_36 : i32 to vector<1x512xi32>
    %102 = arith.cmpi slt, %100, %101 : vector<1x512xi32>
    %103 = arith.andi %98, %102 : vector<1x512xi1>
    %c-1_i32_37 = arith.constant -1 : i32
    %104 = vector.broadcast %c-1_i32_37 : i32 to vector<1x512xi32>
    %105 = arith.addi %8, %104 : vector<1x512xi32>
    %c0_i32_38 = arith.constant 0 : i32
    %106 = vector.broadcast %c0_i32_38 : i32 to vector<1x512xi32>
    %107 = arith.cmpi sge, %105, %106 : vector<1x512xi32>
    %108 = arith.andi %103, %107 : vector<1x512xi1>
    %c-1_i32_39 = arith.constant -1 : i32
    %109 = vector.broadcast %c-1_i32_39 : i32 to vector<1x512xi32>
    %110 = arith.addi %8, %109 : vector<1x512xi32>
    %c16_i32_40 = arith.constant 16 : i32
    %111 = vector.broadcast %c16_i32_40 : i32 to vector<1x512xi32>
    %112 = arith.cmpi slt, %110, %111 : vector<1x512xi32>
    %113 = arith.andi %108, %112 : vector<1x512xi1>
    %cst_41 = arith.constant 0.000000e+00 : f32
    %114 = vector.broadcast %cst_41 : f32 to vector<1x512xf32>
    %115 = arith.select %113, %94, %114 : vector<1x512xi1>, vector<1x512xf32>
    %116 = vector.extract_strided_slice %1 {offsets = [0, 3], sizes = [8, 1], strides = [1, 1]} : vector<8x9xf32> to vector<8x1xf32>
    %117 = vector.broadcast %116 : vector<8x1xf32> to vector<8x512xf32>
    %118 = vector.broadcast %115 : vector<1x512xf32> to vector<8x512xf32>
    %119 = arith.mulf %117, %118 : vector<8x512xf32>
    %120 = arith.addf %93, %119 : vector<8x512xf32>
    %c0_42 = arith.constant 0 : index
    %c128_43 = arith.constant 128 : index
    %121 = vector.load %arg16[%c0_42, %c128_43] : memref<8x768xf32, #tpu.memory_space<vmem>>, vector<1x512xf32>
    %c0_i32_44 = arith.constant 0 : i32
    %122 = vector.broadcast %c0_i32_44 : i32 to vector<1x512xi32>
    %123 = arith.addi %12, %122 : vector<1x512xi32>
    %c0_i32_45 = arith.constant 0 : i32
    %124 = vector.broadcast %c0_i32_45 : i32 to vector<1x512xi32>
    %125 = arith.cmpi sge, %123, %124 : vector<1x512xi32>
    %c0_i32_46 = arith.constant 0 : i32
    %126 = vector.broadcast %c0_i32_46 : i32 to vector<1x512xi32>
    %127 = arith.addi %12, %126 : vector<1x512xi32>
    %c16_i32_47 = arith.constant 16 : i32
    %128 = vector.broadcast %c16_i32_47 : i32 to vector<1x512xi32>
    %129 = arith.cmpi slt, %127, %128 : vector<1x512xi32>
    %130 = arith.andi %125, %129 : vector<1x512xi1>
    %c0_i32_48 = arith.constant 0 : i32
    %131 = vector.broadcast %c0_i32_48 : i32 to vector<1x512xi32>
    %132 = arith.addi %8, %131 : vector<1x512xi32>
    %c0_i32_49 = arith.constant 0 : i32
    %133 = vector.broadcast %c0_i32_49 : i32 to vector<1x512xi32>
    %134 = arith.cmpi sge, %132, %133 : vector<1x512xi32>
    %135 = arith.andi %130, %134 : vector<1x512xi1>
    %c0_i32_50 = arith.constant 0 : i32
    %136 = vector.broadcast %c0_i32_50 : i32 to vector<1x512xi32>
    %137 = arith.addi %8, %136 : vector<1x512xi32>
    %c16_i32_51 = arith.constant 16 : i32
    %138 = vector.broadcast %c16_i32_51 : i32 to vector<1x512xi32>
    %139 = arith.cmpi slt, %137, %138 : vector<1x512xi32>
    %140 = arith.andi %135, %139 : vector<1x512xi1>
    %cst_52 = arith.constant 0.000000e+00 : f32
    %141 = vector.broadcast %cst_52 : f32 to vector<1x512xf32>
    %142 = arith.select %140, %121, %141 : vector<1x512xi1>, vector<1x512xf32>
    %143 = vector.extract_strided_slice %1 {offsets = [0, 4], sizes = [8, 1], strides = [1, 1]} : vector<8x9xf32> to vector<8x1xf32>
    %144 = vector.broadcast %143 : vector<8x1xf32> to vector<8x512xf32>
    %145 = vector.broadcast %142 : vector<1x512xf32> to vector<8x512xf32>
    %146 = arith.mulf %144, %145 : vector<8x512xf32>
    %147 = arith.addf %120, %146 : vector<8x512xf32>
    %c0_53 = arith.constant 0 : index
    %c129 = arith.constant 129 : index
    %148 = vector.load %arg16[%c0_53, %c129] : memref<8x768xf32, #tpu.memory_space<vmem>>, vector<1x512xf32>
    %c0_i32_54 = arith.constant 0 : i32
    %149 = vector.broadcast %c0_i32_54 : i32 to vector<1x512xi32>
    %150 = arith.addi %12, %149 : vector<1x512xi32>
    %c0_i32_55 = arith.constant 0 : i32
    %151 = vector.broadcast %c0_i32_55 : i32 to vector<1x512xi32>
    %152 = arith.cmpi sge, %150, %151 : vector<1x512xi32>
    %c0_i32_56 = arith.constant 0 : i32
    %153 = vector.broadcast %c0_i32_56 : i32 to vector<1x512xi32>
    %154 = arith.addi %12, %153 : vector<1x512xi32>
    %c16_i32_57 = arith.constant 16 : i32
    %155 = vector.broadcast %c16_i32_57 : i32 to vector<1x512xi32>
    %156 = arith.cmpi slt, %154, %155 : vector<1x512xi32>
    %157 = arith.andi %152, %156 : vector<1x512xi1>
    %c1_i32_58 = arith.constant 1 : i32
    %158 = vector.broadcast %c1_i32_58 : i32 to vector<1x512xi32>
    %159 = arith.addi %8, %158 : vector<1x512xi32>
    %c0_i32_59 = arith.constant 0 : i32
    %160 = vector.broadcast %c0_i32_59 : i32 to vector<1x512xi32>
    %161 = arith.cmpi sge, %159, %160 : vector<1x512xi32>
    %162 = arith.andi %157, %161 : vector<1x512xi1>
    %c1_i32_60 = arith.constant 1 : i32
    %163 = vector.broadcast %c1_i32_60 : i32 to vector<1x512xi32>
    %164 = arith.addi %8, %163 : vector<1x512xi32>
    %c16_i32_61 = arith.constant 16 : i32
    %165 = vector.broadcast %c16_i32_61 : i32 to vector<1x512xi32>
    %166 = arith.cmpi slt, %164, %165 : vector<1x512xi32>
    %167 = arith.andi %162, %166 : vector<1x512xi1>
    %cst_62 = arith.constant 0.000000e+00 : f32
    %168 = vector.broadcast %cst_62 : f32 to vector<1x512xf32>
    %169 = arith.select %167, %148, %168 : vector<1x512xi1>, vector<1x512xf32>
    %170 = vector.extract_strided_slice %1 {offsets = [0, 5], sizes = [8, 1], strides = [1, 1]} : vector<8x9xf32> to vector<8x1xf32>
    %171 = vector.broadcast %170 : vector<8x1xf32> to vector<8x512xf32>
    %172 = vector.broadcast %169 : vector<1x512xf32> to vector<8x512xf32>
    %173 = arith.mulf %171, %172 : vector<8x512xf32>
    %174 = arith.addf %147, %173 : vector<8x512xf32>
    %c0_63 = arith.constant 0 : index
    %c143 = arith.constant 143 : index
    %175 = vector.load %arg16[%c0_63, %c143] : memref<8x768xf32, #tpu.memory_space<vmem>>, vector<1x512xf32>
    %c1_i32_64 = arith.constant 1 : i32
    %176 = vector.broadcast %c1_i32_64 : i32 to vector<1x512xi32>
    %177 = arith.addi %12, %176 : vector<1x512xi32>
    %c0_i32_65 = arith.constant 0 : i32
    %178 = vector.broadcast %c0_i32_65 : i32 to vector<1x512xi32>
    %179 = arith.cmpi sge, %177, %178 : vector<1x512xi32>
    %c1_i32_66 = arith.constant 1 : i32
    %180 = vector.broadcast %c1_i32_66 : i32 to vector<1x512xi32>
    %181 = arith.addi %12, %180 : vector<1x512xi32>
    %c16_i32_67 = arith.constant 16 : i32
    %182 = vector.broadcast %c16_i32_67 : i32 to vector<1x512xi32>
    %183 = arith.cmpi slt, %181, %182 : vector<1x512xi32>
    %184 = arith.andi %179, %183 : vector<1x512xi1>
    %c-1_i32_68 = arith.constant -1 : i32
    %185 = vector.broadcast %c-1_i32_68 : i32 to vector<1x512xi32>
    %186 = arith.addi %8, %185 : vector<1x512xi32>
    %c0_i32_69 = arith.constant 0 : i32
    %187 = vector.broadcast %c0_i32_69 : i32 to vector<1x512xi32>
    %188 = arith.cmpi sge, %186, %187 : vector<1x512xi32>
    %189 = arith.andi %184, %188 : vector<1x512xi1>
    %c-1_i32_70 = arith.constant -1 : i32
    %190 = vector.broadcast %c-1_i32_70 : i32 to vector<1x512xi32>
    %191 = arith.addi %8, %190 : vector<1x512xi32>
    %c16_i32_71 = arith.constant 16 : i32
    %192 = vector.broadcast %c16_i32_71 : i32 to vector<1x512xi32>
    %193 = arith.cmpi slt, %191, %192 : vector<1x512xi32>
    %194 = arith.andi %189, %193 : vector<1x512xi1>
    %cst_72 = arith.constant 0.000000e+00 : f32
    %195 = vector.broadcast %cst_72 : f32 to vector<1x512xf32>
    %196 = arith.select %194, %175, %195 : vector<1x512xi1>, vector<1x512xf32>
    %197 = vector.extract_strided_slice %1 {offsets = [0, 6], sizes = [8, 1], strides = [1, 1]} : vector<8x9xf32> to vector<8x1xf32>
    %198 = vector.broadcast %197 : vector<8x1xf32> to vector<8x512xf32>
    %199 = vector.broadcast %196 : vector<1x512xf32> to vector<8x512xf32>
    %200 = arith.mulf %198, %199 : vector<8x512xf32>
    %201 = arith.addf %174, %200 : vector<8x512xf32>
    %c0_73 = arith.constant 0 : index
    %c144 = arith.constant 144 : index
    %202 = vector.load %arg16[%c0_73, %c144] : memref<8x768xf32, #tpu.memory_space<vmem>>, vector<1x512xf32>
    %c1_i32_74 = arith.constant 1 : i32
    %203 = vector.broadcast %c1_i32_74 : i32 to vector<1x512xi32>
    %204 = arith.addi %12, %203 : vector<1x512xi32>
    %c0_i32_75 = arith.constant 0 : i32
    %205 = vector.broadcast %c0_i32_75 : i32 to vector<1x512xi32>
    %206 = arith.cmpi sge, %204, %205 : vector<1x512xi32>
    %c1_i32_76 = arith.constant 1 : i32
    %207 = vector.broadcast %c1_i32_76 : i32 to vector<1x512xi32>
    %208 = arith.addi %12, %207 : vector<1x512xi32>
    %c16_i32_77 = arith.constant 16 : i32
    %209 = vector.broadcast %c16_i32_77 : i32 to vector<1x512xi32>
    %210 = arith.cmpi slt, %208, %209 : vector<1x512xi32>
    %211 = arith.andi %206, %210 : vector<1x512xi1>
    %c0_i32_78 = arith.constant 0 : i32
    %212 = vector.broadcast %c0_i32_78 : i32 to vector<1x512xi32>
    %213 = arith.addi %8, %212 : vector<1x512xi32>
    %c0_i32_79 = arith.constant 0 : i32
    %214 = vector.broadcast %c0_i32_79 : i32 to vector<1x512xi32>
    %215 = arith.cmpi sge, %213, %214 : vector<1x512xi32>
    %216 = arith.andi %211, %215 : vector<1x512xi1>
    %c0_i32_80 = arith.constant 0 : i32
    %217 = vector.broadcast %c0_i32_80 : i32 to vector<1x512xi32>
    %218 = arith.addi %8, %217 : vector<1x512xi32>
    %c16_i32_81 = arith.constant 16 : i32
    %219 = vector.broadcast %c16_i32_81 : i32 to vector<1x512xi32>
    %220 = arith.cmpi slt, %218, %219 : vector<1x512xi32>
    %221 = arith.andi %216, %220 : vector<1x512xi1>
    %cst_82 = arith.constant 0.000000e+00 : f32
    %222 = vector.broadcast %cst_82 : f32 to vector<1x512xf32>
    %223 = arith.select %221, %202, %222 : vector<1x512xi1>, vector<1x512xf32>
    %224 = vector.extract_strided_slice %1 {offsets = [0, 7], sizes = [8, 1], strides = [1, 1]} : vector<8x9xf32> to vector<8x1xf32>
    %225 = vector.broadcast %224 : vector<8x1xf32> to vector<8x512xf32>
    %226 = vector.broadcast %223 : vector<1x512xf32> to vector<8x512xf32>
    %227 = arith.mulf %225, %226 : vector<8x512xf32>
    %228 = arith.addf %201, %227 : vector<8x512xf32>
    %c0_83 = arith.constant 0 : index
    %c145 = arith.constant 145 : index
    %229 = vector.load %arg16[%c0_83, %c145] : memref<8x768xf32, #tpu.memory_space<vmem>>, vector<1x512xf32>
    %c1_i32_84 = arith.constant 1 : i32
    %230 = vector.broadcast %c1_i32_84 : i32 to vector<1x512xi32>
    %231 = arith.addi %12, %230 : vector<1x512xi32>
    %c0_i32_85 = arith.constant 0 : i32
    %232 = vector.broadcast %c0_i32_85 : i32 to vector<1x512xi32>
    %233 = arith.cmpi sge, %231, %232 : vector<1x512xi32>
    %c1_i32_86 = arith.constant 1 : i32
    %234 = vector.broadcast %c1_i32_86 : i32 to vector<1x512xi32>
    %235 = arith.addi %12, %234 : vector<1x512xi32>
    %c16_i32_87 = arith.constant 16 : i32
    %236 = vector.broadcast %c16_i32_87 : i32 to vector<1x512xi32>
    %237 = arith.cmpi slt, %235, %236 : vector<1x512xi32>
    %238 = arith.andi %233, %237 : vector<1x512xi1>
    %c1_i32_88 = arith.constant 1 : i32
    %239 = vector.broadcast %c1_i32_88 : i32 to vector<1x512xi32>
    %240 = arith.addi %8, %239 : vector<1x512xi32>
    %c0_i32_89 = arith.constant 0 : i32
    %241 = vector.broadcast %c0_i32_89 : i32 to vector<1x512xi32>
    %242 = arith.cmpi sge, %240, %241 : vector<1x512xi32>
    %243 = arith.andi %238, %242 : vector<1x512xi1>
    %c1_i32_90 = arith.constant 1 : i32
    %244 = vector.broadcast %c1_i32_90 : i32 to vector<1x512xi32>
    %245 = arith.addi %8, %244 : vector<1x512xi32>
    %c16_i32_91 = arith.constant 16 : i32
    %246 = vector.broadcast %c16_i32_91 : i32 to vector<1x512xi32>
    %247 = arith.cmpi slt, %245, %246 : vector<1x512xi32>
    %248 = arith.andi %243, %247 : vector<1x512xi1>
    %cst_92 = arith.constant 0.000000e+00 : f32
    %249 = vector.broadcast %cst_92 : f32 to vector<1x512xf32>
    %250 = arith.select %248, %229, %249 : vector<1x512xi1>, vector<1x512xf32>
    %251 = vector.extract_strided_slice %1 {offsets = [0, 8], sizes = [8, 1], strides = [1, 1]} : vector<8x9xf32> to vector<8x1xf32>
    %252 = vector.broadcast %251 : vector<8x1xf32> to vector<8x512xf32>
    %253 = vector.broadcast %250 : vector<1x512xf32> to vector<8x512xf32>
    %254 = arith.mulf %252, %253 : vector<8x512xf32>
    %255 = arith.addf %228, %254 : vector<8x512xf32>
    %cst_93 = arith.constant 0.000000e+00 : f32
    %256 = vector.broadcast %cst_93 : f32 to vector<8x512xf32>
    %257 = arith.maximumf %255, %256 : vector<8x512xf32>
    %c0_94 = arith.constant 0 : index
    %c0_95 = arith.constant 0 : index
    %258 = vector.load %arg9[%c0_94, %c0_95] : memref<512x128xf32, #tpu.memory_space<vmem>>, vector<512x128xf32>
    %c0_96 = arith.constant 0 : index
    %c128_97 = arith.constant 128 : index
    %259 = vector.load %arg16[%c0_96, %c128_97] : memref<8x768xf32, #tpu.memory_space<vmem>>, vector<8x512xf32>
    tpu.vector_store %arg16[%c0_96, %c128_97], %257 {strides = array<i32>} : memref<8x768xf32, #tpu.memory_space<vmem>>, vector<8x512xf32>,
    %260 = tpu.iota {dimensions = array<i32: 1>} : vector<1x512xi32>
    %c15_i32_98 = arith.constant 15 : i32
    %261 = vector.broadcast %c15_i32_98 : i32 to vector<1x512xi32>
    %262 = arith.andi %260, %261 : vector<1x512xi32>
    %c4_i32_99 = arith.constant 4 : i32
    %263 = vector.broadcast %c4_i32_99 : i32 to vector<1x512xi32>
    %264 = arith.shrsi %260, %263 : vector<1x512xi32>
    %c15_i32_100 = arith.constant 15 : i32
    %265 = vector.broadcast %c15_i32_100 : i32 to vector<1x512xi32>
    %266 = arith.andi %264, %265 : vector<1x512xi32>
    %c0_101 = arith.constant 0 : index
    %c111_102 = arith.constant 111 : index
    %267 = vector.load %arg16[%c0_101, %c111_102] : memref<8x768xf32, #tpu.memory_space<vmem>>, vector<8x512xf32>
    %c-1_i32_103 = arith.constant -1 : i32
    %268 = vector.broadcast %c-1_i32_103 : i32 to vector<1x512xi32>
    %269 = arith.addi %266, %268 : vector<1x512xi32>
    %c0_i32_104 = arith.constant 0 : i32
    %270 = vector.broadcast %c0_i32_104 : i32 to vector<1x512xi32>
    %271 = arith.cmpi sge, %269, %270 : vector<1x512xi32>
    %c-1_i32_105 = arith.constant -1 : i32
    %272 = vector.broadcast %c-1_i32_105 : i32 to vector<1x512xi32>
    %273 = arith.addi %266, %272 : vector<1x512xi32>
    %c16_i32_106 = arith.constant 16 : i32
    %274 = vector.broadcast %c16_i32_106 : i32 to vector<1x512xi32>
    %275 = arith.cmpi slt, %273, %274 : vector<1x512xi32>
    %276 = arith.andi %271, %275 : vector<1x512xi1>
    %c-1_i32_107 = arith.constant -1 : i32
    %277 = vector.broadcast %c-1_i32_107 : i32 to vector<1x512xi32>
    %278 = arith.addi %262, %277 : vector<1x512xi32>
    %c0_i32_108 = arith.constant 0 : i32
    %279 = vector.broadcast %c0_i32_108 : i32 to vector<1x512xi32>
    %280 = arith.cmpi sge, %278, %279 : vector<1x512xi32>
    %281 = arith.andi %276, %280 : vector<1x512xi1>
    %c-1_i32_109 = arith.constant -1 : i32
    %282 = vector.broadcast %c-1_i32_109 : i32 to vector<1x512xi32>
    %283 = arith.addi %262, %282 : vector<1x512xi32>
    %c16_i32_110 = arith.constant 16 : i32
    %284 = vector.broadcast %c16_i32_110 : i32 to vector<1x512xi32>
    %285 = arith.cmpi slt, %283, %284 : vector<1x512xi32>
    %286 = arith.andi %281, %285 : vector<1x512xi1>
    %cst_111 = arith.constant 0.000000e+00 : f32
    %287 = vector.shape_cast %286 : vector<1x512xi1> to vector<1x512xi1>
    %288 = vector.broadcast %287 : vector<1x512xi1> to vector<8x512xi1>
    %289 = vector.broadcast %cst_111 : f32 to vector<8x512xf32>
    %290 = arith.select %288, %267, %289 : vector<8x512xi1>, vector<8x512xf32>
    %291 = arith.maximumf %257, %290 : vector<8x512xf32>
    %c0_112 = arith.constant 0 : index
    %c112_113 = arith.constant 112 : index
    %292 = vector.load %arg16[%c0_112, %c112_113] : memref<8x768xf32, #tpu.memory_space<vmem>>, vector<8x512xf32>
    %c-1_i32_114 = arith.constant -1 : i32
    %293 = vector.broadcast %c-1_i32_114 : i32 to vector<1x512xi32>
    %294 = arith.addi %266, %293 : vector<1x512xi32>
    %c0_i32_115 = arith.constant 0 : i32
    %295 = vector.broadcast %c0_i32_115 : i32 to vector<1x512xi32>
    %296 = arith.cmpi sge, %294, %295 : vector<1x512xi32>
    %c-1_i32_116 = arith.constant -1 : i32
    %297 = vector.broadcast %c-1_i32_116 : i32 to vector<1x512xi32>
    %298 = arith.addi %266, %297 : vector<1x512xi32>
    %c16_i32_117 = arith.constant 16 : i32
    %299 = vector.broadcast %c16_i32_117 : i32 to vector<1x512xi32>
    %300 = arith.cmpi slt, %298, %299 : vector<1x512xi32>
    %301 = arith.andi %296, %300 : vector<1x512xi1>
    %c0_i32_118 = arith.constant 0 : i32
    %302 = vector.broadcast %c0_i32_118 : i32 to vector<1x512xi32>
    %303 = arith.addi %262, %302 : vector<1x512xi32>
    %c0_i32_119 = arith.constant 0 : i32
    %304 = vector.broadcast %c0_i32_119 : i32 to vector<1x512xi32>
    %305 = arith.cmpi sge, %303, %304 : vector<1x512xi32>
    %306 = arith.andi %301, %305 : vector<1x512xi1>
    %c0_i32_120 = arith.constant 0 : i32
    %307 = vector.broadcast %c0_i32_120 : i32 to vector<1x512xi32>
    %308 = arith.addi %262, %307 : vector<1x512xi32>
    %c16_i32_121 = arith.constant 16 : i32
    %309 = vector.broadcast %c16_i32_121 : i32 to vector<1x512xi32>
    %310 = arith.cmpi slt, %308, %309 : vector<1x512xi32>
    %311 = arith.andi %306, %310 : vector<1x512xi1>
    %cst_122 = arith.constant 0.000000e+00 : f32
    %312 = vector.shape_cast %311 : vector<1x512xi1> to vector<1x512xi1>
    %313 = vector.broadcast %312 : vector<1x512xi1> to vector<8x512xi1>
    %314 = vector.broadcast %cst_122 : f32 to vector<8x512xf32>
    %315 = arith.select %313, %292, %314 : vector<8x512xi1>, vector<8x512xf32>
    %316 = arith.maximumf %291, %315 : vector<8x512xf32>
    %c0_123 = arith.constant 0 : index
    %c113_124 = arith.constant 113 : index
    %317 = vector.load %arg16[%c0_123, %c113_124] : memref<8x768xf32, #tpu.memory_space<vmem>>, vector<8x512xf32>
    %c-1_i32_125 = arith.constant -1 : i32
    %318 = vector.broadcast %c-1_i32_125 : i32 to vector<1x512xi32>
    %319 = arith.addi %266, %318 : vector<1x512xi32>
    %c0_i32_126 = arith.constant 0 : i32
    %320 = vector.broadcast %c0_i32_126 : i32 to vector<1x512xi32>
    %321 = arith.cmpi sge, %319, %320 : vector<1x512xi32>
    %c-1_i32_127 = arith.constant -1 : i32
    %322 = vector.broadcast %c-1_i32_127 : i32 to vector<1x512xi32>
    %323 = arith.addi %266, %322 : vector<1x512xi32>
    %c16_i32_128 = arith.constant 16 : i32
    %324 = vector.broadcast %c16_i32_128 : i32 to vector<1x512xi32>
    %325 = arith.cmpi slt, %323, %324 : vector<1x512xi32>
    %326 = arith.andi %321, %325 : vector<1x512xi1>
    %c1_i32_129 = arith.constant 1 : i32
    %327 = vector.broadcast %c1_i32_129 : i32 to vector<1x512xi32>
    %328 = arith.addi %262, %327 : vector<1x512xi32>
    %c0_i32_130 = arith.constant 0 : i32
    %329 = vector.broadcast %c0_i32_130 : i32 to vector<1x512xi32>
    %330 = arith.cmpi sge, %328, %329 : vector<1x512xi32>
    %331 = arith.andi %326, %330 : vector<1x512xi1>
    %c1_i32_131 = arith.constant 1 : i32
    %332 = vector.broadcast %c1_i32_131 : i32 to vector<1x512xi32>
    %333 = arith.addi %262, %332 : vector<1x512xi32>
    %c16_i32_132 = arith.constant 16 : i32
    %334 = vector.broadcast %c16_i32_132 : i32 to vector<1x512xi32>
    %335 = arith.cmpi slt, %333, %334 : vector<1x512xi32>
    %336 = arith.andi %331, %335 : vector<1x512xi1>
    %cst_133 = arith.constant 0.000000e+00 : f32
    %337 = vector.shape_cast %336 : vector<1x512xi1> to vector<1x512xi1>
    %338 = vector.broadcast %337 : vector<1x512xi1> to vector<8x512xi1>
    %339 = vector.broadcast %cst_133 : f32 to vector<8x512xf32>
    %340 = arith.select %338, %317, %339 : vector<8x512xi1>, vector<8x512xf32>
    %341 = arith.maximumf %316, %340 : vector<8x512xf32>
    %c0_134 = arith.constant 0 : index
    %c127_135 = arith.constant 127 : index
    %342 = vector.load %arg16[%c0_134, %c127_135] : memref<8x768xf32, #tpu.memory_space<vmem>>, vector<8x512xf32>
    %c0_i32_136 = arith.constant 0 : i32
    %343 = vector.broadcast %c0_i32_136 : i32 to vector<1x512xi32>
    %344 = arith.addi %266, %343 : vector<1x512xi32>
    %c0_i32_137 = arith.constant 0 : i32
    %345 = vector.broadcast %c0_i32_137 : i32 to vector<1x512xi32>
    %346 = arith.cmpi sge, %344, %345 : vector<1x512xi32>
    %c0_i32_138 = arith.constant 0 : i32
    %347 = vector.broadcast %c0_i32_138 : i32 to vector<1x512xi32>
    %348 = arith.addi %266, %347 : vector<1x512xi32>
    %c16_i32_139 = arith.constant 16 : i32
    %349 = vector.broadcast %c16_i32_139 : i32 to vector<1x512xi32>
    %350 = arith.cmpi slt, %348, %349 : vector<1x512xi32>
    %351 = arith.andi %346, %350 : vector<1x512xi1>
    %c-1_i32_140 = arith.constant -1 : i32
    %352 = vector.broadcast %c-1_i32_140 : i32 to vector<1x512xi32>
    %353 = arith.addi %262, %352 : vector<1x512xi32>
    %c0_i32_141 = arith.constant 0 : i32
    %354 = vector.broadcast %c0_i32_141 : i32 to vector<1x512xi32>
    %355 = arith.cmpi sge, %353, %354 : vector<1x512xi32>
    %356 = arith.andi %351, %355 : vector<1x512xi1>
    %c-1_i32_142 = arith.constant -1 : i32
    %357 = vector.broadcast %c-1_i32_142 : i32 to vector<1x512xi32>
    %358 = arith.addi %262, %357 : vector<1x512xi32>
    %c16_i32_143 = arith.constant 16 : i32
    %359 = vector.broadcast %c16_i32_143 : i32 to vector<1x512xi32>
    %360 = arith.cmpi slt, %358, %359 : vector<1x512xi32>
    %361 = arith.andi %356, %360 : vector<1x512xi1>
    %cst_144 = arith.constant 0.000000e+00 : f32
    %362 = vector.shape_cast %361 : vector<1x512xi1> to vector<1x512xi1>
    %363 = vector.broadcast %362 : vector<1x512xi1> to vector<8x512xi1>
    %364 = vector.broadcast %cst_144 : f32 to vector<8x512xf32>
    %365 = arith.select %363, %342, %364 : vector<8x512xi1>, vector<8x512xf32>
    %366 = arith.maximumf %341, %365 : vector<8x512xf32>
    %c0_145 = arith.constant 0 : index
    %c128_146 = arith.constant 128 : index
    %367 = vector.load %arg16[%c0_145, %c128_146] : memref<8x768xf32, #tpu.memory_space<vmem>>, vector<8x512xf32>
    %c0_i32_147 = arith.constant 0 : i32
    %368 = vector.broadcast %c0_i32_147 : i32 to vector<1x512xi32>
    %369 = arith.addi %266, %368 : vector<1x512xi32>
    %c0_i32_148 = arith.constant 0 : i32
    %370 = vector.broadcast %c0_i32_148 : i32 to vector<1x512xi32>
    %371 = arith.cmpi sge, %369, %370 : vector<1x512xi32>
    %c0_i32_149 = arith.constant 0 : i32
    %372 = vector.broadcast %c0_i32_149 : i32 to vector<1x512xi32>
    %373 = arith.addi %266, %372 : vector<1x512xi32>
    %c16_i32_150 = arith.constant 16 : i32
    %374 = vector.broadcast %c16_i32_150 : i32 to vector<1x512xi32>
    %375 = arith.cmpi slt, %373, %374 : vector<1x512xi32>
    %376 = arith.andi %371, %375 : vector<1x512xi1>
    %c0_i32_151 = arith.constant 0 : i32
    %377 = vector.broadcast %c0_i32_151 : i32 to vector<1x512xi32>
    %378 = arith.addi %262, %377 : vector<1x512xi32>
    %c0_i32_152 = arith.constant 0 : i32
    %379 = vector.broadcast %c0_i32_152 : i32 to vector<1x512xi32>
    %380 = arith.cmpi sge, %378, %379 : vector<1x512xi32>
    %381 = arith.andi %376, %380 : vector<1x512xi1>
    %c0_i32_153 = arith.constant 0 : i32
    %382 = vector.broadcast %c0_i32_153 : i32 to vector<1x512xi32>
    %383 = arith.addi %262, %382 : vector<1x512xi32>
    %c16_i32_154 = arith.constant 16 : i32
    %384 = vector.broadcast %c16_i32_154 : i32 to vector<1x512xi32>
    %385 = arith.cmpi slt, %383, %384 : vector<1x512xi32>
    %386 = arith.andi %381, %385 : vector<1x512xi1>
    %cst_155 = arith.constant 0.000000e+00 : f32
    %387 = vector.shape_cast %386 : vector<1x512xi1> to vector<1x512xi1>
    %388 = vector.broadcast %387 : vector<1x512xi1> to vector<8x512xi1>
    %389 = vector.broadcast %cst_155 : f32 to vector<8x512xf32>
    %390 = arith.select %388, %367, %389 : vector<8x512xi1>, vector<8x512xf32>
    %391 = arith.maximumf %366, %390 : vector<8x512xf32>
    %c0_156 = arith.constant 0 : index
    %c129_157 = arith.constant 129 : index
    %392 = vector.load %arg16[%c0_156, %c129_157] : memref<8x768xf32, #tpu.memory_space<vmem>>, vector<8x512xf32>
    %c0_i32_158 = arith.constant 0 : i32
    %393 = vector.broadcast %c0_i32_158 : i32 to vector<1x512xi32>
    %394 = arith.addi %266, %393 : vector<1x512xi32>
    %c0_i32_159 = arith.constant 0 : i32
    %395 = vector.broadcast %c0_i32_159 : i32 to vector<1x512xi32>
    %396 = arith.cmpi sge, %394, %395 : vector<1x512xi32>
    %c0_i32_160 = arith.constant 0 : i32
    %397 = vector.broadcast %c0_i32_160 : i32 to vector<1x512xi32>
    %398 = arith.addi %266, %397 : vector<1x512xi32>
    %c16_i32_161 = arith.constant 16 : i32
    %399 = vector.broadcast %c16_i32_161 : i32 to vector<1x512xi32>
    %400 = arith.cmpi slt, %398, %399 : vector<1x512xi32>
    %401 = arith.andi %396, %400 : vector<1x512xi1>
    %c1_i32_162 = arith.constant 1 : i32
    %402 = vector.broadcast %c1_i32_162 : i32 to vector<1x512xi32>
    %403 = arith.addi %262, %402 : vector<1x512xi32>
    %c0_i32_163 = arith.constant 0 : i32
    %404 = vector.broadcast %c0_i32_163 : i32 to vector<1x512xi32>
    %405 = arith.cmpi sge, %403, %404 : vector<1x512xi32>
    %406 = arith.andi %401, %405 : vector<1x512xi1>
    %c1_i32_164 = arith.constant 1 : i32
    %407 = vector.broadcast %c1_i32_164 : i32 to vector<1x512xi32>
    %408 = arith.addi %262, %407 : vector<1x512xi32>
    %c16_i32_165 = arith.constant 16 : i32
    %409 = vector.broadcast %c16_i32_165 : i32 to vector<1x512xi32>
    %410 = arith.cmpi slt, %408, %409 : vector<1x512xi32>
    %411 = arith.andi %406, %410 : vector<1x512xi1>
    %cst_166 = arith.constant 0.000000e+00 : f32
    %412 = vector.shape_cast %411 : vector<1x512xi1> to vector<1x512xi1>
    %413 = vector.broadcast %412 : vector<1x512xi1> to vector<8x512xi1>
    %414 = vector.broadcast %cst_166 : f32 to vector<8x512xf32>
    %415 = arith.select %413, %392, %414 : vector<8x512xi1>, vector<8x512xf32>
    %416 = arith.maximumf %391, %415 : vector<8x512xf32>
    %c0_167 = arith.constant 0 : index
    %c143_168 = arith.constant 143 : index
    %417 = vector.load %arg16[%c0_167, %c143_168] : memref<8x768xf32, #tpu.memory_space<vmem>>, vector<8x512xf32>
    %c1_i32_169 = arith.constant 1 : i32
    %418 = vector.broadcast %c1_i32_169 : i32 to vector<1x512xi32>
    %419 = arith.addi %266, %418 : vector<1x512xi32>
    %c0_i32_170 = arith.constant 0 : i32
    %420 = vector.broadcast %c0_i32_170 : i32 to vector<1x512xi32>
    %421 = arith.cmpi sge, %419, %420 : vector<1x512xi32>
    %c1_i32_171 = arith.constant 1 : i32
    %422 = vector.broadcast %c1_i32_171 : i32 to vector<1x512xi32>
    %423 = arith.addi %266, %422 : vector<1x512xi32>
    %c16_i32_172 = arith.constant 16 : i32
    %424 = vector.broadcast %c16_i32_172 : i32 to vector<1x512xi32>
    %425 = arith.cmpi slt, %423, %424 : vector<1x512xi32>
    %426 = arith.andi %421, %425 : vector<1x512xi1>
    %c-1_i32_173 = arith.constant -1 : i32
    %427 = vector.broadcast %c-1_i32_173 : i32 to vector<1x512xi32>
    %428 = arith.addi %262, %427 : vector<1x512xi32>
    %c0_i32_174 = arith.constant 0 : i32
    %429 = vector.broadcast %c0_i32_174 : i32 to vector<1x512xi32>
    %430 = arith.cmpi sge, %428, %429 : vector<1x512xi32>
    %431 = arith.andi %426, %430 : vector<1x512xi1>
    %c-1_i32_175 = arith.constant -1 : i32
    %432 = vector.broadcast %c-1_i32_175 : i32 to vector<1x512xi32>
    %433 = arith.addi %262, %432 : vector<1x512xi32>
    %c16_i32_176 = arith.constant 16 : i32
    %434 = vector.broadcast %c16_i32_176 : i32 to vector<1x512xi32>
    %435 = arith.cmpi slt, %433, %434 : vector<1x512xi32>
    %436 = arith.andi %431, %435 : vector<1x512xi1>
    %cst_177 = arith.constant 0.000000e+00 : f32
    %437 = vector.shape_cast %436 : vector<1x512xi1> to vector<1x512xi1>
    %438 = vector.broadcast %437 : vector<1x512xi1> to vector<8x512xi1>
    %439 = vector.broadcast %cst_177 : f32 to vector<8x512xf32>
    %440 = arith.select %438, %417, %439 : vector<8x512xi1>, vector<8x512xf32>
    %441 = arith.maximumf %416, %440 : vector<8x512xf32>
    %c0_178 = arith.constant 0 : index
    %c144_179 = arith.constant 144 : index
    %442 = vector.load %arg16[%c0_178, %c144_179] : memref<8x768xf32, #tpu.memory_space<vmem>>, vector<8x512xf32>
    %c1_i32_180 = arith.constant 1 : i32
    %443 = vector.broadcast %c1_i32_180 : i32 to vector<1x512xi32>
    %444 = arith.addi %266, %443 : vector<1x512xi32>
    %c0_i32_181 = arith.constant 0 : i32
    %445 = vector.broadcast %c0_i32_181 : i32 to vector<1x512xi32>
    %446 = arith.cmpi sge, %444, %445 : vector<1x512xi32>
    %c1_i32_182 = arith.constant 1 : i32
    %447 = vector.broadcast %c1_i32_182 : i32 to vector<1x512xi32>
    %448 = arith.addi %266, %447 : vector<1x512xi32>
    %c16_i32_183 = arith.constant 16 : i32
    %449 = vector.broadcast %c16_i32_183 : i32 to vector<1x512xi32>
    %450 = arith.cmpi slt, %448, %449 : vector<1x512xi32>
    %451 = arith.andi %446, %450 : vector<1x512xi1>
    %c0_i32_184 = arith.constant 0 : i32
    %452 = vector.broadcast %c0_i32_184 : i32 to vector<1x512xi32>
    %453 = arith.addi %262, %452 : vector<1x512xi32>
    %c0_i32_185 = arith.constant 0 : i32
    %454 = vector.broadcast %c0_i32_185 : i32 to vector<1x512xi32>
    %455 = arith.cmpi sge, %453, %454 : vector<1x512xi32>
    %456 = arith.andi %451, %455 : vector<1x512xi1>
    %c0_i32_186 = arith.constant 0 : i32
    %457 = vector.broadcast %c0_i32_186 : i32 to vector<1x512xi32>
    %458 = arith.addi %262, %457 : vector<1x512xi32>
    %c16_i32_187 = arith.constant 16 : i32
    %459 = vector.broadcast %c16_i32_187 : i32 to vector<1x512xi32>
    %460 = arith.cmpi slt, %458, %459 : vector<1x512xi32>
    %461 = arith.andi %456, %460 : vector<1x512xi1>
    %cst_188 = arith.constant 0.000000e+00 : f32
    %462 = vector.shape_cast %461 : vector<1x512xi1> to vector<1x512xi1>
    %463 = vector.broadcast %462 : vector<1x512xi1> to vector<8x512xi1>
    %464 = vector.broadcast %cst_188 : f32 to vector<8x512xf32>
    %465 = arith.select %463, %442, %464 : vector<8x512xi1>, vector<8x512xf32>
    %466 = arith.maximumf %441, %465 : vector<8x512xf32>
    %c0_189 = arith.constant 0 : index
    %c145_190 = arith.constant 145 : index
    %467 = vector.load %arg16[%c0_189, %c145_190] : memref<8x768xf32, #tpu.memory_space<vmem>>, vector<8x512xf32>
    %c1_i32_191 = arith.constant 1 : i32
    %468 = vector.broadcast %c1_i32_191 : i32 to vector<1x512xi32>
    %469 = arith.addi %266, %468 : vector<1x512xi32>
    %c0_i32_192 = arith.constant 0 : i32
    %470 = vector.broadcast %c0_i32_192 : i32 to vector<1x512xi32>
    %471 = arith.cmpi sge, %469, %470 : vector<1x512xi32>
    %c1_i32_193 = arith.constant 1 : i32
    %472 = vector.broadcast %c1_i32_193 : i32 to vector<1x512xi32>
    %473 = arith.addi %266, %472 : vector<1x512xi32>
    %c16_i32_194 = arith.constant 16 : i32
    %474 = vector.broadcast %c16_i32_194 : i32 to vector<1x512xi32>
    %475 = arith.cmpi slt, %473, %474 : vector<1x512xi32>
    %476 = arith.andi %471, %475 : vector<1x512xi1>
    %c1_i32_195 = arith.constant 1 : i32
    %477 = vector.broadcast %c1_i32_195 : i32 to vector<1x512xi32>
    %478 = arith.addi %262, %477 : vector<1x512xi32>
    %c0_i32_196 = arith.constant 0 : i32
    %479 = vector.broadcast %c0_i32_196 : i32 to vector<1x512xi32>
    %480 = arith.cmpi sge, %478, %479 : vector<1x512xi32>
    %481 = arith.andi %476, %480 : vector<1x512xi1>
    %c1_i32_197 = arith.constant 1 : i32
    %482 = vector.broadcast %c1_i32_197 : i32 to vector<1x512xi32>
    %483 = arith.addi %262, %482 : vector<1x512xi32>
    %c16_i32_198 = arith.constant 16 : i32
    %484 = vector.broadcast %c16_i32_198 : i32 to vector<1x512xi32>
    %485 = arith.cmpi slt, %483, %484 : vector<1x512xi32>
    %486 = arith.andi %481, %485 : vector<1x512xi1>
    %cst_199 = arith.constant 0.000000e+00 : f32
    %487 = vector.shape_cast %486 : vector<1x512xi1> to vector<1x512xi1>
    %488 = vector.broadcast %487 : vector<1x512xi1> to vector<8x512xi1>
    %489 = vector.broadcast %cst_199 : f32 to vector<8x512xf32>
    %490 = arith.select %488, %467, %489 : vector<8x512xi1>, vector<8x512xf32>
    %491 = arith.maximumf %466, %490 : vector<8x512xf32>
    %cst_200 = arith.constant dense<0.000000e+00> : vector<8x128xf32>
    %492 = tpu.matmul %491, %258, %cst_200 {dimension_numbers = #tpu.dot_dimension_numbers<[1], [0], [0], [1], [0, 0, 1, 1], [], []>} : vector<8x512xf32>, vector<512x128xf32>, vector<8x128xf32> -> vector<8x128xf32>
    %c0_201 = arith.constant 0 : index
    %c0_202 = arith.constant 0 : index
    %493 = vector.load %arg3[%c0_201, %c0_202] : memref<8x72xf32, #tpu.memory_space<vmem>>, vector<8x72xf32>
    %c0_203 = arith.constant 0 : index
    %c0_204 = arith.constant 0 : index
    %494 = vector.load %arg4[%c0_203, %c0_204] : memref<8x1xf32, #tpu.memory_space<vmem>>, vector<8x1xf32>
    %495 = vector.shape_cast %494 : vector<8x1xf32> to vector<8x1xf32>
    %496 = vector.broadcast %495 : vector<8x1xf32> to vector<8x128xf32>
    %c0_205 = arith.constant 0 : index
    %c128_206 = arith.constant 128 : index
    %497 = vector.load %arg16[%c0_205, %c128_206] : memref<8x768xf32, #tpu.memory_space<vmem>>, vector<8x128xf32>
    tpu.vector_store %arg16[%c0_205, %c128_206], %492 {strides = array<i32>} : memref<8x768xf32, #tpu.memory_space<vmem>>, vector<8x128xf32>,
    %498 = tpu.iota {dimensions = array<i32: 1>} : vector<1x128xi32>
    %c7_i32 = arith.constant 7 : i32
    %499 = vector.broadcast %c7_i32 : i32 to vector<1x128xi32>
    %500 = arith.andi %498, %499 : vector<1x128xi32>
    %c3_i32 = arith.constant 3 : i32
    %501 = vector.broadcast %c3_i32 : i32 to vector<1x128xi32>
    %502 = arith.shrsi %498, %501 : vector<1x128xi32>
    %c7_i32_207 = arith.constant 7 : i32
    %503 = vector.broadcast %c7_i32_207 : i32 to vector<1x128xi32>
    %504 = arith.andi %502, %503 : vector<1x128xi32>
    %c0_208 = arith.constant 0 : index
    %c119 = arith.constant 119 : index
    %505 = vector.load %arg16[%c0_208, %c119] : memref<8x768xf32, #tpu.memory_space<vmem>>, vector<8x128xf32>
    %c-1_i32_209 = arith.constant -1 : i32
    %506 = vector.broadcast %c-1_i32_209 : i32 to vector<1x128xi32>
    %507 = arith.addi %504, %506 : vector<1x128xi32>
    %c0_i32_210 = arith.constant 0 : i32
    %508 = vector.broadcast %c0_i32_210 : i32 to vector<1x128xi32>
    %509 = arith.cmpi sge, %507, %508 : vector<1x128xi32>
    %c-1_i32_211 = arith.constant -1 : i32
    %510 = vector.broadcast %c-1_i32_211 : i32 to vector<1x128xi32>
    %511 = arith.addi %504, %510 : vector<1x128xi32>
    %c8_i32 = arith.constant 8 : i32
    %512 = vector.broadcast %c8_i32 : i32 to vector<1x128xi32>
    %513 = arith.cmpi slt, %511, %512 : vector<1x128xi32>
    %514 = arith.andi %509, %513 : vector<1x128xi1>
    %c-1_i32_212 = arith.constant -1 : i32
    %515 = vector.broadcast %c-1_i32_212 : i32 to vector<1x128xi32>
    %516 = arith.addi %500, %515 : vector<1x128xi32>
    %c0_i32_213 = arith.constant 0 : i32
    %517 = vector.broadcast %c0_i32_213 : i32 to vector<1x128xi32>
    %518 = arith.cmpi sge, %516, %517 : vector<1x128xi32>
    %519 = arith.andi %514, %518 : vector<1x128xi1>
    %c-1_i32_214 = arith.constant -1 : i32
    %520 = vector.broadcast %c-1_i32_214 : i32 to vector<1x128xi32>
    %521 = arith.addi %500, %520 : vector<1x128xi32>
    %c8_i32_215 = arith.constant 8 : i32
    %522 = vector.broadcast %c8_i32_215 : i32 to vector<1x128xi32>
    %523 = arith.cmpi slt, %521, %522 : vector<1x128xi32>
    %524 = arith.andi %519, %523 : vector<1x128xi1>
    %cst_216 = arith.constant 0.000000e+00 : f32
    %525 = vector.shape_cast %524 : vector<1x128xi1> to vector<1x128xi1>
    %526 = vector.broadcast %525 : vector<1x128xi1> to vector<8x128xi1>
    %527 = vector.broadcast %cst_216 : f32 to vector<8x128xf32>
    %528 = arith.select %526, %505, %527 : vector<8x128xi1>, vector<8x128xf32>
    %529 = vector.extract_strided_slice %493 {offsets = [0, 0], sizes = [8, 1], strides = [1, 1]} : vector<8x72xf32> to vector<8x1xf32>
    %530 = vector.extract_strided_slice %528 {offsets = [0, 0], sizes = [1, 128], strides = [1, 1]} : vector<8x128xf32> to vector<1x128xf32>
    %531 = vector.broadcast %529 : vector<8x1xf32> to vector<8x128xf32>
    %532 = vector.broadcast %530 : vector<1x128xf32> to vector<8x128xf32>
    %533 = arith.mulf %531, %532 : vector<8x128xf32>
    %534 = arith.addf %496, %533 : vector<8x128xf32>
    %535 = vector.extract_strided_slice %493 {offsets = [0, 1], sizes = [8, 1], strides = [1, 1]} : vector<8x72xf32> to vector<8x1xf32>
    %536 = vector.extract_strided_slice %528 {offsets = [1, 0], sizes = [1, 128], strides = [1, 1]} : vector<8x128xf32> to vector<1x128xf32>
    %537 = vector.broadcast %535 : vector<8x1xf32> to vector<8x128xf32>
    %538 = vector.broadcast %536 : vector<1x128xf32> to vector<8x128xf32>
    %539 = arith.mulf %537, %538 : vector<8x128xf32>
    %540 = arith.addf %534, %539 : vector<8x128xf32>
    %541 = vector.extract_strided_slice %493 {offsets = [0, 2], sizes = [8, 1], strides = [1, 1]} : vector<8x72xf32> to vector<8x1xf32>
    %542 = vector.extract_strided_slice %528 {offsets = [2, 0], sizes = [1, 128], strides = [1, 1]} : vector<8x128xf32> to vector<1x128xf32>
    %543 = vector.broadcast %541 : vector<8x1xf32> to vector<8x128xf32>
    %544 = vector.broadcast %542 : vector<1x128xf32> to vector<8x128xf32>
    %545 = arith.mulf %543, %544 : vector<8x128xf32>
    %546 = arith.addf %540, %545 : vector<8x128xf32>
    %547 = vector.extract_strided_slice %493 {offsets = [0, 3], sizes = [8, 1], strides = [1, 1]} : vector<8x72xf32> to vector<8x1xf32>
    %548 = vector.extract_strided_slice %528 {offsets = [3, 0], sizes = [1, 128], strides = [1, 1]} : vector<8x128xf32> to vector<1x128xf32>
    %549 = vector.broadcast %547 : vector<8x1xf32> to vector<8x128xf32>
    %550 = vector.broadcast %548 : vector<1x128xf32> to vector<8x128xf32>
    %551 = arith.mulf %549, %550 : vector<8x128xf32>
    %552 = arith.addf %546, %551 : vector<8x128xf32>
    %553 = vector.extract_strided_slice %493 {offsets = [0, 4], sizes = [8, 1], strides = [1, 1]} : vector<8x72xf32> to vector<8x1xf32>
    %554 = vector.extract_strided_slice %528 {offsets = [4, 0], sizes = [1, 128], strides = [1, 1]} : vector<8x128xf32> to vector<1x128xf32>
    %555 = vector.broadcast %553 : vector<8x1xf32> to vector<8x128xf32>
    %556 = vector.broadcast %554 : vector<1x128xf32> to vector<8x128xf32>
    %557 = arith.mulf %555, %556 : vector<8x128xf32>
    %558 = arith.addf %552, %557 : vector<8x128xf32>
    %559 = vector.extract_strided_slice %493 {offsets = [0, 5], sizes = [8, 1], strides = [1, 1]} : vector<8x72xf32> to vector<8x1xf32>
    %560 = vector.extract_strided_slice %528 {offsets = [5, 0], sizes = [1, 128], strides = [1, 1]} : vector<8x128xf32> to vector<1x128xf32>
    %561 = vector.broadcast %559 : vector<8x1xf32> to vector<8x128xf32>
    %562 = vector.broadcast %560 : vector<1x128xf32> to vector<8x128xf32>
    %563 = arith.mulf %561, %562 : vector<8x128xf32>
    %564 = arith.addf %558, %563 : vector<8x128xf32>
    %565 = vector.extract_strided_slice %493 {offsets = [0, 6], sizes = [8, 1], strides = [1, 1]} : vector<8x72xf32> to vector<8x1xf32>
    %566 = vector.extract_strided_slice %528 {offsets = [6, 0], sizes = [1, 128], strides = [1, 1]} : vector<8x128xf32> to vector<1x128xf32>
    %567 = vector.broadcast %565 : vector<8x1xf32> to vector<8x128xf32>
    %568 = vector.broadcast %566 : vector<1x128xf32> to vector<8x128xf32>
    %569 = arith.mulf %567, %568 : vector<8x128xf32>
    %570 = arith.addf %564, %569 : vector<8x128xf32>
    %571 = vector.extract_strided_slice %493 {offsets = [0, 7], sizes = [8, 1], strides = [1, 1]} : vector<8x72xf32> to vector<8x1xf32>
    %572 = vector.extract_strided_slice %528 {offsets = [7, 0], sizes = [1, 128], strides = [1, 1]} : vector<8x128xf32> to vector<1x128xf32>
    %573 = vector.broadcast %571 : vector<8x1xf32> to vector<8x128xf32>
    %574 = vector.broadcast %572 : vector<1x128xf32> to vector<8x128xf32>
    %575 = arith.mulf %573, %574 : vector<8x128xf32>
    %576 = arith.addf %570, %575 : vector<8x128xf32>
    %c0_217 = arith.constant 0 : index
    %c120 = arith.constant 120 : index
    %577 = vector.load %arg16[%c0_217, %c120] : memref<8x768xf32, #tpu.memory_space<vmem>>, vector<8x128xf32>
    %c-1_i32_218 = arith.constant -1 : i32
    %578 = vector.broadcast %c-1_i32_218 : i32 to vector<1x128xi32>
    %579 = arith.addi %504, %578 : vector<1x128xi32>
    %c0_i32_219 = arith.constant 0 : i32
    %580 = vector.broadcast %c0_i32_219 : i32 to vector<1x128xi32>
    %581 = arith.cmpi sge, %579, %580 : vector<1x128xi32>
    %c-1_i32_220 = arith.constant -1 : i32
    %582 = vector.broadcast %c-1_i32_220 : i32 to vector<1x128xi32>
    %583 = arith.addi %504, %582 : vector<1x128xi32>
    %c8_i32_221 = arith.constant 8 : i32
    %584 = vector.broadcast %c8_i32_221 : i32 to vector<1x128xi32>
    %585 = arith.cmpi slt, %583, %584 : vector<1x128xi32>
    %586 = arith.andi %581, %585 : vector<1x128xi1>
    %c0_i32_222 = arith.constant 0 : i32
    %587 = vector.broadcast %c0_i32_222 : i32 to vector<1x128xi32>
    %588 = arith.addi %500, %587 : vector<1x128xi32>
    %c0_i32_223 = arith.constant 0 : i32
    %589 = vector.broadcast %c0_i32_223 : i32 to vector<1x128xi32>
    %590 = arith.cmpi sge, %588, %589 : vector<1x128xi32>
    %591 = arith.andi %586, %590 : vector<1x128xi1>
    %c0_i32_224 = arith.constant 0 : i32
    %592 = vector.broadcast %c0_i32_224 : i32 to vector<1x128xi32>
    %593 = arith.addi %500, %592 : vector<1x128xi32>
    %c8_i32_225 = arith.constant 8 : i32
    %594 = vector.broadcast %c8_i32_225 : i32 to vector<1x128xi32>
    %595 = arith.cmpi slt, %593, %594 : vector<1x128xi32>
    %596 = arith.andi %591, %595 : vector<1x128xi1>
    %cst_226 = arith.constant 0.000000e+00 : f32
    %597 = vector.shape_cast %596 : vector<1x128xi1> to vector<1x128xi1>
    %598 = vector.broadcast %597 : vector<1x128xi1> to vector<8x128xi1>
    %599 = vector.broadcast %cst_226 : f32 to vector<8x128xf32>
    %600 = arith.select %598, %577, %599 : vector<8x128xi1>, vector<8x128xf32>
    %601 = vector.extract_strided_slice %493 {offsets = [0, 8], sizes = [8, 1], strides = [1, 1]} : vector<8x72xf32> to vector<8x1xf32>
    %602 = vector.extract_strided_slice %600 {offsets = [0, 0], sizes = [1, 128], strides = [1, 1]} : vector<8x128xf32> to vector<1x128xf32>
    %603 = vector.broadcast %601 : vector<8x1xf32> to vector<8x128xf32>
    %604 = vector.broadcast %602 : vector<1x128xf32> to vector<8x128xf32>
    %605 = arith.mulf %603, %604 : vector<8x128xf32>
    %606 = arith.addf %576, %605 : vector<8x128xf32>
    %607 = vector.extract_strided_slice %493 {offsets = [0, 9], sizes = [8, 1], strides = [1, 1]} : vector<8x72xf32> to vector<8x1xf32>
    %608 = vector.extract_strided_slice %600 {offsets = [1, 0], sizes = [1, 128], strides = [1, 1]} : vector<8x128xf32> to vector<1x128xf32>
    %609 = vector.broadcast %607 : vector<8x1xf32> to vector<8x128xf32>
    %610 = vector.broadcast %608 : vector<1x128xf32> to vector<8x128xf32>
    %611 = arith.mulf %609, %610 : vector<8x128xf32>
    %612 = arith.addf %606, %611 : vector<8x128xf32>
    %613 = vector.extract_strided_slice %493 {offsets = [0, 10], sizes = [8, 1], strides = [1, 1]} : vector<8x72xf32> to vector<8x1xf32>
    %614 = vector.extract_strided_slice %600 {offsets = [2, 0], sizes = [1, 128], strides = [1, 1]} : vector<8x128xf32> to vector<1x128xf32>
    %615 = vector.broadcast %613 : vector<8x1xf32> to vector<8x128xf32>
    %616 = vector.broadcast %614 : vector<1x128xf32> to vector<8x128xf32>
    %617 = arith.mulf %615, %616 : vector<8x128xf32>
    %618 = arith.addf %612, %617 : vector<8x128xf32>
    %619 = vector.extract_strided_slice %493 {offsets = [0, 11], sizes = [8, 1], strides = [1, 1]} : vector<8x72xf32> to vector<8x1xf32>
    %620 = vector.extract_strided_slice %600 {offsets = [3, 0], sizes = [1, 128], strides = [1, 1]} : vector<8x128xf32> to vector<1x128xf32>
    %621 = vector.broadcast %619 : vector<8x1xf32> to vector<8x128xf32>
    %622 = vector.broadcast %620 : vector<1x128xf32> to vector<8x128xf32>
    %623 = arith.mulf %621, %622 : vector<8x128xf32>
    %624 = arith.addf %618, %623 : vector<8x128xf32>
    %625 = vector.extract_strided_slice %493 {offsets = [0, 12], sizes = [8, 1], strides = [1, 1]} : vector<8x72xf32> to vector<8x1xf32>
    %626 = vector.extract_strided_slice %600 {offsets = [4, 0], sizes = [1, 128], strides = [1, 1]} : vector<8x128xf32> to vector<1x128xf32>
    %627 = vector.broadcast %625 : vector<8x1xf32> to vector<8x128xf32>
    %628 = vector.broadcast %626 : vector<1x128xf32> to vector<8x128xf32>
    %629 = arith.mulf %627, %628 : vector<8x128xf32>
    %630 = arith.addf %624, %629 : vector<8x128xf32>
    %631 = vector.extract_strided_slice %493 {offsets = [0, 13], sizes = [8, 1], strides = [1, 1]} : vector<8x72xf32> to vector<8x1xf32>
    %632 = vector.extract_strided_slice %600 {offsets = [5, 0], sizes = [1, 128], strides = [1, 1]} : vector<8x128xf32> to vector<1x128xf32>
    %633 = vector.broadcast %631 : vector<8x1xf32> to vector<8x128xf32>
    %634 = vector.broadcast %632 : vector<1x128xf32> to vector<8x128xf32>
    %635 = arith.mulf %633, %634 : vector<8x128xf32>
    %636 = arith.addf %630, %635 : vector<8x128xf32>
    %637 = vector.extract_strided_slice %493 {offsets = [0, 14], sizes = [8, 1], strides = [1, 1]} : vector<8x72xf32> to vector<8x1xf32>
    %638 = vector.extract_strided_slice %600 {offsets = [6, 0], sizes = [1, 128], strides = [1, 1]} : vector<8x128xf32> to vector<1x128xf32>
    %639 = vector.broadcast %637 : vector<8x1xf32> to vector<8x128xf32>
    %640 = vector.broadcast %638 : vector<1x128xf32> to vector<8x128xf32>
    %641 = arith.mulf %639, %640 : vector<8x128xf32>
    %642 = arith.addf %636, %641 : vector<8x128xf32>
    %643 = vector.extract_strided_slice %493 {offsets = [0, 15], sizes = [8, 1], strides = [1, 1]} : vector<8x72xf32> to vector<8x1xf32>
    %644 = vector.extract_strided_slice %600 {offsets = [7, 0], sizes = [1, 128], strides = [1, 1]} : vector<8x128xf32> to vector<1x128xf32>
    %645 = vector.broadcast %643 : vector<8x1xf32> to vector<8x128xf32>
    %646 = vector.broadcast %644 : vector<1x128xf32> to vector<8x128xf32>
    %647 = arith.mulf %645, %646 : vector<8x128xf32>
    %648 = arith.addf %642, %647 : vector<8x128xf32>
    %c0_227 = arith.constant 0 : index
    %c121 = arith.constant 121 : index
    %649 = vector.load %arg16[%c0_227, %c121] : memref<8x768xf32, #tpu.memory_space<vmem>>, vector<8x128xf32>
    %c-1_i32_228 = arith.constant -1 : i32
    %650 = vector.broadcast %c-1_i32_228 : i32 to vector<1x128xi32>
    %651 = arith.addi %504, %650 : vector<1x128xi32>
    %c0_i32_229 = arith.constant 0 : i32
    %652 = vector.broadcast %c0_i32_229 : i32 to vector<1x128xi32>
    %653 = arith.cmpi sge, %651, %652 : vector<1x128xi32>
    %c-1_i32_230 = arith.constant -1 : i32
    %654 = vector.broadcast %c-1_i32_230 : i32 to vector<1x128xi32>
    %655 = arith.addi %504, %654 : vector<1x128xi32>
    %c8_i32_231 = arith.constant 8 : i32
    %656 = vector.broadcast %c8_i32_231 : i32 to vector<1x128xi32>
    %657 = arith.cmpi slt, %655, %656 : vector<1x128xi32>
    %658 = arith.andi %653, %657 : vector<1x128xi1>
    %c1_i32_232 = arith.constant 1 : i32
    %659 = vector.broadcast %c1_i32_232 : i32 to vector<1x128xi32>
    %660 = arith.addi %500, %659 : vector<1x128xi32>
    %c0_i32_233 = arith.constant 0 : i32
    %661 = vector.broadcast %c0_i32_233 : i32 to vector<1x128xi32>
    %662 = arith.cmpi sge, %660, %661 : vector<1x128xi32>
    %663 = arith.andi %658, %662 : vector<1x128xi1>
    %c1_i32_234 = arith.constant 1 : i32
    %664 = vector.broadcast %c1_i32_234 : i32 to vector<1x128xi32>
    %665 = arith.addi %500, %664 : vector<1x128xi32>
    %c8_i32_235 = arith.constant 8 : i32
    %666 = vector.broadcast %c8_i32_235 : i32 to vector<1x128xi32>
    %667 = arith.cmpi slt, %665, %666 : vector<1x128xi32>
    %668 = arith.andi %663, %667 : vector<1x128xi1>
    %cst_236 = arith.constant 0.000000e+00 : f32
    %669 = vector.shape_cast %668 : vector<1x128xi1> to vector<1x128xi1>
    %670 = vector.broadcast %669 : vector<1x128xi1> to vector<8x128xi1>
    %671 = vector.broadcast %cst_236 : f32 to vector<8x128xf32>
    %672 = arith.select %670, %649, %671 : vector<8x128xi1>, vector<8x128xf32>
    %673 = vector.extract_strided_slice %493 {offsets = [0, 16], sizes = [8, 1], strides = [1, 1]} : vector<8x72xf32> to vector<8x1xf32>
    %674 = vector.extract_strided_slice %672 {offsets = [0, 0], sizes = [1, 128], strides = [1, 1]} : vector<8x128xf32> to vector<1x128xf32>
    %675 = vector.broadcast %673 : vector<8x1xf32> to vector<8x128xf32>
    %676 = vector.broadcast %674 : vector<1x128xf32> to vector<8x128xf32>
    %677 = arith.mulf %675, %676 : vector<8x128xf32>
    %678 = arith.addf %648, %677 : vector<8x128xf32>
    %679 = vector.extract_strided_slice %493 {offsets = [0, 17], sizes = [8, 1], strides = [1, 1]} : vector<8x72xf32> to vector<8x1xf32>
    %680 = vector.extract_strided_slice %672 {offsets = [1, 0], sizes = [1, 128], strides = [1, 1]} : vector<8x128xf32> to vector<1x128xf32>
    %681 = vector.broadcast %679 : vector<8x1xf32> to vector<8x128xf32>
    %682 = vector.broadcast %680 : vector<1x128xf32> to vector<8x128xf32>
    %683 = arith.mulf %681, %682 : vector<8x128xf32>
    %684 = arith.addf %678, %683 : vector<8x128xf32>
    %685 = vector.extract_strided_slice %493 {offsets = [0, 18], sizes = [8, 1], strides = [1, 1]} : vector<8x72xf32> to vector<8x1xf32>
    %686 = vector.extract_strided_slice %672 {offsets = [2, 0], sizes = [1, 128], strides = [1, 1]} : vector<8x128xf32> to vector<1x128xf32>
    %687 = vector.broadcast %685 : vector<8x1xf32> to vector<8x128xf32>
    %688 = vector.broadcast %686 : vector<1x128xf32> to vector<8x128xf32>
    %689 = arith.mulf %687, %688 : vector<8x128xf32>
    %690 = arith.addf %684, %689 : vector<8x128xf32>
    %691 = vector.extract_strided_slice %493 {offsets = [0, 19], sizes = [8, 1], strides = [1, 1]} : vector<8x72xf32> to vector<8x1xf32>
    %692 = vector.extract_strided_slice %672 {offsets = [3, 0], sizes = [1, 128], strides = [1, 1]} : vector<8x128xf32> to vector<1x128xf32>
    %693 = vector.broadcast %691 : vector<8x1xf32> to vector<8x128xf32>
    %694 = vector.broadcast %692 : vector<1x128xf32> to vector<8x128xf32>
    %695 = arith.mulf %693, %694 : vector<8x128xf32>
    %696 = arith.addf %690, %695 : vector<8x128xf32>
    %697 = vector.extract_strided_slice %493 {offsets = [0, 20], sizes = [8, 1], strides = [1, 1]} : vector<8x72xf32> to vector<8x1xf32>
    %698 = vector.extract_strided_slice %672 {offsets = [4, 0], sizes = [1, 128], strides = [1, 1]} : vector<8x128xf32> to vector<1x128xf32>
    %699 = vector.broadcast %697 : vector<8x1xf32> to vector<8x128xf32>
    %700 = vector.broadcast %698 : vector<1x128xf32> to vector<8x128xf32>
    %701 = arith.mulf %699, %700 : vector<8x128xf32>
    %702 = arith.addf %696, %701 : vector<8x128xf32>
    %703 = vector.extract_strided_slice %493 {offsets = [0, 21], sizes = [8, 1], strides = [1, 1]} : vector<8x72xf32> to vector<8x1xf32>
    %704 = vector.extract_strided_slice %672 {offsets = [5, 0], sizes = [1, 128], strides = [1, 1]} : vector<8x128xf32> to vector<1x128xf32>
    %705 = vector.broadcast %703 : vector<8x1xf32> to vector<8x128xf32>
    %706 = vector.broadcast %704 : vector<1x128xf32> to vector<8x128xf32>
    %707 = arith.mulf %705, %706 : vector<8x128xf32>
    %708 = arith.addf %702, %707 : vector<8x128xf32>
    %709 = vector.extract_strided_slice %493 {offsets = [0, 22], sizes = [8, 1], strides = [1, 1]} : vector<8x72xf32> to vector<8x1xf32>
    %710 = vector.extract_strided_slice %672 {offsets = [6, 0], sizes = [1, 128], strides = [1, 1]} : vector<8x128xf32> to vector<1x128xf32>
    %711 = vector.broadcast %709 : vector<8x1xf32> to vector<8x128xf32>
    %712 = vector.broadcast %710 : vector<1x128xf32> to vector<8x128xf32>
    %713 = arith.mulf %711, %712 : vector<8x128xf32>
    %714 = arith.addf %708, %713 : vector<8x128xf32>
    %715 = vector.extract_strided_slice %493 {offsets = [0, 23], sizes = [8, 1], strides = [1, 1]} : vector<8x72xf32> to vector<8x1xf32>
    %716 = vector.extract_strided_slice %672 {offsets = [7, 0], sizes = [1, 128], strides = [1, 1]} : vector<8x128xf32> to vector<1x128xf32>
    %717 = vector.broadcast %715 : vector<8x1xf32> to vector<8x128xf32>
    %718 = vector.broadcast %716 : vector<1x128xf32> to vector<8x128xf32>
    %719 = arith.mulf %717, %718 : vector<8x128xf32>
    %720 = arith.addf %714, %719 : vector<8x128xf32>
    %c0_237 = arith.constant 0 : index
    %c127_238 = arith.constant 127 : index
    %721 = vector.load %arg16[%c0_237, %c127_238] : memref<8x768xf32, #tpu.memory_space<vmem>>, vector<8x128xf32>
    %c0_i32_239 = arith.constant 0 : i32
    %722 = vector.broadcast %c0_i32_239 : i32 to vector<1x128xi32>
    %723 = arith.addi %504, %722 : vector<1x128xi32>
    %c0_i32_240 = arith.constant 0 : i32
    %724 = vector.broadcast %c0_i32_240 : i32 to vector<1x128xi32>
    %725 = arith.cmpi sge, %723, %724 : vector<1x128xi32>
    %c0_i32_241 = arith.constant 0 : i32
    %726 = vector.broadcast %c0_i32_241 : i32 to vector<1x128xi32>
    %727 = arith.addi %504, %726 : vector<1x128xi32>
    %c8_i32_242 = arith.constant 8 : i32
    %728 = vector.broadcast %c8_i32_242 : i32 to vector<1x128xi32>
    %729 = arith.cmpi slt, %727, %728 : vector<1x128xi32>
    %730 = arith.andi %725, %729 : vector<1x128xi1>
    %c-1_i32_243 = arith.constant -1 : i32
    %731 = vector.broadcast %c-1_i32_243 : i32 to vector<1x128xi32>
    %732 = arith.addi %500, %731 : vector<1x128xi32>
    %c0_i32_244 = arith.constant 0 : i32
    %733 = vector.broadcast %c0_i32_244 : i32 to vector<1x128xi32>
    %734 = arith.cmpi sge, %732, %733 : vector<1x128xi32>
    %735 = arith.andi %730, %734 : vector<1x128xi1>
    %c-1_i32_245 = arith.constant -1 : i32
    %736 = vector.broadcast %c-1_i32_245 : i32 to vector<1x128xi32>
    %737 = arith.addi %500, %736 : vector<1x128xi32>
    %c8_i32_246 = arith.constant 8 : i32
    %738 = vector.broadcast %c8_i32_246 : i32 to vector<1x128xi32>
    %739 = arith.cmpi slt, %737, %738 : vector<1x128xi32>
    %740 = arith.andi %735, %739 : vector<1x128xi1>
    %cst_247 = arith.constant 0.000000e+00 : f32
    %741 = vector.shape_cast %740 : vector<1x128xi1> to vector<1x128xi1>
    %742 = vector.broadcast %741 : vector<1x128xi1> to vector<8x128xi1>
    %743 = vector.broadcast %cst_247 : f32 to vector<8x128xf32>
    %744 = arith.select %742, %721, %743 : vector<8x128xi1>, vector<8x128xf32>
    %745 = vector.extract_strided_slice %493 {offsets = [0, 24], sizes = [8, 1], strides = [1, 1]} : vector<8x72xf32> to vector<8x1xf32>
    %746 = vector.extract_strided_slice %744 {offsets = [0, 0], sizes = [1, 128], strides = [1, 1]} : vector<8x128xf32> to vector<1x128xf32>
    %747 = vector.broadcast %745 : vector<8x1xf32> to vector<8x128xf32>
    %748 = vector.broadcast %746 : vector<1x128xf32> to vector<8x128xf32>
    %749 = arith.mulf %747, %748 : vector<8x128xf32>
    %750 = arith.addf %720, %749 : vector<8x128xf32>
    %751 = vector.extract_strided_slice %493 {offsets = [0, 25], sizes = [8, 1], strides = [1, 1]} : vector<8x72xf32> to vector<8x1xf32>
    %752 = vector.extract_strided_slice %744 {offsets = [1, 0], sizes = [1, 128], strides = [1, 1]} : vector<8x128xf32> to vector<1x128xf32>
    %753 = vector.broadcast %751 : vector<8x1xf32> to vector<8x128xf32>
    %754 = vector.broadcast %752 : vector<1x128xf32> to vector<8x128xf32>
    %755 = arith.mulf %753, %754 : vector<8x128xf32>
    %756 = arith.addf %750, %755 : vector<8x128xf32>
    %757 = vector.extract_strided_slice %493 {offsets = [0, 26], sizes = [8, 1], strides = [1, 1]} : vector<8x72xf32> to vector<8x1xf32>
    %758 = vector.extract_strided_slice %744 {offsets = [2, 0], sizes = [1, 128], strides = [1, 1]} : vector<8x128xf32> to vector<1x128xf32>
    %759 = vector.broadcast %757 : vector<8x1xf32> to vector<8x128xf32>
    %760 = vector.broadcast %758 : vector<1x128xf32> to vector<8x128xf32>
    %761 = arith.mulf %759, %760 : vector<8x128xf32>
    %762 = arith.addf %756, %761 : vector<8x128xf32>
    %763 = vector.extract_strided_slice %493 {offsets = [0, 27], sizes = [8, 1], strides = [1, 1]} : vector<8x72xf32> to vector<8x1xf32>
    %764 = vector.extract_strided_slice %744 {offsets = [3, 0], sizes = [1, 128], strides = [1, 1]} : vector<8x128xf32> to vector<1x128xf32>
    %765 = vector.broadcast %763 : vector<8x1xf32> to vector<8x128xf32>
    %766 = vector.broadcast %764 : vector<1x128xf32> to vector<8x128xf32>
    %767 = arith.mulf %765, %766 : vector<8x128xf32>
    %768 = arith.addf %762, %767 : vector<8x128xf32>
    %769 = vector.extract_strided_slice %493 {offsets = [0, 28], sizes = [8, 1], strides = [1, 1]} : vector<8x72xf32> to vector<8x1xf32>
    %770 = vector.extract_strided_slice %744 {offsets = [4, 0], sizes = [1, 128], strides = [1, 1]} : vector<8x128xf32> to vector<1x128xf32>
    %771 = vector.broadcast %769 : vector<8x1xf32> to vector<8x128xf32>
    %772 = vector.broadcast %770 : vector<1x128xf32> to vector<8x128xf32>
    %773 = arith.mulf %771, %772 : vector<8x128xf32>
    %774 = arith.addf %768, %773 : vector<8x128xf32>
    %775 = vector.extract_strided_slice %493 {offsets = [0, 29], sizes = [8, 1], strides = [1, 1]} : vector<8x72xf32> to vector<8x1xf32>
    %776 = vector.extract_strided_slice %744 {offsets = [5, 0], sizes = [1, 128], strides = [1, 1]} : vector<8x128xf32> to vector<1x128xf32>
    %777 = vector.broadcast %775 : vector<8x1xf32> to vector<8x128xf32>
    %778 = vector.broadcast %776 : vector<1x128xf32> to vector<8x128xf32>
    %779 = arith.mulf %777, %778 : vector<8x128xf32>
    %780 = arith.addf %774, %779 : vector<8x128xf32>
    %781 = vector.extract_strided_slice %493 {offsets = [0, 30], sizes = [8, 1], strides = [1, 1]} : vector<8x72xf32> to vector<8x1xf32>
    %782 = vector.extract_strided_slice %744 {offsets = [6, 0], sizes = [1, 128], strides = [1, 1]} : vector<8x128xf32> to vector<1x128xf32>
    %783 = vector.broadcast %781 : vector<8x1xf32> to vector<8x128xf32>
    %784 = vector.broadcast %782 : vector<1x128xf32> to vector<8x128xf32>
    %785 = arith.mulf %783, %784 : vector<8x128xf32>
    %786 = arith.addf %780, %785 : vector<8x128xf32>
    %787 = vector.extract_strided_slice %493 {offsets = [0, 31], sizes = [8, 1], strides = [1, 1]} : vector<8x72xf32> to vector<8x1xf32>
    %788 = vector.extract_strided_slice %744 {offsets = [7, 0], sizes = [1, 128], strides = [1, 1]} : vector<8x128xf32> to vector<1x128xf32>
    %789 = vector.broadcast %787 : vector<8x1xf32> to vector<8x128xf32>
    %790 = vector.broadcast %788 : vector<1x128xf32> to vector<8x128xf32>
    %791 = arith.mulf %789, %790 : vector<8x128xf32>
    %792 = arith.addf %786, %791 : vector<8x128xf32>
    %c0_248 = arith.constant 0 : index
    %c128_249 = arith.constant 128 : index
    %793 = vector.load %arg16[%c0_248, %c128_249] : memref<8x768xf32, #tpu.memory_space<vmem>>, vector<8x128xf32>
    %c0_i32_250 = arith.constant 0 : i32
    %794 = vector.broadcast %c0_i32_250 : i32 to vector<1x128xi32>
    %795 = arith.addi %504, %794 : vector<1x128xi32>
    %c0_i32_251 = arith.constant 0 : i32
    %796 = vector.broadcast %c0_i32_251 : i32 to vector<1x128xi32>
    %797 = arith.cmpi sge, %795, %796 : vector<1x128xi32>
    %c0_i32_252 = arith.constant 0 : i32
    %798 = vector.broadcast %c0_i32_252 : i32 to vector<1x128xi32>
    %799 = arith.addi %504, %798 : vector<1x128xi32>
    %c8_i32_253 = arith.constant 8 : i32
    %800 = vector.broadcast %c8_i32_253 : i32 to vector<1x128xi32>
    %801 = arith.cmpi slt, %799, %800 : vector<1x128xi32>
    %802 = arith.andi %797, %801 : vector<1x128xi1>
    %c0_i32_254 = arith.constant 0 : i32
    %803 = vector.broadcast %c0_i32_254 : i32 to vector<1x128xi32>
    %804 = arith.addi %500, %803 : vector<1x128xi32>
    %c0_i32_255 = arith.constant 0 : i32
    %805 = vector.broadcast %c0_i32_255 : i32 to vector<1x128xi32>
    %806 = arith.cmpi sge, %804, %805 : vector<1x128xi32>
    %807 = arith.andi %802, %806 : vector<1x128xi1>
    %c0_i32_256 = arith.constant 0 : i32
    %808 = vector.broadcast %c0_i32_256 : i32 to vector<1x128xi32>
    %809 = arith.addi %500, %808 : vector<1x128xi32>
    %c8_i32_257 = arith.constant 8 : i32
    %810 = vector.broadcast %c8_i32_257 : i32 to vector<1x128xi32>
    %811 = arith.cmpi slt, %809, %810 : vector<1x128xi32>
    %812 = arith.andi %807, %811 : vector<1x128xi1>
    %cst_258 = arith.constant 0.000000e+00 : f32
    %813 = vector.shape_cast %812 : vector<1x128xi1> to vector<1x128xi1>
    %814 = vector.broadcast %813 : vector<1x128xi1> to vector<8x128xi1>
    %815 = vector.broadcast %cst_258 : f32 to vector<8x128xf32>
    %816 = arith.select %814, %793, %815 : vector<8x128xi1>, vector<8x128xf32>
    %817 = vector.extract_strided_slice %493 {offsets = [0, 32], sizes = [8, 1], strides = [1, 1]} : vector<8x72xf32> to vector<8x1xf32>
    %818 = vector.extract_strided_slice %816 {offsets = [0, 0], sizes = [1, 128], strides = [1, 1]} : vector<8x128xf32> to vector<1x128xf32>
    %819 = vector.broadcast %817 : vector<8x1xf32> to vector<8x128xf32>
    %820 = vector.broadcast %818 : vector<1x128xf32> to vector<8x128xf32>
    %821 = arith.mulf %819, %820 : vector<8x128xf32>
    %822 = arith.addf %792, %821 : vector<8x128xf32>
    %823 = vector.extract_strided_slice %493 {offsets = [0, 33], sizes = [8, 1], strides = [1, 1]} : vector<8x72xf32> to vector<8x1xf32>
    %824 = vector.extract_strided_slice %816 {offsets = [1, 0], sizes = [1, 128], strides = [1, 1]} : vector<8x128xf32> to vector<1x128xf32>
    %825 = vector.broadcast %823 : vector<8x1xf32> to vector<8x128xf32>
    %826 = vector.broadcast %824 : vector<1x128xf32> to vector<8x128xf32>
    %827 = arith.mulf %825, %826 : vector<8x128xf32>
    %828 = arith.addf %822, %827 : vector<8x128xf32>
    %829 = vector.extract_strided_slice %493 {offsets = [0, 34], sizes = [8, 1], strides = [1, 1]} : vector<8x72xf32> to vector<8x1xf32>
    %830 = vector.extract_strided_slice %816 {offsets = [2, 0], sizes = [1, 128], strides = [1, 1]} : vector<8x128xf32> to vector<1x128xf32>
    %831 = vector.broadcast %829 : vector<8x1xf32> to vector<8x128xf32>
    %832 = vector.broadcast %830 : vector<1x128xf32> to vector<8x128xf32>
    %833 = arith.mulf %831, %832 : vector<8x128xf32>
    %834 = arith.addf %828, %833 : vector<8x128xf32>
    %835 = vector.extract_strided_slice %493 {offsets = [0, 35], sizes = [8, 1], strides = [1, 1]} : vector<8x72xf32> to vector<8x1xf32>
    %836 = vector.extract_strided_slice %816 {offsets = [3, 0], sizes = [1, 128], strides = [1, 1]} : vector<8x128xf32> to vector<1x128xf32>
    %837 = vector.broadcast %835 : vector<8x1xf32> to vector<8x128xf32>
    %838 = vector.broadcast %836 : vector<1x128xf32> to vector<8x128xf32>
    %839 = arith.mulf %837, %838 : vector<8x128xf32>
    %840 = arith.addf %834, %839 : vector<8x128xf32>
    %841 = vector.extract_strided_slice %493 {offsets = [0, 36], sizes = [8, 1], strides = [1, 1]} : vector<8x72xf32> to vector<8x1xf32>
    %842 = vector.extract_strided_slice %816 {offsets = [4, 0], sizes = [1, 128], strides = [1, 1]} : vector<8x128xf32> to vector<1x128xf32>
    %843 = vector.broadcast %841 : vector<8x1xf32> to vector<8x128xf32>
    %844 = vector.broadcast %842 : vector<1x128xf32> to vector<8x128xf32>
    %845 = arith.mulf %843, %844 : vector<8x128xf32>
    %846 = arith.addf %840, %845 : vector<8x128xf32>
    %847 = vector.extract_strided_slice %493 {offsets = [0, 37], sizes = [8, 1], strides = [1, 1]} : vector<8x72xf32> to vector<8x1xf32>
    %848 = vector.extract_strided_slice %816 {offsets = [5, 0], sizes = [1, 128], strides = [1, 1]} : vector<8x128xf32> to vector<1x128xf32>
    %849 = vector.broadcast %847 : vector<8x1xf32> to vector<8x128xf32>
    %850 = vector.broadcast %848 : vector<1x128xf32> to vector<8x128xf32>
    %851 = arith.mulf %849, %850 : vector<8x128xf32>
    %852 = arith.addf %846, %851 : vector<8x128xf32>
    %853 = vector.extract_strided_slice %493 {offsets = [0, 38], sizes = [8, 1], strides = [1, 1]} : vector<8x72xf32> to vector<8x1xf32>
    %854 = vector.extract_strided_slice %816 {offsets = [6, 0], sizes = [1, 128], strides = [1, 1]} : vector<8x128xf32> to vector<1x128xf32>
    %855 = vector.broadcast %853 : vector<8x1xf32> to vector<8x128xf32>
    %856 = vector.broadcast %854 : vector<1x128xf32> to vector<8x128xf32>
    %857 = arith.mulf %855, %856 : vector<8x128xf32>
    %858 = arith.addf %852, %857 : vector<8x128xf32>
    %859 = vector.extract_strided_slice %493 {offsets = [0, 39], sizes = [8, 1], strides = [1, 1]} : vector<8x72xf32> to vector<8x1xf32>
    %860 = vector.extract_strided_slice %816 {offsets = [7, 0], sizes = [1, 128], strides = [1, 1]} : vector<8x128xf32> to vector<1x128xf32>
    %861 = vector.broadcast %859 : vector<8x1xf32> to vector<8x128xf32>
    %862 = vector.broadcast %860 : vector<1x128xf32> to vector<8x128xf32>
    %863 = arith.mulf %861, %862 : vector<8x128xf32>
    %864 = arith.addf %858, %863 : vector<8x128xf32>
    %c0_259 = arith.constant 0 : index
    %c129_260 = arith.constant 129 : index
    %865 = vector.load %arg16[%c0_259, %c129_260] : memref<8x768xf32, #tpu.memory_space<vmem>>, vector<8x128xf32>
    %c0_i32_261 = arith.constant 0 : i32
    %866 = vector.broadcast %c0_i32_261 : i32 to vector<1x128xi32>
    %867 = arith.addi %504, %866 : vector<1x128xi32>
    %c0_i32_262 = arith.constant 0 : i32
    %868 = vector.broadcast %c0_i32_262 : i32 to vector<1x128xi32>
    %869 = arith.cmpi sge, %867, %868 : vector<1x128xi32>
    %c0_i32_263 = arith.constant 0 : i32
    %870 = vector.broadcast %c0_i32_263 : i32 to vector<1x128xi32>
    %871 = arith.addi %504, %870 : vector<1x128xi32>
    %c8_i32_264 = arith.constant 8 : i32
    %872 = vector.broadcast %c8_i32_264 : i32 to vector<1x128xi32>
    %873 = arith.cmpi slt, %871, %872 : vector<1x128xi32>
    %874 = arith.andi %869, %873 : vector<1x128xi1>
    %c1_i32_265 = arith.constant 1 : i32
    %875 = vector.broadcast %c1_i32_265 : i32 to vector<1x128xi32>
    %876 = arith.addi %500, %875 : vector<1x128xi32>
    %c0_i32_266 = arith.constant 0 : i32
    %877 = vector.broadcast %c0_i32_266 : i32 to vector<1x128xi32>
    %878 = arith.cmpi sge, %876, %877 : vector<1x128xi32>
    %879 = arith.andi %874, %878 : vector<1x128xi1>
    %c1_i32_267 = arith.constant 1 : i32
    %880 = vector.broadcast %c1_i32_267 : i32 to vector<1x128xi32>
    %881 = arith.addi %500, %880 : vector<1x128xi32>
    %c8_i32_268 = arith.constant 8 : i32
    %882 = vector.broadcast %c8_i32_268 : i32 to vector<1x128xi32>
    %883 = arith.cmpi slt, %881, %882 : vector<1x128xi32>
    %884 = arith.andi %879, %883 : vector<1x128xi1>
    %cst_269 = arith.constant 0.000000e+00 : f32
    %885 = vector.shape_cast %884 : vector<1x128xi1> to vector<1x128xi1>
    %886 = vector.broadcast %885 : vector<1x128xi1> to vector<8x128xi1>
    %887 = vector.broadcast %cst_269 : f32 to vector<8x128xf32>
    %888 = arith.select %886, %865, %887 : vector<8x128xi1>, vector<8x128xf32>
    %889 = vector.extract_strided_slice %493 {offsets = [0, 40], sizes = [8, 1], strides = [1, 1]} : vector<8x72xf32> to vector<8x1xf32>
    %890 = vector.extract_strided_slice %888 {offsets = [0, 0], sizes = [1, 128], strides = [1, 1]} : vector<8x128xf32> to vector<1x128xf32>
    %891 = vector.broadcast %889 : vector<8x1xf32> to vector<8x128xf32>
    %892 = vector.broadcast %890 : vector<1x128xf32> to vector<8x128xf32>
    %893 = arith.mulf %891, %892 : vector<8x128xf32>
    %894 = arith.addf %864, %893 : vector<8x128xf32>
    %895 = vector.extract_strided_slice %493 {offsets = [0, 41], sizes = [8, 1], strides = [1, 1]} : vector<8x72xf32> to vector<8x1xf32>
    %896 = vector.extract_strided_slice %888 {offsets = [1, 0], sizes = [1, 128], strides = [1, 1]} : vector<8x128xf32> to vector<1x128xf32>
    %897 = vector.broadcast %895 : vector<8x1xf32> to vector<8x128xf32>
    %898 = vector.broadcast %896 : vector<1x128xf32> to vector<8x128xf32>
    %899 = arith.mulf %897, %898 : vector<8x128xf32>
    %900 = arith.addf %894, %899 : vector<8x128xf32>
    %901 = vector.extract_strided_slice %493 {offsets = [0, 42], sizes = [8, 1], strides = [1, 1]} : vector<8x72xf32> to vector<8x1xf32>
    %902 = vector.extract_strided_slice %888 {offsets = [2, 0], sizes = [1, 128], strides = [1, 1]} : vector<8x128xf32> to vector<1x128xf32>
    %903 = vector.broadcast %901 : vector<8x1xf32> to vector<8x128xf32>
    %904 = vector.broadcast %902 : vector<1x128xf32> to vector<8x128xf32>
    %905 = arith.mulf %903, %904 : vector<8x128xf32>
    %906 = arith.addf %900, %905 : vector<8x128xf32>
    %907 = vector.extract_strided_slice %493 {offsets = [0, 43], sizes = [8, 1], strides = [1, 1]} : vector<8x72xf32> to vector<8x1xf32>
    %908 = vector.extract_strided_slice %888 {offsets = [3, 0], sizes = [1, 128], strides = [1, 1]} : vector<8x128xf32> to vector<1x128xf32>
    %909 = vector.broadcast %907 : vector<8x1xf32> to vector<8x128xf32>
    %910 = vector.broadcast %908 : vector<1x128xf32> to vector<8x128xf32>
    %911 = arith.mulf %909, %910 : vector<8x128xf32>
    %912 = arith.addf %906, %911 : vector<8x128xf32>
    %913 = vector.extract_strided_slice %493 {offsets = [0, 44], sizes = [8, 1], strides = [1, 1]} : vector<8x72xf32> to vector<8x1xf32>
    %914 = vector.extract_strided_slice %888 {offsets = [4, 0], sizes = [1, 128], strides = [1, 1]} : vector<8x128xf32> to vector<1x128xf32>
    %915 = vector.broadcast %913 : vector<8x1xf32> to vector<8x128xf32>
    %916 = vector.broadcast %914 : vector<1x128xf32> to vector<8x128xf32>
    %917 = arith.mulf %915, %916 : vector<8x128xf32>
    %918 = arith.addf %912, %917 : vector<8x128xf32>
    %919 = vector.extract_strided_slice %493 {offsets = [0, 45], sizes = [8, 1], strides = [1, 1]} : vector<8x72xf32> to vector<8x1xf32>
    %920 = vector.extract_strided_slice %888 {offsets = [5, 0], sizes = [1, 128], strides = [1, 1]} : vector<8x128xf32> to vector<1x128xf32>
    %921 = vector.broadcast %919 : vector<8x1xf32> to vector<8x128xf32>
    %922 = vector.broadcast %920 : vector<1x128xf32> to vector<8x128xf32>
    %923 = arith.mulf %921, %922 : vector<8x128xf32>
    %924 = arith.addf %918, %923 : vector<8x128xf32>
    %925 = vector.extract_strided_slice %493 {offsets = [0, 46], sizes = [8, 1], strides = [1, 1]} : vector<8x72xf32> to vector<8x1xf32>
    %926 = vector.extract_strided_slice %888 {offsets = [6, 0], sizes = [1, 128], strides = [1, 1]} : vector<8x128xf32> to vector<1x128xf32>
    %927 = vector.broadcast %925 : vector<8x1xf32> to vector<8x128xf32>
    %928 = vector.broadcast %926 : vector<1x128xf32> to vector<8x128xf32>
    %929 = arith.mulf %927, %928 : vector<8x128xf32>
    %930 = arith.addf %924, %929 : vector<8x128xf32>
    %931 = vector.extract_strided_slice %493 {offsets = [0, 47], sizes = [8, 1], strides = [1, 1]} : vector<8x72xf32> to vector<8x1xf32>
    %932 = vector.extract_strided_slice %888 {offsets = [7, 0], sizes = [1, 128], strides = [1, 1]} : vector<8x128xf32> to vector<1x128xf32>
    %933 = vector.broadcast %931 : vector<8x1xf32> to vector<8x128xf32>
    %934 = vector.broadcast %932 : vector<1x128xf32> to vector<8x128xf32>
    %935 = arith.mulf %933, %934 : vector<8x128xf32>
    %936 = arith.addf %930, %935 : vector<8x128xf32>
    %c0_270 = arith.constant 0 : index
    %c135 = arith.constant 135 : index
    %937 = vector.load %arg16[%c0_270, %c135] : memref<8x768xf32, #tpu.memory_space<vmem>>, vector<8x128xf32>
    %c1_i32_271 = arith.constant 1 : i32
    %938 = vector.broadcast %c1_i32_271 : i32 to vector<1x128xi32>
    %939 = arith.addi %504, %938 : vector<1x128xi32>
    %c0_i32_272 = arith.constant 0 : i32
    %940 = vector.broadcast %c0_i32_272 : i32 to vector<1x128xi32>
    %941 = arith.cmpi sge, %939, %940 : vector<1x128xi32>
    %c1_i32_273 = arith.constant 1 : i32
    %942 = vector.broadcast %c1_i32_273 : i32 to vector<1x128xi32>
    %943 = arith.addi %504, %942 : vector<1x128xi32>
    %c8_i32_274 = arith.constant 8 : i32
    %944 = vector.broadcast %c8_i32_274 : i32 to vector<1x128xi32>
    %945 = arith.cmpi slt, %943, %944 : vector<1x128xi32>
    %946 = arith.andi %941, %945 : vector<1x128xi1>
    %c-1_i32_275 = arith.constant -1 : i32
    %947 = vector.broadcast %c-1_i32_275 : i32 to vector<1x128xi32>
    %948 = arith.addi %500, %947 : vector<1x128xi32>
    %c0_i32_276 = arith.constant 0 : i32
    %949 = vector.broadcast %c0_i32_276 : i32 to vector<1x128xi32>
    %950 = arith.cmpi sge, %948, %949 : vector<1x128xi32>
    %951 = arith.andi %946, %950 : vector<1x128xi1>
    %c-1_i32_277 = arith.constant -1 : i32
    %952 = vector.broadcast %c-1_i32_277 : i32 to vector<1x128xi32>
    %953 = arith.addi %500, %952 : vector<1x128xi32>
    %c8_i32_278 = arith.constant 8 : i32
    %954 = vector.broadcast %c8_i32_278 : i32 to vector<1x128xi32>
    %955 = arith.cmpi slt, %953, %954 : vector<1x128xi32>
    %956 = arith.andi %951, %955 : vector<1x128xi1>
    %cst_279 = arith.constant 0.000000e+00 : f32
    %957 = vector.shape_cast %956 : vector<1x128xi1> to vector<1x128xi1>
    %958 = vector.broadcast %957 : vector<1x128xi1> to vector<8x128xi1>
    %959 = vector.broadcast %cst_279 : f32 to vector<8x128xf32>
    %960 = arith.select %958, %937, %959 : vector<8x128xi1>, vector<8x128xf32>
    %961 = vector.extract_strided_slice %493 {offsets = [0, 48], sizes = [8, 1], strides = [1, 1]} : vector<8x72xf32> to vector<8x1xf32>
    %962 = vector.extract_strided_slice %960 {offsets = [0, 0], sizes = [1, 128], strides = [1, 1]} : vector<8x128xf32> to vector<1x128xf32>
    %963 = vector.broadcast %961 : vector<8x1xf32> to vector<8x128xf32>
    %964 = vector.broadcast %962 : vector<1x128xf32> to vector<8x128xf32>
    %965 = arith.mulf %963, %964 : vector<8x128xf32>
    %966 = arith.addf %936, %965 : vector<8x128xf32>
    %967 = vector.extract_strided_slice %493 {offsets = [0, 49], sizes = [8, 1], strides = [1, 1]} : vector<8x72xf32> to vector<8x1xf32>
    %968 = vector.extract_strided_slice %960 {offsets = [1, 0], sizes = [1, 128], strides = [1, 1]} : vector<8x128xf32> to vector<1x128xf32>
    %969 = vector.broadcast %967 : vector<8x1xf32> to vector<8x128xf32>
    %970 = vector.broadcast %968 : vector<1x128xf32> to vector<8x128xf32>
    %971 = arith.mulf %969, %970 : vector<8x128xf32>
    %972 = arith.addf %966, %971 : vector<8x128xf32>
    %973 = vector.extract_strided_slice %493 {offsets = [0, 50], sizes = [8, 1], strides = [1, 1]} : vector<8x72xf32> to vector<8x1xf32>
    %974 = vector.extract_strided_slice %960 {offsets = [2, 0], sizes = [1, 128], strides = [1, 1]} : vector<8x128xf32> to vector<1x128xf32>
    %975 = vector.broadcast %973 : vector<8x1xf32> to vector<8x128xf32>
    %976 = vector.broadcast %974 : vector<1x128xf32> to vector<8x128xf32>
    %977 = arith.mulf %975, %976 : vector<8x128xf32>
    %978 = arith.addf %972, %977 : vector<8x128xf32>
    %979 = vector.extract_strided_slice %493 {offsets = [0, 51], sizes = [8, 1], strides = [1, 1]} : vector<8x72xf32> to vector<8x1xf32>
    %980 = vector.extract_strided_slice %960 {offsets = [3, 0], sizes = [1, 128], strides = [1, 1]} : vector<8x128xf32> to vector<1x128xf32>
    %981 = vector.broadcast %979 : vector<8x1xf32> to vector<8x128xf32>
    %982 = vector.broadcast %980 : vector<1x128xf32> to vector<8x128xf32>
    %983 = arith.mulf %981, %982 : vector<8x128xf32>
    %984 = arith.addf %978, %983 : vector<8x128xf32>
    %985 = vector.extract_strided_slice %493 {offsets = [0, 52], sizes = [8, 1], strides = [1, 1]} : vector<8x72xf32> to vector<8x1xf32>
    %986 = vector.extract_strided_slice %960 {offsets = [4, 0], sizes = [1, 128], strides = [1, 1]} : vector<8x128xf32> to vector<1x128xf32>
    %987 = vector.broadcast %985 : vector<8x1xf32> to vector<8x128xf32>
    %988 = vector.broadcast %986 : vector<1x128xf32> to vector<8x128xf32>
    %989 = arith.mulf %987, %988 : vector<8x128xf32>
    %990 = arith.addf %984, %989 : vector<8x128xf32>
    %991 = vector.extract_strided_slice %493 {offsets = [0, 53], sizes = [8, 1], strides = [1, 1]} : vector<8x72xf32> to vector<8x1xf32>
    %992 = vector.extract_strided_slice %960 {offsets = [5, 0], sizes = [1, 128], strides = [1, 1]} : vector<8x128xf32> to vector<1x128xf32>
    %993 = vector.broadcast %991 : vector<8x1xf32> to vector<8x128xf32>
    %994 = vector.broadcast %992 : vector<1x128xf32> to vector<8x128xf32>
    %995 = arith.mulf %993, %994 : vector<8x128xf32>
    %996 = arith.addf %990, %995 : vector<8x128xf32>
    %997 = vector.extract_strided_slice %493 {offsets = [0, 54], sizes = [8, 1], strides = [1, 1]} : vector<8x72xf32> to vector<8x1xf32>
    %998 = vector.extract_strided_slice %960 {offsets = [6, 0], sizes = [1, 128], strides = [1, 1]} : vector<8x128xf32> to vector<1x128xf32>
    %999 = vector.broadcast %997 : vector<8x1xf32> to vector<8x128xf32>
    %1000 = vector.broadcast %998 : vector<1x128xf32> to vector<8x128xf32>
    %1001 = arith.mulf %999, %1000 : vector<8x128xf32>
    %1002 = arith.addf %996, %1001 : vector<8x128xf32>
    %1003 = vector.extract_strided_slice %493 {offsets = [0, 55], sizes = [8, 1], strides = [1, 1]} : vector<8x72xf32> to vector<8x1xf32>
    %1004 = vector.extract_strided_slice %960 {offsets = [7, 0], sizes = [1, 128], strides = [1, 1]} : vector<8x128xf32> to vector<1x128xf32>
    %1005 = vector.broadcast %1003 : vector<8x1xf32> to vector<8x128xf32>
    %1006 = vector.broadcast %1004 : vector<1x128xf32> to vector<8x128xf32>
    %1007 = arith.mulf %1005, %1006 : vector<8x128xf32>
    %1008 = arith.addf %1002, %1007 : vector<8x128xf32>
    %c0_280 = arith.constant 0 : index
    %c136 = arith.constant 136 : index
    %1009 = vector.load %arg16[%c0_280, %c136] : memref<8x768xf32, #tpu.memory_space<vmem>>, vector<8x128xf32>
    %c1_i32_281 = arith.constant 1 : i32
    %1010 = vector.broadcast %c1_i32_281 : i32 to vector<1x128xi32>
    %1011 = arith.addi %504, %1010 : vector<1x128xi32>
    %c0_i32_282 = arith.constant 0 : i32
    %1012 = vector.broadcast %c0_i32_282 : i32 to vector<1x128xi32>
    %1013 = arith.cmpi sge, %1011, %1012 : vector<1x128xi32>
    %c1_i32_283 = arith.constant 1 : i32
    %1014 = vector.broadcast %c1_i32_283 : i32 to vector<1x128xi32>
    %1015 = arith.addi %504, %1014 : vector<1x128xi32>
    %c8_i32_284 = arith.constant 8 : i32
    %1016 = vector.broadcast %c8_i32_284 : i32 to vector<1x128xi32>
    %1017 = arith.cmpi slt, %1015, %1016 : vector<1x128xi32>
    %1018 = arith.andi %1013, %1017 : vector<1x128xi1>
    %c0_i32_285 = arith.constant 0 : i32
    %1019 = vector.broadcast %c0_i32_285 : i32 to vector<1x128xi32>
    %1020 = arith.addi %500, %1019 : vector<1x128xi32>
    %c0_i32_286 = arith.constant 0 : i32
    %1021 = vector.broadcast %c0_i32_286 : i32 to vector<1x128xi32>
    %1022 = arith.cmpi sge, %1020, %1021 : vector<1x128xi32>
    %1023 = arith.andi %1018, %1022 : vector<1x128xi1>
    %c0_i32_287 = arith.constant 0 : i32
    %1024 = vector.broadcast %c0_i32_287 : i32 to vector<1x128xi32>
    %1025 = arith.addi %500, %1024 : vector<1x128xi32>
    %c8_i32_288 = arith.constant 8 : i32
    %1026 = vector.broadcast %c8_i32_288 : i32 to vector<1x128xi32>
    %1027 = arith.cmpi slt, %1025, %1026 : vector<1x128xi32>
    %1028 = arith.andi %1023, %1027 : vector<1x128xi1>
    %cst_289 = arith.constant 0.000000e+00 : f32
    %1029 = vector.shape_cast %1028 : vector<1x128xi1> to vector<1x128xi1>
    %1030 = vector.broadcast %1029 : vector<1x128xi1> to vector<8x128xi1>
    %1031 = vector.broadcast %cst_289 : f32 to vector<8x128xf32>
    %1032 = arith.select %1030, %1009, %1031 : vector<8x128xi1>, vector<8x128xf32>
    %1033 = vector.extract_strided_slice %493 {offsets = [0, 56], sizes = [8, 1], strides = [1, 1]} : vector<8x72xf32> to vector<8x1xf32>
    %1034 = vector.extract_strided_slice %1032 {offsets = [0, 0], sizes = [1, 128], strides = [1, 1]} : vector<8x128xf32> to vector<1x128xf32>
    %1035 = vector.broadcast %1033 : vector<8x1xf32> to vector<8x128xf32>
    %1036 = vector.broadcast %1034 : vector<1x128xf32> to vector<8x128xf32>
    %1037 = arith.mulf %1035, %1036 : vector<8x128xf32>
    %1038 = arith.addf %1008, %1037 : vector<8x128xf32>
    %1039 = vector.extract_strided_slice %493 {offsets = [0, 57], sizes = [8, 1], strides = [1, 1]} : vector<8x72xf32> to vector<8x1xf32>
    %1040 = vector.extract_strided_slice %1032 {offsets = [1, 0], sizes = [1, 128], strides = [1, 1]} : vector<8x128xf32> to vector<1x128xf32>
    %1041 = vector.broadcast %1039 : vector<8x1xf32> to vector<8x128xf32>
    %1042 = vector.broadcast %1040 : vector<1x128xf32> to vector<8x128xf32>
    %1043 = arith.mulf %1041, %1042 : vector<8x128xf32>
    %1044 = arith.addf %1038, %1043 : vector<8x128xf32>
    %1045 = vector.extract_strided_slice %493 {offsets = [0, 58], sizes = [8, 1], strides = [1, 1]} : vector<8x72xf32> to vector<8x1xf32>
    %1046 = vector.extract_strided_slice %1032 {offsets = [2, 0], sizes = [1, 128], strides = [1, 1]} : vector<8x128xf32> to vector<1x128xf32>
    %1047 = vector.broadcast %1045 : vector<8x1xf32> to vector<8x128xf32>
    %1048 = vector.broadcast %1046 : vector<1x128xf32> to vector<8x128xf32>
    %1049 = arith.mulf %1047, %1048 : vector<8x128xf32>
    %1050 = arith.addf %1044, %1049 : vector<8x128xf32>
    %1051 = vector.extract_strided_slice %493 {offsets = [0, 59], sizes = [8, 1], strides = [1, 1]} : vector<8x72xf32> to vector<8x1xf32>
    %1052 = vector.extract_strided_slice %1032 {offsets = [3, 0], sizes = [1, 128], strides = [1, 1]} : vector<8x128xf32> to vector<1x128xf32>
    %1053 = vector.broadcast %1051 : vector<8x1xf32> to vector<8x128xf32>
    %1054 = vector.broadcast %1052 : vector<1x128xf32> to vector<8x128xf32>
    %1055 = arith.mulf %1053, %1054 : vector<8x128xf32>
    %1056 = arith.addf %1050, %1055 : vector<8x128xf32>
    %1057 = vector.extract_strided_slice %493 {offsets = [0, 60], sizes = [8, 1], strides = [1, 1]} : vector<8x72xf32> to vector<8x1xf32>
    %1058 = vector.extract_strided_slice %1032 {offsets = [4, 0], sizes = [1, 128], strides = [1, 1]} : vector<8x128xf32> to vector<1x128xf32>
    %1059 = vector.broadcast %1057 : vector<8x1xf32> to vector<8x128xf32>
    %1060 = vector.broadcast %1058 : vector<1x128xf32> to vector<8x128xf32>
    %1061 = arith.mulf %1059, %1060 : vector<8x128xf32>
    %1062 = arith.addf %1056, %1061 : vector<8x128xf32>
    %1063 = vector.extract_strided_slice %493 {offsets = [0, 61], sizes = [8, 1], strides = [1, 1]} : vector<8x72xf32> to vector<8x1xf32>
    %1064 = vector.extract_strided_slice %1032 {offsets = [5, 0], sizes = [1, 128], strides = [1, 1]} : vector<8x128xf32> to vector<1x128xf32>
    %1065 = vector.broadcast %1063 : vector<8x1xf32> to vector<8x128xf32>
    %1066 = vector.broadcast %1064 : vector<1x128xf32> to vector<8x128xf32>
    %1067 = arith.mulf %1065, %1066 : vector<8x128xf32>
    %1068 = arith.addf %1062, %1067 : vector<8x128xf32>
    %1069 = vector.extract_strided_slice %493 {offsets = [0, 62], sizes = [8, 1], strides = [1, 1]} : vector<8x72xf32> to vector<8x1xf32>
    %1070 = vector.extract_strided_slice %1032 {offsets = [6, 0], sizes = [1, 128], strides = [1, 1]} : vector<8x128xf32> to vector<1x128xf32>
    %1071 = vector.broadcast %1069 : vector<8x1xf32> to vector<8x128xf32>
    %1072 = vector.broadcast %1070 : vector<1x128xf32> to vector<8x128xf32>
    %1073 = arith.mulf %1071, %1072 : vector<8x128xf32>
    %1074 = arith.addf %1068, %1073 : vector<8x128xf32>
    %1075 = vector.extract_strided_slice %493 {offsets = [0, 63], sizes = [8, 1], strides = [1, 1]} : vector<8x72xf32> to vector<8x1xf32>
    %1076 = vector.extract_strided_slice %1032 {offsets = [7, 0], sizes = [1, 128], strides = [1, 1]} : vector<8x128xf32> to vector<1x128xf32>
    %1077 = vector.broadcast %1075 : vector<8x1xf32> to vector<8x128xf32>
    %1078 = vector.broadcast %1076 : vector<1x128xf32> to vector<8x128xf32>
    %1079 = arith.mulf %1077, %1078 : vector<8x128xf32>
    %1080 = arith.addf %1074, %1079 : vector<8x128xf32>
    %c0_290 = arith.constant 0 : index
    %c137 = arith.constant 137 : index
    %1081 = vector.load %arg16[%c0_290, %c137] : memref<8x768xf32, #tpu.memory_space<vmem>>, vector<8x128xf32>
    %c1_i32_291 = arith.constant 1 : i32
    %1082 = vector.broadcast %c1_i32_291 : i32 to vector<1x128xi32>
    %1083 = arith.addi %504, %1082 : vector<1x128xi32>
    %c0_i32_292 = arith.constant 0 : i32
    %1084 = vector.broadcast %c0_i32_292 : i32 to vector<1x128xi32>
    %1085 = arith.cmpi sge, %1083, %1084 : vector<1x128xi32>
    %c1_i32_293 = arith.constant 1 : i32
    %1086 = vector.broadcast %c1_i32_293 : i32 to vector<1x128xi32>
    %1087 = arith.addi %504, %1086 : vector<1x128xi32>
    %c8_i32_294 = arith.constant 8 : i32
    %1088 = vector.broadcast %c8_i32_294 : i32 to vector<1x128xi32>
    %1089 = arith.cmpi slt, %1087, %1088 : vector<1x128xi32>
    %1090 = arith.andi %1085, %1089 : vector<1x128xi1>
    %c1_i32_295 = arith.constant 1 : i32
    %1091 = vector.broadcast %c1_i32_295 : i32 to vector<1x128xi32>
    %1092 = arith.addi %500, %1091 : vector<1x128xi32>
    %c0_i32_296 = arith.constant 0 : i32
    %1093 = vector.broadcast %c0_i32_296 : i32 to vector<1x128xi32>
    %1094 = arith.cmpi sge, %1092, %1093 : vector<1x128xi32>
    %1095 = arith.andi %1090, %1094 : vector<1x128xi1>
    %c1_i32_297 = arith.constant 1 : i32
    %1096 = vector.broadcast %c1_i32_297 : i32 to vector<1x128xi32>
    %1097 = arith.addi %500, %1096 : vector<1x128xi32>
    %c8_i32_298 = arith.constant 8 : i32
    %1098 = vector.broadcast %c8_i32_298 : i32 to vector<1x128xi32>
    %1099 = arith.cmpi slt, %1097, %1098 : vector<1x128xi32>
    %1100 = arith.andi %1095, %1099 : vector<1x128xi1>
    %cst_299 = arith.constant 0.000000e+00 : f32
    %1101 = vector.shape_cast %1100 : vector<1x128xi1> to vector<1x128xi1>
    %1102 = vector.broadcast %1101 : vector<1x128xi1> to vector<8x128xi1>
    %1103 = vector.broadcast %cst_299 : f32 to vector<8x128xf32>
    %1104 = arith.select %1102, %1081, %1103 : vector<8x128xi1>, vector<8x128xf32>
    %1105 = vector.extract_strided_slice %493 {offsets = [0, 64], sizes = [8, 1], strides = [1, 1]} : vector<8x72xf32> to vector<8x1xf32>
    %1106 = vector.extract_strided_slice %1104 {offsets = [0, 0], sizes = [1, 128], strides = [1, 1]} : vector<8x128xf32> to vector<1x128xf32>
    %1107 = vector.broadcast %1105 : vector<8x1xf32> to vector<8x128xf32>
    %1108 = vector.broadcast %1106 : vector<1x128xf32> to vector<8x128xf32>
    %1109 = arith.mulf %1107, %1108 : vector<8x128xf32>
    %1110 = arith.addf %1080, %1109 : vector<8x128xf32>
    %1111 = vector.extract_strided_slice %493 {offsets = [0, 65], sizes = [8, 1], strides = [1, 1]} : vector<8x72xf32> to vector<8x1xf32>
    %1112 = vector.extract_strided_slice %1104 {offsets = [1, 0], sizes = [1, 128], strides = [1, 1]} : vector<8x128xf32> to vector<1x128xf32>
    %1113 = vector.broadcast %1111 : vector<8x1xf32> to vector<8x128xf32>
    %1114 = vector.broadcast %1112 : vector<1x128xf32> to vector<8x128xf32>
    %1115 = arith.mulf %1113, %1114 : vector<8x128xf32>
    %1116 = arith.addf %1110, %1115 : vector<8x128xf32>
    %1117 = vector.extract_strided_slice %493 {offsets = [0, 66], sizes = [8, 1], strides = [1, 1]} : vector<8x72xf32> to vector<8x1xf32>
    %1118 = vector.extract_strided_slice %1104 {offsets = [2, 0], sizes = [1, 128], strides = [1, 1]} : vector<8x128xf32> to vector<1x128xf32>
    %1119 = vector.broadcast %1117 : vector<8x1xf32> to vector<8x128xf32>
    %1120 = vector.broadcast %1118 : vector<1x128xf32> to vector<8x128xf32>
    %1121 = arith.mulf %1119, %1120 : vector<8x128xf32>
    %1122 = arith.addf %1116, %1121 : vector<8x128xf32>
    %1123 = vector.extract_strided_slice %493 {offsets = [0, 67], sizes = [8, 1], strides = [1, 1]} : vector<8x72xf32> to vector<8x1xf32>
    %1124 = vector.extract_strided_slice %1104 {offsets = [3, 0], sizes = [1, 128], strides = [1, 1]} : vector<8x128xf32> to vector<1x128xf32>
    %1125 = vector.broadcast %1123 : vector<8x1xf32> to vector<8x128xf32>
    %1126 = vector.broadcast %1124 : vector<1x128xf32> to vector<8x128xf32>
    %1127 = arith.mulf %1125, %1126 : vector<8x128xf32>
    %1128 = arith.addf %1122, %1127 : vector<8x128xf32>
    %1129 = vector.extract_strided_slice %493 {offsets = [0, 68], sizes = [8, 1], strides = [1, 1]} : vector<8x72xf32> to vector<8x1xf32>
    %1130 = vector.extract_strided_slice %1104 {offsets = [4, 0], sizes = [1, 128], strides = [1, 1]} : vector<8x128xf32> to vector<1x128xf32>
    %1131 = vector.broadcast %1129 : vector<8x1xf32> to vector<8x128xf32>
    %1132 = vector.broadcast %1130 : vector<1x128xf32> to vector<8x128xf32>
    %1133 = arith.mulf %1131, %1132 : vector<8x128xf32>
    %1134 = arith.addf %1128, %1133 : vector<8x128xf32>
    %1135 = vector.extract_strided_slice %493 {offsets = [0, 69], sizes = [8, 1], strides = [1, 1]} : vector<8x72xf32> to vector<8x1xf32>
    %1136 = vector.extract_strided_slice %1104 {offsets = [5, 0], sizes = [1, 128], strides = [1, 1]} : vector<8x128xf32> to vector<1x128xf32>
    %1137 = vector.broadcast %1135 : vector<8x1xf32> to vector<8x128xf32>
    %1138 = vector.broadcast %1136 : vector<1x128xf32> to vector<8x128xf32>
    %1139 = arith.mulf %1137, %1138 : vector<8x128xf32>
    %1140 = arith.addf %1134, %1139 : vector<8x128xf32>
    %1141 = vector.extract_strided_slice %493 {offsets = [0, 70], sizes = [8, 1], strides = [1, 1]} : vector<8x72xf32> to vector<8x1xf32>
    %1142 = vector.extract_strided_slice %1104 {offsets = [6, 0], sizes = [1, 128], strides = [1, 1]} : vector<8x128xf32> to vector<1x128xf32>
    %1143 = vector.broadcast %1141 : vector<8x1xf32> to vector<8x128xf32>
    %1144 = vector.broadcast %1142 : vector<1x128xf32> to vector<8x128xf32>
    %1145 = arith.mulf %1143, %1144 : vector<8x128xf32>
    %1146 = arith.addf %1140, %1145 : vector<8x128xf32>
    %1147 = vector.extract_strided_slice %493 {offsets = [0, 71], sizes = [8, 1], strides = [1, 1]} : vector<8x72xf32> to vector<8x1xf32>
    %1148 = vector.extract_strided_slice %1104 {offsets = [7, 0], sizes = [1, 128], strides = [1, 1]} : vector<8x128xf32> to vector<1x128xf32>
    %1149 = vector.broadcast %1147 : vector<8x1xf32> to vector<8x128xf32>
    %1150 = vector.broadcast %1148 : vector<1x128xf32> to vector<8x128xf32>
    %1151 = arith.mulf %1149, %1150 : vector<8x128xf32>
    %1152 = arith.addf %1146, %1151 : vector<8x128xf32>
    %cst_300 = arith.constant 0.000000e+00 : f32
    %1153 = vector.broadcast %cst_300 : f32 to vector<8x128xf32>
    %1154 = arith.maximumf %1152, %1153 : vector<8x128xf32>
    %c0_301 = arith.constant 0 : index
    %c0_302 = arith.constant 0 : index
    %1155 = vector.load %arg10[%c0_301, %c0_302] : memref<128x32xf32, #tpu.memory_space<vmem>>, vector<128x32xf32>
    %c0_303 = arith.constant 0 : index
    %c128_304 = arith.constant 128 : index
    %1156 = vector.load %arg16[%c0_303, %c128_304] : memref<8x768xf32, #tpu.memory_space<vmem>>, vector<8x128xf32>
    tpu.vector_store %arg16[%c0_303, %c128_304], %1154 {strides = array<i32>} : memref<8x768xf32, #tpu.memory_space<vmem>>, vector<8x128xf32>,
    %1157 = tpu.iota {dimensions = array<i32: 1>} : vector<1x128xi32>
    %c7_i32_305 = arith.constant 7 : i32
    %1158 = vector.broadcast %c7_i32_305 : i32 to vector<1x128xi32>
    %1159 = arith.andi %1157, %1158 : vector<1x128xi32>
    %c3_i32_306 = arith.constant 3 : i32
    %1160 = vector.broadcast %c3_i32_306 : i32 to vector<1x128xi32>
    %1161 = arith.shrsi %1157, %1160 : vector<1x128xi32>
    %c7_i32_307 = arith.constant 7 : i32
    %1162 = vector.broadcast %c7_i32_307 : i32 to vector<1x128xi32>
    %1163 = arith.andi %1161, %1162 : vector<1x128xi32>
    %c0_308 = arith.constant 0 : index
    %c119_309 = arith.constant 119 : index
    %1164 = vector.load %arg16[%c0_308, %c119_309] : memref<8x768xf32, #tpu.memory_space<vmem>>, vector<8x128xf32>
    %c-1_i32_310 = arith.constant -1 : i32
    %1165 = vector.broadcast %c-1_i32_310 : i32 to vector<1x128xi32>
    %1166 = arith.addi %1163, %1165 : vector<1x128xi32>
    %c0_i32_311 = arith.constant 0 : i32
    %1167 = vector.broadcast %c0_i32_311 : i32 to vector<1x128xi32>
    %1168 = arith.cmpi sge, %1166, %1167 : vector<1x128xi32>
    %c-1_i32_312 = arith.constant -1 : i32
    %1169 = vector.broadcast %c-1_i32_312 : i32 to vector<1x128xi32>
    %1170 = arith.addi %1163, %1169 : vector<1x128xi32>
    %c8_i32_313 = arith.constant 8 : i32
    %1171 = vector.broadcast %c8_i32_313 : i32 to vector<1x128xi32>
    %1172 = arith.cmpi slt, %1170, %1171 : vector<1x128xi32>
    %1173 = arith.andi %1168, %1172 : vector<1x128xi1>
    %c-1_i32_314 = arith.constant -1 : i32
    %1174 = vector.broadcast %c-1_i32_314 : i32 to vector<1x128xi32>
    %1175 = arith.addi %1159, %1174 : vector<1x128xi32>
    %c0_i32_315 = arith.constant 0 : i32
    %1176 = vector.broadcast %c0_i32_315 : i32 to vector<1x128xi32>
    %1177 = arith.cmpi sge, %1175, %1176 : vector<1x128xi32>
    %1178 = arith.andi %1173, %1177 : vector<1x128xi1>
    %c-1_i32_316 = arith.constant -1 : i32
    %1179 = vector.broadcast %c-1_i32_316 : i32 to vector<1x128xi32>
    %1180 = arith.addi %1159, %1179 : vector<1x128xi32>
    %c8_i32_317 = arith.constant 8 : i32
    %1181 = vector.broadcast %c8_i32_317 : i32 to vector<1x128xi32>
    %1182 = arith.cmpi slt, %1180, %1181 : vector<1x128xi32>
    %1183 = arith.andi %1178, %1182 : vector<1x128xi1>
    %cst_318 = arith.constant 0.000000e+00 : f32
    %1184 = vector.shape_cast %1183 : vector<1x128xi1> to vector<1x128xi1>
    %1185 = vector.broadcast %1184 : vector<1x128xi1> to vector<8x128xi1>
    %1186 = vector.broadcast %cst_318 : f32 to vector<8x128xf32>
    %1187 = arith.select %1185, %1164, %1186 : vector<8x128xi1>, vector<8x128xf32>
    %1188 = arith.maximumf %1154, %1187 : vector<8x128xf32>
    %c0_319 = arith.constant 0 : index
    %c120_320 = arith.constant 120 : index
    %1189 = vector.load %arg16[%c0_319, %c120_320] : memref<8x768xf32, #tpu.memory_space<vmem>>, vector<8x128xf32>
    %c-1_i32_321 = arith.constant -1 : i32
    %1190 = vector.broadcast %c-1_i32_321 : i32 to vector<1x128xi32>
    %1191 = arith.addi %1163, %1190 : vector<1x128xi32>
    %c0_i32_322 = arith.constant 0 : i32
    %1192 = vector.broadcast %c0_i32_322 : i32 to vector<1x128xi32>
    %1193 = arith.cmpi sge, %1191, %1192 : vector<1x128xi32>
    %c-1_i32_323 = arith.constant -1 : i32
    %1194 = vector.broadcast %c-1_i32_323 : i32 to vector<1x128xi32>
    %1195 = arith.addi %1163, %1194 : vector<1x128xi32>
    %c8_i32_324 = arith.constant 8 : i32
    %1196 = vector.broadcast %c8_i32_324 : i32 to vector<1x128xi32>
    %1197 = arith.cmpi slt, %1195, %1196 : vector<1x128xi32>
    %1198 = arith.andi %1193, %1197 : vector<1x128xi1>
    %c0_i32_325 = arith.constant 0 : i32
    %1199 = vector.broadcast %c0_i32_325 : i32 to vector<1x128xi32>
    %1200 = arith.addi %1159, %1199 : vector<1x128xi32>
    %c0_i32_326 = arith.constant 0 : i32
    %1201 = vector.broadcast %c0_i32_326 : i32 to vector<1x128xi32>
    %1202 = arith.cmpi sge, %1200, %1201 : vector<1x128xi32>
    %1203 = arith.andi %1198, %1202 : vector<1x128xi1>
    %c0_i32_327 = arith.constant 0 : i32
    %1204 = vector.broadcast %c0_i32_327 : i32 to vector<1x128xi32>
    %1205 = arith.addi %1159, %1204 : vector<1x128xi32>
    %c8_i32_328 = arith.constant 8 : i32
    %1206 = vector.broadcast %c8_i32_328 : i32 to vector<1x128xi32>
    %1207 = arith.cmpi slt, %1205, %1206 : vector<1x128xi32>
    %1208 = arith.andi %1203, %1207 : vector<1x128xi1>
    %cst_329 = arith.constant 0.000000e+00 : f32
    %1209 = vector.shape_cast %1208 : vector<1x128xi1> to vector<1x128xi1>
    %1210 = vector.broadcast %1209 : vector<1x128xi1> to vector<8x128xi1>
    %1211 = vector.broadcast %cst_329 : f32 to vector<8x128xf32>
    %1212 = arith.select %1210, %1189, %1211 : vector<8x128xi1>, vector<8x128xf32>
    %1213 = arith.maximumf %1188, %1212 : vector<8x128xf32>
    %c0_330 = arith.constant 0 : index
    %c121_331 = arith.constant 121 : index
    %1214 = vector.load %arg16[%c0_330, %c121_331] : memref<8x768xf32, #tpu.memory_space<vmem>>, vector<8x128xf32>
    %c-1_i32_332 = arith.constant -1 : i32
    %1215 = vector.broadcast %c-1_i32_332 : i32 to vector<1x128xi32>
    %1216 = arith.addi %1163, %1215 : vector<1x128xi32>
    %c0_i32_333 = arith.constant 0 : i32
    %1217 = vector.broadcast %c0_i32_333 : i32 to vector<1x128xi32>
    %1218 = arith.cmpi sge, %1216, %1217 : vector<1x128xi32>
    %c-1_i32_334 = arith.constant -1 : i32
    %1219 = vector.broadcast %c-1_i32_334 : i32 to vector<1x128xi32>
    %1220 = arith.addi %1163, %1219 : vector<1x128xi32>
    %c8_i32_335 = arith.constant 8 : i32
    %1221 = vector.broadcast %c8_i32_335 : i32 to vector<1x128xi32>
    %1222 = arith.cmpi slt, %1220, %1221 : vector<1x128xi32>
    %1223 = arith.andi %1218, %1222 : vector<1x128xi1>
    %c1_i32_336 = arith.constant 1 : i32
    %1224 = vector.broadcast %c1_i32_336 : i32 to vector<1x128xi32>
    %1225 = arith.addi %1159, %1224 : vector<1x128xi32>
    %c0_i32_337 = arith.constant 0 : i32
    %1226 = vector.broadcast %c0_i32_337 : i32 to vector<1x128xi32>
    %1227 = arith.cmpi sge, %1225, %1226 : vector<1x128xi32>
    %1228 = arith.andi %1223, %1227 : vector<1x128xi1>
    %c1_i32_338 = arith.constant 1 : i32
    %1229 = vector.broadcast %c1_i32_338 : i32 to vector<1x128xi32>
    %1230 = arith.addi %1159, %1229 : vector<1x128xi32>
    %c8_i32_339 = arith.constant 8 : i32
    %1231 = vector.broadcast %c8_i32_339 : i32 to vector<1x128xi32>
    %1232 = arith.cmpi slt, %1230, %1231 : vector<1x128xi32>
    %1233 = arith.andi %1228, %1232 : vector<1x128xi1>
    %cst_340 = arith.constant 0.000000e+00 : f32
    %1234 = vector.shape_cast %1233 : vector<1x128xi1> to vector<1x128xi1>
    %1235 = vector.broadcast %1234 : vector<1x128xi1> to vector<8x128xi1>
    %1236 = vector.broadcast %cst_340 : f32 to vector<8x128xf32>
    %1237 = arith.select %1235, %1214, %1236 : vector<8x128xi1>, vector<8x128xf32>
    %1238 = arith.maximumf %1213, %1237 : vector<8x128xf32>
    %c0_341 = arith.constant 0 : index
    %c127_342 = arith.constant 127 : index
    %1239 = vector.load %arg16[%c0_341, %c127_342] : memref<8x768xf32, #tpu.memory_space<vmem>>, vector<8x128xf32>
    %c0_i32_343 = arith.constant 0 : i32
    %1240 = vector.broadcast %c0_i32_343 : i32 to vector<1x128xi32>
    %1241 = arith.addi %1163, %1240 : vector<1x128xi32>
    %c0_i32_344 = arith.constant 0 : i32
    %1242 = vector.broadcast %c0_i32_344 : i32 to vector<1x128xi32>
    %1243 = arith.cmpi sge, %1241, %1242 : vector<1x128xi32>
    %c0_i32_345 = arith.constant 0 : i32
    %1244 = vector.broadcast %c0_i32_345 : i32 to vector<1x128xi32>
    %1245 = arith.addi %1163, %1244 : vector<1x128xi32>
    %c8_i32_346 = arith.constant 8 : i32
    %1246 = vector.broadcast %c8_i32_346 : i32 to vector<1x128xi32>
    %1247 = arith.cmpi slt, %1245, %1246 : vector<1x128xi32>
    %1248 = arith.andi %1243, %1247 : vector<1x128xi1>
    %c-1_i32_347 = arith.constant -1 : i32
    %1249 = vector.broadcast %c-1_i32_347 : i32 to vector<1x128xi32>
    %1250 = arith.addi %1159, %1249 : vector<1x128xi32>
    %c0_i32_348 = arith.constant 0 : i32
    %1251 = vector.broadcast %c0_i32_348 : i32 to vector<1x128xi32>
    %1252 = arith.cmpi sge, %1250, %1251 : vector<1x128xi32>
    %1253 = arith.andi %1248, %1252 : vector<1x128xi1>
    %c-1_i32_349 = arith.constant -1 : i32
    %1254 = vector.broadcast %c-1_i32_349 : i32 to vector<1x128xi32>
    %1255 = arith.addi %1159, %1254 : vector<1x128xi32>
    %c8_i32_350 = arith.constant 8 : i32
    %1256 = vector.broadcast %c8_i32_350 : i32 to vector<1x128xi32>
    %1257 = arith.cmpi slt, %1255, %1256 : vector<1x128xi32>
    %1258 = arith.andi %1253, %1257 : vector<1x128xi1>
    %cst_351 = arith.constant 0.000000e+00 : f32
    %1259 = vector.shape_cast %1258 : vector<1x128xi1> to vector<1x128xi1>
    %1260 = vector.broadcast %1259 : vector<1x128xi1> to vector<8x128xi1>
    %1261 = vector.broadcast %cst_351 : f32 to vector<8x128xf32>
    %1262 = arith.select %1260, %1239, %1261 : vector<8x128xi1>, vector<8x128xf32>
    %1263 = arith.maximumf %1238, %1262 : vector<8x128xf32>
    %c0_352 = arith.constant 0 : index
    %c128_353 = arith.constant 128 : index
    %1264 = vector.load %arg16[%c0_352, %c128_353] : memref<8x768xf32, #tpu.memory_space<vmem>>, vector<8x128xf32>
    %c0_i32_354 = arith.constant 0 : i32
    %1265 = vector.broadcast %c0_i32_354 : i32 to vector<1x128xi32>
    %1266 = arith.addi %1163, %1265 : vector<1x128xi32>
    %c0_i32_355 = arith.constant 0 : i32
    %1267 = vector.broadcast %c0_i32_355 : i32 to vector<1x128xi32>
    %1268 = arith.cmpi sge, %1266, %1267 : vector<1x128xi32>
    %c0_i32_356 = arith.constant 0 : i32
    %1269 = vector.broadcast %c0_i32_356 : i32 to vector<1x128xi32>
    %1270 = arith.addi %1163, %1269 : vector<1x128xi32>
    %c8_i32_357 = arith.constant 8 : i32
    %1271 = vector.broadcast %c8_i32_357 : i32 to vector<1x128xi32>
    %1272 = arith.cmpi slt, %1270, %1271 : vector<1x128xi32>
    %1273 = arith.andi %1268, %1272 : vector<1x128xi1>
    %c0_i32_358 = arith.constant 0 : i32
    %1274 = vector.broadcast %c0_i32_358 : i32 to vector<1x128xi32>
    %1275 = arith.addi %1159, %1274 : vector<1x128xi32>
    %c0_i32_359 = arith.constant 0 : i32
    %1276 = vector.broadcast %c0_i32_359 : i32 to vector<1x128xi32>
    %1277 = arith.cmpi sge, %1275, %1276 : vector<1x128xi32>
    %1278 = arith.andi %1273, %1277 : vector<1x128xi1>
    %c0_i32_360 = arith.constant 0 : i32
    %1279 = vector.broadcast %c0_i32_360 : i32 to vector<1x128xi32>
    %1280 = arith.addi %1159, %1279 : vector<1x128xi32>
    %c8_i32_361 = arith.constant 8 : i32
    %1281 = vector.broadcast %c8_i32_361 : i32 to vector<1x128xi32>
    %1282 = arith.cmpi slt, %1280, %1281 : vector<1x128xi32>
    %1283 = arith.andi %1278, %1282 : vector<1x128xi1>
    %cst_362 = arith.constant 0.000000e+00 : f32
    %1284 = vector.shape_cast %1283 : vector<1x128xi1> to vector<1x128xi1>
    %1285 = vector.broadcast %1284 : vector<1x128xi1> to vector<8x128xi1>
    %1286 = vector.broadcast %cst_362 : f32 to vector<8x128xf32>
    %1287 = arith.select %1285, %1264, %1286 : vector<8x128xi1>, vector<8x128xf32>
    %1288 = arith.maximumf %1263, %1287 : vector<8x128xf32>
    %c0_363 = arith.constant 0 : index
    %c129_364 = arith.constant 129 : index
    %1289 = vector.load %arg16[%c0_363, %c129_364] : memref<8x768xf32, #tpu.memory_space<vmem>>, vector<8x128xf32>
    %c0_i32_365 = arith.constant 0 : i32
    %1290 = vector.broadcast %c0_i32_365 : i32 to vector<1x128xi32>
    %1291 = arith.addi %1163, %1290 : vector<1x128xi32>
    %c0_i32_366 = arith.constant 0 : i32
    %1292 = vector.broadcast %c0_i32_366 : i32 to vector<1x128xi32>
    %1293 = arith.cmpi sge, %1291, %1292 : vector<1x128xi32>
    %c0_i32_367 = arith.constant 0 : i32
    %1294 = vector.broadcast %c0_i32_367 : i32 to vector<1x128xi32>
    %1295 = arith.addi %1163, %1294 : vector<1x128xi32>
    %c8_i32_368 = arith.constant 8 : i32
    %1296 = vector.broadcast %c8_i32_368 : i32 to vector<1x128xi32>
    %1297 = arith.cmpi slt, %1295, %1296 : vector<1x128xi32>
    %1298 = arith.andi %1293, %1297 : vector<1x128xi1>
    %c1_i32_369 = arith.constant 1 : i32
    %1299 = vector.broadcast %c1_i32_369 : i32 to vector<1x128xi32>
    %1300 = arith.addi %1159, %1299 : vector<1x128xi32>
    %c0_i32_370 = arith.constant 0 : i32
    %1301 = vector.broadcast %c0_i32_370 : i32 to vector<1x128xi32>
    %1302 = arith.cmpi sge, %1300, %1301 : vector<1x128xi32>
    %1303 = arith.andi %1298, %1302 : vector<1x128xi1>
    %c1_i32_371 = arith.constant 1 : i32
    %1304 = vector.broadcast %c1_i32_371 : i32 to vector<1x128xi32>
    %1305 = arith.addi %1159, %1304 : vector<1x128xi32>
    %c8_i32_372 = arith.constant 8 : i32
    %1306 = vector.broadcast %c8_i32_372 : i32 to vector<1x128xi32>
    %1307 = arith.cmpi slt, %1305, %1306 : vector<1x128xi32>
    %1308 = arith.andi %1303, %1307 : vector<1x128xi1>
    %cst_373 = arith.constant 0.000000e+00 : f32
    %1309 = vector.shape_cast %1308 : vector<1x128xi1> to vector<1x128xi1>
    %1310 = vector.broadcast %1309 : vector<1x128xi1> to vector<8x128xi1>
    %1311 = vector.broadcast %cst_373 : f32 to vector<8x128xf32>
    %1312 = arith.select %1310, %1289, %1311 : vector<8x128xi1>, vector<8x128xf32>
    %1313 = arith.maximumf %1288, %1312 : vector<8x128xf32>
    %c0_374 = arith.constant 0 : index
    %c135_375 = arith.constant 135 : index
    %1314 = vector.load %arg16[%c0_374, %c135_375] : memref<8x768xf32, #tpu.memory_space<vmem>>, vector<8x128xf32>
    %c1_i32_376 = arith.constant 1 : i32
    %1315 = vector.broadcast %c1_i32_376 : i32 to vector<1x128xi32>
    %1316 = arith.addi %1163, %1315 : vector<1x128xi32>
    %c0_i32_377 = arith.constant 0 : i32
    %1317 = vector.broadcast %c0_i32_377 : i32 to vector<1x128xi32>
    %1318 = arith.cmpi sge, %1316, %1317 : vector<1x128xi32>
    %c1_i32_378 = arith.constant 1 : i32
    %1319 = vector.broadcast %c1_i32_378 : i32 to vector<1x128xi32>
    %1320 = arith.addi %1163, %1319 : vector<1x128xi32>
    %c8_i32_379 = arith.constant 8 : i32
    %1321 = vector.broadcast %c8_i32_379 : i32 to vector<1x128xi32>
    %1322 = arith.cmpi slt, %1320, %1321 : vector<1x128xi32>
    %1323 = arith.andi %1318, %1322 : vector<1x128xi1>
    %c-1_i32_380 = arith.constant -1 : i32
    %1324 = vector.broadcast %c-1_i32_380 : i32 to vector<1x128xi32>
    %1325 = arith.addi %1159, %1324 : vector<1x128xi32>
    %c0_i32_381 = arith.constant 0 : i32
    %1326 = vector.broadcast %c0_i32_381 : i32 to vector<1x128xi32>
    %1327 = arith.cmpi sge, %1325, %1326 : vector<1x128xi32>
    %1328 = arith.andi %1323, %1327 : vector<1x128xi1>
    %c-1_i32_382 = arith.constant -1 : i32
    %1329 = vector.broadcast %c-1_i32_382 : i32 to vector<1x128xi32>
    %1330 = arith.addi %1159, %1329 : vector<1x128xi32>
    %c8_i32_383 = arith.constant 8 : i32
    %1331 = vector.broadcast %c8_i32_383 : i32 to vector<1x128xi32>
    %1332 = arith.cmpi slt, %1330, %1331 : vector<1x128xi32>
    %1333 = arith.andi %1328, %1332 : vector<1x128xi1>
    %cst_384 = arith.constant 0.000000e+00 : f32
    %1334 = vector.shape_cast %1333 : vector<1x128xi1> to vector<1x128xi1>
    %1335 = vector.broadcast %1334 : vector<1x128xi1> to vector<8x128xi1>
    %1336 = vector.broadcast %cst_384 : f32 to vector<8x128xf32>
    %1337 = arith.select %1335, %1314, %1336 : vector<8x128xi1>, vector<8x128xf32>
    %1338 = arith.maximumf %1313, %1337 : vector<8x128xf32>
    %c0_385 = arith.constant 0 : index
    %c136_386 = arith.constant 136 : index
    %1339 = vector.load %arg16[%c0_385, %c136_386] : memref<8x768xf32, #tpu.memory_space<vmem>>, vector<8x128xf32>
    %c1_i32_387 = arith.constant 1 : i32
    %1340 = vector.broadcast %c1_i32_387 : i32 to vector<1x128xi32>
    %1341 = arith.addi %1163, %1340 : vector<1x128xi32>
    %c0_i32_388 = arith.constant 0 : i32
    %1342 = vector.broadcast %c0_i32_388 : i32 to vector<1x128xi32>
    %1343 = arith.cmpi sge, %1341, %1342 : vector<1x128xi32>
    %c1_i32_389 = arith.constant 1 : i32
    %1344 = vector.broadcast %c1_i32_389 : i32 to vector<1x128xi32>
    %1345 = arith.addi %1163, %1344 : vector<1x128xi32>
    %c8_i32_390 = arith.constant 8 : i32
    %1346 = vector.broadcast %c8_i32_390 : i32 to vector<1x128xi32>
    %1347 = arith.cmpi slt, %1345, %1346 : vector<1x128xi32>
    %1348 = arith.andi %1343, %1347 : vector<1x128xi1>
    %c0_i32_391 = arith.constant 0 : i32
    %1349 = vector.broadcast %c0_i32_391 : i32 to vector<1x128xi32>
    %1350 = arith.addi %1159, %1349 : vector<1x128xi32>
    %c0_i32_392 = arith.constant 0 : i32
    %1351 = vector.broadcast %c0_i32_392 : i32 to vector<1x128xi32>
    %1352 = arith.cmpi sge, %1350, %1351 : vector<1x128xi32>
    %1353 = arith.andi %1348, %1352 : vector<1x128xi1>
    %c0_i32_393 = arith.constant 0 : i32
    %1354 = vector.broadcast %c0_i32_393 : i32 to vector<1x128xi32>
    %1355 = arith.addi %1159, %1354 : vector<1x128xi32>
    %c8_i32_394 = arith.constant 8 : i32
    %1356 = vector.broadcast %c8_i32_394 : i32 to vector<1x128xi32>
    %1357 = arith.cmpi slt, %1355, %1356 : vector<1x128xi32>
    %1358 = arith.andi %1353, %1357 : vector<1x128xi1>
    %cst_395 = arith.constant 0.000000e+00 : f32
    %1359 = vector.shape_cast %1358 : vector<1x128xi1> to vector<1x128xi1>
    %1360 = vector.broadcast %1359 : vector<1x128xi1> to vector<8x128xi1>
    %1361 = vector.broadcast %cst_395 : f32 to vector<8x128xf32>
    %1362 = arith.select %1360, %1339, %1361 : vector<8x128xi1>, vector<8x128xf32>
    %1363 = arith.maximumf %1338, %1362 : vector<8x128xf32>
    %c0_396 = arith.constant 0 : index
    %c137_397 = arith.constant 137 : index
    %1364 = vector.load %arg16[%c0_396, %c137_397] : memref<8x768xf32, #tpu.memory_space<vmem>>, vector<8x128xf32>
    %c1_i32_398 = arith.constant 1 : i32
    %1365 = vector.broadcast %c1_i32_398 : i32 to vector<1x128xi32>
    %1366 = arith.addi %1163, %1365 : vector<1x128xi32>
    %c0_i32_399 = arith.constant 0 : i32
    %1367 = vector.broadcast %c0_i32_399 : i32 to vector<1x128xi32>
    %1368 = arith.cmpi sge, %1366, %1367 : vector<1x128xi32>
    %c1_i32_400 = arith.constant 1 : i32
    %1369 = vector.broadcast %c1_i32_400 : i32 to vector<1x128xi32>
    %1370 = arith.addi %1163, %1369 : vector<1x128xi32>
    %c8_i32_401 = arith.constant 8 : i32
    %1371 = vector.broadcast %c8_i32_401 : i32 to vector<1x128xi32>
    %1372 = arith.cmpi slt, %1370, %1371 : vector<1x128xi32>
    %1373 = arith.andi %1368, %1372 : vector<1x128xi1>
    %c1_i32_402 = arith.constant 1 : i32
    %1374 = vector.broadcast %c1_i32_402 : i32 to vector<1x128xi32>
    %1375 = arith.addi %1159, %1374 : vector<1x128xi32>
    %c0_i32_403 = arith.constant 0 : i32
    %1376 = vector.broadcast %c0_i32_403 : i32 to vector<1x128xi32>
    %1377 = arith.cmpi sge, %1375, %1376 : vector<1x128xi32>
    %1378 = arith.andi %1373, %1377 : vector<1x128xi1>
    %c1_i32_404 = arith.constant 1 : i32
    %1379 = vector.broadcast %c1_i32_404 : i32 to vector<1x128xi32>
    %1380 = arith.addi %1159, %1379 : vector<1x128xi32>
    %c8_i32_405 = arith.constant 8 : i32
    %1381 = vector.broadcast %c8_i32_405 : i32 to vector<1x128xi32>
    %1382 = arith.cmpi slt, %1380, %1381 : vector<1x128xi32>
    %1383 = arith.andi %1378, %1382 : vector<1x128xi1>
    %cst_406 = arith.constant 0.000000e+00 : f32
    %1384 = vector.shape_cast %1383 : vector<1x128xi1> to vector<1x128xi1>
    %1385 = vector.broadcast %1384 : vector<1x128xi1> to vector<8x128xi1>
    %1386 = vector.broadcast %cst_406 : f32 to vector<8x128xf32>
    %1387 = arith.select %1385, %1364, %1386 : vector<8x128xi1>, vector<8x128xf32>
    %1388 = arith.maximumf %1363, %1387 : vector<8x128xf32>
    %cst_407 = arith.constant dense<0.000000e+00> : vector<8x32xf32>
    %1389 = tpu.matmul %1388, %1155, %cst_407 {dimension_numbers = #tpu.dot_dimension_numbers<[1], [0], [0], [1], [0, 0, 1, 1], [], []>} : vector<8x128xf32>, vector<128x32xf32>, vector<8x32xf32> -> vector<8x32xf32>
    %c0_408 = arith.constant 0 : index
    %c0_409 = arith.constant 0 : index
    %1390 = vector.load %arg5[%c0_408, %c0_409] : memref<4x72xf32, #tpu.memory_space<vmem>>, vector<4x72xf32>
    %c0_410 = arith.constant 0 : index
    %c0_411 = arith.constant 0 : index
    %1391 = vector.load %arg6[%c0_410, %c0_411] : memref<4x1xf32, #tpu.memory_space<vmem>>, vector<4x1xf32>
    %1392 = vector.shape_cast %1391 : vector<4x1xf32> to vector<4x1xf32>
    %1393 = vector.broadcast %1392 : vector<4x1xf32> to vector<4x32xf32>
    %c0_412 = arith.constant 0 : index
    %c128_413 = arith.constant 128 : index
    %1394 = vector.load %arg16[%c0_412, %c128_413] : memref<8x768xf32, #tpu.memory_space<vmem>>, vector<8x32xf32>
    tpu.vector_store %arg16[%c0_412, %c128_413], %1389 {strides = array<i32>} : memref<8x768xf32, #tpu.memory_space<vmem>>, vector<8x32xf32>,
    %1395 = tpu.iota {dimensions = array<i32: 1>} : vector<1x32xi32>
    %c3_i32_414 = arith.constant 3 : i32
    %1396 = vector.broadcast %c3_i32_414 : i32 to vector<1x32xi32>
    %1397 = arith.andi %1395, %1396 : vector<1x32xi32>
    %c2_i32 = arith.constant 2 : i32
    %1398 = vector.broadcast %c2_i32 : i32 to vector<1x32xi32>
    %1399 = arith.shrsi %1395, %1398 : vector<1x32xi32>
    %c3_i32_415 = arith.constant 3 : i32
    %1400 = vector.broadcast %c3_i32_415 : i32 to vector<1x32xi32>
    %1401 = arith.andi %1399, %1400 : vector<1x32xi32>
    %c0_416 = arith.constant 0 : index
    %c123 = arith.constant 123 : index
    %1402 = vector.load %arg16[%c0_416, %c123] : memref<8x768xf32, #tpu.memory_space<vmem>>, vector<8x32xf32>
    %c-1_i32_417 = arith.constant -1 : i32
    %1403 = vector.broadcast %c-1_i32_417 : i32 to vector<1x32xi32>
    %1404 = arith.addi %1401, %1403 : vector<1x32xi32>
    %c0_i32_418 = arith.constant 0 : i32
    %1405 = vector.broadcast %c0_i32_418 : i32 to vector<1x32xi32>
    %1406 = arith.cmpi sge, %1404, %1405 : vector<1x32xi32>
    %c-1_i32_419 = arith.constant -1 : i32
    %1407 = vector.broadcast %c-1_i32_419 : i32 to vector<1x32xi32>
    %1408 = arith.addi %1401, %1407 : vector<1x32xi32>
    %c4_i32_420 = arith.constant 4 : i32
    %1409 = vector.broadcast %c4_i32_420 : i32 to vector<1x32xi32>
    %1410 = arith.cmpi slt, %1408, %1409 : vector<1x32xi32>
    %1411 = arith.andi %1406, %1410 : vector<1x32xi1>
    %c-1_i32_421 = arith.constant -1 : i32
    %1412 = vector.broadcast %c-1_i32_421 : i32 to vector<1x32xi32>
    %1413 = arith.addi %1397, %1412 : vector<1x32xi32>
    %c0_i32_422 = arith.constant 0 : i32
    %1414 = vector.broadcast %c0_i32_422 : i32 to vector<1x32xi32>
    %1415 = arith.cmpi sge, %1413, %1414 : vector<1x32xi32>
    %1416 = arith.andi %1411, %1415 : vector<1x32xi1>
    %c-1_i32_423 = arith.constant -1 : i32
    %1417 = vector.broadcast %c-1_i32_423 : i32 to vector<1x32xi32>
    %1418 = arith.addi %1397, %1417 : vector<1x32xi32>
    %c4_i32_424 = arith.constant 4 : i32
    %1419 = vector.broadcast %c4_i32_424 : i32 to vector<1x32xi32>
    %1420 = arith.cmpi slt, %1418, %1419 : vector<1x32xi32>
    %1421 = arith.andi %1416, %1420 : vector<1x32xi1>
    %cst_425 = arith.constant 0.000000e+00 : f32
    %1422 = vector.shape_cast %1421 : vector<1x32xi1> to vector<1x32xi1>
    %1423 = vector.broadcast %1422 : vector<1x32xi1> to vector<8x32xi1>
    %1424 = vector.broadcast %cst_425 : f32 to vector<8x32xf32>
    %1425 = arith.select %1423, %1402, %1424 : vector<8x32xi1>, vector<8x32xf32>
    %1426 = vector.extract_strided_slice %1390 {offsets = [0, 0], sizes = [4, 1], strides = [1, 1]} : vector<4x72xf32> to vector<4x1xf32>
    %1427 = vector.extract_strided_slice %1425 {offsets = [0, 0], sizes = [1, 32], strides = [1, 1]} : vector<8x32xf32> to vector<1x32xf32>
    %1428 = vector.broadcast %1426 : vector<4x1xf32> to vector<4x32xf32>
    %1429 = vector.broadcast %1427 : vector<1x32xf32> to vector<4x32xf32>
    %1430 = arith.mulf %1428, %1429 : vector<4x32xf32>
    %1431 = arith.addf %1393, %1430 : vector<4x32xf32>
    %1432 = vector.extract_strided_slice %1390 {offsets = [0, 1], sizes = [4, 1], strides = [1, 1]} : vector<4x72xf32> to vector<4x1xf32>
    %1433 = vector.extract_strided_slice %1425 {offsets = [1, 0], sizes = [1, 32], strides = [1, 1]} : vector<8x32xf32> to vector<1x32xf32>
    %1434 = vector.broadcast %1432 : vector<4x1xf32> to vector<4x32xf32>
    %1435 = vector.broadcast %1433 : vector<1x32xf32> to vector<4x32xf32>
    %1436 = arith.mulf %1434, %1435 : vector<4x32xf32>
    %1437 = arith.addf %1431, %1436 : vector<4x32xf32>
    %1438 = vector.extract_strided_slice %1390 {offsets = [0, 2], sizes = [4, 1], strides = [1, 1]} : vector<4x72xf32> to vector<4x1xf32>
    %1439 = vector.extract_strided_slice %1425 {offsets = [2, 0], sizes = [1, 32], strides = [1, 1]} : vector<8x32xf32> to vector<1x32xf32>
    %1440 = vector.broadcast %1438 : vector<4x1xf32> to vector<4x32xf32>
    %1441 = vector.broadcast %1439 : vector<1x32xf32> to vector<4x32xf32>
    %1442 = arith.mulf %1440, %1441 : vector<4x32xf32>
    %1443 = arith.addf %1437, %1442 : vector<4x32xf32>
    %1444 = vector.extract_strided_slice %1390 {offsets = [0, 3], sizes = [4, 1], strides = [1, 1]} : vector<4x72xf32> to vector<4x1xf32>
    %1445 = vector.extract_strided_slice %1425 {offsets = [3, 0], sizes = [1, 32], strides = [1, 1]} : vector<8x32xf32> to vector<1x32xf32>
    %1446 = vector.broadcast %1444 : vector<4x1xf32> to vector<4x32xf32>
    %1447 = vector.broadcast %1445 : vector<1x32xf32> to vector<4x32xf32>
    %1448 = arith.mulf %1446, %1447 : vector<4x32xf32>
    %1449 = arith.addf %1443, %1448 : vector<4x32xf32>
    %1450 = vector.extract_strided_slice %1390 {offsets = [0, 4], sizes = [4, 1], strides = [1, 1]} : vector<4x72xf32> to vector<4x1xf32>
    %1451 = vector.extract_strided_slice %1425 {offsets = [4, 0], sizes = [1, 32], strides = [1, 1]} : vector<8x32xf32> to vector<1x32xf32>
    %1452 = vector.broadcast %1450 : vector<4x1xf32> to vector<4x32xf32>
    %1453 = vector.broadcast %1451 : vector<1x32xf32> to vector<4x32xf32>
    %1454 = arith.mulf %1452, %1453 : vector<4x32xf32>
    %1455 = arith.addf %1449, %1454 : vector<4x32xf32>
    %1456 = vector.extract_strided_slice %1390 {offsets = [0, 5], sizes = [4, 1], strides = [1, 1]} : vector<4x72xf32> to vector<4x1xf32>
    %1457 = vector.extract_strided_slice %1425 {offsets = [5, 0], sizes = [1, 32], strides = [1, 1]} : vector<8x32xf32> to vector<1x32xf32>
    %1458 = vector.broadcast %1456 : vector<4x1xf32> to vector<4x32xf32>
    %1459 = vector.broadcast %1457 : vector<1x32xf32> to vector<4x32xf32>
    %1460 = arith.mulf %1458, %1459 : vector<4x32xf32>
    %1461 = arith.addf %1455, %1460 : vector<4x32xf32>
    %1462 = vector.extract_strided_slice %1390 {offsets = [0, 6], sizes = [4, 1], strides = [1, 1]} : vector<4x72xf32> to vector<4x1xf32>
    %1463 = vector.extract_strided_slice %1425 {offsets = [6, 0], sizes = [1, 32], strides = [1, 1]} : vector<8x32xf32> to vector<1x32xf32>
    %1464 = vector.broadcast %1462 : vector<4x1xf32> to vector<4x32xf32>
    %1465 = vector.broadcast %1463 : vector<1x32xf32> to vector<4x32xf32>
    %1466 = arith.mulf %1464, %1465 : vector<4x32xf32>
    %1467 = arith.addf %1461, %1466 : vector<4x32xf32>
    %1468 = vector.extract_strided_slice %1390 {offsets = [0, 7], sizes = [4, 1], strides = [1, 1]} : vector<4x72xf32> to vector<4x1xf32>
    %1469 = vector.extract_strided_slice %1425 {offsets = [7, 0], sizes = [1, 32], strides = [1, 1]} : vector<8x32xf32> to vector<1x32xf32>
    %1470 = vector.broadcast %1468 : vector<4x1xf32> to vector<4x32xf32>
    %1471 = vector.broadcast %1469 : vector<1x32xf32> to vector<4x32xf32>
    %1472 = arith.mulf %1470, %1471 : vector<4x32xf32>
    %1473 = arith.addf %1467, %1472 : vector<4x32xf32>
    %c0_426 = arith.constant 0 : index
    %c124 = arith.constant 124 : index
    %1474 = vector.load %arg16[%c0_426, %c124] : memref<8x768xf32, #tpu.memory_space<vmem>>, vector<8x32xf32>
    %c-1_i32_427 = arith.constant -1 : i32
    %1475 = vector.broadcast %c-1_i32_427 : i32 to vector<1x32xi32>
    %1476 = arith.addi %1401, %1475 : vector<1x32xi32>
    %c0_i32_428 = arith.constant 0 : i32
    %1477 = vector.broadcast %c0_i32_428 : i32 to vector<1x32xi32>
    %1478 = arith.cmpi sge, %1476, %1477 : vector<1x32xi32>
    %c-1_i32_429 = arith.constant -1 : i32
    %1479 = vector.broadcast %c-1_i32_429 : i32 to vector<1x32xi32>
    %1480 = arith.addi %1401, %1479 : vector<1x32xi32>
    %c4_i32_430 = arith.constant 4 : i32
    %1481 = vector.broadcast %c4_i32_430 : i32 to vector<1x32xi32>
    %1482 = arith.cmpi slt, %1480, %1481 : vector<1x32xi32>
    %1483 = arith.andi %1478, %1482 : vector<1x32xi1>
    %c0_i32_431 = arith.constant 0 : i32
    %1484 = vector.broadcast %c0_i32_431 : i32 to vector<1x32xi32>
    %1485 = arith.addi %1397, %1484 : vector<1x32xi32>
    %c0_i32_432 = arith.constant 0 : i32
    %1486 = vector.broadcast %c0_i32_432 : i32 to vector<1x32xi32>
    %1487 = arith.cmpi sge, %1485, %1486 : vector<1x32xi32>
    %1488 = arith.andi %1483, %1487 : vector<1x32xi1>
    %c0_i32_433 = arith.constant 0 : i32
    %1489 = vector.broadcast %c0_i32_433 : i32 to vector<1x32xi32>
    %1490 = arith.addi %1397, %1489 : vector<1x32xi32>
    %c4_i32_434 = arith.constant 4 : i32
    %1491 = vector.broadcast %c4_i32_434 : i32 to vector<1x32xi32>
    %1492 = arith.cmpi slt, %1490, %1491 : vector<1x32xi32>
    %1493 = arith.andi %1488, %1492 : vector<1x32xi1>
    %cst_435 = arith.constant 0.000000e+00 : f32
    %1494 = vector.shape_cast %1493 : vector<1x32xi1> to vector<1x32xi1>
    %1495 = vector.broadcast %1494 : vector<1x32xi1> to vector<8x32xi1>
    %1496 = vector.broadcast %cst_435 : f32 to vector<8x32xf32>
    %1497 = arith.select %1495, %1474, %1496 : vector<8x32xi1>, vector<8x32xf32>
    %1498 = vector.extract_strided_slice %1390 {offsets = [0, 8], sizes = [4, 1], strides = [1, 1]} : vector<4x72xf32> to vector<4x1xf32>
    %1499 = vector.extract_strided_slice %1497 {offsets = [0, 0], sizes = [1, 32], strides = [1, 1]} : vector<8x32xf32> to vector<1x32xf32>
    %1500 = vector.broadcast %1498 : vector<4x1xf32> to vector<4x32xf32>
    %1501 = vector.broadcast %1499 : vector<1x32xf32> to vector<4x32xf32>
    %1502 = arith.mulf %1500, %1501 : vector<4x32xf32>
    %1503 = arith.addf %1473, %1502 : vector<4x32xf32>
    %1504 = vector.extract_strided_slice %1390 {offsets = [0, 9], sizes = [4, 1], strides = [1, 1]} : vector<4x72xf32> to vector<4x1xf32>
    %1505 = vector.extract_strided_slice %1497 {offsets = [1, 0], sizes = [1, 32], strides = [1, 1]} : vector<8x32xf32> to vector<1x32xf32>
    %1506 = vector.broadcast %1504 : vector<4x1xf32> to vector<4x32xf32>
    %1507 = vector.broadcast %1505 : vector<1x32xf32> to vector<4x32xf32>
    %1508 = arith.mulf %1506, %1507 : vector<4x32xf32>
    %1509 = arith.addf %1503, %1508 : vector<4x32xf32>
    %1510 = vector.extract_strided_slice %1390 {offsets = [0, 10], sizes = [4, 1], strides = [1, 1]} : vector<4x72xf32> to vector<4x1xf32>
    %1511 = vector.extract_strided_slice %1497 {offsets = [2, 0], sizes = [1, 32], strides = [1, 1]} : vector<8x32xf32> to vector<1x32xf32>
    %1512 = vector.broadcast %1510 : vector<4x1xf32> to vector<4x32xf32>
    %1513 = vector.broadcast %1511 : vector<1x32xf32> to vector<4x32xf32>
    %1514 = arith.mulf %1512, %1513 : vector<4x32xf32>
    %1515 = arith.addf %1509, %1514 : vector<4x32xf32>
    %1516 = vector.extract_strided_slice %1390 {offsets = [0, 11], sizes = [4, 1], strides = [1, 1]} : vector<4x72xf32> to vector<4x1xf32>
    %1517 = vector.extract_strided_slice %1497 {offsets = [3, 0], sizes = [1, 32], strides = [1, 1]} : vector<8x32xf32> to vector<1x32xf32>
    %1518 = vector.broadcast %1516 : vector<4x1xf32> to vector<4x32xf32>
    %1519 = vector.broadcast %1517 : vector<1x32xf32> to vector<4x32xf32>
    %1520 = arith.mulf %1518, %1519 : vector<4x32xf32>
    %1521 = arith.addf %1515, %1520 : vector<4x32xf32>
    %1522 = vector.extract_strided_slice %1390 {offsets = [0, 12], sizes = [4, 1], strides = [1, 1]} : vector<4x72xf32> to vector<4x1xf32>
    %1523 = vector.extract_strided_slice %1497 {offsets = [4, 0], sizes = [1, 32], strides = [1, 1]} : vector<8x32xf32> to vector<1x32xf32>
    %1524 = vector.broadcast %1522 : vector<4x1xf32> to vector<4x32xf32>
    %1525 = vector.broadcast %1523 : vector<1x32xf32> to vector<4x32xf32>
    %1526 = arith.mulf %1524, %1525 : vector<4x32xf32>
    %1527 = arith.addf %1521, %1526 : vector<4x32xf32>
    %1528 = vector.extract_strided_slice %1390 {offsets = [0, 13], sizes = [4, 1], strides = [1, 1]} : vector<4x72xf32> to vector<4x1xf32>
    %1529 = vector.extract_strided_slice %1497 {offsets = [5, 0], sizes = [1, 32], strides = [1, 1]} : vector<8x32xf32> to vector<1x32xf32>
    %1530 = vector.broadcast %1528 : vector<4x1xf32> to vector<4x32xf32>
    %1531 = vector.broadcast %1529 : vector<1x32xf32> to vector<4x32xf32>
    %1532 = arith.mulf %1530, %1531 : vector<4x32xf32>
    %1533 = arith.addf %1527, %1532 : vector<4x32xf32>
    %1534 = vector.extract_strided_slice %1390 {offsets = [0, 14], sizes = [4, 1], strides = [1, 1]} : vector<4x72xf32> to vector<4x1xf32>
    %1535 = vector.extract_strided_slice %1497 {offsets = [6, 0], sizes = [1, 32], strides = [1, 1]} : vector<8x32xf32> to vector<1x32xf32>
    %1536 = vector.broadcast %1534 : vector<4x1xf32> to vector<4x32xf32>
    %1537 = vector.broadcast %1535 : vector<1x32xf32> to vector<4x32xf32>
    %1538 = arith.mulf %1536, %1537 : vector<4x32xf32>
    %1539 = arith.addf %1533, %1538 : vector<4x32xf32>
    %1540 = vector.extract_strided_slice %1390 {offsets = [0, 15], sizes = [4, 1], strides = [1, 1]} : vector<4x72xf32> to vector<4x1xf32>
    %1541 = vector.extract_strided_slice %1497 {offsets = [7, 0], sizes = [1, 32], strides = [1, 1]} : vector<8x32xf32> to vector<1x32xf32>
    %1542 = vector.broadcast %1540 : vector<4x1xf32> to vector<4x32xf32>
    %1543 = vector.broadcast %1541 : vector<1x32xf32> to vector<4x32xf32>
    %1544 = arith.mulf %1542, %1543 : vector<4x32xf32>
    %1545 = arith.addf %1539, %1544 : vector<4x32xf32>
    %c0_436 = arith.constant 0 : index
    %c125 = arith.constant 125 : index
    %1546 = vector.load %arg16[%c0_436, %c125] : memref<8x768xf32, #tpu.memory_space<vmem>>, vector<8x32xf32>
    %c-1_i32_437 = arith.constant -1 : i32
    %1547 = vector.broadcast %c-1_i32_437 : i32 to vector<1x32xi32>
    %1548 = arith.addi %1401, %1547 : vector<1x32xi32>
    %c0_i32_438 = arith.constant 0 : i32
    %1549 = vector.broadcast %c0_i32_438 : i32 to vector<1x32xi32>
    %1550 = arith.cmpi sge, %1548, %1549 : vector<1x32xi32>
    %c-1_i32_439 = arith.constant -1 : i32
    %1551 = vector.broadcast %c-1_i32_439 : i32 to vector<1x32xi32>
    %1552 = arith.addi %1401, %1551 : vector<1x32xi32>
    %c4_i32_440 = arith.constant 4 : i32
    %1553 = vector.broadcast %c4_i32_440 : i32 to vector<1x32xi32>
    %1554 = arith.cmpi slt, %1552, %1553 : vector<1x32xi32>
    %1555 = arith.andi %1550, %1554 : vector<1x32xi1>
    %c1_i32_441 = arith.constant 1 : i32
    %1556 = vector.broadcast %c1_i32_441 : i32 to vector<1x32xi32>
    %1557 = arith.addi %1397, %1556 : vector<1x32xi32>
    %c0_i32_442 = arith.constant 0 : i32
    %1558 = vector.broadcast %c0_i32_442 : i32 to vector<1x32xi32>
    %1559 = arith.cmpi sge, %1557, %1558 : vector<1x32xi32>
    %1560 = arith.andi %1555, %1559 : vector<1x32xi1>
    %c1_i32_443 = arith.constant 1 : i32
    %1561 = vector.broadcast %c1_i32_443 : i32 to vector<1x32xi32>
    %1562 = arith.addi %1397, %1561 : vector<1x32xi32>
    %c4_i32_444 = arith.constant 4 : i32
    %1563 = vector.broadcast %c4_i32_444 : i32 to vector<1x32xi32>
    %1564 = arith.cmpi slt, %1562, %1563 : vector<1x32xi32>
    %1565 = arith.andi %1560, %1564 : vector<1x32xi1>
    %cst_445 = arith.constant 0.000000e+00 : f32
    %1566 = vector.shape_cast %1565 : vector<1x32xi1> to vector<1x32xi1>
    %1567 = vector.broadcast %1566 : vector<1x32xi1> to vector<8x32xi1>
    %1568 = vector.broadcast %cst_445 : f32 to vector<8x32xf32>
    %1569 = arith.select %1567, %1546, %1568 : vector<8x32xi1>, vector<8x32xf32>
    %1570 = vector.extract_strided_slice %1390 {offsets = [0, 16], sizes = [4, 1], strides = [1, 1]} : vector<4x72xf32> to vector<4x1xf32>
    %1571 = vector.extract_strided_slice %1569 {offsets = [0, 0], sizes = [1, 32], strides = [1, 1]} : vector<8x32xf32> to vector<1x32xf32>
    %1572 = vector.broadcast %1570 : vector<4x1xf32> to vector<4x32xf32>
    %1573 = vector.broadcast %1571 : vector<1x32xf32> to vector<4x32xf32>
    %1574 = arith.mulf %1572, %1573 : vector<4x32xf32>
    %1575 = arith.addf %1545, %1574 : vector<4x32xf32>
    %1576 = vector.extract_strided_slice %1390 {offsets = [0, 17], sizes = [4, 1], strides = [1, 1]} : vector<4x72xf32> to vector<4x1xf32>
    %1577 = vector.extract_strided_slice %1569 {offsets = [1, 0], sizes = [1, 32], strides = [1, 1]} : vector<8x32xf32> to vector<1x32xf32>
    %1578 = vector.broadcast %1576 : vector<4x1xf32> to vector<4x32xf32>
    %1579 = vector.broadcast %1577 : vector<1x32xf32> to vector<4x32xf32>
    %1580 = arith.mulf %1578, %1579 : vector<4x32xf32>
    %1581 = arith.addf %1575, %1580 : vector<4x32xf32>
    %1582 = vector.extract_strided_slice %1390 {offsets = [0, 18], sizes = [4, 1], strides = [1, 1]} : vector<4x72xf32> to vector<4x1xf32>
    %1583 = vector.extract_strided_slice %1569 {offsets = [2, 0], sizes = [1, 32], strides = [1, 1]} : vector<8x32xf32> to vector<1x32xf32>
    %1584 = vector.broadcast %1582 : vector<4x1xf32> to vector<4x32xf32>
    %1585 = vector.broadcast %1583 : vector<1x32xf32> to vector<4x32xf32>
    %1586 = arith.mulf %1584, %1585 : vector<4x32xf32>
    %1587 = arith.addf %1581, %1586 : vector<4x32xf32>
    %1588 = vector.extract_strided_slice %1390 {offsets = [0, 19], sizes = [4, 1], strides = [1, 1]} : vector<4x72xf32> to vector<4x1xf32>
    %1589 = vector.extract_strided_slice %1569 {offsets = [3, 0], sizes = [1, 32], strides = [1, 1]} : vector<8x32xf32> to vector<1x32xf32>
    %1590 = vector.broadcast %1588 : vector<4x1xf32> to vector<4x32xf32>
    %1591 = vector.broadcast %1589 : vector<1x32xf32> to vector<4x32xf32>
    %1592 = arith.mulf %1590, %1591 : vector<4x32xf32>
    %1593 = arith.addf %1587, %1592 : vector<4x32xf32>
    %1594 = vector.extract_strided_slice %1390 {offsets = [0, 20], sizes = [4, 1], strides = [1, 1]} : vector<4x72xf32> to vector<4x1xf32>
    %1595 = vector.extract_strided_slice %1569 {offsets = [4, 0], sizes = [1, 32], strides = [1, 1]} : vector<8x32xf32> to vector<1x32xf32>
    %1596 = vector.broadcast %1594 : vector<4x1xf32> to vector<4x32xf32>
    %1597 = vector.broadcast %1595 : vector<1x32xf32> to vector<4x32xf32>
    %1598 = arith.mulf %1596, %1597 : vector<4x32xf32>
    %1599 = arith.addf %1593, %1598 : vector<4x32xf32>
    %1600 = vector.extract_strided_slice %1390 {offsets = [0, 21], sizes = [4, 1], strides = [1, 1]} : vector<4x72xf32> to vector<4x1xf32>
    %1601 = vector.extract_strided_slice %1569 {offsets = [5, 0], sizes = [1, 32], strides = [1, 1]} : vector<8x32xf32> to vector<1x32xf32>
    %1602 = vector.broadcast %1600 : vector<4x1xf32> to vector<4x32xf32>
    %1603 = vector.broadcast %1601 : vector<1x32xf32> to vector<4x32xf32>
    %1604 = arith.mulf %1602, %1603 : vector<4x32xf32>
    %1605 = arith.addf %1599, %1604 : vector<4x32xf32>
    %1606 = vector.extract_strided_slice %1390 {offsets = [0, 22], sizes = [4, 1], strides = [1, 1]} : vector<4x72xf32> to vector<4x1xf32>
    %1607 = vector.extract_strided_slice %1569 {offsets = [6, 0], sizes = [1, 32], strides = [1, 1]} : vector<8x32xf32> to vector<1x32xf32>
    %1608 = vector.broadcast %1606 : vector<4x1xf32> to vector<4x32xf32>
    %1609 = vector.broadcast %1607 : vector<1x32xf32> to vector<4x32xf32>
    %1610 = arith.mulf %1608, %1609 : vector<4x32xf32>
    %1611 = arith.addf %1605, %1610 : vector<4x32xf32>
    %1612 = vector.extract_strided_slice %1390 {offsets = [0, 23], sizes = [4, 1], strides = [1, 1]} : vector<4x72xf32> to vector<4x1xf32>
    %1613 = vector.extract_strided_slice %1569 {offsets = [7, 0], sizes = [1, 32], strides = [1, 1]} : vector<8x32xf32> to vector<1x32xf32>
    %1614 = vector.broadcast %1612 : vector<4x1xf32> to vector<4x32xf32>
    %1615 = vector.broadcast %1613 : vector<1x32xf32> to vector<4x32xf32>
    %1616 = arith.mulf %1614, %1615 : vector<4x32xf32>
    %1617 = arith.addf %1611, %1616 : vector<4x32xf32>
    %c0_446 = arith.constant 0 : index
    %c127_447 = arith.constant 127 : index
    %1618 = vector.load %arg16[%c0_446, %c127_447] : memref<8x768xf32, #tpu.memory_space<vmem>>, vector<8x32xf32>
    %c0_i32_448 = arith.constant 0 : i32
    %1619 = vector.broadcast %c0_i32_448 : i32 to vector<1x32xi32>
    %1620 = arith.addi %1401, %1619 : vector<1x32xi32>
    %c0_i32_449 = arith.constant 0 : i32
    %1621 = vector.broadcast %c0_i32_449 : i32 to vector<1x32xi32>
    %1622 = arith.cmpi sge, %1620, %1621 : vector<1x32xi32>
    %c0_i32_450 = arith.constant 0 : i32
    %1623 = vector.broadcast %c0_i32_450 : i32 to vector<1x32xi32>
    %1624 = arith.addi %1401, %1623 : vector<1x32xi32>
    %c4_i32_451 = arith.constant 4 : i32
    %1625 = vector.broadcast %c4_i32_451 : i32 to vector<1x32xi32>
    %1626 = arith.cmpi slt, %1624, %1625 : vector<1x32xi32>
    %1627 = arith.andi %1622, %1626 : vector<1x32xi1>
    %c-1_i32_452 = arith.constant -1 : i32
    %1628 = vector.broadcast %c-1_i32_452 : i32 to vector<1x32xi32>
    %1629 = arith.addi %1397, %1628 : vector<1x32xi32>
    %c0_i32_453 = arith.constant 0 : i32
    %1630 = vector.broadcast %c0_i32_453 : i32 to vector<1x32xi32>
    %1631 = arith.cmpi sge, %1629, %1630 : vector<1x32xi32>
    %1632 = arith.andi %1627, %1631 : vector<1x32xi1>
    %c-1_i32_454 = arith.constant -1 : i32
    %1633 = vector.broadcast %c-1_i32_454 : i32 to vector<1x32xi32>
    %1634 = arith.addi %1397, %1633 : vector<1x32xi32>
    %c4_i32_455 = arith.constant 4 : i32
    %1635 = vector.broadcast %c4_i32_455 : i32 to vector<1x32xi32>
    %1636 = arith.cmpi slt, %1634, %1635 : vector<1x32xi32>
    %1637 = arith.andi %1632, %1636 : vector<1x32xi1>
    %cst_456 = arith.constant 0.000000e+00 : f32
    %1638 = vector.shape_cast %1637 : vector<1x32xi1> to vector<1x32xi1>
    %1639 = vector.broadcast %1638 : vector<1x32xi1> to vector<8x32xi1>
    %1640 = vector.broadcast %cst_456 : f32 to vector<8x32xf32>
    %1641 = arith.select %1639, %1618, %1640 : vector<8x32xi1>, vector<8x32xf32>
    %1642 = vector.extract_strided_slice %1390 {offsets = [0, 24], sizes = [4, 1], strides = [1, 1]} : vector<4x72xf32> to vector<4x1xf32>
    %1643 = vector.extract_strided_slice %1641 {offsets = [0, 0], sizes = [1, 32], strides = [1, 1]} : vector<8x32xf32> to vector<1x32xf32>
    %1644 = vector.broadcast %1642 : vector<4x1xf32> to vector<4x32xf32>
    %1645 = vector.broadcast %1643 : vector<1x32xf32> to vector<4x32xf32>
    %1646 = arith.mulf %1644, %1645 : vector<4x32xf32>
    %1647 = arith.addf %1617, %1646 : vector<4x32xf32>
    %1648 = vector.extract_strided_slice %1390 {offsets = [0, 25], sizes = [4, 1], strides = [1, 1]} : vector<4x72xf32> to vector<4x1xf32>
    %1649 = vector.extract_strided_slice %1641 {offsets = [1, 0], sizes = [1, 32], strides = [1, 1]} : vector<8x32xf32> to vector<1x32xf32>
    %1650 = vector.broadcast %1648 : vector<4x1xf32> to vector<4x32xf32>
    %1651 = vector.broadcast %1649 : vector<1x32xf32> to vector<4x32xf32>
    %1652 = arith.mulf %1650, %1651 : vector<4x32xf32>
    %1653 = arith.addf %1647, %1652 : vector<4x32xf32>
    %1654 = vector.extract_strided_slice %1390 {offsets = [0, 26], sizes = [4, 1], strides = [1, 1]} : vector<4x72xf32> to vector<4x1xf32>
    %1655 = vector.extract_strided_slice %1641 {offsets = [2, 0], sizes = [1, 32], strides = [1, 1]} : vector<8x32xf32> to vector<1x32xf32>
    %1656 = vector.broadcast %1654 : vector<4x1xf32> to vector<4x32xf32>
    %1657 = vector.broadcast %1655 : vector<1x32xf32> to vector<4x32xf32>
    %1658 = arith.mulf %1656, %1657 : vector<4x32xf32>
    %1659 = arith.addf %1653, %1658 : vector<4x32xf32>
    %1660 = vector.extract_strided_slice %1390 {offsets = [0, 27], sizes = [4, 1], strides = [1, 1]} : vector<4x72xf32> to vector<4x1xf32>
    %1661 = vector.extract_strided_slice %1641 {offsets = [3, 0], sizes = [1, 32], strides = [1, 1]} : vector<8x32xf32> to vector<1x32xf32>
    %1662 = vector.broadcast %1660 : vector<4x1xf32> to vector<4x32xf32>
    %1663 = vector.broadcast %1661 : vector<1x32xf32> to vector<4x32xf32>
    %1664 = arith.mulf %1662, %1663 : vector<4x32xf32>
    %1665 = arith.addf %1659, %1664 : vector<4x32xf32>
    %1666 = vector.extract_strided_slice %1390 {offsets = [0, 28], sizes = [4, 1], strides = [1, 1]} : vector<4x72xf32> to vector<4x1xf32>
    %1667 = vector.extract_strided_slice %1641 {offsets = [4, 0], sizes = [1, 32], strides = [1, 1]} : vector<8x32xf32> to vector<1x32xf32>
    %1668 = vector.broadcast %1666 : vector<4x1xf32> to vector<4x32xf32>
    %1669 = vector.broadcast %1667 : vector<1x32xf32> to vector<4x32xf32>
    %1670 = arith.mulf %1668, %1669 : vector<4x32xf32>
    %1671 = arith.addf %1665, %1670 : vector<4x32xf32>
    %1672 = vector.extract_strided_slice %1390 {offsets = [0, 29], sizes = [4, 1], strides = [1, 1]} : vector<4x72xf32> to vector<4x1xf32>
    %1673 = vector.extract_strided_slice %1641 {offsets = [5, 0], sizes = [1, 32], strides = [1, 1]} : vector<8x32xf32> to vector<1x32xf32>
    %1674 = vector.broadcast %1672 : vector<4x1xf32> to vector<4x32xf32>
    %1675 = vector.broadcast %1673 : vector<1x32xf32> to vector<4x32xf32>
    %1676 = arith.mulf %1674, %1675 : vector<4x32xf32>
    %1677 = arith.addf %1671, %1676 : vector<4x32xf32>
    %1678 = vector.extract_strided_slice %1390 {offsets = [0, 30], sizes = [4, 1], strides = [1, 1]} : vector<4x72xf32> to vector<4x1xf32>
    %1679 = vector.extract_strided_slice %1641 {offsets = [6, 0], sizes = [1, 32], strides = [1, 1]} : vector<8x32xf32> to vector<1x32xf32>
    %1680 = vector.broadcast %1678 : vector<4x1xf32> to vector<4x32xf32>
    %1681 = vector.broadcast %1679 : vector<1x32xf32> to vector<4x32xf32>
    %1682 = arith.mulf %1680, %1681 : vector<4x32xf32>
    %1683 = arith.addf %1677, %1682 : vector<4x32xf32>
    %1684 = vector.extract_strided_slice %1390 {offsets = [0, 31], sizes = [4, 1], strides = [1, 1]} : vector<4x72xf32> to vector<4x1xf32>
    %1685 = vector.extract_strided_slice %1641 {offsets = [7, 0], sizes = [1, 32], strides = [1, 1]} : vector<8x32xf32> to vector<1x32xf32>
    %1686 = vector.broadcast %1684 : vector<4x1xf32> to vector<4x32xf32>
    %1687 = vector.broadcast %1685 : vector<1x32xf32> to vector<4x32xf32>
    %1688 = arith.mulf %1686, %1687 : vector<4x32xf32>
    %1689 = arith.addf %1683, %1688 : vector<4x32xf32>
    %c0_457 = arith.constant 0 : index
    %c128_458 = arith.constant 128 : index
    %1690 = vector.load %arg16[%c0_457, %c128_458] : memref<8x768xf32, #tpu.memory_space<vmem>>, vector<8x32xf32>
    %c0_i32_459 = arith.constant 0 : i32
    %1691 = vector.broadcast %c0_i32_459 : i32 to vector<1x32xi32>
    %1692 = arith.addi %1401, %1691 : vector<1x32xi32>
    %c0_i32_460 = arith.constant 0 : i32
    %1693 = vector.broadcast %c0_i32_460 : i32 to vector<1x32xi32>
    %1694 = arith.cmpi sge, %1692, %1693 : vector<1x32xi32>
    %c0_i32_461 = arith.constant 0 : i32
    %1695 = vector.broadcast %c0_i32_461 : i32 to vector<1x32xi32>
    %1696 = arith.addi %1401, %1695 : vector<1x32xi32>
    %c4_i32_462 = arith.constant 4 : i32
    %1697 = vector.broadcast %c4_i32_462 : i32 to vector<1x32xi32>
    %1698 = arith.cmpi slt, %1696, %1697 : vector<1x32xi32>
    %1699 = arith.andi %1694, %1698 : vector<1x32xi1>
    %c0_i32_463 = arith.constant 0 : i32
    %1700 = vector.broadcast %c0_i32_463 : i32 to vector<1x32xi32>
    %1701 = arith.addi %1397, %1700 : vector<1x32xi32>
    %c0_i32_464 = arith.constant 0 : i32
    %1702 = vector.broadcast %c0_i32_464 : i32 to vector<1x32xi32>
    %1703 = arith.cmpi sge, %1701, %1702 : vector<1x32xi32>
    %1704 = arith.andi %1699, %1703 : vector<1x32xi1>
    %c0_i32_465 = arith.constant 0 : i32
    %1705 = vector.broadcast %c0_i32_465 : i32 to vector<1x32xi32>
    %1706 = arith.addi %1397, %1705 : vector<1x32xi32>
    %c4_i32_466 = arith.constant 4 : i32
    %1707 = vector.broadcast %c4_i32_466 : i32 to vector<1x32xi32>
    %1708 = arith.cmpi slt, %1706, %1707 : vector<1x32xi32>
    %1709 = arith.andi %1704, %1708 : vector<1x32xi1>
    %cst_467 = arith.constant 0.000000e+00 : f32
    %1710 = vector.shape_cast %1709 : vector<1x32xi1> to vector<1x32xi1>
    %1711 = vector.broadcast %1710 : vector<1x32xi1> to vector<8x32xi1>
    %1712 = vector.broadcast %cst_467 : f32 to vector<8x32xf32>
    %1713 = arith.select %1711, %1690, %1712 : vector<8x32xi1>, vector<8x32xf32>
    %1714 = vector.extract_strided_slice %1390 {offsets = [0, 32], sizes = [4, 1], strides = [1, 1]} : vector<4x72xf32> to vector<4x1xf32>
    %1715 = vector.extract_strided_slice %1713 {offsets = [0, 0], sizes = [1, 32], strides = [1, 1]} : vector<8x32xf32> to vector<1x32xf32>
    %1716 = vector.broadcast %1714 : vector<4x1xf32> to vector<4x32xf32>
    %1717 = vector.broadcast %1715 : vector<1x32xf32> to vector<4x32xf32>
    %1718 = arith.mulf %1716, %1717 : vector<4x32xf32>
    %1719 = arith.addf %1689, %1718 : vector<4x32xf32>
    %1720 = vector.extract_strided_slice %1390 {offsets = [0, 33], sizes = [4, 1], strides = [1, 1]} : vector<4x72xf32> to vector<4x1xf32>
    %1721 = vector.extract_strided_slice %1713 {offsets = [1, 0], sizes = [1, 32], strides = [1, 1]} : vector<8x32xf32> to vector<1x32xf32>
    %1722 = vector.broadcast %1720 : vector<4x1xf32> to vector<4x32xf32>
    %1723 = vector.broadcast %1721 : vector<1x32xf32> to vector<4x32xf32>
    %1724 = arith.mulf %1722, %1723 : vector<4x32xf32>
    %1725 = arith.addf %1719, %1724 : vector<4x32xf32>
    %1726 = vector.extract_strided_slice %1390 {offsets = [0, 34], sizes = [4, 1], strides = [1, 1]} : vector<4x72xf32> to vector<4x1xf32>
    %1727 = vector.extract_strided_slice %1713 {offsets = [2, 0], sizes = [1, 32], strides = [1, 1]} : vector<8x32xf32> to vector<1x32xf32>
    %1728 = vector.broadcast %1726 : vector<4x1xf32> to vector<4x32xf32>
    %1729 = vector.broadcast %1727 : vector<1x32xf32> to vector<4x32xf32>
    %1730 = arith.mulf %1728, %1729 : vector<4x32xf32>
    %1731 = arith.addf %1725, %1730 : vector<4x32xf32>
    %1732 = vector.extract_strided_slice %1390 {offsets = [0, 35], sizes = [4, 1], strides = [1, 1]} : vector<4x72xf32> to vector<4x1xf32>
    %1733 = vector.extract_strided_slice %1713 {offsets = [3, 0], sizes = [1, 32], strides = [1, 1]} : vector<8x32xf32> to vector<1x32xf32>
    %1734 = vector.broadcast %1732 : vector<4x1xf32> to vector<4x32xf32>
    %1735 = vector.broadcast %1733 : vector<1x32xf32> to vector<4x32xf32>
    %1736 = arith.mulf %1734, %1735 : vector<4x32xf32>
    %1737 = arith.addf %1731, %1736 : vector<4x32xf32>
    %1738 = vector.extract_strided_slice %1390 {offsets = [0, 36], sizes = [4, 1], strides = [1, 1]} : vector<4x72xf32> to vector<4x1xf32>
    %1739 = vector.extract_strided_slice %1713 {offsets = [4, 0], sizes = [1, 32], strides = [1, 1]} : vector<8x32xf32> to vector<1x32xf32>
    %1740 = vector.broadcast %1738 : vector<4x1xf32> to vector<4x32xf32>
    %1741 = vector.broadcast %1739 : vector<1x32xf32> to vector<4x32xf32>
    %1742 = arith.mulf %1740, %1741 : vector<4x32xf32>
    %1743 = arith.addf %1737, %1742 : vector<4x32xf32>
    %1744 = vector.extract_strided_slice %1390 {offsets = [0, 37], sizes = [4, 1], strides = [1, 1]} : vector<4x72xf32> to vector<4x1xf32>
    %1745 = vector.extract_strided_slice %1713 {offsets = [5, 0], sizes = [1, 32], strides = [1, 1]} : vector<8x32xf32> to vector<1x32xf32>
    %1746 = vector.broadcast %1744 : vector<4x1xf32> to vector<4x32xf32>
    %1747 = vector.broadcast %1745 : vector<1x32xf32> to vector<4x32xf32>
    %1748 = arith.mulf %1746, %1747 : vector<4x32xf32>
    %1749 = arith.addf %1743, %1748 : vector<4x32xf32>
    %1750 = vector.extract_strided_slice %1390 {offsets = [0, 38], sizes = [4, 1], strides = [1, 1]} : vector<4x72xf32> to vector<4x1xf32>
    %1751 = vector.extract_strided_slice %1713 {offsets = [6, 0], sizes = [1, 32], strides = [1, 1]} : vector<8x32xf32> to vector<1x32xf32>
    %1752 = vector.broadcast %1750 : vector<4x1xf32> to vector<4x32xf32>
    %1753 = vector.broadcast %1751 : vector<1x32xf32> to vector<4x32xf32>
    %1754 = arith.mulf %1752, %1753 : vector<4x32xf32>
    %1755 = arith.addf %1749, %1754 : vector<4x32xf32>
    %1756 = vector.extract_strided_slice %1390 {offsets = [0, 39], sizes = [4, 1], strides = [1, 1]} : vector<4x72xf32> to vector<4x1xf32>
    %1757 = vector.extract_strided_slice %1713 {offsets = [7, 0], sizes = [1, 32], strides = [1, 1]} : vector<8x32xf32> to vector<1x32xf32>
    %1758 = vector.broadcast %1756 : vector<4x1xf32> to vector<4x32xf32>
    %1759 = vector.broadcast %1757 : vector<1x32xf32> to vector<4x32xf32>
    %1760 = arith.mulf %1758, %1759 : vector<4x32xf32>
    %1761 = arith.addf %1755, %1760 : vector<4x32xf32>
    %c0_468 = arith.constant 0 : index
    %c129_469 = arith.constant 129 : index
    %1762 = vector.load %arg16[%c0_468, %c129_469] : memref<8x768xf32, #tpu.memory_space<vmem>>, vector<8x32xf32>
    %c0_i32_470 = arith.constant 0 : i32
    %1763 = vector.broadcast %c0_i32_470 : i32 to vector<1x32xi32>
    %1764 = arith.addi %1401, %1763 : vector<1x32xi32>
    %c0_i32_471 = arith.constant 0 : i32
    %1765 = vector.broadcast %c0_i32_471 : i32 to vector<1x32xi32>
    %1766 = arith.cmpi sge, %1764, %1765 : vector<1x32xi32>
    %c0_i32_472 = arith.constant 0 : i32
    %1767 = vector.broadcast %c0_i32_472 : i32 to vector<1x32xi32>
    %1768 = arith.addi %1401, %1767 : vector<1x32xi32>
    %c4_i32_473 = arith.constant 4 : i32
    %1769 = vector.broadcast %c4_i32_473 : i32 to vector<1x32xi32>
    %1770 = arith.cmpi slt, %1768, %1769 : vector<1x32xi32>
    %1771 = arith.andi %1766, %1770 : vector<1x32xi1>
    %c1_i32_474 = arith.constant 1 : i32
    %1772 = vector.broadcast %c1_i32_474 : i32 to vector<1x32xi32>
    %1773 = arith.addi %1397, %1772 : vector<1x32xi32>
    %c0_i32_475 = arith.constant 0 : i32
    %1774 = vector.broadcast %c0_i32_475 : i32 to vector<1x32xi32>
    %1775 = arith.cmpi sge, %1773, %1774 : vector<1x32xi32>
    %1776 = arith.andi %1771, %1775 : vector<1x32xi1>
    %c1_i32_476 = arith.constant 1 : i32
    %1777 = vector.broadcast %c1_i32_476 : i32 to vector<1x32xi32>
    %1778 = arith.addi %1397, %1777 : vector<1x32xi32>
    %c4_i32_477 = arith.constant 4 : i32
    %1779 = vector.broadcast %c4_i32_477 : i32 to vector<1x32xi32>
    %1780 = arith.cmpi slt, %1778, %1779 : vector<1x32xi32>
    %1781 = arith.andi %1776, %1780 : vector<1x32xi1>
    %cst_478 = arith.constant 0.000000e+00 : f32
    %1782 = vector.shape_cast %1781 : vector<1x32xi1> to vector<1x32xi1>
    %1783 = vector.broadcast %1782 : vector<1x32xi1> to vector<8x32xi1>
    %1784 = vector.broadcast %cst_478 : f32 to vector<8x32xf32>
    %1785 = arith.select %1783, %1762, %1784 : vector<8x32xi1>, vector<8x32xf32>
    %1786 = vector.extract_strided_slice %1390 {offsets = [0, 40], sizes = [4, 1], strides = [1, 1]} : vector<4x72xf32> to vector<4x1xf32>
    %1787 = vector.extract_strided_slice %1785 {offsets = [0, 0], sizes = [1, 32], strides = [1, 1]} : vector<8x32xf32> to vector<1x32xf32>
    %1788 = vector.broadcast %1786 : vector<4x1xf32> to vector<4x32xf32>
    %1789 = vector.broadcast %1787 : vector<1x32xf32> to vector<4x32xf32>
    %1790 = arith.mulf %1788, %1789 : vector<4x32xf32>
    %1791 = arith.addf %1761, %1790 : vector<4x32xf32>
    %1792 = vector.extract_strided_slice %1390 {offsets = [0, 41], sizes = [4, 1], strides = [1, 1]} : vector<4x72xf32> to vector<4x1xf32>
    %1793 = vector.extract_strided_slice %1785 {offsets = [1, 0], sizes = [1, 32], strides = [1, 1]} : vector<8x32xf32> to vector<1x32xf32>
    %1794 = vector.broadcast %1792 : vector<4x1xf32> to vector<4x32xf32>
    %1795 = vector.broadcast %1793 : vector<1x32xf32> to vector<4x32xf32>
    %1796 = arith.mulf %1794, %1795 : vector<4x32xf32>
    %1797 = arith.addf %1791, %1796 : vector<4x32xf32>
    %1798 = vector.extract_strided_slice %1390 {offsets = [0, 42], sizes = [4, 1], strides = [1, 1]} : vector<4x72xf32> to vector<4x1xf32>
    %1799 = vector.extract_strided_slice %1785 {offsets = [2, 0], sizes = [1, 32], strides = [1, 1]} : vector<8x32xf32> to vector<1x32xf32>
    %1800 = vector.broadcast %1798 : vector<4x1xf32> to vector<4x32xf32>
    %1801 = vector.broadcast %1799 : vector<1x32xf32> to vector<4x32xf32>
    %1802 = arith.mulf %1800, %1801 : vector<4x32xf32>
    %1803 = arith.addf %1797, %1802 : vector<4x32xf32>
    %1804 = vector.extract_strided_slice %1390 {offsets = [0, 43], sizes = [4, 1], strides = [1, 1]} : vector<4x72xf32> to vector<4x1xf32>
    %1805 = vector.extract_strided_slice %1785 {offsets = [3, 0], sizes = [1, 32], strides = [1, 1]} : vector<8x32xf32> to vector<1x32xf32>
    %1806 = vector.broadcast %1804 : vector<4x1xf32> to vector<4x32xf32>
    %1807 = vector.broadcast %1805 : vector<1x32xf32> to vector<4x32xf32>
    %1808 = arith.mulf %1806, %1807 : vector<4x32xf32>
    %1809 = arith.addf %1803, %1808 : vector<4x32xf32>
    %1810 = vector.extract_strided_slice %1390 {offsets = [0, 44], sizes = [4, 1], strides = [1, 1]} : vector<4x72xf32> to vector<4x1xf32>
    %1811 = vector.extract_strided_slice %1785 {offsets = [4, 0], sizes = [1, 32], strides = [1, 1]} : vector<8x32xf32> to vector<1x32xf32>
    %1812 = vector.broadcast %1810 : vector<4x1xf32> to vector<4x32xf32>
    %1813 = vector.broadcast %1811 : vector<1x32xf32> to vector<4x32xf32>
    %1814 = arith.mulf %1812, %1813 : vector<4x32xf32>
    %1815 = arith.addf %1809, %1814 : vector<4x32xf32>
    %1816 = vector.extract_strided_slice %1390 {offsets = [0, 45], sizes = [4, 1], strides = [1, 1]} : vector<4x72xf32> to vector<4x1xf32>
    %1817 = vector.extract_strided_slice %1785 {offsets = [5, 0], sizes = [1, 32], strides = [1, 1]} : vector<8x32xf32> to vector<1x32xf32>
    %1818 = vector.broadcast %1816 : vector<4x1xf32> to vector<4x32xf32>
    %1819 = vector.broadcast %1817 : vector<1x32xf32> to vector<4x32xf32>
    %1820 = arith.mulf %1818, %1819 : vector<4x32xf32>
    %1821 = arith.addf %1815, %1820 : vector<4x32xf32>
    %1822 = vector.extract_strided_slice %1390 {offsets = [0, 46], sizes = [4, 1], strides = [1, 1]} : vector<4x72xf32> to vector<4x1xf32>
    %1823 = vector.extract_strided_slice %1785 {offsets = [6, 0], sizes = [1, 32], strides = [1, 1]} : vector<8x32xf32> to vector<1x32xf32>
    %1824 = vector.broadcast %1822 : vector<4x1xf32> to vector<4x32xf32>
    %1825 = vector.broadcast %1823 : vector<1x32xf32> to vector<4x32xf32>
    %1826 = arith.mulf %1824, %1825 : vector<4x32xf32>
    %1827 = arith.addf %1821, %1826 : vector<4x32xf32>
    %1828 = vector.extract_strided_slice %1390 {offsets = [0, 47], sizes = [4, 1], strides = [1, 1]} : vector<4x72xf32> to vector<4x1xf32>
    %1829 = vector.extract_strided_slice %1785 {offsets = [7, 0], sizes = [1, 32], strides = [1, 1]} : vector<8x32xf32> to vector<1x32xf32>
    %1830 = vector.broadcast %1828 : vector<4x1xf32> to vector<4x32xf32>
    %1831 = vector.broadcast %1829 : vector<1x32xf32> to vector<4x32xf32>
    %1832 = arith.mulf %1830, %1831 : vector<4x32xf32>
    %1833 = arith.addf %1827, %1832 : vector<4x32xf32>
    %c0_479 = arith.constant 0 : index
    %c131 = arith.constant 131 : index
    %1834 = vector.load %arg16[%c0_479, %c131] : memref<8x768xf32, #tpu.memory_space<vmem>>, vector<8x32xf32>
    %c1_i32_480 = arith.constant 1 : i32
    %1835 = vector.broadcast %c1_i32_480 : i32 to vector<1x32xi32>
    %1836 = arith.addi %1401, %1835 : vector<1x32xi32>
    %c0_i32_481 = arith.constant 0 : i32
    %1837 = vector.broadcast %c0_i32_481 : i32 to vector<1x32xi32>
    %1838 = arith.cmpi sge, %1836, %1837 : vector<1x32xi32>
    %c1_i32_482 = arith.constant 1 : i32
    %1839 = vector.broadcast %c1_i32_482 : i32 to vector<1x32xi32>
    %1840 = arith.addi %1401, %1839 : vector<1x32xi32>
    %c4_i32_483 = arith.constant 4 : i32
    %1841 = vector.broadcast %c4_i32_483 : i32 to vector<1x32xi32>
    %1842 = arith.cmpi slt, %1840, %1841 : vector<1x32xi32>
    %1843 = arith.andi %1838, %1842 : vector<1x32xi1>
    %c-1_i32_484 = arith.constant -1 : i32
    %1844 = vector.broadcast %c-1_i32_484 : i32 to vector<1x32xi32>
    %1845 = arith.addi %1397, %1844 : vector<1x32xi32>
    %c0_i32_485 = arith.constant 0 : i32
    %1846 = vector.broadcast %c0_i32_485 : i32 to vector<1x32xi32>
    %1847 = arith.cmpi sge, %1845, %1846 : vector<1x32xi32>
    %1848 = arith.andi %1843, %1847 : vector<1x32xi1>
    %c-1_i32_486 = arith.constant -1 : i32
    %1849 = vector.broadcast %c-1_i32_486 : i32 to vector<1x32xi32>
    %1850 = arith.addi %1397, %1849 : vector<1x32xi32>
    %c4_i32_487 = arith.constant 4 : i32
    %1851 = vector.broadcast %c4_i32_487 : i32 to vector<1x32xi32>
    %1852 = arith.cmpi slt, %1850, %1851 : vector<1x32xi32>
    %1853 = arith.andi %1848, %1852 : vector<1x32xi1>
    %cst_488 = arith.constant 0.000000e+00 : f32
    %1854 = vector.shape_cast %1853 : vector<1x32xi1> to vector<1x32xi1>
    %1855 = vector.broadcast %1854 : vector<1x32xi1> to vector<8x32xi1>
    %1856 = vector.broadcast %cst_488 : f32 to vector<8x32xf32>
    %1857 = arith.select %1855, %1834, %1856 : vector<8x32xi1>, vector<8x32xf32>
    %1858 = vector.extract_strided_slice %1390 {offsets = [0, 48], sizes = [4, 1], strides = [1, 1]} : vector<4x72xf32> to vector<4x1xf32>
    %1859 = vector.extract_strided_slice %1857 {offsets = [0, 0], sizes = [1, 32], strides = [1, 1]} : vector<8x32xf32> to vector<1x32xf32>
    %1860 = vector.broadcast %1858 : vector<4x1xf32> to vector<4x32xf32>
    %1861 = vector.broadcast %1859 : vector<1x32xf32> to vector<4x32xf32>
    %1862 = arith.mulf %1860, %1861 : vector<4x32xf32>
    %1863 = arith.addf %1833, %1862 : vector<4x32xf32>
    %1864 = vector.extract_strided_slice %1390 {offsets = [0, 49], sizes = [4, 1], strides = [1, 1]} : vector<4x72xf32> to vector<4x1xf32>
    %1865 = vector.extract_strided_slice %1857 {offsets = [1, 0], sizes = [1, 32], strides = [1, 1]} : vector<8x32xf32> to vector<1x32xf32>
    %1866 = vector.broadcast %1864 : vector<4x1xf32> to vector<4x32xf32>
    %1867 = vector.broadcast %1865 : vector<1x32xf32> to vector<4x32xf32>
    %1868 = arith.mulf %1866, %1867 : vector<4x32xf32>
    %1869 = arith.addf %1863, %1868 : vector<4x32xf32>
    %1870 = vector.extract_strided_slice %1390 {offsets = [0, 50], sizes = [4, 1], strides = [1, 1]} : vector<4x72xf32> to vector<4x1xf32>
    %1871 = vector.extract_strided_slice %1857 {offsets = [2, 0], sizes = [1, 32], strides = [1, 1]} : vector<8x32xf32> to vector<1x32xf32>
    %1872 = vector.broadcast %1870 : vector<4x1xf32> to vector<4x32xf32>
    %1873 = vector.broadcast %1871 : vector<1x32xf32> to vector<4x32xf32>
    %1874 = arith.mulf %1872, %1873 : vector<4x32xf32>
    %1875 = arith.addf %1869, %1874 : vector<4x32xf32>
    %1876 = vector.extract_strided_slice %1390 {offsets = [0, 51], sizes = [4, 1], strides = [1, 1]} : vector<4x72xf32> to vector<4x1xf32>
    %1877 = vector.extract_strided_slice %1857 {offsets = [3, 0], sizes = [1, 32], strides = [1, 1]} : vector<8x32xf32> to vector<1x32xf32>
    %1878 = vector.broadcast %1876 : vector<4x1xf32> to vector<4x32xf32>
    %1879 = vector.broadcast %1877 : vector<1x32xf32> to vector<4x32xf32>
    %1880 = arith.mulf %1878, %1879 : vector<4x32xf32>
    %1881 = arith.addf %1875, %1880 : vector<4x32xf32>
    %1882 = vector.extract_strided_slice %1390 {offsets = [0, 52], sizes = [4, 1], strides = [1, 1]} : vector<4x72xf32> to vector<4x1xf32>
    %1883 = vector.extract_strided_slice %1857 {offsets = [4, 0], sizes = [1, 32], strides = [1, 1]} : vector<8x32xf32> to vector<1x32xf32>
    %1884 = vector.broadcast %1882 : vector<4x1xf32> to vector<4x32xf32>
    %1885 = vector.broadcast %1883 : vector<1x32xf32> to vector<4x32xf32>
    %1886 = arith.mulf %1884, %1885 : vector<4x32xf32>
    %1887 = arith.addf %1881, %1886 : vector<4x32xf32>
    %1888 = vector.extract_strided_slice %1390 {offsets = [0, 53], sizes = [4, 1], strides = [1, 1]} : vector<4x72xf32> to vector<4x1xf32>
    %1889 = vector.extract_strided_slice %1857 {offsets = [5, 0], sizes = [1, 32], strides = [1, 1]} : vector<8x32xf32> to vector<1x32xf32>
    %1890 = vector.broadcast %1888 : vector<4x1xf32> to vector<4x32xf32>
    %1891 = vector.broadcast %1889 : vector<1x32xf32> to vector<4x32xf32>
    %1892 = arith.mulf %1890, %1891 : vector<4x32xf32>
    %1893 = arith.addf %1887, %1892 : vector<4x32xf32>
    %1894 = vector.extract_strided_slice %1390 {offsets = [0, 54], sizes = [4, 1], strides = [1, 1]} : vector<4x72xf32> to vector<4x1xf32>
    %1895 = vector.extract_strided_slice %1857 {offsets = [6, 0], sizes = [1, 32], strides = [1, 1]} : vector<8x32xf32> to vector<1x32xf32>
    %1896 = vector.broadcast %1894 : vector<4x1xf32> to vector<4x32xf32>
    %1897 = vector.broadcast %1895 : vector<1x32xf32> to vector<4x32xf32>
    %1898 = arith.mulf %1896, %1897 : vector<4x32xf32>
    %1899 = arith.addf %1893, %1898 : vector<4x32xf32>
    %1900 = vector.extract_strided_slice %1390 {offsets = [0, 55], sizes = [4, 1], strides = [1, 1]} : vector<4x72xf32> to vector<4x1xf32>
    %1901 = vector.extract_strided_slice %1857 {offsets = [7, 0], sizes = [1, 32], strides = [1, 1]} : vector<8x32xf32> to vector<1x32xf32>
    %1902 = vector.broadcast %1900 : vector<4x1xf32> to vector<4x32xf32>
    %1903 = vector.broadcast %1901 : vector<1x32xf32> to vector<4x32xf32>
    %1904 = arith.mulf %1902, %1903 : vector<4x32xf32>
    %1905 = arith.addf %1899, %1904 : vector<4x32xf32>
    %c0_489 = arith.constant 0 : index
    %c132 = arith.constant 132 : index
    %1906 = vector.load %arg16[%c0_489, %c132] : memref<8x768xf32, #tpu.memory_space<vmem>>, vector<8x32xf32>
    %c1_i32_490 = arith.constant 1 : i32
    %1907 = vector.broadcast %c1_i32_490 : i32 to vector<1x32xi32>
    %1908 = arith.addi %1401, %1907 : vector<1x32xi32>
    %c0_i32_491 = arith.constant 0 : i32
    %1909 = vector.broadcast %c0_i32_491 : i32 to vector<1x32xi32>
    %1910 = arith.cmpi sge, %1908, %1909 : vector<1x32xi32>
    %c1_i32_492 = arith.constant 1 : i32
    %1911 = vector.broadcast %c1_i32_492 : i32 to vector<1x32xi32>
    %1912 = arith.addi %1401, %1911 : vector<1x32xi32>
    %c4_i32_493 = arith.constant 4 : i32
    %1913 = vector.broadcast %c4_i32_493 : i32 to vector<1x32xi32>
    %1914 = arith.cmpi slt, %1912, %1913 : vector<1x32xi32>
    %1915 = arith.andi %1910, %1914 : vector<1x32xi1>
    %c0_i32_494 = arith.constant 0 : i32
    %1916 = vector.broadcast %c0_i32_494 : i32 to vector<1x32xi32>
    %1917 = arith.addi %1397, %1916 : vector<1x32xi32>
    %c0_i32_495 = arith.constant 0 : i32
    %1918 = vector.broadcast %c0_i32_495 : i32 to vector<1x32xi32>
    %1919 = arith.cmpi sge, %1917, %1918 : vector<1x32xi32>
    %1920 = arith.andi %1915, %1919 : vector<1x32xi1>
    %c0_i32_496 = arith.constant 0 : i32
    %1921 = vector.broadcast %c0_i32_496 : i32 to vector<1x32xi32>
    %1922 = arith.addi %1397, %1921 : vector<1x32xi32>
    %c4_i32_497 = arith.constant 4 : i32
    %1923 = vector.broadcast %c4_i32_497 : i32 to vector<1x32xi32>
    %1924 = arith.cmpi slt, %1922, %1923 : vector<1x32xi32>
    %1925 = arith.andi %1920, %1924 : vector<1x32xi1>
    %cst_498 = arith.constant 0.000000e+00 : f32
    %1926 = vector.shape_cast %1925 : vector<1x32xi1> to vector<1x32xi1>
    %1927 = vector.broadcast %1926 : vector<1x32xi1> to vector<8x32xi1>
    %1928 = vector.broadcast %cst_498 : f32 to vector<8x32xf32>
    %1929 = arith.select %1927, %1906, %1928 : vector<8x32xi1>, vector<8x32xf32>
    %1930 = vector.extract_strided_slice %1390 {offsets = [0, 56], sizes = [4, 1], strides = [1, 1]} : vector<4x72xf32> to vector<4x1xf32>
    %1931 = vector.extract_strided_slice %1929 {offsets = [0, 0], sizes = [1, 32], strides = [1, 1]} : vector<8x32xf32> to vector<1x32xf32>
    %1932 = vector.broadcast %1930 : vector<4x1xf32> to vector<4x32xf32>
    %1933 = vector.broadcast %1931 : vector<1x32xf32> to vector<4x32xf32>
    %1934 = arith.mulf %1932, %1933 : vector<4x32xf32>
    %1935 = arith.addf %1905, %1934 : vector<4x32xf32>
    %1936 = vector.extract_strided_slice %1390 {offsets = [0, 57], sizes = [4, 1], strides = [1, 1]} : vector<4x72xf32> to vector<4x1xf32>
    %1937 = vector.extract_strided_slice %1929 {offsets = [1, 0], sizes = [1, 32], strides = [1, 1]} : vector<8x32xf32> to vector<1x32xf32>
    %1938 = vector.broadcast %1936 : vector<4x1xf32> to vector<4x32xf32>
    %1939 = vector.broadcast %1937 : vector<1x32xf32> to vector<4x32xf32>
    %1940 = arith.mulf %1938, %1939 : vector<4x32xf32>
    %1941 = arith.addf %1935, %1940 : vector<4x32xf32>
    %1942 = vector.extract_strided_slice %1390 {offsets = [0, 58], sizes = [4, 1], strides = [1, 1]} : vector<4x72xf32> to vector<4x1xf32>
    %1943 = vector.extract_strided_slice %1929 {offsets = [2, 0], sizes = [1, 32], strides = [1, 1]} : vector<8x32xf32> to vector<1x32xf32>
    %1944 = vector.broadcast %1942 : vector<4x1xf32> to vector<4x32xf32>
    %1945 = vector.broadcast %1943 : vector<1x32xf32> to vector<4x32xf32>
    %1946 = arith.mulf %1944, %1945 : vector<4x32xf32>
    %1947 = arith.addf %1941, %1946 : vector<4x32xf32>
    %1948 = vector.extract_strided_slice %1390 {offsets = [0, 59], sizes = [4, 1], strides = [1, 1]} : vector<4x72xf32> to vector<4x1xf32>
    %1949 = vector.extract_strided_slice %1929 {offsets = [3, 0], sizes = [1, 32], strides = [1, 1]} : vector<8x32xf32> to vector<1x32xf32>
    %1950 = vector.broadcast %1948 : vector<4x1xf32> to vector<4x32xf32>
    %1951 = vector.broadcast %1949 : vector<1x32xf32> to vector<4x32xf32>
    %1952 = arith.mulf %1950, %1951 : vector<4x32xf32>
    %1953 = arith.addf %1947, %1952 : vector<4x32xf32>
    %1954 = vector.extract_strided_slice %1390 {offsets = [0, 60], sizes = [4, 1], strides = [1, 1]} : vector<4x72xf32> to vector<4x1xf32>
    %1955 = vector.extract_strided_slice %1929 {offsets = [4, 0], sizes = [1, 32], strides = [1, 1]} : vector<8x32xf32> to vector<1x32xf32>
    %1956 = vector.broadcast %1954 : vector<4x1xf32> to vector<4x32xf32>
    %1957 = vector.broadcast %1955 : vector<1x32xf32> to vector<4x32xf32>
    %1958 = arith.mulf %1956, %1957 : vector<4x32xf32>
    %1959 = arith.addf %1953, %1958 : vector<4x32xf32>
    %1960 = vector.extract_strided_slice %1390 {offsets = [0, 61], sizes = [4, 1], strides = [1, 1]} : vector<4x72xf32> to vector<4x1xf32>
    %1961 = vector.extract_strided_slice %1929 {offsets = [5, 0], sizes = [1, 32], strides = [1, 1]} : vector<8x32xf32> to vector<1x32xf32>
    %1962 = vector.broadcast %1960 : vector<4x1xf32> to vector<4x32xf32>
    %1963 = vector.broadcast %1961 : vector<1x32xf32> to vector<4x32xf32>
    %1964 = arith.mulf %1962, %1963 : vector<4x32xf32>
    %1965 = arith.addf %1959, %1964 : vector<4x32xf32>
    %1966 = vector.extract_strided_slice %1390 {offsets = [0, 62], sizes = [4, 1], strides = [1, 1]} : vector<4x72xf32> to vector<4x1xf32>
    %1967 = vector.extract_strided_slice %1929 {offsets = [6, 0], sizes = [1, 32], strides = [1, 1]} : vector<8x32xf32> to vector<1x32xf32>
    %1968 = vector.broadcast %1966 : vector<4x1xf32> to vector<4x32xf32>
    %1969 = vector.broadcast %1967 : vector<1x32xf32> to vector<4x32xf32>
    %1970 = arith.mulf %1968, %1969 : vector<4x32xf32>
    %1971 = arith.addf %1965, %1970 : vector<4x32xf32>
    %1972 = vector.extract_strided_slice %1390 {offsets = [0, 63], sizes = [4, 1], strides = [1, 1]} : vector<4x72xf32> to vector<4x1xf32>
    %1973 = vector.extract_strided_slice %1929 {offsets = [7, 0], sizes = [1, 32], strides = [1, 1]} : vector<8x32xf32> to vector<1x32xf32>
    %1974 = vector.broadcast %1972 : vector<4x1xf32> to vector<4x32xf32>
    %1975 = vector.broadcast %1973 : vector<1x32xf32> to vector<4x32xf32>
    %1976 = arith.mulf %1974, %1975 : vector<4x32xf32>
    %1977 = arith.addf %1971, %1976 : vector<4x32xf32>
    %c0_499 = arith.constant 0 : index
    %c133 = arith.constant 133 : index
    %1978 = vector.load %arg16[%c0_499, %c133] : memref<8x768xf32, #tpu.memory_space<vmem>>, vector<8x32xf32>
    %c1_i32_500 = arith.constant 1 : i32
    %1979 = vector.broadcast %c1_i32_500 : i32 to vector<1x32xi32>
    %1980 = arith.addi %1401, %1979 : vector<1x32xi32>
    %c0_i32_501 = arith.constant 0 : i32
    %1981 = vector.broadcast %c0_i32_501 : i32 to vector<1x32xi32>
    %1982 = arith.cmpi sge, %1980, %1981 : vector<1x32xi32>
    %c1_i32_502 = arith.constant 1 : i32
    %1983 = vector.broadcast %c1_i32_502 : i32 to vector<1x32xi32>
    %1984 = arith.addi %1401, %1983 : vector<1x32xi32>
    %c4_i32_503 = arith.constant 4 : i32
    %1985 = vector.broadcast %c4_i32_503 : i32 to vector<1x32xi32>
    %1986 = arith.cmpi slt, %1984, %1985 : vector<1x32xi32>
    %1987 = arith.andi %1982, %1986 : vector<1x32xi1>
    %c1_i32_504 = arith.constant 1 : i32
    %1988 = vector.broadcast %c1_i32_504 : i32 to vector<1x32xi32>
    %1989 = arith.addi %1397, %1988 : vector<1x32xi32>
    %c0_i32_505 = arith.constant 0 : i32
    %1990 = vector.broadcast %c0_i32_505 : i32 to vector<1x32xi32>
    %1991 = arith.cmpi sge, %1989, %1990 : vector<1x32xi32>
    %1992 = arith.andi %1987, %1991 : vector<1x32xi1>
    %c1_i32_506 = arith.constant 1 : i32
    %1993 = vector.broadcast %c1_i32_506 : i32 to vector<1x32xi32>
    %1994 = arith.addi %1397, %1993 : vector<1x32xi32>
    %c4_i32_507 = arith.constant 4 : i32
    %1995 = vector.broadcast %c4_i32_507 : i32 to vector<1x32xi32>
    %1996 = arith.cmpi slt, %1994, %1995 : vector<1x32xi32>
    %1997 = arith.andi %1992, %1996 : vector<1x32xi1>
    %cst_508 = arith.constant 0.000000e+00 : f32
    %1998 = vector.shape_cast %1997 : vector<1x32xi1> to vector<1x32xi1>
    %1999 = vector.broadcast %1998 : vector<1x32xi1> to vector<8x32xi1>
    %2000 = vector.broadcast %cst_508 : f32 to vector<8x32xf32>
    %2001 = arith.select %1999, %1978, %2000 : vector<8x32xi1>, vector<8x32xf32>
    %2002 = vector.extract_strided_slice %1390 {offsets = [0, 64], sizes = [4, 1], strides = [1, 1]} : vector<4x72xf32> to vector<4x1xf32>
    %2003 = vector.extract_strided_slice %2001 {offsets = [0, 0], sizes = [1, 32], strides = [1, 1]} : vector<8x32xf32> to vector<1x32xf32>
    %2004 = vector.broadcast %2002 : vector<4x1xf32> to vector<4x32xf32>
    %2005 = vector.broadcast %2003 : vector<1x32xf32> to vector<4x32xf32>
    %2006 = arith.mulf %2004, %2005 : vector<4x32xf32>
    %2007 = arith.addf %1977, %2006 : vector<4x32xf32>
    %2008 = vector.extract_strided_slice %1390 {offsets = [0, 65], sizes = [4, 1], strides = [1, 1]} : vector<4x72xf32> to vector<4x1xf32>
    %2009 = vector.extract_strided_slice %2001 {offsets = [1, 0], sizes = [1, 32], strides = [1, 1]} : vector<8x32xf32> to vector<1x32xf32>
    %2010 = vector.broadcast %2008 : vector<4x1xf32> to vector<4x32xf32>
    %2011 = vector.broadcast %2009 : vector<1x32xf32> to vector<4x32xf32>
    %2012 = arith.mulf %2010, %2011 : vector<4x32xf32>
    %2013 = arith.addf %2007, %2012 : vector<4x32xf32>
    %2014 = vector.extract_strided_slice %1390 {offsets = [0, 66], sizes = [4, 1], strides = [1, 1]} : vector<4x72xf32> to vector<4x1xf32>
    %2015 = vector.extract_strided_slice %2001 {offsets = [2, 0], sizes = [1, 32], strides = [1, 1]} : vector<8x32xf32> to vector<1x32xf32>
    %2016 = vector.broadcast %2014 : vector<4x1xf32> to vector<4x32xf32>
    %2017 = vector.broadcast %2015 : vector<1x32xf32> to vector<4x32xf32>
    %2018 = arith.mulf %2016, %2017 : vector<4x32xf32>
    %2019 = arith.addf %2013, %2018 : vector<4x32xf32>
    %2020 = vector.extract_strided_slice %1390 {offsets = [0, 67], sizes = [4, 1], strides = [1, 1]} : vector<4x72xf32> to vector<4x1xf32>
    %2021 = vector.extract_strided_slice %2001 {offsets = [3, 0], sizes = [1, 32], strides = [1, 1]} : vector<8x32xf32> to vector<1x32xf32>
    %2022 = vector.broadcast %2020 : vector<4x1xf32> to vector<4x32xf32>
    %2023 = vector.broadcast %2021 : vector<1x32xf32> to vector<4x32xf32>
    %2024 = arith.mulf %2022, %2023 : vector<4x32xf32>
    %2025 = arith.addf %2019, %2024 : vector<4x32xf32>
    %2026 = vector.extract_strided_slice %1390 {offsets = [0, 68], sizes = [4, 1], strides = [1, 1]} : vector<4x72xf32> to vector<4x1xf32>
    %2027 = vector.extract_strided_slice %2001 {offsets = [4, 0], sizes = [1, 32], strides = [1, 1]} : vector<8x32xf32> to vector<1x32xf32>
    %2028 = vector.broadcast %2026 : vector<4x1xf32> to vector<4x32xf32>
    %2029 = vector.broadcast %2027 : vector<1x32xf32> to vector<4x32xf32>
    %2030 = arith.mulf %2028, %2029 : vector<4x32xf32>
    %2031 = arith.addf %2025, %2030 : vector<4x32xf32>
    %2032 = vector.extract_strided_slice %1390 {offsets = [0, 69], sizes = [4, 1], strides = [1, 1]} : vector<4x72xf32> to vector<4x1xf32>
    %2033 = vector.extract_strided_slice %2001 {offsets = [5, 0], sizes = [1, 32], strides = [1, 1]} : vector<8x32xf32> to vector<1x32xf32>
    %2034 = vector.broadcast %2032 : vector<4x1xf32> to vector<4x32xf32>
    %2035 = vector.broadcast %2033 : vector<1x32xf32> to vector<4x32xf32>
    %2036 = arith.mulf %2034, %2035 : vector<4x32xf32>
    %2037 = arith.addf %2031, %2036 : vector<4x32xf32>
    %2038 = vector.extract_strided_slice %1390 {offsets = [0, 70], sizes = [4, 1], strides = [1, 1]} : vector<4x72xf32> to vector<4x1xf32>
    %2039 = vector.extract_strided_slice %2001 {offsets = [6, 0], sizes = [1, 32], strides = [1, 1]} : vector<8x32xf32> to vector<1x32xf32>
    %2040 = vector.broadcast %2038 : vector<4x1xf32> to vector<4x32xf32>
    %2041 = vector.broadcast %2039 : vector<1x32xf32> to vector<4x32xf32>
    %2042 = arith.mulf %2040, %2041 : vector<4x32xf32>
    %2043 = arith.addf %2037, %2042 : vector<4x32xf32>
    %2044 = vector.extract_strided_slice %1390 {offsets = [0, 71], sizes = [4, 1], strides = [1, 1]} : vector<4x72xf32> to vector<4x1xf32>
    %2045 = vector.extract_strided_slice %2001 {offsets = [7, 0], sizes = [1, 32], strides = [1, 1]} : vector<8x32xf32> to vector<1x32xf32>
    %2046 = vector.broadcast %2044 : vector<4x1xf32> to vector<4x32xf32>
    %2047 = vector.broadcast %2045 : vector<1x32xf32> to vector<4x32xf32>
    %2048 = arith.mulf %2046, %2047 : vector<4x32xf32>
    %2049 = arith.addf %2043, %2048 : vector<4x32xf32>
    %cst_509 = arith.constant 0.000000e+00 : f32
    %2050 = vector.broadcast %cst_509 : f32 to vector<4x32xf32>
    %2051 = arith.maximumf %2049, %2050 : vector<4x32xf32>
    %c0_510 = arith.constant 0 : index
    %c0_511 = arith.constant 0 : index
    %2052 = vector.load %arg11[%c0_510, %c0_511] : memref<32x8xf32, #tpu.memory_space<vmem>>, vector<32x8xf32>
    %cst_512 = arith.constant dense<0.000000e+00> : vector<4x8xf32>
    %2053 = tpu.matmul %2051, %2052, %cst_512 {dimension_numbers = #tpu.dot_dimension_numbers<[1], [0], [0], [1], [0, 0, 1, 1], [], []>} : vector<4x32xf32>, vector<32x8xf32>, vector<4x8xf32> -> vector<4x8xf32>
    %2054 = arith.mulf %2053, %2053 : vector<4x8xf32>
    %cst_513 = arith.constant dense<0.000000e+00> : vector<4xf32>
    %2055 = vector.multi_reduction <add>, %2054, %cst_513 [1] : vector<4x8xf32> to vector<4xf32>
    %2056 = vector.shape_cast %2055 : vector<4xf32> to vector<4x1xf32>
    %cst_514 = arith.constant dense<0.000000e+00> : vector<1xf32>
    %2057 = vector.multi_reduction <add>, %2056, %cst_514 [0] : vector<4x1xf32> to vector<1xf32>
    %2058 = vector.shape_cast %2057 : vector<1xf32> to vector<1x1xf32>
    %cst_515 = arith.constant 3.125000e-04 : f32
    %2059 = vector.broadcast %cst_515 : f32 to vector<1x1xf32>
    %2060 = arith.mulf %2058, %2059 : vector<1x1xf32>
    %2061 = math.sqrt %2060 : vector<1x1xf32>
    %c0_516 = arith.constant 0 : index
    %c0_517 = arith.constant 0 : index
    %2062 = vector.load %arg14[%c0_516, %c0_517] : memref<4x8xf32, #tpu.memory_space<vmem>>, vector<4x8xf32>
    %2063 = vector.broadcast %2061 : vector<1x1xf32> to vector<4x8xf32>
    %2064 = arith.mulf %2063, %2062 : vector<4x8xf32>
    %2065 = arith.addf %2053, %2064 : vector<4x8xf32>
    %c0_518 = arith.constant 0 : index
    %c0_519 = arith.constant 0 : index
    %2066 = vector.load %arg7[%c0_518, %c0_519] : memref<4x36xf32, #tpu.memory_space<vmem>>, vector<4x36xf32>
    %c0_520 = arith.constant 0 : index
    %c0_521 = arith.constant 0 : index
    %2067 = vector.load %arg8[%c0_520, %c0_521] : memref<4x1xf32, #tpu.memory_space<vmem>>, vector<4x1xf32>
    %2068 = vector.shape_cast %2067 : vector<4x1xf32> to vector<4x1xf32>
    %2069 = vector.broadcast %2068 : vector<4x1xf32> to vector<4x8xf32>
    %c0_522 = arith.constant 0 : index
    %c128_523 = arith.constant 128 : index
    %2070 = vector.load %arg16[%c0_522, %c128_523] : memref<8x768xf32, #tpu.memory_space<vmem>>, vector<4x8xf32>
    tpu.vector_store %arg16[%c0_522, %c128_523], %2065 {strides = array<i32>} : memref<8x768xf32, #tpu.memory_space<vmem>>, vector<4x8xf32>,
    %2071 = tpu.iota {dimensions = array<i32: 1>} : vector<1x8xi32>
    %c1_i32_524 = arith.constant 1 : i32
    %2072 = vector.broadcast %c1_i32_524 : i32 to vector<1x8xi32>
    %2073 = arith.andi %2071, %2072 : vector<1x8xi32>
    %c1_i32_525 = arith.constant 1 : i32
    %2074 = vector.broadcast %c1_i32_525 : i32 to vector<1x8xi32>
    %2075 = arith.shrsi %2071, %2074 : vector<1x8xi32>
    %c1_i32_526 = arith.constant 1 : i32
    %2076 = vector.broadcast %c1_i32_526 : i32 to vector<1x8xi32>
    %2077 = arith.andi %2075, %2076 : vector<1x8xi32>
    %c0_527 = arith.constant 0 : index
    %c125_528 = arith.constant 125 : index
    %2078 = vector.load %arg16[%c0_527, %c125_528] : memref<8x768xf32, #tpu.memory_space<vmem>>, vector<4x8xf32>
    %c-1_i32_529 = arith.constant -1 : i32
    %2079 = vector.broadcast %c-1_i32_529 : i32 to vector<1x8xi32>
    %2080 = arith.addi %2077, %2079 : vector<1x8xi32>
    %c0_i32_530 = arith.constant 0 : i32
    %2081 = vector.broadcast %c0_i32_530 : i32 to vector<1x8xi32>
    %2082 = arith.cmpi sge, %2080, %2081 : vector<1x8xi32>
    %c-1_i32_531 = arith.constant -1 : i32
    %2083 = vector.broadcast %c-1_i32_531 : i32 to vector<1x8xi32>
    %2084 = arith.addi %2077, %2083 : vector<1x8xi32>
    %c2_i32_532 = arith.constant 2 : i32
    %2085 = vector.broadcast %c2_i32_532 : i32 to vector<1x8xi32>
    %2086 = arith.cmpi slt, %2084, %2085 : vector<1x8xi32>
    %2087 = arith.andi %2082, %2086 : vector<1x8xi1>
    %c-1_i32_533 = arith.constant -1 : i32
    %2088 = vector.broadcast %c-1_i32_533 : i32 to vector<1x8xi32>
    %2089 = arith.addi %2073, %2088 : vector<1x8xi32>
    %c0_i32_534 = arith.constant 0 : i32
    %2090 = vector.broadcast %c0_i32_534 : i32 to vector<1x8xi32>
    %2091 = arith.cmpi sge, %2089, %2090 : vector<1x8xi32>
    %2092 = arith.andi %2087, %2091 : vector<1x8xi1>
    %c-1_i32_535 = arith.constant -1 : i32
    %2093 = vector.broadcast %c-1_i32_535 : i32 to vector<1x8xi32>
    %2094 = arith.addi %2073, %2093 : vector<1x8xi32>
    %c2_i32_536 = arith.constant 2 : i32
    %2095 = vector.broadcast %c2_i32_536 : i32 to vector<1x8xi32>
    %2096 = arith.cmpi slt, %2094, %2095 : vector<1x8xi32>
    %2097 = arith.andi %2092, %2096 : vector<1x8xi1>
    %cst_537 = arith.constant 0.000000e+00 : f32
    %2098 = vector.shape_cast %2097 : vector<1x8xi1> to vector<1x8xi1>
    %2099 = vector.broadcast %2098 : vector<1x8xi1> to vector<4x8xi1>
    %2100 = vector.broadcast %cst_537 : f32 to vector<4x8xf32>
    %2101 = arith.select %2099, %2078, %2100 : vector<4x8xi1>, vector<4x8xf32>
    %2102 = vector.extract_strided_slice %2066 {offsets = [0, 0], sizes = [4, 1], strides = [1, 1]} : vector<4x36xf32> to vector<4x1xf32>
    %2103 = vector.extract_strided_slice %2101 {offsets = [0, 0], sizes = [1, 8], strides = [1, 1]} : vector<4x8xf32> to vector<1x8xf32>
    %2104 = vector.broadcast %2102 : vector<4x1xf32> to vector<4x8xf32>
    %2105 = vector.broadcast %2103 : vector<1x8xf32> to vector<4x8xf32>
    %2106 = arith.mulf %2104, %2105 : vector<4x8xf32>
    %2107 = arith.addf %2069, %2106 : vector<4x8xf32>
    %2108 = vector.extract_strided_slice %2066 {offsets = [0, 1], sizes = [4, 1], strides = [1, 1]} : vector<4x36xf32> to vector<4x1xf32>
    %2109 = vector.extract_strided_slice %2101 {offsets = [1, 0], sizes = [1, 8], strides = [1, 1]} : vector<4x8xf32> to vector<1x8xf32>
    %2110 = vector.broadcast %2108 : vector<4x1xf32> to vector<4x8xf32>
    %2111 = vector.broadcast %2109 : vector<1x8xf32> to vector<4x8xf32>
    %2112 = arith.mulf %2110, %2111 : vector<4x8xf32>
    %2113 = arith.addf %2107, %2112 : vector<4x8xf32>
    %2114 = vector.extract_strided_slice %2066 {offsets = [0, 2], sizes = [4, 1], strides = [1, 1]} : vector<4x36xf32> to vector<4x1xf32>
    %2115 = vector.extract_strided_slice %2101 {offsets = [2, 0], sizes = [1, 8], strides = [1, 1]} : vector<4x8xf32> to vector<1x8xf32>
    %2116 = vector.broadcast %2114 : vector<4x1xf32> to vector<4x8xf32>
    %2117 = vector.broadcast %2115 : vector<1x8xf32> to vector<4x8xf32>
    %2118 = arith.mulf %2116, %2117 : vector<4x8xf32>
    %2119 = arith.addf %2113, %2118 : vector<4x8xf32>
    %2120 = vector.extract_strided_slice %2066 {offsets = [0, 3], sizes = [4, 1], strides = [1, 1]} : vector<4x36xf32> to vector<4x1xf32>
    %2121 = vector.extract_strided_slice %2101 {offsets = [3, 0], sizes = [1, 8], strides = [1, 1]} : vector<4x8xf32> to vector<1x8xf32>
    %2122 = vector.broadcast %2120 : vector<4x1xf32> to vector<4x8xf32>
    %2123 = vector.broadcast %2121 : vector<1x8xf32> to vector<4x8xf32>
    %2124 = arith.mulf %2122, %2123 : vector<4x8xf32>
    %2125 = arith.addf %2119, %2124 : vector<4x8xf32>
    %c0_538 = arith.constant 0 : index
    %c126 = arith.constant 126 : index
    %2126 = vector.load %arg16[%c0_538, %c126] : memref<8x768xf32, #tpu.memory_space<vmem>>, vector<4x8xf32>
    %c-1_i32_539 = arith.constant -1 : i32
    %2127 = vector.broadcast %c-1_i32_539 : i32 to vector<1x8xi32>
    %2128 = arith.addi %2077, %2127 : vector<1x8xi32>
    %c0_i32_540 = arith.constant 0 : i32
    %2129 = vector.broadcast %c0_i32_540 : i32 to vector<1x8xi32>
    %2130 = arith.cmpi sge, %2128, %2129 : vector<1x8xi32>
    %c-1_i32_541 = arith.constant -1 : i32
    %2131 = vector.broadcast %c-1_i32_541 : i32 to vector<1x8xi32>
    %2132 = arith.addi %2077, %2131 : vector<1x8xi32>
    %c2_i32_542 = arith.constant 2 : i32
    %2133 = vector.broadcast %c2_i32_542 : i32 to vector<1x8xi32>
    %2134 = arith.cmpi slt, %2132, %2133 : vector<1x8xi32>
    %2135 = arith.andi %2130, %2134 : vector<1x8xi1>
    %c0_i32_543 = arith.constant 0 : i32
    %2136 = vector.broadcast %c0_i32_543 : i32 to vector<1x8xi32>
    %2137 = arith.addi %2073, %2136 : vector<1x8xi32>
    %c0_i32_544 = arith.constant 0 : i32
    %2138 = vector.broadcast %c0_i32_544 : i32 to vector<1x8xi32>
    %2139 = arith.cmpi sge, %2137, %2138 : vector<1x8xi32>
    %2140 = arith.andi %2135, %2139 : vector<1x8xi1>
    %c0_i32_545 = arith.constant 0 : i32
    %2141 = vector.broadcast %c0_i32_545 : i32 to vector<1x8xi32>
    %2142 = arith.addi %2073, %2141 : vector<1x8xi32>
    %c2_i32_546 = arith.constant 2 : i32
    %2143 = vector.broadcast %c2_i32_546 : i32 to vector<1x8xi32>
    %2144 = arith.cmpi slt, %2142, %2143 : vector<1x8xi32>
    %2145 = arith.andi %2140, %2144 : vector<1x8xi1>
    %cst_547 = arith.constant 0.000000e+00 : f32
    %2146 = vector.shape_cast %2145 : vector<1x8xi1> to vector<1x8xi1>
    %2147 = vector.broadcast %2146 : vector<1x8xi1> to vector<4x8xi1>
    %2148 = vector.broadcast %cst_547 : f32 to vector<4x8xf32>
    %2149 = arith.select %2147, %2126, %2148 : vector<4x8xi1>, vector<4x8xf32>
    %2150 = vector.extract_strided_slice %2066 {offsets = [0, 4], sizes = [4, 1], strides = [1, 1]} : vector<4x36xf32> to vector<4x1xf32>
    %2151 = vector.extract_strided_slice %2149 {offsets = [0, 0], sizes = [1, 8], strides = [1, 1]} : vector<4x8xf32> to vector<1x8xf32>
    %2152 = vector.broadcast %2150 : vector<4x1xf32> to vector<4x8xf32>
    %2153 = vector.broadcast %2151 : vector<1x8xf32> to vector<4x8xf32>
    %2154 = arith.mulf %2152, %2153 : vector<4x8xf32>
    %2155 = arith.addf %2125, %2154 : vector<4x8xf32>
    %2156 = vector.extract_strided_slice %2066 {offsets = [0, 5], sizes = [4, 1], strides = [1, 1]} : vector<4x36xf32> to vector<4x1xf32>
    %2157 = vector.extract_strided_slice %2149 {offsets = [1, 0], sizes = [1, 8], strides = [1, 1]} : vector<4x8xf32> to vector<1x8xf32>
    %2158 = vector.broadcast %2156 : vector<4x1xf32> to vector<4x8xf32>
    %2159 = vector.broadcast %2157 : vector<1x8xf32> to vector<4x8xf32>
    %2160 = arith.mulf %2158, %2159 : vector<4x8xf32>
    %2161 = arith.addf %2155, %2160 : vector<4x8xf32>
    %2162 = vector.extract_strided_slice %2066 {offsets = [0, 6], sizes = [4, 1], strides = [1, 1]} : vector<4x36xf32> to vector<4x1xf32>
    %2163 = vector.extract_strided_slice %2149 {offsets = [2, 0], sizes = [1, 8], strides = [1, 1]} : vector<4x8xf32> to vector<1x8xf32>
    %2164 = vector.broadcast %2162 : vector<4x1xf32> to vector<4x8xf32>
    %2165 = vector.broadcast %2163 : vector<1x8xf32> to vector<4x8xf32>
    %2166 = arith.mulf %2164, %2165 : vector<4x8xf32>
    %2167 = arith.addf %2161, %2166 : vector<4x8xf32>
    %2168 = vector.extract_strided_slice %2066 {offsets = [0, 7], sizes = [4, 1], strides = [1, 1]} : vector<4x36xf32> to vector<4x1xf32>
    %2169 = vector.extract_strided_slice %2149 {offsets = [3, 0], sizes = [1, 8], strides = [1, 1]} : vector<4x8xf32> to vector<1x8xf32>
    %2170 = vector.broadcast %2168 : vector<4x1xf32> to vector<4x8xf32>
    %2171 = vector.broadcast %2169 : vector<1x8xf32> to vector<4x8xf32>
    %2172 = arith.mulf %2170, %2171 : vector<4x8xf32>
    %2173 = arith.addf %2167, %2172 : vector<4x8xf32>
    %c0_548 = arith.constant 0 : index
    %c127_549 = arith.constant 127 : index
    %2174 = vector.load %arg16[%c0_548, %c127_549] : memref<8x768xf32, #tpu.memory_space<vmem>>, vector<4x8xf32>
    %c-1_i32_550 = arith.constant -1 : i32
    %2175 = vector.broadcast %c-1_i32_550 : i32 to vector<1x8xi32>
    %2176 = arith.addi %2077, %2175 : vector<1x8xi32>
    %c0_i32_551 = arith.constant 0 : i32
    %2177 = vector.broadcast %c0_i32_551 : i32 to vector<1x8xi32>
    %2178 = arith.cmpi sge, %2176, %2177 : vector<1x8xi32>
    %c-1_i32_552 = arith.constant -1 : i32
    %2179 = vector.broadcast %c-1_i32_552 : i32 to vector<1x8xi32>
    %2180 = arith.addi %2077, %2179 : vector<1x8xi32>
    %c2_i32_553 = arith.constant 2 : i32
    %2181 = vector.broadcast %c2_i32_553 : i32 to vector<1x8xi32>
    %2182 = arith.cmpi slt, %2180, %2181 : vector<1x8xi32>
    %2183 = arith.andi %2178, %2182 : vector<1x8xi1>
    %c1_i32_554 = arith.constant 1 : i32
    %2184 = vector.broadcast %c1_i32_554 : i32 to vector<1x8xi32>
    %2185 = arith.addi %2073, %2184 : vector<1x8xi32>
    %c0_i32_555 = arith.constant 0 : i32
    %2186 = vector.broadcast %c0_i32_555 : i32 to vector<1x8xi32>
    %2187 = arith.cmpi sge, %2185, %2186 : vector<1x8xi32>
    %2188 = arith.andi %2183, %2187 : vector<1x8xi1>
    %c1_i32_556 = arith.constant 1 : i32
    %2189 = vector.broadcast %c1_i32_556 : i32 to vector<1x8xi32>
    %2190 = arith.addi %2073, %2189 : vector<1x8xi32>
    %c2_i32_557 = arith.constant 2 : i32
    %2191 = vector.broadcast %c2_i32_557 : i32 to vector<1x8xi32>
    %2192 = arith.cmpi slt, %2190, %2191 : vector<1x8xi32>
    %2193 = arith.andi %2188, %2192 : vector<1x8xi1>
    %cst_558 = arith.constant 0.000000e+00 : f32
    %2194 = vector.shape_cast %2193 : vector<1x8xi1> to vector<1x8xi1>
    %2195 = vector.broadcast %2194 : vector<1x8xi1> to vector<4x8xi1>
    %2196 = vector.broadcast %cst_558 : f32 to vector<4x8xf32>
    %2197 = arith.select %2195, %2174, %2196 : vector<4x8xi1>, vector<4x8xf32>
    %2198 = vector.extract_strided_slice %2066 {offsets = [0, 8], sizes = [4, 1], strides = [1, 1]} : vector<4x36xf32> to vector<4x1xf32>
    %2199 = vector.extract_strided_slice %2197 {offsets = [0, 0], sizes = [1, 8], strides = [1, 1]} : vector<4x8xf32> to vector<1x8xf32>
    %2200 = vector.broadcast %2198 : vector<4x1xf32> to vector<4x8xf32>
    %2201 = vector.broadcast %2199 : vector<1x8xf32> to vector<4x8xf32>
    %2202 = arith.mulf %2200, %2201 : vector<4x8xf32>
    %2203 = arith.addf %2173, %2202 : vector<4x8xf32>
    %2204 = vector.extract_strided_slice %2066 {offsets = [0, 9], sizes = [4, 1], strides = [1, 1]} : vector<4x36xf32> to vector<4x1xf32>
    %2205 = vector.extract_strided_slice %2197 {offsets = [1, 0], sizes = [1, 8], strides = [1, 1]} : vector<4x8xf32> to vector<1x8xf32>
    %2206 = vector.broadcast %2204 : vector<4x1xf32> to vector<4x8xf32>
    %2207 = vector.broadcast %2205 : vector<1x8xf32> to vector<4x8xf32>
    %2208 = arith.mulf %2206, %2207 : vector<4x8xf32>
    %2209 = arith.addf %2203, %2208 : vector<4x8xf32>
    %2210 = vector.extract_strided_slice %2066 {offsets = [0, 10], sizes = [4, 1], strides = [1, 1]} : vector<4x36xf32> to vector<4x1xf32>
    %2211 = vector.extract_strided_slice %2197 {offsets = [2, 0], sizes = [1, 8], strides = [1, 1]} : vector<4x8xf32> to vector<1x8xf32>
    %2212 = vector.broadcast %2210 : vector<4x1xf32> to vector<4x8xf32>
    %2213 = vector.broadcast %2211 : vector<1x8xf32> to vector<4x8xf32>
    %2214 = arith.mulf %2212, %2213 : vector<4x8xf32>
    %2215 = arith.addf %2209, %2214 : vector<4x8xf32>
    %2216 = vector.extract_strided_slice %2066 {offsets = [0, 11], sizes = [4, 1], strides = [1, 1]} : vector<4x36xf32> to vector<4x1xf32>
    %2217 = vector.extract_strided_slice %2197 {offsets = [3, 0], sizes = [1, 8], strides = [1, 1]} : vector<4x8xf32> to vector<1x8xf32>
    %2218 = vector.broadcast %2216 : vector<4x1xf32> to vector<4x8xf32>
    %2219 = vector.broadcast %2217 : vector<1x8xf32> to vector<4x8xf32>
    %2220 = arith.mulf %2218, %2219 : vector<4x8xf32>
    %2221 = arith.addf %2215, %2220 : vector<4x8xf32>
    %c0_559 = arith.constant 0 : index
    %c127_560 = arith.constant 127 : index
    %2222 = vector.load %arg16[%c0_559, %c127_560] : memref<8x768xf32, #tpu.memory_space<vmem>>, vector<4x8xf32>
    %c0_i32_561 = arith.constant 0 : i32
    %2223 = vector.broadcast %c0_i32_561 : i32 to vector<1x8xi32>
    %2224 = arith.addi %2077, %2223 : vector<1x8xi32>
    %c0_i32_562 = arith.constant 0 : i32
    %2225 = vector.broadcast %c0_i32_562 : i32 to vector<1x8xi32>
    %2226 = arith.cmpi sge, %2224, %2225 : vector<1x8xi32>
    %c0_i32_563 = arith.constant 0 : i32
    %2227 = vector.broadcast %c0_i32_563 : i32 to vector<1x8xi32>
    %2228 = arith.addi %2077, %2227 : vector<1x8xi32>
    %c2_i32_564 = arith.constant 2 : i32
    %2229 = vector.broadcast %c2_i32_564 : i32 to vector<1x8xi32>
    %2230 = arith.cmpi slt, %2228, %2229 : vector<1x8xi32>
    %2231 = arith.andi %2226, %2230 : vector<1x8xi1>
    %c-1_i32_565 = arith.constant -1 : i32
    %2232 = vector.broadcast %c-1_i32_565 : i32 to vector<1x8xi32>
    %2233 = arith.addi %2073, %2232 : vector<1x8xi32>
    %c0_i32_566 = arith.constant 0 : i32
    %2234 = vector.broadcast %c0_i32_566 : i32 to vector<1x8xi32>
    %2235 = arith.cmpi sge, %2233, %2234 : vector<1x8xi32>
    %2236 = arith.andi %2231, %2235 : vector<1x8xi1>
    %c-1_i32_567 = arith.constant -1 : i32
    %2237 = vector.broadcast %c-1_i32_567 : i32 to vector<1x8xi32>
    %2238 = arith.addi %2073, %2237 : vector<1x8xi32>
    %c2_i32_568 = arith.constant 2 : i32
    %2239 = vector.broadcast %c2_i32_568 : i32 to vector<1x8xi32>
    %2240 = arith.cmpi slt, %2238, %2239 : vector<1x8xi32>
    %2241 = arith.andi %2236, %2240 : vector<1x8xi1>
    %cst_569 = arith.constant 0.000000e+00 : f32
    %2242 = vector.shape_cast %2241 : vector<1x8xi1> to vector<1x8xi1>
    %2243 = vector.broadcast %2242 : vector<1x8xi1> to vector<4x8xi1>
    %2244 = vector.broadcast %cst_569 : f32 to vector<4x8xf32>
    %2245 = arith.select %2243, %2222, %2244 : vector<4x8xi1>, vector<4x8xf32>
    %2246 = vector.extract_strided_slice %2066 {offsets = [0, 12], sizes = [4, 1], strides = [1, 1]} : vector<4x36xf32> to vector<4x1xf32>
    %2247 = vector.extract_strided_slice %2245 {offsets = [0, 0], sizes = [1, 8], strides = [1, 1]} : vector<4x8xf32> to vector<1x8xf32>
    %2248 = vector.broadcast %2246 : vector<4x1xf32> to vector<4x8xf32>
    %2249 = vector.broadcast %2247 : vector<1x8xf32> to vector<4x8xf32>
    %2250 = arith.mulf %2248, %2249 : vector<4x8xf32>
    %2251 = arith.addf %2221, %2250 : vector<4x8xf32>
    %2252 = vector.extract_strided_slice %2066 {offsets = [0, 13], sizes = [4, 1], strides = [1, 1]} : vector<4x36xf32> to vector<4x1xf32>
    %2253 = vector.extract_strided_slice %2245 {offsets = [1, 0], sizes = [1, 8], strides = [1, 1]} : vector<4x8xf32> to vector<1x8xf32>
    %2254 = vector.broadcast %2252 : vector<4x1xf32> to vector<4x8xf32>
    %2255 = vector.broadcast %2253 : vector<1x8xf32> to vector<4x8xf32>
    %2256 = arith.mulf %2254, %2255 : vector<4x8xf32>
    %2257 = arith.addf %2251, %2256 : vector<4x8xf32>
    %2258 = vector.extract_strided_slice %2066 {offsets = [0, 14], sizes = [4, 1], strides = [1, 1]} : vector<4x36xf32> to vector<4x1xf32>
    %2259 = vector.extract_strided_slice %2245 {offsets = [2, 0], sizes = [1, 8], strides = [1, 1]} : vector<4x8xf32> to vector<1x8xf32>
    %2260 = vector.broadcast %2258 : vector<4x1xf32> to vector<4x8xf32>
    %2261 = vector.broadcast %2259 : vector<1x8xf32> to vector<4x8xf32>
    %2262 = arith.mulf %2260, %2261 : vector<4x8xf32>
    %2263 = arith.addf %2257, %2262 : vector<4x8xf32>
    %2264 = vector.extract_strided_slice %2066 {offsets = [0, 15], sizes = [4, 1], strides = [1, 1]} : vector<4x36xf32> to vector<4x1xf32>
    %2265 = vector.extract_strided_slice %2245 {offsets = [3, 0], sizes = [1, 8], strides = [1, 1]} : vector<4x8xf32> to vector<1x8xf32>
    %2266 = vector.broadcast %2264 : vector<4x1xf32> to vector<4x8xf32>
    %2267 = vector.broadcast %2265 : vector<1x8xf32> to vector<4x8xf32>
    %2268 = arith.mulf %2266, %2267 : vector<4x8xf32>
    %2269 = arith.addf %2263, %2268 : vector<4x8xf32>
    %c0_570 = arith.constant 0 : index
    %c128_571 = arith.constant 128 : index
    %2270 = vector.load %arg16[%c0_570, %c128_571] : memref<8x768xf32, #tpu.memory_space<vmem>>, vector<4x8xf32>
    %c0_i32_572 = arith.constant 0 : i32
    %2271 = vector.broadcast %c0_i32_572 : i32 to vector<1x8xi32>
    %2272 = arith.addi %2077, %2271 : vector<1x8xi32>
    %c0_i32_573 = arith.constant 0 : i32
    %2273 = vector.broadcast %c0_i32_573 : i32 to vector<1x8xi32>
    %2274 = arith.cmpi sge, %2272, %2273 : vector<1x8xi32>
    %c0_i32_574 = arith.constant 0 : i32
    %2275 = vector.broadcast %c0_i32_574 : i32 to vector<1x8xi32>
    %2276 = arith.addi %2077, %2275 : vector<1x8xi32>
    %c2_i32_575 = arith.constant 2 : i32
    %2277 = vector.broadcast %c2_i32_575 : i32 to vector<1x8xi32>
    %2278 = arith.cmpi slt, %2276, %2277 : vector<1x8xi32>
    %2279 = arith.andi %2274, %2278 : vector<1x8xi1>
    %c0_i32_576 = arith.constant 0 : i32
    %2280 = vector.broadcast %c0_i32_576 : i32 to vector<1x8xi32>
    %2281 = arith.addi %2073, %2280 : vector<1x8xi32>
    %c0_i32_577 = arith.constant 0 : i32
    %2282 = vector.broadcast %c0_i32_577 : i32 to vector<1x8xi32>
    %2283 = arith.cmpi sge, %2281, %2282 : vector<1x8xi32>
    %2284 = arith.andi %2279, %2283 : vector<1x8xi1>
    %c0_i32_578 = arith.constant 0 : i32
    %2285 = vector.broadcast %c0_i32_578 : i32 to vector<1x8xi32>
    %2286 = arith.addi %2073, %2285 : vector<1x8xi32>
    %c2_i32_579 = arith.constant 2 : i32
    %2287 = vector.broadcast %c2_i32_579 : i32 to vector<1x8xi32>
    %2288 = arith.cmpi slt, %2286, %2287 : vector<1x8xi32>
    %2289 = arith.andi %2284, %2288 : vector<1x8xi1>
    %cst_580 = arith.constant 0.000000e+00 : f32
    %2290 = vector.shape_cast %2289 : vector<1x8xi1> to vector<1x8xi1>
    %2291 = vector.broadcast %2290 : vector<1x8xi1> to vector<4x8xi1>
    %2292 = vector.broadcast %cst_580 : f32 to vector<4x8xf32>
    %2293 = arith.select %2291, %2270, %2292 : vector<4x8xi1>, vector<4x8xf32>
    %2294 = vector.extract_strided_slice %2066 {offsets = [0, 16], sizes = [4, 1], strides = [1, 1]} : vector<4x36xf32> to vector<4x1xf32>
    %2295 = vector.extract_strided_slice %2293 {offsets = [0, 0], sizes = [1, 8], strides = [1, 1]} : vector<4x8xf32> to vector<1x8xf32>
    %2296 = vector.broadcast %2294 : vector<4x1xf32> to vector<4x8xf32>
    %2297 = vector.broadcast %2295 : vector<1x8xf32> to vector<4x8xf32>
    %2298 = arith.mulf %2296, %2297 : vector<4x8xf32>
    %2299 = arith.addf %2269, %2298 : vector<4x8xf32>
    %2300 = vector.extract_strided_slice %2066 {offsets = [0, 17], sizes = [4, 1], strides = [1, 1]} : vector<4x36xf32> to vector<4x1xf32>
    %2301 = vector.extract_strided_slice %2293 {offsets = [1, 0], sizes = [1, 8], strides = [1, 1]} : vector<4x8xf32> to vector<1x8xf32>
    %2302 = vector.broadcast %2300 : vector<4x1xf32> to vector<4x8xf32>
    %2303 = vector.broadcast %2301 : vector<1x8xf32> to vector<4x8xf32>
    %2304 = arith.mulf %2302, %2303 : vector<4x8xf32>
    %2305 = arith.addf %2299, %2304 : vector<4x8xf32>
    %2306 = vector.extract_strided_slice %2066 {offsets = [0, 18], sizes = [4, 1], strides = [1, 1]} : vector<4x36xf32> to vector<4x1xf32>
    %2307 = vector.extract_strided_slice %2293 {offsets = [2, 0], sizes = [1, 8], strides = [1, 1]} : vector<4x8xf32> to vector<1x8xf32>
    %2308 = vector.broadcast %2306 : vector<4x1xf32> to vector<4x8xf32>
    %2309 = vector.broadcast %2307 : vector<1x8xf32> to vector<4x8xf32>
    %2310 = arith.mulf %2308, %2309 : vector<4x8xf32>
    %2311 = arith.addf %2305, %2310 : vector<4x8xf32>
    %2312 = vector.extract_strided_slice %2066 {offsets = [0, 19], sizes = [4, 1], strides = [1, 1]} : vector<4x36xf32> to vector<4x1xf32>
    %2313 = vector.extract_strided_slice %2293 {offsets = [3, 0], sizes = [1, 8], strides = [1, 1]} : vector<4x8xf32> to vector<1x8xf32>
    %2314 = vector.broadcast %2312 : vector<4x1xf32> to vector<4x8xf32>
    %2315 = vector.broadcast %2313 : vector<1x8xf32> to vector<4x8xf32>
    %2316 = arith.mulf %2314, %2315 : vector<4x8xf32>
    %2317 = arith.addf %2311, %2316 : vector<4x8xf32>
    %c0_581 = arith.constant 0 : index
    %c129_582 = arith.constant 129 : index
    %2318 = vector.load %arg16[%c0_581, %c129_582] : memref<8x768xf32, #tpu.memory_space<vmem>>, vector<4x8xf32>
    %c0_i32_583 = arith.constant 0 : i32
    %2319 = vector.broadcast %c0_i32_583 : i32 to vector<1x8xi32>
    %2320 = arith.addi %2077, %2319 : vector<1x8xi32>
    %c0_i32_584 = arith.constant 0 : i32
    %2321 = vector.broadcast %c0_i32_584 : i32 to vector<1x8xi32>
    %2322 = arith.cmpi sge, %2320, %2321 : vector<1x8xi32>
    %c0_i32_585 = arith.constant 0 : i32
    %2323 = vector.broadcast %c0_i32_585 : i32 to vector<1x8xi32>
    %2324 = arith.addi %2077, %2323 : vector<1x8xi32>
    %c2_i32_586 = arith.constant 2 : i32
    %2325 = vector.broadcast %c2_i32_586 : i32 to vector<1x8xi32>
    %2326 = arith.cmpi slt, %2324, %2325 : vector<1x8xi32>
    %2327 = arith.andi %2322, %2326 : vector<1x8xi1>
    %c1_i32_587 = arith.constant 1 : i32
    %2328 = vector.broadcast %c1_i32_587 : i32 to vector<1x8xi32>
    %2329 = arith.addi %2073, %2328 : vector<1x8xi32>
    %c0_i32_588 = arith.constant 0 : i32
    %2330 = vector.broadcast %c0_i32_588 : i32 to vector<1x8xi32>
    %2331 = arith.cmpi sge, %2329, %2330 : vector<1x8xi32>
    %2332 = arith.andi %2327, %2331 : vector<1x8xi1>
    %c1_i32_589 = arith.constant 1 : i32
    %2333 = vector.broadcast %c1_i32_589 : i32 to vector<1x8xi32>
    %2334 = arith.addi %2073, %2333 : vector<1x8xi32>
    %c2_i32_590 = arith.constant 2 : i32
    %2335 = vector.broadcast %c2_i32_590 : i32 to vector<1x8xi32>
    %2336 = arith.cmpi slt, %2334, %2335 : vector<1x8xi32>
    %2337 = arith.andi %2332, %2336 : vector<1x8xi1>
    %cst_591 = arith.constant 0.000000e+00 : f32
    %2338 = vector.shape_cast %2337 : vector<1x8xi1> to vector<1x8xi1>
    %2339 = vector.broadcast %2338 : vector<1x8xi1> to vector<4x8xi1>
    %2340 = vector.broadcast %cst_591 : f32 to vector<4x8xf32>
    %2341 = arith.select %2339, %2318, %2340 : vector<4x8xi1>, vector<4x8xf32>
    %2342 = vector.extract_strided_slice %2066 {offsets = [0, 20], sizes = [4, 1], strides = [1, 1]} : vector<4x36xf32> to vector<4x1xf32>
    %2343 = vector.extract_strided_slice %2341 {offsets = [0, 0], sizes = [1, 8], strides = [1, 1]} : vector<4x8xf32> to vector<1x8xf32>
    %2344 = vector.broadcast %2342 : vector<4x1xf32> to vector<4x8xf32>
    %2345 = vector.broadcast %2343 : vector<1x8xf32> to vector<4x8xf32>
    %2346 = arith.mulf %2344, %2345 : vector<4x8xf32>
    %2347 = arith.addf %2317, %2346 : vector<4x8xf32>
    %2348 = vector.extract_strided_slice %2066 {offsets = [0, 21], sizes = [4, 1], strides = [1, 1]} : vector<4x36xf32> to vector<4x1xf32>
    %2349 = vector.extract_strided_slice %2341 {offsets = [1, 0], sizes = [1, 8], strides = [1, 1]} : vector<4x8xf32> to vector<1x8xf32>
    %2350 = vector.broadcast %2348 : vector<4x1xf32> to vector<4x8xf32>
    %2351 = vector.broadcast %2349 : vector<1x8xf32> to vector<4x8xf32>
    %2352 = arith.mulf %2350, %2351 : vector<4x8xf32>
    %2353 = arith.addf %2347, %2352 : vector<4x8xf32>
    %2354 = vector.extract_strided_slice %2066 {offsets = [0, 22], sizes = [4, 1], strides = [1, 1]} : vector<4x36xf32> to vector<4x1xf32>
    %2355 = vector.extract_strided_slice %2341 {offsets = [2, 0], sizes = [1, 8], strides = [1, 1]} : vector<4x8xf32> to vector<1x8xf32>
    %2356 = vector.broadcast %2354 : vector<4x1xf32> to vector<4x8xf32>
    %2357 = vector.broadcast %2355 : vector<1x8xf32> to vector<4x8xf32>
    %2358 = arith.mulf %2356, %2357 : vector<4x8xf32>
    %2359 = arith.addf %2353, %2358 : vector<4x8xf32>
    %2360 = vector.extract_strided_slice %2066 {offsets = [0, 23], sizes = [4, 1], strides = [1, 1]} : vector<4x36xf32> to vector<4x1xf32>
    %2361 = vector.extract_strided_slice %2341 {offsets = [3, 0], sizes = [1, 8], strides = [1, 1]} : vector<4x8xf32> to vector<1x8xf32>
    %2362 = vector.broadcast %2360 : vector<4x1xf32> to vector<4x8xf32>
    %2363 = vector.broadcast %2361 : vector<1x8xf32> to vector<4x8xf32>
    %2364 = arith.mulf %2362, %2363 : vector<4x8xf32>
    %2365 = arith.addf %2359, %2364 : vector<4x8xf32>
    %c0_592 = arith.constant 0 : index
    %c129_593 = arith.constant 129 : index
    %2366 = vector.load %arg16[%c0_592, %c129_593] : memref<8x768xf32, #tpu.memory_space<vmem>>, vector<4x8xf32>
    %c1_i32_594 = arith.constant 1 : i32
    %2367 = vector.broadcast %c1_i32_594 : i32 to vector<1x8xi32>
    %2368 = arith.addi %2077, %2367 : vector<1x8xi32>
    %c0_i32_595 = arith.constant 0 : i32
    %2369 = vector.broadcast %c0_i32_595 : i32 to vector<1x8xi32>
    %2370 = arith.cmpi sge, %2368, %2369 : vector<1x8xi32>
    %c1_i32_596 = arith.constant 1 : i32
    %2371 = vector.broadcast %c1_i32_596 : i32 to vector<1x8xi32>
    %2372 = arith.addi %2077, %2371 : vector<1x8xi32>
    %c2_i32_597 = arith.constant 2 : i32
    %2373 = vector.broadcast %c2_i32_597 : i32 to vector<1x8xi32>
    %2374 = arith.cmpi slt, %2372, %2373 : vector<1x8xi32>
    %2375 = arith.andi %2370, %2374 : vector<1x8xi1>
    %c-1_i32_598 = arith.constant -1 : i32
    %2376 = vector.broadcast %c-1_i32_598 : i32 to vector<1x8xi32>
    %2377 = arith.addi %2073, %2376 : vector<1x8xi32>
    %c0_i32_599 = arith.constant 0 : i32
    %2378 = vector.broadcast %c0_i32_599 : i32 to vector<1x8xi32>
    %2379 = arith.cmpi sge, %2377, %2378 : vector<1x8xi32>
    %2380 = arith.andi %2375, %2379 : vector<1x8xi1>
    %c-1_i32_600 = arith.constant -1 : i32
    %2381 = vector.broadcast %c-1_i32_600 : i32 to vector<1x8xi32>
    %2382 = arith.addi %2073, %2381 : vector<1x8xi32>
    %c2_i32_601 = arith.constant 2 : i32
    %2383 = vector.broadcast %c2_i32_601 : i32 to vector<1x8xi32>
    %2384 = arith.cmpi slt, %2382, %2383 : vector<1x8xi32>
    %2385 = arith.andi %2380, %2384 : vector<1x8xi1>
    %cst_602 = arith.constant 0.000000e+00 : f32
    %2386 = vector.shape_cast %2385 : vector<1x8xi1> to vector<1x8xi1>
    %2387 = vector.broadcast %2386 : vector<1x8xi1> to vector<4x8xi1>
    %2388 = vector.broadcast %cst_602 : f32 to vector<4x8xf32>
    %2389 = arith.select %2387, %2366, %2388 : vector<4x8xi1>, vector<4x8xf32>
    %2390 = vector.extract_strided_slice %2066 {offsets = [0, 24], sizes = [4, 1], strides = [1, 1]} : vector<4x36xf32> to vector<4x1xf32>
    %2391 = vector.extract_strided_slice %2389 {offsets = [0, 0], sizes = [1, 8], strides = [1, 1]} : vector<4x8xf32> to vector<1x8xf32>
    %2392 = vector.broadcast %2390 : vector<4x1xf32> to vector<4x8xf32>
    %2393 = vector.broadcast %2391 : vector<1x8xf32> to vector<4x8xf32>
    %2394 = arith.mulf %2392, %2393 : vector<4x8xf32>
    %2395 = arith.addf %2365, %2394 : vector<4x8xf32>
    %2396 = vector.extract_strided_slice %2066 {offsets = [0, 25], sizes = [4, 1], strides = [1, 1]} : vector<4x36xf32> to vector<4x1xf32>
    %2397 = vector.extract_strided_slice %2389 {offsets = [1, 0], sizes = [1, 8], strides = [1, 1]} : vector<4x8xf32> to vector<1x8xf32>
    %2398 = vector.broadcast %2396 : vector<4x1xf32> to vector<4x8xf32>
    %2399 = vector.broadcast %2397 : vector<1x8xf32> to vector<4x8xf32>
    %2400 = arith.mulf %2398, %2399 : vector<4x8xf32>
    %2401 = arith.addf %2395, %2400 : vector<4x8xf32>
    %2402 = vector.extract_strided_slice %2066 {offsets = [0, 26], sizes = [4, 1], strides = [1, 1]} : vector<4x36xf32> to vector<4x1xf32>
    %2403 = vector.extract_strided_slice %2389 {offsets = [2, 0], sizes = [1, 8], strides = [1, 1]} : vector<4x8xf32> to vector<1x8xf32>
    %2404 = vector.broadcast %2402 : vector<4x1xf32> to vector<4x8xf32>
    %2405 = vector.broadcast %2403 : vector<1x8xf32> to vector<4x8xf32>
    %2406 = arith.mulf %2404, %2405 : vector<4x8xf32>
    %2407 = arith.addf %2401, %2406 : vector<4x8xf32>
    %2408 = vector.extract_strided_slice %2066 {offsets = [0, 27], sizes = [4, 1], strides = [1, 1]} : vector<4x36xf32> to vector<4x1xf32>
    %2409 = vector.extract_strided_slice %2389 {offsets = [3, 0], sizes = [1, 8], strides = [1, 1]} : vector<4x8xf32> to vector<1x8xf32>
    %2410 = vector.broadcast %2408 : vector<4x1xf32> to vector<4x8xf32>
    %2411 = vector.broadcast %2409 : vector<1x8xf32> to vector<4x8xf32>
    %2412 = arith.mulf %2410, %2411 : vector<4x8xf32>
    %2413 = arith.addf %2407, %2412 : vector<4x8xf32>
    %c0_603 = arith.constant 0 : index
    %c130 = arith.constant 130 : index
    %2414 = vector.load %arg16[%c0_603, %c130] : memref<8x768xf32, #tpu.memory_space<vmem>>, vector<4x8xf32>
    %c1_i32_604 = arith.constant 1 : i32
    %2415 = vector.broadcast %c1_i32_604 : i32 to vector<1x8xi32>
    %2416 = arith.addi %2077, %2415 : vector<1x8xi32>
    %c0_i32_605 = arith.constant 0 : i32
    %2417 = vector.broadcast %c0_i32_605 : i32 to vector<1x8xi32>
    %2418 = arith.cmpi sge, %2416, %2417 : vector<1x8xi32>
    %c1_i32_606 = arith.constant 1 : i32
    %2419 = vector.broadcast %c1_i32_606 : i32 to vector<1x8xi32>
    %2420 = arith.addi %2077, %2419 : vector<1x8xi32>
    %c2_i32_607 = arith.constant 2 : i32
    %2421 = vector.broadcast %c2_i32_607 : i32 to vector<1x8xi32>
    %2422 = arith.cmpi slt, %2420, %2421 : vector<1x8xi32>
    %2423 = arith.andi %2418, %2422 : vector<1x8xi1>
    %c0_i32_608 = arith.constant 0 : i32
    %2424 = vector.broadcast %c0_i32_608 : i32 to vector<1x8xi32>
    %2425 = arith.addi %2073, %2424 : vector<1x8xi32>
    %c0_i32_609 = arith.constant 0 : i32
    %2426 = vector.broadcast %c0_i32_609 : i32 to vector<1x8xi32>
    %2427 = arith.cmpi sge, %2425, %2426 : vector<1x8xi32>
    %2428 = arith.andi %2423, %2427 : vector<1x8xi1>
    %c0_i32_610 = arith.constant 0 : i32
    %2429 = vector.broadcast %c0_i32_610 : i32 to vector<1x8xi32>
    %2430 = arith.addi %2073, %2429 : vector<1x8xi32>
    %c2_i32_611 = arith.constant 2 : i32
    %2431 = vector.broadcast %c2_i32_611 : i32 to vector<1x8xi32>
    %2432 = arith.cmpi slt, %2430, %2431 : vector<1x8xi32>
    %2433 = arith.andi %2428, %2432 : vector<1x8xi1>
    %cst_612 = arith.constant 0.000000e+00 : f32
    %2434 = vector.shape_cast %2433 : vector<1x8xi1> to vector<1x8xi1>
    %2435 = vector.broadcast %2434 : vector<1x8xi1> to vector<4x8xi1>
    %2436 = vector.broadcast %cst_612 : f32 to vector<4x8xf32>
    %2437 = arith.select %2435, %2414, %2436 : vector<4x8xi1>, vector<4x8xf32>
    %2438 = vector.extract_strided_slice %2066 {offsets = [0, 28], sizes = [4, 1], strides = [1, 1]} : vector<4x36xf32> to vector<4x1xf32>
    %2439 = vector.extract_strided_slice %2437 {offsets = [0, 0], sizes = [1, 8], strides = [1, 1]} : vector<4x8xf32> to vector<1x8xf32>
    %2440 = vector.broadcast %2438 : vector<4x1xf32> to vector<4x8xf32>
    %2441 = vector.broadcast %2439 : vector<1x8xf32> to vector<4x8xf32>
    %2442 = arith.mulf %2440, %2441 : vector<4x8xf32>
    %2443 = arith.addf %2413, %2442 : vector<4x8xf32>
    %2444 = vector.extract_strided_slice %2066 {offsets = [0, 29], sizes = [4, 1], strides = [1, 1]} : vector<4x36xf32> to vector<4x1xf32>
    %2445 = vector.extract_strided_slice %2437 {offsets = [1, 0], sizes = [1, 8], strides = [1, 1]} : vector<4x8xf32> to vector<1x8xf32>
    %2446 = vector.broadcast %2444 : vector<4x1xf32> to vector<4x8xf32>
    %2447 = vector.broadcast %2445 : vector<1x8xf32> to vector<4x8xf32>
    %2448 = arith.mulf %2446, %2447 : vector<4x8xf32>
    %2449 = arith.addf %2443, %2448 : vector<4x8xf32>
    %2450 = vector.extract_strided_slice %2066 {offsets = [0, 30], sizes = [4, 1], strides = [1, 1]} : vector<4x36xf32> to vector<4x1xf32>
    %2451 = vector.extract_strided_slice %2437 {offsets = [2, 0], sizes = [1, 8], strides = [1, 1]} : vector<4x8xf32> to vector<1x8xf32>
    %2452 = vector.broadcast %2450 : vector<4x1xf32> to vector<4x8xf32>
    %2453 = vector.broadcast %2451 : vector<1x8xf32> to vector<4x8xf32>
    %2454 = arith.mulf %2452, %2453 : vector<4x8xf32>
    %2455 = arith.addf %2449, %2454 : vector<4x8xf32>
    %2456 = vector.extract_strided_slice %2066 {offsets = [0, 31], sizes = [4, 1], strides = [1, 1]} : vector<4x36xf32> to vector<4x1xf32>
    %2457 = vector.extract_strided_slice %2437 {offsets = [3, 0], sizes = [1, 8], strides = [1, 1]} : vector<4x8xf32> to vector<1x8xf32>
    %2458 = vector.broadcast %2456 : vector<4x1xf32> to vector<4x8xf32>
    %2459 = vector.broadcast %2457 : vector<1x8xf32> to vector<4x8xf32>
    %2460 = arith.mulf %2458, %2459 : vector<4x8xf32>
    %2461 = arith.addf %2455, %2460 : vector<4x8xf32>
    %c0_613 = arith.constant 0 : index
    %c131_614 = arith.constant 131 : index
    %2462 = vector.load %arg16[%c0_613, %c131_614] : memref<8x768xf32, #tpu.memory_space<vmem>>, vector<4x8xf32>
    %c1_i32_615 = arith.constant 1 : i32
    %2463 = vector.broadcast %c1_i32_615 : i32 to vector<1x8xi32>
    %2464 = arith.addi %2077, %2463 : vector<1x8xi32>
    %c0_i32_616 = arith.constant 0 : i32
    %2465 = vector.broadcast %c0_i32_616 : i32 to vector<1x8xi32>
    %2466 = arith.cmpi sge, %2464, %2465 : vector<1x8xi32>
    %c1_i32_617 = arith.constant 1 : i32
    %2467 = vector.broadcast %c1_i32_617 : i32 to vector<1x8xi32>
    %2468 = arith.addi %2077, %2467 : vector<1x8xi32>
    %c2_i32_618 = arith.constant 2 : i32
    %2469 = vector.broadcast %c2_i32_618 : i32 to vector<1x8xi32>
    %2470 = arith.cmpi slt, %2468, %2469 : vector<1x8xi32>
    %2471 = arith.andi %2466, %2470 : vector<1x8xi1>
    %c1_i32_619 = arith.constant 1 : i32
    %2472 = vector.broadcast %c1_i32_619 : i32 to vector<1x8xi32>
    %2473 = arith.addi %2073, %2472 : vector<1x8xi32>
    %c0_i32_620 = arith.constant 0 : i32
    %2474 = vector.broadcast %c0_i32_620 : i32 to vector<1x8xi32>
    %2475 = arith.cmpi sge, %2473, %2474 : vector<1x8xi32>
    %2476 = arith.andi %2471, %2475 : vector<1x8xi1>
    %c1_i32_621 = arith.constant 1 : i32
    %2477 = vector.broadcast %c1_i32_621 : i32 to vector<1x8xi32>
    %2478 = arith.addi %2073, %2477 : vector<1x8xi32>
    %c2_i32_622 = arith.constant 2 : i32
    %2479 = vector.broadcast %c2_i32_622 : i32 to vector<1x8xi32>
    %2480 = arith.cmpi slt, %2478, %2479 : vector<1x8xi32>
    %2481 = arith.andi %2476, %2480 : vector<1x8xi1>
    %cst_623 = arith.constant 0.000000e+00 : f32
    %2482 = vector.shape_cast %2481 : vector<1x8xi1> to vector<1x8xi1>
    %2483 = vector.broadcast %2482 : vector<1x8xi1> to vector<4x8xi1>
    %2484 = vector.broadcast %cst_623 : f32 to vector<4x8xf32>
    %2485 = arith.select %2483, %2462, %2484 : vector<4x8xi1>, vector<4x8xf32>
    %2486 = vector.extract_strided_slice %2066 {offsets = [0, 32], sizes = [4, 1], strides = [1, 1]} : vector<4x36xf32> to vector<4x1xf32>
    %2487 = vector.extract_strided_slice %2485 {offsets = [0, 0], sizes = [1, 8], strides = [1, 1]} : vector<4x8xf32> to vector<1x8xf32>
    %2488 = vector.broadcast %2486 : vector<4x1xf32> to vector<4x8xf32>
    %2489 = vector.broadcast %2487 : vector<1x8xf32> to vector<4x8xf32>
    %2490 = arith.mulf %2488, %2489 : vector<4x8xf32>
    %2491 = arith.addf %2461, %2490 : vector<4x8xf32>
    %2492 = vector.extract_strided_slice %2066 {offsets = [0, 33], sizes = [4, 1], strides = [1, 1]} : vector<4x36xf32> to vector<4x1xf32>
    %2493 = vector.extract_strided_slice %2485 {offsets = [1, 0], sizes = [1, 8], strides = [1, 1]} : vector<4x8xf32> to vector<1x8xf32>
    %2494 = vector.broadcast %2492 : vector<4x1xf32> to vector<4x8xf32>
    %2495 = vector.broadcast %2493 : vector<1x8xf32> to vector<4x8xf32>
    %2496 = arith.mulf %2494, %2495 : vector<4x8xf32>
    %2497 = arith.addf %2491, %2496 : vector<4x8xf32>
    %2498 = vector.extract_strided_slice %2066 {offsets = [0, 34], sizes = [4, 1], strides = [1, 1]} : vector<4x36xf32> to vector<4x1xf32>
    %2499 = vector.extract_strided_slice %2485 {offsets = [2, 0], sizes = [1, 8], strides = [1, 1]} : vector<4x8xf32> to vector<1x8xf32>
    %2500 = vector.broadcast %2498 : vector<4x1xf32> to vector<4x8xf32>
    %2501 = vector.broadcast %2499 : vector<1x8xf32> to vector<4x8xf32>
    %2502 = arith.mulf %2500, %2501 : vector<4x8xf32>
    %2503 = arith.addf %2497, %2502 : vector<4x8xf32>
    %2504 = vector.extract_strided_slice %2066 {offsets = [0, 35], sizes = [4, 1], strides = [1, 1]} : vector<4x36xf32> to vector<4x1xf32>
    %2505 = vector.extract_strided_slice %2485 {offsets = [3, 0], sizes = [1, 8], strides = [1, 1]} : vector<4x8xf32> to vector<1x8xf32>
    %2506 = vector.broadcast %2504 : vector<4x1xf32> to vector<4x8xf32>
    %2507 = vector.broadcast %2505 : vector<1x8xf32> to vector<4x8xf32>
    %2508 = arith.mulf %2506, %2507 : vector<4x8xf32>
    %2509 = arith.addf %2503, %2508 : vector<4x8xf32>
    %cst_624 = arith.constant 0.000000e+00 : f32
    %2510 = vector.broadcast %cst_624 : f32 to vector<4x8xf32>
    %2511 = arith.maximumf %2509, %2510 : vector<4x8xf32>
    %2512 = vector.extract_strided_slice %2511 {offsets = [0, 0], sizes = [1, 4], strides = [1, 1]} : vector<4x8xf32> to vector<1x4xf32>
    %c0_625 = arith.constant 0 : index
    %c0_626 = arith.constant 0 : index
    %2513 = vector.load %arg17[%c0_625, %c0_626] : memref<2x16xf32, #tpu.memory_space<vmem>>, vector<1x4xf32>
    tpu.vector_store %arg17[%c0_625, %c0_626], %2512 {strides = array<i32>} : memref<2x16xf32, #tpu.memory_space<vmem>>, vector<1x4xf32>,
    %2514 = vector.extract_strided_slice %2511 {offsets = [1, 0], sizes = [1, 4], strides = [1, 1]} : vector<4x8xf32> to vector<1x4xf32>
    %c0_627 = arith.constant 0 : index
    %c4 = arith.constant 4 : index
    %2515 = vector.load %arg17[%c0_627, %c4] : memref<2x16xf32, #tpu.memory_space<vmem>>, vector<1x4xf32>
    tpu.vector_store %arg17[%c0_627, %c4], %2514 {strides = array<i32>} : memref<2x16xf32, #tpu.memory_space<vmem>>, vector<1x4xf32>,
    %2516 = vector.extract_strided_slice %2511 {offsets = [2, 0], sizes = [1, 4], strides = [1, 1]} : vector<4x8xf32> to vector<1x4xf32>
    %c0_628 = arith.constant 0 : index
    %c8 = arith.constant 8 : index
    %2517 = vector.load %arg17[%c0_628, %c8] : memref<2x16xf32, #tpu.memory_space<vmem>>, vector<1x4xf32>
    tpu.vector_store %arg17[%c0_628, %c8], %2516 {strides = array<i32>} : memref<2x16xf32, #tpu.memory_space<vmem>>, vector<1x4xf32>,
    %2518 = vector.extract_strided_slice %2511 {offsets = [3, 0], sizes = [1, 4], strides = [1, 1]} : vector<4x8xf32> to vector<1x4xf32>
    %c0_629 = arith.constant 0 : index
    %c12 = arith.constant 12 : index
    %2519 = vector.load %arg17[%c0_629, %c12] : memref<2x16xf32, #tpu.memory_space<vmem>>, vector<1x4xf32>
    tpu.vector_store %arg17[%c0_629, %c12], %2518 {strides = array<i32>} : memref<2x16xf32, #tpu.memory_space<vmem>>, vector<1x4xf32>,
    %2520 = vector.extract_strided_slice %2511 {offsets = [0, 4], sizes = [1, 4], strides = [1, 1]} : vector<4x8xf32> to vector<1x4xf32>
    %c1 = arith.constant 1 : index
    %c0_630 = arith.constant 0 : index
    %2521 = vector.load %arg17[%c1, %c0_630] : memref<2x16xf32, #tpu.memory_space<vmem>>, vector<1x4xf32>
    tpu.vector_store %arg17[%c1, %c0_630], %2520 {strides = array<i32>} : memref<2x16xf32, #tpu.memory_space<vmem>>, vector<1x4xf32>,
    %2522 = vector.extract_strided_slice %2511 {offsets = [1, 4], sizes = [1, 4], strides = [1, 1]} : vector<4x8xf32> to vector<1x4xf32>
    %c1_631 = arith.constant 1 : index
    %c4_632 = arith.constant 4 : index
    %2523 = vector.load %arg17[%c1_631, %c4_632] : memref<2x16xf32, #tpu.memory_space<vmem>>, vector<1x4xf32>
    tpu.vector_store %arg17[%c1_631, %c4_632], %2522 {strides = array<i32>} : memref<2x16xf32, #tpu.memory_space<vmem>>, vector<1x4xf32>,
    %2524 = vector.extract_strided_slice %2511 {offsets = [2, 4], sizes = [1, 4], strides = [1, 1]} : vector<4x8xf32> to vector<1x4xf32>
    %c1_633 = arith.constant 1 : index
    %c8_634 = arith.constant 8 : index
    %2525 = vector.load %arg17[%c1_633, %c8_634] : memref<2x16xf32, #tpu.memory_space<vmem>>, vector<1x4xf32>
    tpu.vector_store %arg17[%c1_633, %c8_634], %2524 {strides = array<i32>} : memref<2x16xf32, #tpu.memory_space<vmem>>, vector<1x4xf32>,
    %2526 = vector.extract_strided_slice %2511 {offsets = [3, 4], sizes = [1, 4], strides = [1, 1]} : vector<4x8xf32> to vector<1x4xf32>
    %c1_635 = arith.constant 1 : index
    %c12_636 = arith.constant 12 : index
    %2527 = vector.load %arg17[%c1_635, %c12_636] : memref<2x16xf32, #tpu.memory_space<vmem>>, vector<1x4xf32>
    tpu.vector_store %arg17[%c1_635, %c12_636], %2526 {strides = array<i32>} : memref<2x16xf32, #tpu.memory_space<vmem>>, vector<1x4xf32>,
    %c0_637 = arith.constant 0 : index
    %c0_638 = arith.constant 0 : index
    %2528 = vector.load %arg17[%c0_637, %c0_638] : memref<2x16xf32, #tpu.memory_space<vmem>>, vector<2x16xf32>
    %c0_639 = arith.constant 0 : index
    %c0_640 = arith.constant 0 : index
    %2529 = vector.load %arg12[%c0_639, %c0_640] : memref<16x10xf32, #tpu.memory_space<vmem>>, vector<16x10xf32>
    %cst_641 = arith.constant dense<0.000000e+00> : vector<2x10xf32>
    %2530 = tpu.matmul %2528, %2529, %cst_641 {dimension_numbers = #tpu.dot_dimension_numbers<[1], [0], [0], [1], [0, 0, 1, 1], [], []>} : vector<2x16xf32>, vector<16x10xf32>, vector<2x10xf32> -> vector<2x10xf32>
    %c0_642 = arith.constant 0 : index
    %c0_643 = arith.constant 0 : index
    %2531 = vector.load %arg13[%c0_642, %c0_643] : memref<1x10xf32, #tpu.memory_space<vmem>>, vector<1x10xf32>
    %2532 = vector.broadcast %2531 : vector<1x10xf32> to vector<2x10xf32>
    %2533 = arith.addf %2530, %2532 : vector<2x10xf32>
    %cst_644 = arith.constant dense<0xFF800000> : vector<2xf32>
    %2534 = vector.multi_reduction <maximumf>, %2533, %cst_644 [1] : vector<2x10xf32> to vector<2xf32>
    %2535 = vector.shape_cast %2534 : vector<2xf32> to vector<2x1xf32>
    %2536 = vector.broadcast %2535 : vector<2x1xf32> to vector<2x10xf32>
    %2537 = arith.subf %2533, %2536 : vector<2x10xf32>
    %2538 = math.exp %2537 : vector<2x10xf32>
    %cst_645 = arith.constant dense<0.000000e+00> : vector<2xf32>
    %2539 = vector.multi_reduction <add>, %2538, %cst_645 [1] : vector<2x10xf32> to vector<2xf32>
    %2540 = vector.shape_cast %2539 : vector<2xf32> to vector<2x1xf32>
    %2541 = tpu.reciprocal %2540 {approx = true} : vector<2x1xf32> -> vector<2x1xf32>
    %2542 = vector.broadcast %2541 : vector<2x1xf32> to vector<2x10xf32>
    %2543 = arith.mulf %2538, %2542 : vector<2x10xf32>
    %c0_646 = arith.constant 0 : index
    %c0_647 = arith.constant 0 : index
    %2544 = vector.load %arg15[%c0_646, %c0_647] : memref<2x10xf32, #tpu.memory_space<vmem>>, vector<2x10xf32>
    tpu.vector_store %arg15[%c0_646, %c0_647], %2543 {strides = array<i32>} : memref<2x10xf32, #tpu.memory_space<vmem>>, vector<2x10xf32>,
    return
  }
}

</mosaic_0001>

<bundles_post_ra>
// kernel: cnn_forward.1
= control target key start
LH: loop header
LB: loop body
LE: loop exit
PB: predicated region body
PF: predicated region fallthrough
CT: control target
= control target key end

     0   :  { %v59_v2 = vlaneseq  ;;  %v7293_v3 = vmov 1   ;;  %v7295_v4 = vmov 2   ;;  %s7262_s0 = inlined_call_operand.vmem [shape: f32[1,512], index: 0, kind: input, shape index: {}]   ;;  %s7263_s1 = inlined_call_operand.vmem [shape: f32[8,9], index: 1, kind: input, shape index: {}]   ;;  %s7264_s2 = inlined_call_operand.vmem [shape: f32[8,1], index: 2, kind: input, shape index: {}]   ;;  %s7265_s3 = inlined_call_operand.vmem [shape: f32[8,72], index: 3, kind: input, shape index: {}]   ;;  %s7266_s4 = inlined_call_operand.vmem [shape: f32[8,1], index: 4, kind: input, shape index: {}]   ;;  %s7267_s5 = inlined_call_operand.vmem [shape: f32[4,72], index: 5, kind: input, shape index: {}]   ;;  %s7268_s6 = inlined_call_operand.vmem [shape: f32[4,1], index: 6, kind: input, shape index: {}]   ;;  %s7269_s7 = inlined_call_operand.vmem [shape: f32[4,36], index: 7, kind: input, shape index: {}]   ;;  %s7270_s8 = inlined_call_operand.vmem [shape: f32[4,1], index: 8, kind: input, shape index: {}]   ;;  %s7271_s9 = inlined_call_operand.vmem [shape: f32[512,128], index: 9, kind: input, shape index: {}]   ;;  %s7272_s10 = inlined_call_operand.vmem [shape: f32[128,32], index: 10, kind: input, shape index: {}]   ;;  %s7273_s11 = inlined_call_operand.vmem [shape: f32[32,8], index: 11, kind: input, shape index: {}]   ;;  %s7274_s12 = inlined_call_operand.vmem [shape: f32[16,10], index: 12, kind: input, shape index: {}]   ;;  %s7275_s13 = inlined_call_operand.vmem [shape: f32[1,10], index: 13, kind: input, shape index: {}]   ;;  %s7276_s14 = inlined_call_operand.vmem [shape: f32[4,8], index: 14, kind: input, shape index: {}]   ;;  %s7277_s15 = inlined_call_operand.hbm [shape: f32[2,10], index: 15, kind: output, shape index: {}]  }
   0x1   :  { %v4699_v0 = vld [vmem:[%s7263_s1] sm:$0xff]  ;;  %4174 = vset.pattern.permute.xlu1 %v7293_v3  ;;  %4175 = vset.pattern.permute.xlu0 %v7295_v4 }
   0x2   :  { %v51_v1 = vld [vmem:[%s7262_s0] sm:$0xf]  ;;  %235 = vperm.xlu1 %4174, %v4699_v0   ;;  %vm61_vm0 = vcmp.lt.s32.totalorder %v59_v2, 512  ;;  %v4709_v5 = vshrl.u32 %v59_v2, 7 }
   0x3   :  { %64 = vst.msk [vmem:[#allocation2 + $0x8] ss:$8 sm:$0xf] %vm61_vm0, %v51_v1 }
   0x4   :  { %7449 = vst [vmem:[#allocation7_spill] sm:$0xff] %v4709_v5 }
   0x5   :  { %20 = vsyncpa [#allocation5], 0  ;;  %v7288_v6 = vmov 3   ;;  %v4713_v7 = vsub.s32 0, %v4709_v5  ;;  %v4716_v8 = vsub.s32 1, %v4709_v5  ;;  %v4719_v12 = vsub.s32 2, %v4709_v5 }
   0x6   :  { %4176 = vset.pattern.permute.xlu1 %v7288_v6  ;;  %v4722_v13 = vsub.s32 3, %v4709_v5  ;;  %v4727_v16 = vsub.s32 4, %v4709_v5  ;;  %s4520_s0 = smov 17   ;;  %s4521_s1 = smov 16   ;;  %v7282_v20 = vmov 6   ;;  %v7284_v21 = vmov 4  }
   0x7   :  { %7450 = vst [vmem:[#allocation8_spill] sm:$0xff] %v4716_v8  ;;  %7451 = vst [vmem:[#allocation9_spill] sm:$0xff] %v4719_v12  ;;  %s4523_s22 = smov 15   ;;  %s4525_s23 = smov 1   ;;  %v7290_v22 = vmov 5   ;;  %v7278_v26 = vmov 0  }
   0x8   :  { %7452 = vst [vmem:[#allocation10_spill] sm:$0xff] %v4722_v13  ;;  %7453 = vst [vmem:[#allocation11_spill] sm:$0xff] %v4727_v16  ;;  %v468_v24 = vld [vmem:[#allocation2 + $0x8] ss:$8 sm:$0x10]  ;;  %v53_v28 = vld [vmem:[%s7264_s2] sm:$0xff] }
   0x9   :  { %s4528_s26 = smov 127   ;;  %v7280_v30 = vmov 7   ;;  %s4530_s2 = smov 113   ;;  %v7286_v34 = vmov 8   ;;  %v4795_v35 = vld [vmem:[#allocation2] sm:$0xff]  ;;  %v4836_v51 = vand.u32 127, %v59_v2 }
   0xa   :  { %v83_v9 = vld [vmem:[#allocation2] ss:$8 sm:$0xf]  ;;  %s4532_s27 = smov 112   ;;  %s7350_s28 = smov 111   ;;  %7454 = vst [vmem:[#allocation12_spill] sm:$0xff] %v4795_v35 }
   0xb   :  { %v84_v10 = vld [vmem:[#allocation2] ss:$8 sm:$0x10]  ;;  %7455 = vst [vmem:[#allocation13_spill] sm:$0xff] %v4836_v51  ;;  %v75_v54 = vshra.s32 %v4836_v51, 4  ;;  %v68_v55 = vadd.s32 128, %v4836_v51 }
   0xc   :  { %v85_v11 = vor.u32 %v84_v10, %v83_v9  ;;  %v467_v23 = vld [vmem:[#allocation2 + $0x8] ss:$8 sm:$0xf]  ;;  %v69_v58 = vadd.s32 256, %v4836_v51  ;;  %v70_v61 = vadd.s32 384, %v4836_v51  ;;  %v7474_v3 = vmov 0 }
   0xd   :  { %v469_v25 = vor.u32 %v468_v24, %v467_v23  ;;  %v4849_v59 = vand.u32 15, %v75_v54  ;;  %v76_v60 = vshra.s32 %v68_v55, 4  ;;  %s4550_s29 = smov 7   ;;  %s4570_s30 = smov 121  }
   0xe   :  { %v130_v14 = vrot.slane %v85_v11, %v4716_v8  ;;  %v126_v15 = vrot.slane %v85_v11, %v4713_v7  ;;  %v138_v17 = vrot.slane %v85_v11, %v4722_v13  ;;  %v134_v18 = vrot.slane %v85_v11, %v4719_v12  ;;  %s4583_s16 = smov 119   ;;  %s4593_s17 = smov 120  }
   0xf   :  { %v142_v19 = vrot.slane %v85_v11, %v4727_v16  ;;  %v482_v27 = vrot.slane %v469_v25, %v4713_v7  ;;  %v486_v29 = vrot.slane %v469_v25, %v4716_v8  ;;  %v490_v31 = vrot.slane %v469_v25, %v4719_v12 }
  0x10   :  { %145 = vrot.lane.b32.xlu0 %v130_v14, %s4520_s0  ;;  %143 = vrot.lane.b32.xlu1 %v126_v15, %s4520_s0  ;;  %v494_v32 = vrot.slane %v469_v25, %v4722_v13  ;;  %v498_v33 = vrot.slane %v469_v25, %v4727_v16  ;;  %v77_v1 = vshra.s32 %v69_v58, 4  ;;  %v86_v2 = vadd.s32 4294967295, %v4849_v59 }
  0x11   :  { %v4858_v9 = vand.u32 15, %v76_v60  ;;  %v78_v10 = vshra.s32 %v70_v61, 4  ;;  %vm333_vm6 = vcmp.ge.s32.totalorder %v4849_v59, 0  ;;  %vm337_vm7 = vcmp.lt.s32.totalorder %v4849_v59, 16 }
  0x12   :  { %vm90_vm1 = vcmp.ge.s32.totalorder %v86_v2, 0  ;;  %vm94_vm2 = vcmp.lt.s32.totalorder %v86_v2, 16  ;;  %v7461_v60 = vmov 0  ;;  %vm4904_vm0 = vmand %vm333_vm6, %vm337_vm7  ;;  %v5050_v5 = vadd.s32 1, %v4849_v59 }
  0x13   :  { %v87_v23 = vadd.s32 4294967295, %v4858_v9  ;;  %v4869_v24 = vand.u32 15, %v78_v10  ;;  %vm4877_vm4 = vmand %vm90_vm1, %vm94_vm2  ;;  %vm334_vm8 = vcmp.ge.s32.totalorder %v4858_v9, 0  ;;  %vm338_vm9 = vcmp.lt.s32.totalorder %v4858_v9, 16 }
  0x14   :  { %149 = vrot.lane.b32.xlu0 %v138_v17, %s4520_s0  ;;  %147 = vrot.lane.b32.xlu1 %v134_v18, %s4520_s0  ;;  %vm4920_vm2 = vmand %vm334_vm8, %vm338_vm9 }
  0x15   :  { %vm91_vm10 = vcmp.ge.s32.totalorder %v87_v23, 0  ;;  %vm95_vm15 = vcmp.lt.s32.totalorder %v87_v23, 16  ;;  %vm340_vm8 = vcmp.lt.s32.totalorder %v4869_v24, 16 }
  0x16   :  { %vm4941_vm9 = vmand %vm91_vm10, %vm95_vm15  ;;  %vm7325_vm10 = vcmask 121856  }
  0x18   :  { %306 = vperm.xlu0 %4175, %v4699_v0   ;;  %151 = vrot.lane.b32.xlu1 %v142_v19, %s4520_s0 }
  0x1c   :  { %215 = vrot.lane.b32.xlu0 %v134_v18, %s4521_s1  ;;  %211 = vrot.lane.b32.xlu1 %v126_v15, %s4521_s1 }
  0x1d   :  { %4179 = vset.pattern.permute.xlu0 %v7282_v20  ;;  %v7466_v20 = vmov 0 }
  0x1e   :  { %v7467_v20 = vsel %vm4920_vm2, 4294967295, %v7466_v20 }
  0x20   :  { %219 = vrot.lane.b32.xlu0 %v142_v19, %s4521_s1  ;;  %213 = vrot.lane.b32.xlu1 %v130_v14, %s4521_s1 }
  0x24   :  { %282 = vrot.lane.b32.xlu0 %v126_v15, %s4523_s22  ;;  %217 = vrot.lane.b32.xlu1 %v138_v17, %s4521_s1 }
  0x28   :  { %286 = vrot.lane.b32.xlu0 %v134_v18, %s4523_s22  ;;  %377 = vperm.xlu1 %4176, %v4699_v0  }
  0x2c   :  { %290 = vrot.lane.b32.xlu0 %v142_v19, %s4523_s22  ;;  %284 = vrot.lane.b32.xlu1 %v130_v14, %s4523_s22 }
  0x2d   :  { %4177 = vset.pattern.permute.xlu1 %v7284_v21 }
  0x30   :  { %353 = vrot.lane.b32.xlu0 %v126_v15, %s4525_s23  ;;  %288 = vrot.lane.b32.xlu1 %v138_v17, %s4523_s22 }
  0x34   :  { %357 = vrot.lane.b32.xlu0 %v134_v18, %s4525_s23  ;;  %439 = vperm.xlu1 %4177, %v4699_v0   ;;  %v72_v18 = vand.u32 15, %v68_v55  ;;  %v89_v55 = vadd.s32 4294967295, %v4869_v24 }
  0x36   :  { %vm97_vm5 = vcmp.lt.s32.totalorder %v89_v55, 16 }
  0x38   :  { %361 = vrot.lane.b32.xlu0 %v142_v19, %s4525_s23  ;;  %355 = vrot.lane.b32.xlu1 %v130_v14, %s4525_s23  ;;  %v73_v19 = vand.u32 15, %v69_v58 }
  0x39   :  { %4178 = vset.pattern.permute.xlu1 %v7290_v22  ;;  %v7470_v22 = vmov 0 }
  0x3a   :  { %v4885_v54 = vadd.s32 4294967295, %v73_v19  ;;  %v4927_v6 = vadd.s32 1, %v73_v19  ;;  %v7471_v22 = vsel %vm4941_vm9, 4294967295, %v7470_v22 }
  0x3b   :  { %7472 = vst [vmem:[#allocation18_spill] sm:$0xff] %v7471_v22 }
  0x3c   :  { %598 = vperm.xlu0 %4179, %v4699_v0   ;;  %359 = vrot.lane.b32.xlu1 %v138_v17, %s4525_s23  ;;  %v4866_v17 = vand.u32 15, %v77_v1 }
  0x3e   :  { %vm335_vm11 = vcmp.ge.s32.totalorder %v4866_v17, 0  ;;  %vm339_vm12 = vcmp.lt.s32.totalorder %v4866_v17, 16 }
  0x3f   :  { %vm4933_vm6 = vmand %vm335_vm11, %vm339_vm12 }
  0x40   :  { %4180 = vset.pattern.permute.xlu0 %v7278_v26  ;;  %523 = vperm.xlu1 %4178, %v4699_v0  }
  0x41   :  { %168 = vperm.xlu0 %4180, %v4699_v0  }
  0x44   :  { %499 = vrot.lane.b32.xlu1 %v482_v27, %s4528_s26 }
  0x45   :  { %56 = vperm.xlu0 %4180, %v53_v28   ;;  %4181 = vset.pattern.permute.xlu1 %v7280_v30  ;;  %v88_v28 = vadd.s32 4294967295, %v4866_v17 }
  0x47   :  { %vm96_vm1 = vcmp.lt.s32.totalorder %v88_v28, 16  ;;  %vm7473_vm11 = vcmp.ge.s32.totalorder %v88_v28, 0 }
  0x48   :  { %501 = vrot.lane.b32.xlu1 %v486_v29, %s4528_s26  ;;  %vm4951_vm12 = vmand %vm7473_vm11, %vm96_vm1  ;;  %vm7477_vm11 = vcmp.ge.s32.totalorder %v4869_v24, 0  ;;  %vm7483_vm1 = vcmask 130048  }
  0x49   :  { %503 = vrot.lane.b32.xlu0 %v490_v31, %s4528_s26  ;;  %v7475_v3 = vsel %vm4951_vm12, 4294967295, %v7474_v3  ;;  %vm4978_vm7 = vmand %vm7477_vm11, %vm340_vm8 }
  0x4a   :  { %7476 = vst [vmem:[#allocation19_spill] sm:$0xff] %v7475_v3 }
  0x4c   :  { %505 = vrot.lane.b32.xlu1 %v494_v32, %s4528_s26 }
  0x4d   :  { %507 = vrot.lane.b32.xlu0 %v498_v33, %s4528_s26 }
  0x50   :  { %657 = vperm.xlu1 %4181, %v4699_v0  }
  0x51   :  { %574 = vrot.lane.b32.xlu0 %v482_v27, %s4530_s2 }
  0x54   :  { %576 = vrot.lane.b32.xlu1 %v486_v29, %s4530_s2 }
  0x55   :  { %4182 = vset.pattern.permute.xlu1 %v7286_v34  ;;  %578 = vrot.lane.b32.xlu0 %v490_v31, %s4530_s2  ;;  %v4925_v34 = vadd.s32 1, %v72_v18 }
  0x57   :  { %vm7317_vm15 = vcmp.lt.s32.totalorder %v4925_v34, 16 }
  0x58   :  { %580 = vrot.lane.b32.xlu1 %v494_v32, %s4530_s2 }
  0x59   :  { %582 = vrot.lane.b32.xlu0 %v498_v33, %s4530_s2 }
  0x5c   :  { %716 = vperm.xlu1 %4182, %v4699_v0   ;;  %v71_v0 = vand.u32 15, %v4836_v51 }
  0x5d   :  { %633 = vrot.lane.b32.xlu0 %v482_v27, %s4532_s27 }
  0x5e   :  { %v4864_v15 = vadd.s32 4294967295, %v71_v0  ;;  %v4914_v30 = vadd.s32 1, %v71_v0  ;;  %v7468_v0 = vmov 0 }
  0x5f   :  { %v7469_v0 = vsel %vm4933_vm6, 4294967295, %v7468_v0 }
  0x60   :  { %635 = vrot.lane.b32.xlu1 %v486_v29, %s4532_s27  ;;  %vm7292_vm3 = vcmp.ge.s32.totalorder %v4864_v15, 0 }
  0x61   :  { %637 = vrot.lane.b32.xlu0 %v490_v31, %s4532_s27  ;;  %4263 = vset.pattern.permute.xlu1 %v7278_v26  ;;  %vm4898_vm13 = vmand %vm4877_vm4, %vm7292_vm3  ;;  %vm93_vm3 = vcmp.ge.s32.totalorder %v89_v55, 0 }
  0x62   :  { %v7462_v60 = vsel %vm4898_vm13, 4294967295, %v7461_v60  ;;  %vm4984_vm14 = vmand %vm93_vm3, %vm97_vm5 }
  0x63   :  { %7463 = vst [vmem:[#allocation17_spill] sm:$0xff] %v7462_v60  ;;  %vm7487_vm3 = vmmov %vm7483_vm1 }
  0x64   :  { %639 = vrot.lane.b32.xlu1 %v494_v32, %s4532_s27 }
  0x65   :  { %641 = vrot.lane.b32.xlu0 %v498_v33, %s4532_s27 }
  0x68   :  { %692 = vrot.lane.b32.xlu1 %v482_v27, %s7350_s28 }
  0x69   :  { %694 = vrot.lane.b32.xlu0 %v486_v29, %s7350_s28  ;;  %v7457_v29 = vmov 0 }
  0x6a   :  { %v7458_v29 = vsel %vm4877_vm4, 4294967295, %v7457_v29 }
  0x6b   :  { %7459 = vst [vmem:[#allocation15_spill] sm:$0xff] %v7458_v29  ;;  %v7512_v29 = vmov 0 }
  0x6c   :  { %696 = vrot.lane.b32.xlu1 %v490_v31, %s7350_s28  ;;  %v74_v31 = vand.u32 15, %v70_v61  ;;  %v7464_v61 = vmov 0 }
  0x6d   :  { %698 = vrot.lane.b32.xlu0 %v494_v32, %s7350_s28  ;;  %v404_v32 = vld [vmem:[#allocation2 + $0x8] ss:$8 sm:$0xf]  ;;  %v7465_v61 = vsel %vm4904_vm0, 4294967295, %v7464_v61 }
  0x6e   :  { %v417_v1 = vrot.slane %v404_v32, %v4713_v7  ;;  %v421_v2 = vrot.slane %v404_v32, %v4716_v8  ;;  %v4912_v26 = vadd.s32 4294967295, %v74_v31  ;;  %v425_v21 = vrot.slane %v404_v32, %v4719_v12 }
  0x70   :  { %700 = vrot.lane.b32.xlu1 %v498_v33, %s7350_s28  ;;  %v4883_v33 = vadd.s32 4294967295, %v72_v18  ;;  %v4945_v18 = vadd.s32 1, %v74_v31  ;;  %v4958_v23 = vsel %vm4904_vm0, %v417_v1, 0.0  ;;  %v4962_v4 = vsel %vm4920_vm2, %v421_v2, 0.0  ;;  %s4611_s28 = smov 123  }
  0x71   :  { %833 = vrot.lane.b32.xlu0 %v4795_v35, %s4520_s0  ;;  %v429_v31 = vrot.slane %v404_v32, %v4722_v13  ;;  %v4972_v28 = vsel %vm4933_vm6, %v425_v21, 0.0  ;;  %v7480_v32 = vmov 0 }
  0x72   :  { %v7481_v32 = vsel %vm4984_vm14, 4294967295, %v7480_v32  ;;  %vm7484_vm8 = vcmp.ge.s32.totalorder %v4883_v33, 0 }
  0x73   :  { %7482 = vst [vmem:[#allocation20_spill] sm:$0xff] %v7481_v32  ;;  %vm4997_vm11 = vmand %vm4941_vm9, %vm7484_vm8  ;;  %vm7489_vm8 = vcmp.ge.s32.totalorder %v4885_v54, 0  ;;  %v5029_v8 = vsel %vm4978_vm7, %v429_v31, 0.0 }
  0x74   :  { %867 = vrot.lane.b32.xlu1 %v4795_v35, %s4521_s1  ;;  %vm5018_vm6 = vmand %vm4951_vm12, %vm7489_vm8  ;;  %vm7494_vm8 = vcmp.ge.s32.totalorder %v4912_v26, 0 }
  0x75   :  { %901 = vrot.lane.b32.xlu0 %v4795_v35, %s4523_s22  ;;  %vm5040_vm5 = vmand %vm4984_vm14, %vm7494_vm8 }
  0x78   :  { %935 = vrot.lane.b32.xlu1 %v4795_v35, %s4525_s23  ;;  %v7495_v35 = vmov 0 }
  0x79   :  { %v7496_v35 = vsel %vm5040_vm5, 4294967295, %v7495_v35 }
  0x7a   :  { %7497 = vst [vmem:[#allocation22_spill] sm:$0xff] %v7496_v35 }
  0x81   :  { %v4805_v36 = vpop.permute.xlu1 %235 }
  0x82   :  { %v4811_v39 = vpop.permute.xlu0 %145 }
  0x85   :  { %v4807_v37 = vpop.permute.xlu1 %143 }
  0x86   :  { %v4815_v41 = vpop.permute.xlu0 %149 }
  0x89   :  { %v4809_v38 = vpop.permute.xlu1 %147 }
  0x8d   :  { %v4813_v40 = vpop.permute.xlu1 %151 }
  0x91   :  { %v4817_v42 = vpop.permute.xlu1 %211 }
  0x95   :  { %v4823_v45 = vpop.permute.xlu1 %213 }
  0x96   :  { %v222_v2 = vsel %vm7483_vm1, %v4817_v42, %v4823_v45  ;;  %vm7488_vm1 = vcmask 138240  }
  0x97   :  { %v4819_v43 = vpop.permute.xlu0 %306  ;;  %v154_v12 = vsel %vm7488_vm1, %v4807_v37, %v4811_v39  ;;  %v156_v51 = vsel %vm7488_vm1, %v4809_v38, %v4815_v41  ;;  %v230_v31 = vsel %vm4877_vm4, %v222_v2, 0.0 }
  0x98   :  { %v241_v60 = vrot.slane %v230_v31, %v4713_v7  ;;  %v5106_v31 = vadd.s32 1, %v4869_v24 }
  0x99   :  { %v4827_v47 = vpop.permute.xlu1 %217 }
  0x9b   :  { %v4821_v44 = vpop.permute.xlu0 %215 }
  0x9c   :  { %v223_v55 = vsel %vm7487_vm3, %v4823_v45, %v4821_v44  ;;  %v7490_v45 = vmov 0  ;;  %vm7493_vm3 = vmmov %vm7488_vm1 }
  0x9d   :  { %v7491_v45 = vsel %vm5018_vm6, 4294967295, %v7490_v45  ;;  %v155_v42 = vsel %vm7493_vm3, %v4811_v39, %v4809_v38  ;;  %vm7498_vm3 = vmmov %vm7488_vm1  ;;  %vm7499_vm1 = vcmask 130048  }
  0x9e   :  { %7492 = vst [vmem:[#allocation21_spill] sm:$0xff] %v7491_v45  ;;  %v157_v39 = vsel %vm7498_vm3, %v4815_v41, %v4813_v40  ;;  %v224_v38 = vsel %vm7499_vm1, %v4821_v44, %v4827_v47  ;;  %v162_v40 = vsel %vm4898_vm13, %v154_v12, 0.0  ;;  %v163_v41 = vsel %vm4997_vm11, %v155_v42, 0.0  ;;  %vm7500_vm3 = vmmov %vm7499_vm1 }
  0x9f   :  { %v4825_v46 = vpop.permute.xlu0 %219  ;;  %v5069_v44 = vadd.s32 1, %v4866_v17  ;;  %vm7501_vm1 = vcmp.lt.s32.totalorder %v4914_v30, 16  ;;  %v7502_v42 = vmov 0 }
  0xa0   :  { %v225_v12 = vsel %vm7500_vm3, %v4827_v47, %v4825_v46  ;;  %vm5083_vm8 = vmand %vm4877_vm4, %vm7501_vm1  ;;  %v7504_v46 = vmov 0  ;;  %vm7519_vm4 = vcmask 7168  }
  0xa1   :  { %v7503_v42 = vsel %vm5083_vm8, 4294967295, %v7502_v42  ;;  %vm5096_vm3 = vmand %vm4941_vm9, %vm7317_vm15  ;;  %vm7507_vm15 = vcmp.lt.s32.totalorder %v4927_v6, 16 }
  0xa2   :  { %v7505_v46 = vsel %vm5096_vm3, 4294967295, %v7504_v46  ;;  %vm5117_vm1 = vmand %vm4951_vm12, %vm7507_vm15  ;;  %vm7511_vm15 = vcmp.lt.s32.totalorder %v4945_v18, 16 }
  0xa3   :  { %v4829_v48 = vpop.permute.xlu0 %282  ;;  %7506 = vst [vmem:[#allocation23_spill] sm:$0xff] %v7505_v46  ;;  %v7531_v46 = vmov 0 }
  0xa7   :  { %v4831_v49 = vpop.permute.xlu0 %286  ;;  %v4833_v50 = vpop.permute.xlu1 %377 }
  0xab   :  { %v4838_v52 = vpop.permute.xlu0 %290  ;;  %v4840_v53 = vpop.permute.xlu1 %284 }
  0xac   :  { %v293_v47 = vsel %vm7325_vm10, %v4829_v48, %v4840_v53  ;;  %v294_v59 = vsel %vm7325_vm10, %v4840_v53, %v4831_v49  ;;  %v7508_v48 = vmov 0 }
  0xad   :  { %v7509_v48 = vsel %vm5117_vm1, 4294967295, %v7508_v48  ;;  %v302_v35 = vsel %vm5096_vm3, %v294_v59, 0.0 }
  0xae   :  { %7510 = vst [vmem:[#allocation24_spill] sm:$0xff] %v7509_v48  ;;  %v7525_v48 = vmov 0 }
  0xaf   :  { %v4844_v56 = vpop.permute.xlu0 %353  ;;  %v4846_v57 = vpop.permute.xlu1 %288 }
  0xb0   :  { %v295_v24 = vsel %vm7325_vm10, %v4831_v49, %v4846_v57  ;;  %v296_v49 = vsel %vm7325_vm10, %v4846_v57, %v4838_v52 }
  0xb1   :  { %v303_v52 = vsel %vm5117_vm1, %v295_v24, 0.0  ;;  %vm7523_vm1 = vcmp.ge.s32.totalorder %v4885_v54, 0 }
  0xb3   :  { %v4852_v62 = vpop.permute.xlu0 %357  ;;  %v4854_v63 = vpop.permute.xlu1 %439 }
  0xb7   :  { %v4860_v11 = vpop.permute.xlu0 %361  ;;  %v4862_v14 = vpop.permute.xlu1 %355 }
  0xb8   :  { %v364_v59 = vsel %vm7519_vm4, %v4844_v56, %v4862_v14  ;;  %v365_v56 = vsel %vm7519_vm4, %v4862_v14, %v4852_v62 }
  0xbb   :  { %v4871_v25 = vpop.permute.xlu1 %359  ;;  %v4873_v27 = vpop.permute.xlu0 %598 }
  0xbc   :  { %7456 = vst [vmem:[#allocation14_spill] sm:$0xff] %v4873_v27  ;;  %v231_v27 = vsel %vm4941_vm9, %v223_v55, 0.0  ;;  %v164_v55 = vsel %vm5018_vm6, %v156_v51, 0.0  ;;  %v232_v51 = vsel %vm4951_vm12, %v224_v38, 0.0  ;;  %v178_v38 = vrot.slane %v163_v41, %v4713_v7  ;;  %vm5134_vm12 = vmand %vm4984_vm14, %vm7511_vm15 }
  0xbd   :  { %v233_v41 = vsel %vm4984_vm14, %v225_v12, 0.0  ;;  %v7513_v29 = vsel %vm5134_vm12, 4294967295, %v7512_v29  ;;  %v301_v12 = vsel %vm5083_vm8, %v293_v47, 0.0  ;;  %vm7515_vm15 = vcmp.ge.s32.totalorder %v4864_v15, 0 }
  0xbe   :  { %7514 = vst [vmem:[#allocation25_spill] sm:$0xff] %v7513_v29  ;;  %vm5163_vm10 = vmand %vm4904_vm0, %vm7515_vm15  ;;  %v7516_v47 = vmov 0  ;;  %v366_v14 = vsel %vm7519_vm4, %v4852_v62, %v4871_v25  ;;  %vm7527_vm6 = vcmp.ge.s32.totalorder %v4912_v26, 0  ;;  %v7528_v29 = vmov 0 }
  0xbf   :  { %v4892_v58 = vpop.permute.xlu1 %523  ;;  %v7517_v47 = vsel %vm5163_vm10, 4294967295, %v7516_v47  ;;  %v367_v62 = vsel %vm7519_vm4, %v4871_v25, %v4860_v11  ;;  %vm7536_vm4 = vcmask 1039360   ;;  %vm7537_vm8 = vcmp.lt.s32.totalorder %v5050_v5, 16 }
  0xc0   :  { %7460 = vst [vmem:[#allocation16_spill] sm:$0xff] %v4892_v58  ;;  %v4910_v10 = vpop.permute.xlu0 %168  ;;  %v5058_v58 = vadd.s32 1, %v4858_v9  ;;  %v165_v9 = vsel %vm5040_vm5, %v157_v39, 0.0  ;;  %v245_v39 = vrot.slane %v231_v27, %v4713_v7  ;;  %v174_v27 = vrot.slane %v162_v40, %v4713_v7  ;;  %7518 = vst [vmem:[#allocation26_spill] sm:$0xff] %v7517_v47 }
  0xc1   :  { %v182_v40 = vrot.slane %v164_v55, %v4713_v7  ;;  %v186_v53 = vrot.slane %v165_v9, %v4713_v7  ;;  %v254_v55 = vmul.f32 %v241_v60, %v4805_v36  ;;  %v249_v9 = vrot.slane %v232_v51, %v4713_v7 }
  0xc2   :  { %v187_v22 = vmul.f32 %v174_v27, %v4910_v10  ;;  %v255_v45 = vmul.f32 %v245_v39, %v4805_v36  ;;  %v188_v57 = vmul.f32 %v178_v38, %v4910_v10  ;;  %v253_v60 = vrot.slane %v233_v41, %v4713_v7 }
  0xc3   :  { %v4947_v19 = vpop.permute.xlu1 %499  ;;  %v304_v51 = vsel %vm5134_vm12, %v296_v49, 0.0  ;;  %v312_v27 = vrot.slane %v301_v12, %v4713_v7  ;;  %vm7520_vm12 = vcmp.ge.s32.totalorder %v4883_v33, 0  ;;  %v7521_v38 = vmov 0 }
  0xc4   :  { %v4965_v16 = vpop.permute.xlu0 %56  ;;  %vm5178_vm15 = vmand %vm4920_vm2, %vm7520_vm12  ;;  %v316_v49 = vrot.slane %v302_v35, %v4713_v7  ;;  %v320_v12 = vrot.slane %v303_v52, %v4713_v7  ;;  %vm7524_vm12 = vnez %v7469_v0  ;;  %v324_v35 = vrot.slane %v304_v51, %v4713_v7 }
  0xc5   :  { %v191_v39 = vadd.f32 %v187_v22, %v4965_v16  ;;  %v7522_v38 = vsel %vm5178_vm15, 4294967295, %v7521_v38  ;;  %v189_v22 = vmul.f32 %v182_v40, %v4910_v10  ;;  %v192_v24 = vadd.f32 %v188_v57, %v4965_v16  ;;  %vm5193_vm3 = vmand %vm7524_vm12, %vm7523_vm1 }
  0xc6   :  { %v7526_v48 = vsel %vm5193_vm3, 4294967295, %v7525_v48  ;;  %v190_v40 = vmul.f32 %v186_v53, %v4910_v10  ;;  %v372_v52 = vsel %vm5163_vm10, %v364_v59, 0.0  ;;  %vm5210_vm1 = vmand %vm4978_vm7, %vm7527_vm6  ;;  %v256_v53 = vmul.f32 %v249_v9, %v4805_v36 }
  0xc7   :  { %v5009_v13 = vpop.permute.xlu1 %501  ;;  %v7529_v29 = vsel %vm5210_vm1, 4294967295, %v7528_v29  ;;  %v193_v10 = vadd.f32 %v189_v22, %v4965_v16  ;;  %v373_v51 = vsel %vm5178_vm15, %v365_v56, 0.0  ;;  %v258_v47 = vadd.f32 %v254_v55, %v191_v39 }
  0xc8   :  { %v5031_v37 = vpop.permute.xlu0 %503  ;;  %v194_v59 = vadd.f32 %v190_v40, %v4965_v16  ;;  %vm7530_vm6 = vcmp.lt.s32.totalorder %v4914_v30, 16  ;;  %v257_v11 = vmul.f32 %v253_v60, %v4805_v36  ;;  %v325_v25 = vmul.f32 %v312_v27, %v4819_v43 }
  0xc9   :  { %vm5226_vm10 = vmand %vm4904_vm0, %vm7530_vm6  ;;  %v374_v16 = vsel %vm5193_vm3, %v366_v14, 0.0  ;;  %v259_v55 = vadd.f32 %v255_v45, %v192_v24  ;;  %vm7533_vm15 = vcmp.lt.s32.totalorder %v4925_v34, 16  ;;  %v7534_v9 = vmov 0 }
  0xca   :  { %v7532_v46 = vsel %vm5226_vm10, 4294967295, %v7531_v46  ;;  %vm5240_vm6 = vmand %vm4920_vm2, %vm7533_vm15  ;;  %v326_v56 = vmul.f32 %v316_v49, %v4819_v43  ;;  %v383_v36 = vrot.slane %v372_v52, %v4713_v7  ;;  %v375_v60 = vsel %vm5210_vm1, %v367_v62, 0.0 }
  0xcb   :  { %v5064_v2 = vpop.permute.xlu1 %505  ;;  %v7535_v9 = vsel %vm5240_vm6, 4294967295, %v7534_v9  ;;  %v510_v45 = vsel %vm7536_vm4, %v4947_v19, %v5009_v13  ;;  %vm7538_vm15 = vcmp.ge.s32.totalorder %v5050_v5, 0  ;;  %v7539_v27 = vmov 0 }
  0xcc   :  { %v5087_v17 = vpop.permute.xlu0 %507  ;;  %vm5257_vm2 = vmand %vm7538_vm15, %vm7537_vm8  ;;  %v327_v24 = vmul.f32 %v320_v12, %v4819_v43  ;;  %v328_v49 = vmul.f32 %v324_v35, %v4819_v43  ;;  %v387_v14 = vrot.slane %v373_v51, %v4713_v7  ;;  %v260_v40 = vadd.f32 %v256_v53, %v193_v10 }
  0xcd   :  { %v7540_v27 = vsel %vm5257_vm2, 4294967295, %v7539_v27  ;;  %vm7541_vm1 = vcmp.lt.s32.totalorder %v5058_v58, 16  ;;  %vm7542_vm4 = vcmp.ge.s32.totalorder %v5058_v58, 0  ;;  %v7545_v5 = vrot.slane %v4958_v23, %v4713_v7 }
  0xce   :  { %vm5268_vm3 = vmand %vm7542_vm4, %vm7541_vm1  ;;  %v391_v12 = vrot.slane %v374_v16, %v4713_v7  ;;  %v261_v62 = vadd.f32 %v257_v11, %v194_v59  ;;  %v329_v43 = vadd.f32 %v325_v25, %v258_v47  ;;  %vm7546_vm8 = vcmp.lt.s32.totalorder %v4927_v6, 16 }
  0xcf   :  { %v5141_v3 = vpop.permute.xlu1 %657  ;;  %v458_v52 = vmul.f32 %v7545_v5, %v4854_v63  ;;  %vm5281_vm15 = vmand %vm7524_vm12, %vm7546_vm8  ;;  %v395_v58 = vrot.slane %v375_v60, %v4713_v7  ;;  %v330_v10 = vadd.f32 %v326_v56, %v259_v55  ;;  %v518_v53 = vsel %vm5226_vm10, %v510_v45, 0.0 }
  0xd0   :  { %v5148_v32 = vpop.permute.xlu0 %574  ;;  %vm7549_vm1 = vcmask 1039360   ;;  %vm7550_vm4 = vcmp.ge.s32.totalorder %v4864_v15, 0  ;;  %v7551_v47 = vmov 0  ;;  %v7553_v59 = vrot.slane %v4962_v4, %v4713_v7 }
  0xd1   :  { %v511_v23 = vsel %vm7549_vm1, %v5009_v13, %v5031_v37  ;;  %vm5295_vm14 = vmand %vm5257_vm2, %vm7550_vm4  ;;  %v7554_v25 = vrot.slane %v4972_v28, %v4713_v7  ;;  %v396_v15 = vmul.f32 %v383_v36, %v4833_v50  ;;  %v7557_v55 = vmov 0 }
  0xd2   :  { %v7552_v47 = vsel %vm5295_vm14, 4294967295, %v7551_v47  ;;  %v459_v11 = vmul.f32 %v7553_v59, %v4854_v63  ;;  %vm7555_vm8 = vmmov %vm7549_vm1  ;;  %vm7556_vm1 = vcmp.ge.s32.totalorder %v4883_v33, 0  ;;  %v397_v56 = vmul.f32 %v387_v14, %v4833_v50 }
  0xd3   :  { %v577_v41 = vpop.permute.xlu1 %576  ;;  %v460_v13 = vmul.f32 %v7554_v25, %v4854_v63  ;;  %v512_v16 = vsel %vm7555_vm8, %v5031_v37, %v5064_v2  ;;  %vm5317_vm4 = vmand %vm5268_vm3, %vm7556_vm1  ;;  %v331_v60 = vadd.f32 %v327_v24, %v260_v40  ;;  %vm7559_vm10 = vcmask 924672   ;;  %v7579_v25 = vld [vmem:[#allocation16_spill] sm:$0xff] }
  0xd4   :  { %v5201_v57 = vpop.permute.xlu0 %578  ;;  %v7558_v55 = vsel %vm5317_vm4, 4294967295, %v7557_v55  ;;  %v585_v28 = vsel %vm7559_vm10, %v5148_v32, %v577_v41  ;;  %vm7560_vm12 = vmmov %vm7559_vm10  ;;  %vm7561_vm8 = vcmp.lt.s32.totalorder %v5069_v44, 16  ;;  %vm7562_vm9 = vcmp.ge.s32.totalorder %v5069_v44, 0 }
  0xd5   :  { %v586_v36 = vsel %vm7560_vm12, %v577_v41, %v5201_v57  ;;  %vm5330_vm0 = vmand %vm7562_vm9, %vm7561_vm8  ;;  %v7563_v33 = vmov 0  ;;  %v332_v37 = vadd.f32 %v328_v49, %v261_v62  ;;  %v400_v45 = vadd.f32 %v396_v15, %v329_v43 }
  0xd6   :  { %v7564_v33 = vsel %vm5330_vm0, 4294967295, %v7563_v33  ;;  %v529_v5 = vrot.slane %v518_v53, %v4713_v7  ;;  %v519_v24 = vsel %vm5240_vm6, %v511_v23, 0.0  ;;  %v398_v32 = vmul.f32 %v391_v12, %v4833_v50 }
  0xd7   :  { %v5244_v39 = vpop.permute.xlu1 %580  ;;  %v399_v41 = vmul.f32 %v395_v58, %v4833_v50  ;;  %v401_v14 = vadd.f32 %v397_v56, %v330_v10  ;;  %v520_v44 = vsel %vm5281_vm15, %v512_v16, 0.0  ;;  %vm7565_vm9 = vcmp.lt.s32.totalorder %v4945_v18, 16 }
  0xd8   :  { %v583_v22 = vpop.permute.xlu0 %582  ;;  %vm5345_vm10 = vmand %vm4978_vm7, %vm7565_vm9  ;;  %vm7568_vm12 = vcmask 1039360   ;;  %v593_v50 = vsel %vm5295_vm14, %v585_v28, 0.0  ;;  %v594_v12 = vsel %vm5317_vm4, %v586_v36, 0.0  ;;  %vm7569_vm8 = vcmp.ge.s32.totalorder %v4885_v54, 0 }
  0xd9   :  { %v513_v62 = vsel %vm7568_vm12, %v5064_v2, %v5087_v17  ;;  %vm5360_vm1 = vmand %vm5330_vm0, %vm7569_vm8  ;;  %vm7572_vm9 = vcmask 916480   ;;  %v533_v53 = vrot.slane %v519_v24, %v4713_v7  ;;  %v402_v2 = vadd.f32 %v398_v32, %v331_v60 }
  0xda   :  { %vm7573_vm12 = vcmask 924672   ;;  %vm7574_vm14 = vcmp.lt.s32.totalorder %v5106_v31, 16  ;;  %vm7575_vm4 = vcmp.ge.s32.totalorder %v5106_v31, 0  ;;  %vm7578_vm8 = vmmov %vm7572_vm9  ;;  %v462_v59 = vadd.f32 %v458_v52, %v400_v45 }
  0xdb   :  { %v5299_v51 = vpop.permute.xlu1 %716  ;;  %v587_v17 = vsel %vm7573_vm12, %v5201_v57, %v5244_v39  ;;  %vm5373_vm6 = vmand %vm7575_vm4, %vm7574_vm14  ;;  %v542_v15 = vmul.f32 %v529_v5, %v7579_v25  ;;  %v537_v16 = vrot.slane %v520_v44, %v4713_v7  ;;  %v521_v56 = vsel %vm5345_vm10, %v513_v62, 0.0 }
  0xdc   :  { %v634_v4 = vpop.permute.xlu0 %633  ;;  %v604_v57 = vrot.slane %v593_v50, %v4713_v7  ;;  %v608_v60 = vrot.slane %v594_v12, %v4713_v7  ;;  %v595_v36 = vsel %vm5360_vm1, %v587_v17, 0.0  ;;  %vm7580_vm14 = vcmp.ge.s32.totalorder %v4912_v26, 0 }
  0xdd   :  { %vm5392_vm4 = vmand %vm5373_vm6, %vm7580_vm14  ;;  %v463_v32 = vadd.f32 %v459_v11, %v401_v14  ;;  %v464_v44 = vadd.f32 %v460_v13, %v402_v2  ;;  %v7585_v26 = vrot.slane %v5029_v8, %v4713_v7  ;;  %v544_v62 = vmul.f32 %v537_v16, %v7579_v25 }
  0xde   :  { %v541_v12 = vrot.slane %v521_v56, %v4713_v7  ;;  %v612_v11 = vrot.slane %v595_v36, %v4713_v7  ;;  %vm7586_vm14 = vcmp.lt.s32.totalorder %v4914_v30, 16 }
  0xdf   :  { %v636_v40 = vpop.permute.xlu1 %635 }
  0xe0   :  { %v644_v58 = vsel %vm7572_vm9, %v634_v4, %v636_v40  ;;  %v638_v10 = vpop.permute.xlu0 %637  ;;  %v403_v4 = vadd.f32 %v399_v41, %v332_v37  ;;  %vm7583_vm9 = vmmov %vm7573_vm12  ;;  %v543_v41 = vmul.f32 %v533_v53, %v7579_v25  ;;  %v7589_v53 = vld [vmem:[#allocation14_spill] sm:$0xff] }
  0xe1   :  { %v645_v23 = vsel %vm7578_vm8, %v636_v40, %v638_v10  ;;  %v652_v31 = vsel %vm5257_vm2, %v644_v58, 0.0  ;;  %v588_v37 = vsel %vm7583_vm9, %v5244_v39, %v583_v22  ;;  %vm7584_vm12 = vmmov %vm7578_vm8  ;;  %v461_v40 = vmul.f32 %v7585_v26, %v4854_v63 }
  0xe2   :  { %v653_v45 = vsel %vm5268_vm3, %v645_v23, 0.0  ;;  %v663_v50 = vrot.slane %v652_v31, %v4713_v7  ;;  %v596_v13 = vsel %vm5392_vm4, %v588_v37, 0.0  ;;  %vm5420_vm9 = vmand %vm5257_vm2, %vm7586_vm14  ;;  %v7587_v63 = vmov 0 }
  0xe3   :  { %v640_v28 = vpop.permute.xlu1 %639  ;;  %v667_v14 = vrot.slane %v653_v45, %v4713_v7  ;;  %v7588_v63 = vsel %vm5420_vm9, 4294967295, %v7587_v63  ;;  %v546_v58 = vadd.f32 %v542_v15, %v462_v59  ;;  %v617_v2 = vmul.f32 %v604_v57, %v7589_v53 }
  0xe4   :  { %v646_v5 = vsel %vm7584_vm12, %v638_v10, %v640_v28  ;;  %v642_v24 = vpop.permute.xlu0 %641  ;;  %v465_v10 = vadd.f32 %v461_v40, %v403_v4  ;;  %v618_v17 = vmul.f32 %v608_v60, %v7589_v53  ;;  %v547_v16 = vadd.f32 %v543_v41, %v463_v32 }
  0xe5   :  { %v654_v39 = vsel %vm5330_vm0, %v646_v5, 0.0  ;;  %v647_v22 = vsel %vm7578_vm8, %v640_v28, %v642_v24  ;;  %vm7590_vm12 = vcmask 908288   ;;  %v548_v28 = vadd.f32 %v544_v62, %v464_v44 }
  0xe6   :  { %v671_v56 = vrot.slane %v654_v39, %v4713_v7  ;;  %v655_v31 = vsel %vm5373_vm6, %v647_v22, 0.0  ;;  %v616_v36 = vrot.slane %v596_v13, %v4713_v7  ;;  %v676_v37 = vmul.f32 %v663_v50, %v5141_v3 }
  0xe7   :  { %v693_v8 = vpop.permute.xlu1 %692  ;;  %vm7591_vm8 = vcmp.lt.s32.totalorder %v4925_v34, 16  ;;  %v7592_v15 = vmov 0  ;;  %v545_v4 = vmul.f32 %v541_v12, %v7579_v25  ;;  %v619_v57 = vmul.f32 %v612_v11, %v7589_v53 }
  0xe8   :  { %v695_v23 = vpop.permute.xlu0 %694  ;;  %vm5438_vm14 = vmand %vm5268_vm3, %vm7591_vm8  ;;  %v677_v60 = vmul.f32 %v667_v14, %v5141_v3  ;;  %v7595_v34 = vmov 0  ;;  %v621_v24 = vadd.f32 %v617_v2, %v546_v58  ;;  %v622_v32 = vadd.f32 %v618_v17, %v547_v16 }
  0xe9   :  { %v703_v30 = vsel %vm7590_vm12, %v693_v8, %v695_v23  ;;  %v7593_v15 = vsel %vm5438_vm14, 4294967295, %v7592_v15  ;;  %vm7594_vm12 = vcmp.lt.s32.totalorder %v4927_v6, 16  ;;  %v675_v41 = vrot.slane %v655_v31, %v4713_v7 }
  0xea   :  { %v711_v59 = vsel %vm5420_vm9, %v703_v30, 0.0  ;;  %vm5450_vm9 = vmand %vm5330_vm0, %vm7594_vm12  ;;  %vm7597_vm8 = vcmask 908288   ;;  %v678_v26 = vmul.f32 %v671_v56, %v5141_v3  ;;  %v620_v50 = vmul.f32 %v616_v36, %v7589_v53 }
  0xeb   :  { %v722_v45 = vrot.slane %v711_v59, %v4713_v7  ;;  %v697_v5 = vpop.permute.xlu1 %696  ;;  %v7596_v34 = vsel %vm5450_vm9, 4294967295, %v7595_v34  ;;  %vm7598_vm2 = vmmov %vm7597_vm8  ;;  %v680_v39 = vadd.f32 %v676_v37, %v621_v24  ;;  %vm7599_vm12 = vcmp.lt.s32.totalorder %v4945_v18, 16 }
  0xec   :  { %v704_v25 = vsel %vm7597_vm8, %v695_v23, %v697_v5  ;;  %v699_v44 = vpop.permute.xlu0 %698  ;;  %vm5469_vm8 = vmand %vm5373_vm6, %vm7599_vm12  ;;  %v7600_v11 = vmov 0  ;;  %v549_v13 = vadd.f32 %v545_v4, %v465_v10  ;;  %v623_v14 = vadd.f32 %v619_v57, %v548_v28 }
  0xed   :  { %v735_v40 = vmul.f32 %v722_v45, %v5299_v51  ;;  %v712_v6 = vsel %vm5438_vm14, %v704_v25, 0.0  ;;  %v705_v62 = vsel %vm7598_vm2, %v697_v5, %v699_v44  ;;  %v7601_v11 = vsel %vm5469_vm8, 4294967295, %v7600_v11  ;;  %v796_v45 = vld [vmem:[%s7271_s9 + $0x188] sm:$0xff] }
  0xee   :  { %v726_v22 = vrot.slane %v712_v6, %v4713_v7  ;;  %v713_v12 = vsel %vm5450_vm9, %v705_v62, 0.0  ;;  %v681_v8 = vadd.f32 %v677_v60, %v622_v32  ;;  %v679_v2 = vmul.f32 %v675_v41, %v5141_v3  ;;  %v795_v60 = vld [vmem:[%s7271_s9 + $0x180] sm:$0xff]  ;;  %v764_v25 = vld [vmem:[%s7271_s9 + $0x88] sm:$0xff] }
  0xef   :  { %v730_v58 = vrot.slane %v713_v12, %v4713_v7  ;;  %v701_v53 = vpop.permute.xlu1 %700  ;;  %v739_v17 = vadd.f32 %v735_v40, %v680_v39  ;;  %v682_v18 = vadd.f32 %v678_v26, %v623_v14  ;;  %v624_v30 = vadd.f32 %v620_v50, %v549_v13  ;;  %v763_v41 = vld [vmem:[%s7271_s9 + $0x80] sm:$0xff]  ;;  %v780_v40 = vld [vmem:[%s7271_s9 + $0x108] sm:$0xff]  ;;  %v797_v12 = vld [vmem:[%s7271_s9 + $0x190] sm:$0xff] }
  0xf0   :  { %v736_v23 = vmul.f32 %v726_v22, %v5299_v51  ;;  %v706_v16 = vsel %vm7598_vm2, %v699_v44, %v701_v53  ;;  %v4010_v32 = vpack.c.bf16 %v796_v45, %v795_v60  ;;  %v779_v44 = vld [vmem:[%s7271_s9 + $0x100] sm:$0xff]  ;;  %v3978_v26 = vpack.c.bf16 %v764_v25, %v763_v41  ;;  %v748_v62 = vld [vmem:[%s7271_s9 + $0x8] sm:$0xff]  ;;  %v798_v13 = vld [vmem:[%s7271_s9 + $0x198] sm:$0xff] }
  0xf1   :  { %v737_v56 = vmul.f32 %v730_v58, %v5299_v51  ;;  %v714_v31 = vsel %vm5469_vm8, %v706_v16, 0.0  ;;  %v683_v37 = vadd.f32 %v679_v2, %v624_v30  ;;  %v5481_v59 = vmax.f32 %v739_v17, 0.0  ;;  %v747_v6 = vld [vmem:[%s7271_s9] sm:$0xff]  ;;  %v766_v58 = vld [vmem:[%s7271_s9 + $0x98] sm:$0xff]  ;;  %v781_v2 = vld [vmem:[%s7271_s9 + $0x110] sm:$0xff] }
  0xf2   :  { %v740_v10 = vadd.f32 %v736_v23, %v681_v8  ;;  %v734_v28 = vrot.slane %v714_v31, %v4713_v7  ;;  %4011 = vmatprep.subr.bf16.mxu1 %v4010_v32  ;;  %v4012_v39 = vpack.c.bf16 %v780_v40, %v779_v44  ;;  %v3980_v22 = vpack.c.bf16 %v748_v62, %v747_v6  ;;  %v765_v8 = vld [vmem:[%s7271_s9 + $0x90] sm:$0xff]  ;;  %v782_v17 = vld [vmem:[%s7271_s9 + $0x118] sm:$0xff]  ;;  %v799_v31 = vld [vmem:[%s7271_s9 + $0x1a0] sm:$0xff] }
  0xf3   :  { %v741_v36 = vadd.f32 %v737_v56, %v682_v18  ;;  %3979 = vmatprep.subr.bf16.mxu0 %v3978_v26  ;;  %v4014_v14 = vpack.c.bf16 %v798_v13, %v797_v12  ;;  %v3982_v53 = vpack.c.bf16 %v766_v58, %v765_v8  ;;  %v749_v23 = vld [vmem:[%s7271_s9 + $0x10] sm:$0xff]  ;;  %v4016_v16 = vpack.c.bf16 %v782_v17, %v781_v2  ;;  %v750_v18 = vld [vmem:[%s7271_s9 + $0x18] sm:$0xff]  ;;  %v800_v30 = vld [vmem:[%s7271_s9 + $0x1a8] sm:$0xff] }
  0xf4   :  { %v5483_v3 = vmax.f32 %v740_v10, 0.0  ;;  %v738_v4 = vmul.f32 %v734_v28, %v5299_v51  ;;  %4013 = vmatpush3.bf16.msra.mxu1 %v4012_v39  ;;  %3981 = vmatpush3.bf16.msra.mxu0 %v3980_v22  ;;  %v3984_v56 = vpack.c.bf16 %v750_v18, %v749_v23  ;;  %v4018_v10 = vpack.c.bf16 %v800_v30, %v799_v31  ;;  %v767_v28 = vld [vmem:[%s7271_s9 + $0xa0] sm:$0xff]  ;;  %v784_v60 = vld [vmem:[%s7271_s9 + $0x128] sm:$0xff]  ;;  %v801_v25 = vld [vmem:[%s7271_s9 + $0x1b0] sm:$0xff] }
  0xf5   :  { %v5486_v57 = vmax.f32 %v741_v36, 0.0  ;;  %4015 = vmatprep.subr.bf16.mxu1 %v4014_v14  ;;  %3983 = vmatprep.subr.bf16.mxu0 %v3982_v53  ;;  %v768_v36 = vld [vmem:[%s7271_s9 + $0xa8] sm:$0xff]  ;;  %v751_v45 = vld [vmem:[%s7271_s9 + $0x20] sm:$0xff]  ;;  %v802_v44 = vld [vmem:[%s7271_s9 + $0x1b8] sm:$0xff]  ;;  %vm7612_vm12 = vcmask 138240   ;;  %vm7625_vm8 = vcmask 121856  }
  0xf6   :  { %812 = vst [vmem:[#allocation2 + $0x10] sm:$0xff] %v5483_v3  ;;  %v742_v5 = vadd.f32 %v738_v4, %v683_v37  ;;  %v5497_v24 = vpack.i.bf16 %v5483_v3, %v5481_v59  ;;  %v3986_v37 = vpack.c.bf16 %v768_v36, %v767_v28  ;;  %v783_v4 = vld [vmem:[%s7271_s9 + $0x120] sm:$0xff]  ;;  %v752_v32 = vld [vmem:[%s7271_s9 + $0x28] sm:$0xff]  ;;  %v4022_v26 = vpack.c.bf16 %v802_v44, %v801_v25  ;;  %v769_v40 = vld [vmem:[%s7271_s9 + $0xb0] sm:$0xff] }
  0xf7   :  { %813 = vst [vmem:[#allocation2 + $0x18] sm:$0xff] %v5486_v57  ;;  %v3988_v41 = vpack.c.bf16 %v752_v32, %v751_v45  ;;  %v770_v6 = vld [vmem:[%s7271_s9 + $0xb8] sm:$0xff]  ;;  %v785_v39 = vld [vmem:[%s7271_s9 + $0x130] sm:$0xff]  ;;  %v5604_v12 = vpack.i.bf16 %v5486_v57, %v5483_v3  ;;  %v803_v8 = vld [vmem:[%s7271_s9 + $0x1c0] sm:$0xff] }
  0xf8   :  { %v5500_v51 = vmax.f32 %v742_v5, 0.0  ;;  %4184 = vrot.lane.b32.xlu0 %v5497_v24, %s4520_s0  ;;  %4017 = vmatpush3.bf16.msra.mxu1 %v4016_v16  ;;  %v4020_v5 = vpack.c.bf16 %v784_v60, %v783_v4  ;;  %v3990_v62 = vpack.c.bf16 %v770_v6, %v769_v40  ;;  %v753_v22 = vld [vmem:[%s7271_s9 + $0x30] sm:$0xff]  ;;  %v754_v14 = vld [vmem:[%s7271_s9 + $0x38] sm:$0xff]  ;;  %v804_v58 = vld [vmem:[%s7271_s9 + $0x1c8] sm:$0xff] }
  0xf9   :  { %3985 = vmatpush3.bf16.msra.mxu0 %v3984_v56  ;;  %4019 = vmatprep.subr.bf16.mxu1 %v4018_v10  ;;  %v981_v53 = vld [vmem:[#allocation2 + $0x28] sm:$0xff]  ;;  %v3992_v2 = vpack.c.bf16 %v754_v14, %v753_v22  ;;  %v4026_v17 = vpack.c.bf16 %v804_v58, %v803_v8  ;;  %v771_v23 = vld [vmem:[%s7271_s9 + $0xc0] sm:$0xff]  ;;  %v805_v36 = vld [vmem:[%s7271_s9 + $0x1d0] sm:$0xff] }
  0xfa   :  { %814 = vst [vmem:[#allocation2 + $0x20] sm:$0xff] %v5500_v51  ;;  %v4198_v50 = vpack.i.bf16 %v5500_v51, %v5486_v57  ;;  %3987 = vmatprep.subr.bf16.mxu0 %v3986_v37  ;;  %v772_v16 = vld [vmem:[%s7271_s9 + $0xc8] sm:$0xff]  ;;  %v787_v56 = vld [vmem:[%s7271_s9 + $0x140] sm:$0xff]  ;;  %v5635_v30 = vpack.i.bf16 %v981_v53, %v5500_v51  ;;  %v806_v37 = vld [vmem:[%s7271_s9 + $0x1d8] sm:$0xff] }
  0xfb   :  { %v3994_v18 = vpack.c.bf16 %v772_v16, %v771_v23  ;;  %v788_v31 = vld [vmem:[%s7271_s9 + $0x148] sm:$0xff]  ;;  %v4030_v60 = vpack.c.bf16 %v806_v37, %v805_v36  ;;  %v773_v45 = vld [vmem:[%s7271_s9 + $0xd0] sm:$0xff]  ;;  %v790_v25 = vld [vmem:[%s7271_s9 + $0x158] sm:$0xff] }
  0xfc   :  { %4199 = vrot.lane.b32.xlu0 %v4198_v50, %s4521_s1  ;;  %4189 = vrot.lane.b32.xlu1 %v4198_v50, %s4520_s0  ;;  %v4028_v10 = vpack.c.bf16 %v788_v31, %v787_v56  ;;  %v756_v28 = vld [vmem:[%s7271_s9 + $0x48] sm:$0xff]  ;;  %v757_v44 = vld [vmem:[%s7271_s9 + $0x50] sm:$0xff]  ;;  %vm7613_vm2 = vmmov %vm7612_vm12 }
  0xfd   :  { %4021 = vmatpush3.bf16.msra.mxu1 %v4020_v5  ;;  %3989 = vmatpush3.bf16.msra.mxu0 %v3988_v41  ;;  %v774_v5 = vld [vmem:[%s7271_s9 + $0xd8] sm:$0xff]  ;;  %v789_v41 = vld [vmem:[%s7271_s9 + $0x150] sm:$0xff]  ;;  %v807_v6 = vld [vmem:[%s7271_s9 + $0x1e0] sm:$0xff] }
  0xfe   :  { %4023 = vmatprep.subr.bf16.mxu1 %v4022_v26  ;;  %3991 = vmatprep.subr.bf16.mxu0 %v3990_v62  ;;  %v3998_v32 = vpack.c.bf16 %v774_v5, %v773_v45  ;;  %v4032_v26 = vpack.c.bf16 %v790_v25, %v789_v41  ;;  %v758_v40 = vld [vmem:[%s7271_s9 + $0x58] sm:$0xff]  ;;  %v808_v62 = vld [vmem:[%s7271_s9 + $0x1e8] sm:$0xff]  ;;  %v775_v22 = vld [vmem:[%s7271_s9 + $0xe0] sm:$0xff]  ;;  %v7605_v41 = vmov 1   ;;  %v7606_v25 = vmov 5  }
  0xff   :  { %v791_v14 = vld [vmem:[%s7271_s9 + $0x160] sm:$0xff]  ;;  %v792_v58 = vld [vmem:[%s7271_s9 + $0x168] sm:$0xff]  ;;  %v809_v23 = vld [vmem:[%s7271_s9 + $0x1f0] sm:$0xff] }
 0x100   :  { %4204 = vrot.lane.b32.xlu0 %v5497_v24, %s4523_s22  ;;  %4194 = vrot.lane.b32.xlu1 %v5497_v24, %s4521_s1  ;;  %v759_v53 = vld [vmem:[%s7271_s9 + $0x60] sm:$0xff]  ;;  %v810_v16 = vld [vmem:[%s7271_s9 + $0x1f8] sm:$0xff]  ;;  %s7602_s1 = smov 111   ;;  %vm7614_vm9 = vmmov %vm7613_vm2 }
 0x101   :  { %3993 = vmatpush3.bf16.msra.mxu0 %v3992_v2  ;;  %v4036_v2 = vpack.c.bf16 %v792_v58, %v791_v14  ;;  %v4038_v56 = vpack.c.bf16 %v810_v16, %v809_v23  ;;  %v777_v31 = vld [vmem:[%s7271_s9 + $0xf0] sm:$0xff]  ;;  %v794_v36 = vld [vmem:[%s7271_s9 + $0x178] sm:$0xff]  ;;  %v5735_v5 = vld [vmem:[%s7265_s3] sm:$0xff]  ;;  %v7360_v14 = vmov 18   ;;  %v7383_v58 = vmov 10  }
 0x102   :  { %3995 = vmatprep.subr.bf16.mxu0 %v3994_v18  ;;  %v761_v37 = vld [vmem:[%s7271_s9 + $0x70] sm:$0xff]  ;;  %v7381_v23 = vmov 13   ;;  %v7354_v16 = vmov 27   ;;  %vm7626_vm14 = vmmov %vm7625_vm8 }
 0x104   :  { %4219 = vrot.lane.b32.xlu0 %v4198_v50, %s4525_s23  ;;  %4209 = vrot.lane.b32.xlu1 %v4198_v50, %s4523_s22  ;;  %v786_v50 = vld [vmem:[%s7271_s9 + $0x138] sm:$0xff]  ;;  %s4534_s22 = smov 9  }
 0x105   :  { %v4024_v13 = vpack.c.bf16 %v786_v50, %v785_v39  ;;  %v4000_v39 = vpack.c.bf16 %v758_v40, %v757_v44  ;;  %v4034_v50 = vpack.c.bf16 %v808_v62, %v807_v6  ;;  %v7607_v44 = vmov 3  }
 0x106   :  { %v7609_v40 = vmov 4   ;;  %v7373_v6 = vmov 11   ;;  %v7610_v62 = vmov 6  }
 0x107   :  { %4025 = vmatpush3.bf16.msra.mxu1 %v4024_v13  ;;  %v776_v13 = vld [vmem:[%s7271_s9 + $0xe8] sm:$0xff] }
 0x108   :  { %4224 = vrot.lane.b32.xlu0 %v5604_v12, %s4528_s26  ;;  %4214 = vrot.lane.b32.xlu1 %v5497_v24, %s4525_s23  ;;  %v755_v24 = vld [vmem:[%s7271_s9 + $0x40] sm:$0xff]  ;;  %v4002_v8 = vpack.c.bf16 %v776_v13, %v775_v22  ;;  %v7362_v22 = vmov 17   ;;  %v7385_v13 = vmov 9  }
 0x109   :  { %4027 = vmatprep.subr.bf16.mxu1 %v4026_v17  ;;  %v3996_v4 = vpack.c.bf16 %v756_v28, %v755_v24  ;;  %v760_v17 = vld [vmem:[%s7271_s9 + $0x68] sm:$0xff]  ;;  %v778_v24 = vld [vmem:[%s7271_s9 + $0xf8] sm:$0xff]  ;;  %v793_v28 = vld [vmem:[%s7271_s9 + $0x170] sm:$0xff] }
 0x10a   :  { %v4004_v18 = vpack.c.bf16 %v760_v17, %v759_v53  ;;  %v7358_v53 = vmov 21   ;;  %v7356_v17 = vmov 24  }
 0x10b   :  { %4029 = vmatpush3.bf16.msra.mxu1 %v4028_v10  ;;  %3997 = vmatpush3.bf16.msra.mxu0 %v3996_v4  ;;  %v4006_v10 = vpack.c.bf16 %v778_v24, %v777_v31  ;;  %v4040_v4 = vpack.c.bf16 %v794_v36, %v793_v28  ;;  %v7379_v31 = vmov 16   ;;  %v834_v24 = vpop.permute.xlu0 %833  ;;  %v7375_v28 = vmov 19  }
 0x10c   :  { %995 = vrot.lane.b32.xlu0 %v5481_v59, %s4528_s26  ;;  %4229 = vrot.lane.b32.xlu1 %v5635_v30, %s4528_s26 }
 0x10d   :  { %4031 = vmatprep.subr.bf16.mxu1 %v4030_v60  ;;  %3999 = vmatprep.subr.bf16.mxu0 %v3998_v32  ;;  %v762_v60 = vld [vmem:[%s7271_s9 + $0x78] sm:$0xff]  ;;  %v1264_v32 = vld [vmem:[%s7266_s4] sm:$0xff]  ;;  %s4540_s4 = smov 8  }
 0x10e   :  { %v4008_v45 = vpack.c.bf16 %v762_v60, %v761_v37  ;;  %v7367_v60 = vmov 20  }
 0x10f   :  { %4033 = vmatpush3.bf16.msra.mxu1 %v4032_v26  ;;  %4001 = vmatpush3.bf16.msra.mxu0 %v4000_v39  ;;  %v7608_v26 = vmov 8   ;;  %v7369_v39 = vmov 14   ;;  %v902_v36 = vpop.permute.xlu0 %901 }
 0x110   :  { %4239 = vrot.lane.b32.xlu0 %v5635_v30, %s4530_s2  ;;  %4234 = vrot.lane.b32.xlu1 %v5604_v12, %s4530_s2 }
 0x111   :  { %4035 = vmatprep.subr.bf16.mxu1 %v4034_v50  ;;  %4003 = vmatprep.subr.bf16.mxu0 %v4002_v8  ;;  %v7611_v50 = vmov 7   ;;  %v5770_v8 = vld [vmem:[#allocation2] sm:$0xff] }
 0x113   :  { %4037 = vmatpush3.bf16.msra.mxu1 %v4036_v2  ;;  %4005 = vmatpush3.bf16.msra.mxu0 %v4004_v18  ;;  %v7371_v2 = vmov 12   ;;  %v7365_v18 = vmov 15  }
 0x114   :  { %4244 = vrot.lane.b32.xlu0 %v5604_v12, %s4532_s27  ;;  %1029 = vrot.lane.b32.xlu1 %v5481_v59, %s4530_s2 }
 0x115   :  { %4039 = vmatprep.subr.bf16.mxu1 %v4038_v56  ;;  %4007 = vmatprep.subr.bf16.mxu0 %v4006_v10  ;;  %v7352_v56 = vmov 30   ;;  %v868_v10 = vpop.permute.xlu1 %867 }
 0x117   :  { %4041 = vmatpush3.bf16.msra.mxu1 %v4040_v4  ;;  %4009 = vmatpush3.bf16.msra.mxu0 %v4008_v45 }
 0x118   :  { %1063 = vrot.lane.b32.xlu0 %v5481_v59, %s4532_s27  ;;  %4249 = vrot.lane.b32.xlu1 %v5635_v30, %s4532_s27 }
 0x119   :  { %v5797_v37 = vpop.permute.xlu1 %935 }
 0x11c   :  { %4259 = vrot.lane.b32.xlu0 %v5635_v30, %s7602_s1  ;;  %4254 = vrot.lane.b32.xlu1 %v5604_v12, %s7602_s1  ;;  %v7603_v30 = vld [vmem:[#allocation12_spill] sm:$0xff]  ;;  %v7604_v12 = vmov 2  }
 0x120   :  { %1299 = vperm.xlu0 %4180, %v5735_v5   ;;  %1097 = vrot.lane.b32.xlu1 %v5481_v59, %s7602_s1  ;;  %s4614_s1 = smov 12  }
 0x124   :  { %1267 = vperm.xlu1 %4263, %v1264_v32   ;;  %1289 = vrot.lane.b32.xlu0 %v7603_v30, %s4534_s22 }
 0x125   :  { %4265 = vset.pattern.permute.xlu0 %v7604_v12 }
 0x128   :  { %4264 = vset.pattern.permute.xlu1 %v7605_v41  ;;  %1319 = vperm.xlu0 %4265, %v5735_v5  }
 0x129   :  { %1309 = vperm.xlu1 %4264, %v5735_v5  }
 0x12c   :  { %4268 = vset.pattern.permute.xlu0 %v7606_v25 }
 0x12d   :  { %4266 = vset.pattern.permute.xlu1 %v7607_v44  ;;  %1349 = vperm.xlu0 %4268, %v5735_v5  }
 0x12e   :  { %1329 = vperm.xlu1 %4266, %v5735_v5  }
 0x131   :  { %4271 = vset.pattern.permute.xlu0 %v7608_v26 }
 0x132   :  { %4267 = vset.pattern.permute.xlu1 %v7609_v40  ;;  %1393 = vperm.xlu0 %4271, %v5735_v5   ;;  %v7392_v40 = vmov 25  }
 0x133   :  { %1339 = vperm.xlu1 %4267, %v5735_v5  }
 0x136   :  { %4274 = vset.pattern.permute.xlu0 %v7373_v6 }
 0x137   :  { %4269 = vset.pattern.permute.xlu1 %v7610_v62  ;;  %1423 = vperm.xlu0 %4274, %v5735_v5   ;;  %v7640_v62 = vld [vmem:[#allocation25_spill] sm:$0xff] }
 0x138   :  { %1359 = vperm.xlu1 %4269, %v5735_v5  }
 0x13b   :  { %4277 = vset.pattern.permute.xlu0 %v7369_v39 }
 0x13c   :  { %4270 = vset.pattern.permute.xlu1 %v7611_v50  ;;  %1453 = vperm.xlu0 %4277, %v5735_v5  }
 0x13d   :  { %1369 = vperm.xlu1 %4270, %v5735_v5  }
 0x140   :  { %4280 = vset.pattern.permute.xlu0 %v7362_v22 }
 0x141   :  { %4272 = vset.pattern.permute.xlu1 %v7385_v13  ;;  %1498 = vperm.xlu0 %4280, %v5735_v5  }
 0x142   :  { %1403 = vperm.xlu1 %4272, %v5735_v5  }
 0x145   :  { %4281 = vset.pattern.permute.xlu0 %v7360_v14 }
 0x146   :  { %1384 = vrot.lane.b32.xlu1 %v5770_v8, %s4540_s4  ;;  %1508 = vperm.xlu0 %4281, %v5735_v5  }
 0x147   :  { %4273 = vset.pattern.permute.xlu1 %v7383_v58 }
 0x14a   :  { %1413 = vperm.xlu1 %4273, %v5735_v5   ;;  %4284 = vset.pattern.permute.xlu0 %v7358_v53 }
 0x14b   :  { %1538 = vperm.xlu0 %4284, %v5735_v5  }
 0x14e   :  { %4275 = vset.pattern.permute.xlu1 %v7371_v2 }
 0x14f   :  { %1433 = vperm.xlu1 %4275, %v5735_v5   ;;  %4287 = vset.pattern.permute.xlu0 %v7356_v17 }
 0x150   :  { %1582 = vperm.xlu0 %4287, %v5735_v5  }
 0x153   :  { %4276 = vset.pattern.permute.xlu1 %v7381_v23 }
 0x154   :  { %1443 = vperm.xlu1 %4276, %v5735_v5   ;;  %4290 = vset.pattern.permute.xlu0 %v7354_v16  ;;  %v7377_v16 = vmov 22  }
 0x155   :  { %1612 = vperm.xlu0 %4290, %v5735_v5  }
 0x158   :  { %4278 = vset.pattern.permute.xlu1 %v7365_v18 }
 0x159   :  { %1463 = vperm.xlu1 %4278, %v5735_v5   ;;  %4293 = vset.pattern.permute.xlu0 %v7352_v56 }
 0x15a   :  { %1642 = vperm.xlu0 %4293, %v5735_v5  }
 0x15d   :  { %4279 = vset.pattern.permute.xlu1 %v7379_v31 }
 0x15e   :  { %1488 = vperm.xlu1 %4279, %v5735_v5  }
 0x162   :  { %1479 = vrot.lane.b32.xlu1 %v5770_v8, %s4550_s29 }
 0x163   :  { %4282 = vset.pattern.permute.xlu1 %v7375_v28 }
 0x166   :  { %1518 = vperm.xlu1 %4282, %v5735_v5  }
 0x16a   :  { %v4185_v4 = vpop.permute.xlu0 %4184  ;;  %4283 = vset.pattern.permute.xlu1 %v7367_v60 }
 0x16b   :  { %1528 = vperm.xlu1 %4283, %v5735_v5   ;;  %v4187_v45 = vunpack.i.h.bf16 %v4185_v4  ;;  %v4186_v32 = vunpack.i.l.bf16 %v4185_v4 }
 0x16d   :  { %v843_v17 = vsel %vm7612_vm12, %v834_v24, %v4186_v32  ;;  %v844_v53 = vsel %vm7613_vm2, %v4186_v32, %v4187_v45  ;;  %v7388_v32 = vmov 23   ;;  %vm7616_vm12 = vmmov %vm7613_vm2 }
 0x16e   :  { %v4200_v30 = vpop.permute.xlu0 %4199  ;;  %v4190_v56 = vpop.permute.xlu1 %4189  ;;  %v851_v4 = vsel %vm4898_vm13, %v843_v17, 0.0  ;;  %v852_v6 = vsel %vm4997_vm11, %v844_v53, 0.0  ;;  %vm7618_vm13 = vnez %v7465_v61  ;;  %vm7619_vm11 = vcmask 130048   ;;  %v7627_v17 = vld [vmem:[#allocation18_spill] sm:$0xff] }
 0x16f   :  { %4285 = vset.pattern.permute.xlu1 %v7377_v16  ;;  %v4192_v14 = vunpack.i.h.bf16 %v4190_v56  ;;  %v4191_v22 = vunpack.i.l.bf16 %v4190_v56  ;;  %v4202_v28 = vunpack.i.h.bf16 %v4200_v30  ;;  %v4201_v16 = vunpack.i.l.bf16 %v4200_v30 }
 0x170   :  { %1548 = vperm.xlu1 %4285, %v5735_v5   ;;  %v855_v2 = vmax.f32 %v5481_v59, %v851_v4  ;;  %vm7628_vm0 = vnez %v7627_v17 }
 0x171   :  { %v846_v18 = vsel %vm7614_vm9, %v4191_v22, %v4192_v14  ;;  %v845_v56 = vsel %vm7616_vm12, %v4187_v45, %v4191_v22  ;;  %vm7620_vm9 = vmmov %vm7619_vm11 }
 0x172   :  { %v4205_v60 = vpop.permute.xlu0 %4204  ;;  %v4195_v39 = vpop.permute.xlu1 %4194  ;;  %v854_v14 = vsel %vm5040_vm5, %v846_v18, 0.0  ;;  %vm7621_vm2 = vmmov %vm7620_vm9 }
 0x173   :  { %v4206_v31 = vunpack.i.l.bf16 %v4205_v60  ;;  %v4197_v24 = vunpack.i.h.bf16 %v4195_v39  ;;  %v4196_v23 = vunpack.i.l.bf16 %v4195_v39  ;;  %v4207_v13 = vunpack.i.h.bf16 %v4205_v60  ;;  %vm7622_vm5 = vmmov %vm7621_vm2  ;;  %v7623_v60 = vld [vmem:[#allocation21_spill] sm:$0xff] }
 0x174   :  { %4286 = vset.pattern.permute.xlu1 %v7388_v32  ;;  %v856_v39 = vmax.f32 %v5483_v3, %v852_v6  ;;  %v880_v18 = vsel %vm7622_vm5, %v4201_v16, %v4202_v28  ;;  %vm7624_vm12 = vnez %v7623_v60  ;;  %v858_v4 = vmax.f32 %v5500_v51, %v854_v14 }
 0x175   :  { %1558 = vperm.xlu1 %4286, %v5735_v5   ;;  %v879_v30 = vsel %vm7619_vm11, %v4197_v24, %v4201_v16  ;;  %v877_v22 = vsel %vm7620_vm9, %v868_v10, %v4196_v23  ;;  %v878_v58 = vsel %vm7621_vm2, %v4196_v23, %v4197_v24  ;;  %v853_v45 = vsel %vm7624_vm12, %v845_v56, 0.0  ;;  %v7629_v23 = vld [vmem:[#allocation19_spill] sm:$0xff] }
 0x176   :  { %v4220_v21 = vpop.permute.xlu0 %4219  ;;  %v4210_v53 = vpop.permute.xlu1 %4209  ;;  %v911_v32 = vsel %vm7625_vm8, %v902_v36, %v4206_v31  ;;  %v912_v26 = vsel %vm7626_vm14, %v4206_v31, %v4207_v13  ;;  %v886_v6 = vsel %vm7628_vm0, %v878_v58, 0.0  ;;  %vm7630_vm11 = vnez %v7629_v23  ;;  %v7631_v10 = vld [vmem:[#allocation15_spill] sm:$0xff]  ;;  %v7633_v31 = vld [vmem:[#allocation20_spill] sm:$0xff]  ;;  %vm7635_vm0 = vmmov %vm7625_vm8 }
 0x177   :  { %v4212_v50 = vunpack.i.h.bf16 %v4210_v53  ;;  %v4211_v25 = vunpack.i.l.bf16 %v4210_v53  ;;  %v887_v16 = vsel %vm7630_vm11, %v879_v30, 0.0  ;;  %vm7632_vm9 = vnez %v7631_v10  ;;  %vm7636_vm8 = vmmov %vm7635_vm0  ;;  %v7638_v23 = vld [vmem:[#allocation23_spill] sm:$0xff] }
 0x178   :  { %v885_v28 = vsel %vm7632_vm9, %v877_v22, 0.0  ;;  %v4222_v24 = vunpack.i.h.bf16 %v4220_v21  ;;  %v4221_v56 = vunpack.i.l.bf16 %v4220_v21  ;;  %vm7634_vm14 = vnez %v7633_v31 }
 0x179   :  { %4288 = vset.pattern.permute.xlu1 %v7392_v40  ;;  %v888_v17 = vsel %vm7634_vm14, %v880_v18, 0.0  ;;  %v857_v53 = vmax.f32 %v5486_v57, %v853_v45  ;;  %v913_v58 = vsel %vm7635_vm0, %v4207_v13, %v4211_v25  ;;  %v914_v60 = vsel %vm7636_vm8, %v4211_v25, %v4212_v50  ;;  %v7643_v13 = vld [vmem:[#allocation24_spill] sm:$0xff] }
 0x17a   :  { %v4225_v14 = vpop.permute.xlu0 %4224  ;;  %v4215_v36 = vpop.permute.xlu1 %4214  ;;  %1592 = vperm.xlu1 %4288, %v5735_v5   ;;  %vm7637_vm2 = vnez %v7503_v42  ;;  %vm7639_vm5 = vnez %v7638_v23  ;;  %v890_v21 = vmax.f32 %v856_v39, %v886_v6  ;;  %v889_v40 = vmax.f32 %v855_v2, %v885_v28 }
 0x17b   :  { %v919_v30 = vsel %vm7637_vm2, %v911_v32, 0.0  ;;  %v920_v22 = vsel %vm7639_vm5, %v912_v26, 0.0  ;;  %v4217_v10 = vunpack.i.h.bf16 %v4215_v36  ;;  %v891_v12 = vmax.f32 %v857_v53, %v887_v16 }
 0x17c   :  { %vm7641_vm12 = vnez %v7640_v62  ;;  %v4216_v18 = vunpack.i.l.bf16 %v4215_v36  ;;  %vm7642_vm11 = vcmask 7168   ;;  %v892_v44 = vmax.f32 %v858_v4, %v888_v17 }
 0x17d   :  { %v922_v31 = vsel %vm7641_vm12, %v914_v60, 0.0  ;;  %v948_v45 = vsel %vm7642_vm11, %v4221_v56, %v4222_v24  ;;  %vm7644_vm9 = vnez %v7643_v13  ;;  %vm7645_vm14 = vmmov %vm7642_vm11  ;;  %v4227_v26 = vunpack.i.h.bf16 %v4225_v14 }
 0x17e   :  { %v921_v25 = vsel %vm7644_vm9, %v913_v58, 0.0  ;;  %v947_v42 = vsel %vm7645_vm14, %v4217_v10, %v4221_v56  ;;  %v996_v50 = vpop.permute.xlu0 %995  ;;  %v4230_v32 = vpop.permute.xlu1 %4229  ;;  %1574 = vrot.lane.b32.xlu1 %v5770_v8, %s4525_s23  ;;  %v4226_v2 = vunpack.i.l.bf16 %v4225_v14  ;;  %vm7646_vm0 = vmmov %vm7642_vm11  ;;  %v7431_v6 = vmov 26   ;;  %v7650_v8 = vld [vmem:[#allocation26_spill] sm:$0xff] }
 0x17f   :  { %v945_v62 = vsel %vm7646_vm0, %v5797_v37, %v4216_v18  ;;  %vm7647_vm8 = vmmov %vm7646_vm0  ;;  %4289 = vset.pattern.permute.xlu1 %v7431_v6  ;;  %v926_v4 = vmax.f32 %v892_v44, %v922_v31  ;;  %vm7648_vm2 = vnez %v7526_v48  ;;  %vm7649_vm5 = vnez %v7522_v38 }
 0x180   :  { %v946_v39 = vsel %vm7647_vm8, %v4216_v18, %v4217_v10  ;;  %v955_v16 = vsel %vm7648_vm2, %v947_v42, 0.0  ;;  %v924_v24 = vmax.f32 %v890_v21, %v920_v22  ;;  %v925_v56 = vmax.f32 %v891_v12, %v921_v25 }
 0x181   :  { %v954_v28 = vsel %vm7649_vm5, %v946_v39, 0.0  ;;  %vm7651_vm12 = vnez %v7650_v8  ;;  %v4232_v36 = vunpack.i.h.bf16 %v4230_v32  ;;  %v4231_v17 = vunpack.i.l.bf16 %v4230_v32 }
 0x182   :  { %v953_v14 = vsel %vm7651_vm12, %v945_v62, 0.0  ;;  %vm7652_vm11 = vnez %v7529_v29  ;;  %v923_v53 = vmax.f32 %v889_v40, %v919_v30  ;;  %v4240_v58 = vpop.permute.xlu0 %4239  ;;  %v4235_v60 = vpop.permute.xlu1 %4234  ;;  %v958_v44 = vmax.f32 %v924_v24, %v954_v28  ;;  %1602 = vperm.xlu1 %4289, %v5735_v5  }
 0x183   :  { %v956_v37 = vsel %vm7652_vm11, %v948_v45, 0.0  ;;  %vm7653_vm9 = vnez %v7467_v20  ;;  %v959_v38 = vmax.f32 %v925_v56, %v955_v16  ;;  %vm7654_vm14 = vcmask 1039360  }
 0x184   :  { %v970_v48 = vsel %vm7653_vm9, %v5483_v3, 0.0  ;;  %v1005_v12 = vsel %vm7654_vm14, %v996_v50, %v4226_v2  ;;  %v4242_v23 = vunpack.i.h.bf16 %v4240_v58  ;;  %v4241_v22 = vunpack.i.l.bf16 %v4240_v58  ;;  %vm7655_vm0 = vmmov %vm7654_vm14 }
 0x185   :  { %v957_v21 = vmax.f32 %v923_v53, %v953_v14  ;;  %v4237_v10 = vunpack.i.h.bf16 %v4235_v60  ;;  %v4236_v31 = vunpack.i.l.bf16 %v4235_v60  ;;  %v960_v29 = vmax.f32 %v926_v4, %v956_v37  ;;  %vm7656_vm8 = vmmov %vm7655_vm0 }
 0x186   :  { %v1006_v40 = vsel %vm7655_vm0, %v4226_v2, %v4227_v26  ;;  %v972_v30 = vsel %vm4978_vm7, %v5500_v51, 0.0  ;;  %v1008_v20 = vsel %vm7656_vm8, %v4231_v17, %v4232_v36  ;;  %vm7657_vm2 = vnez %v7469_v0  ;;  %vm7659_vm12 = vmmov %vm7655_vm0  ;;  %v4245_v25 = vpop.permute.xlu0 %4244  ;;  %v1030_v42 = vpop.permute.xlu1 %1029 }
 0x187   :  { %v971_v18 = vsel %vm7657_vm2, %v5486_v57, 0.0  ;;  %vm7658_vm5 = vnez %v7532_v46  ;;  %v1007_v13 = vsel %vm7659_vm12, %v4227_v26, %v4231_v17  ;;  %v974_v50 = vmax.f32 %v958_v44, %v970_v48 }
 0x188   :  { %v1013_v45 = vsel %vm7658_vm5, %v1005_v12, 0.0  ;;  %vm7660_vm11 = vcmask 924672   ;;  %v4247_v2 = vunpack.i.h.bf16 %v4245_v25  ;;  %v4246_v62 = vunpack.i.l.bf16 %v4245_v25 }
 0x189   :  { %v1040_v32 = vsel %vm7660_vm11, %v4236_v31, %v4237_v10  ;;  %v1016_v1 = vsel %vm5345_vm10, %v1008_v20, 0.0  ;;  %vm7661_vm7 = vmmov %vm7660_vm11  ;;  %v7662_v0 = vsel %vm7618_vm13, %v5481_v59, 0.0  ;;  %v976_v26 = vmax.f32 %v960_v29, %v972_v30 }
 0x18a   :  { %v1042_v51 = vsel %vm7661_vm7, %v4241_v22, %v4242_v23  ;;  %v973_v46 = vmax.f32 %v957_v21, %v7662_v0  ;;  %vm7663_vm9 = vmmov %vm7661_vm7  ;;  %v975_v39 = vmax.f32 %v959_v38, %v971_v18  ;;  %v1015_v4 = vsel %vm5281_vm15, %v1007_v13, 0.0  ;;  %v1064_v24 = vpop.permute.xlu0 %1063  ;;  %v4250_v61 = vpop.permute.xlu1 %4249 }
 0x18b   :  { %v1041_v57 = vsel %vm7663_vm9, %v4237_v10, %v4241_v22  ;;  %vm7664_vm14 = vmmov %vm7661_vm7  ;;  %vm7665_vm0 = vnez %v7535_v9  ;;  %vm7666_vm10 = vnez %v7558_v55  ;;  %vm7667_vm13 = vcmask 916480  }
 0x18c   :  { %v1039_v16 = vsel %vm7664_vm14, %v1030_v42, %v4236_v31  ;;  %v1014_v49 = vsel %vm7665_vm0, %v1006_v40, 0.0  ;;  %v1048_v28 = vsel %vm7666_vm10, %v1040_v32, 0.0  ;;  %v1074_v59 = vsel %vm7667_vm13, %v4246_v62, %v4247_v2  ;;  %vm7668_vm8 = vmmov %vm7667_vm13 }
 0x18d   :  { %v1018_v56 = vmax.f32 %v974_v50, %v1014_v49  ;;  %v1020_v8 = vmax.f32 %v976_v26, %v1016_v1  ;;  %v1050_v14 = vsel %vm5392_vm4, %v1042_v51, 0.0  ;;  %v1073_v35 = vsel %vm7668_vm8, %v1064_v24, %v4246_v62  ;;  %vm7670_vm2 = vmmov %vm7668_vm8 }
 0x18e   :  { %v4252_v36 = vunpack.i.h.bf16 %v4250_v61  ;;  %v4251_v17 = vunpack.i.l.bf16 %v4250_v61  ;;  %v1049_v9 = vsel %vm5360_vm1, %v1041_v57, 0.0  ;;  %v1017_v37 = vmax.f32 %v973_v46, %v1013_v45  ;;  %vm7671_vm4 = vmmov %vm7670_vm2  ;;  %v4260_v12 = vpop.permute.xlu0 %4259  ;;  %v4255_v43 = vpop.permute.xlu1 %4254 }
 0x18f   :  { %vm7669_vm15 = vnez %v7552_v47  ;;  %v1052_v53 = vmax.f32 %v1018_v56, %v1048_v28  ;;  %v1019_v58 = vmax.f32 %v975_v39, %v1015_v4  ;;  %v1082_v60 = vsel %vm5268_vm3, %v1074_v59, 0.0 }
 0x190   :  { %v1047_v55 = vsel %vm7669_vm15, %v1039_v16, 0.0  ;;  %v1054_v44 = vmax.f32 %v1020_v8, %v1050_v14  ;;  %v1076_v52 = vsel %vm7670_vm2, %v4251_v17, %v4252_v36  ;;  %v1075_v48 = vsel %vm7671_vm4, %v4247_v2, %v4251_v17 }
 0x191   :  { %vm7672_vm5 = vnez %v7540_v27  ;;  %v1084_v23 = vsel %vm5373_vm6, %v1076_v52, 0.0  ;;  %v1053_v47 = vmax.f32 %v1019_v58, %v1049_v9  ;;  %vm7673_vm1 = vnez %v7564_v33 }
 0x192   :  { %v1081_v38 = vsel %vm7672_vm5, %v1073_v35, 0.0  ;;  %v1083_v22 = vsel %vm7673_vm1, %v1075_v48, 0.0  ;;  %v4262_v21 = vunpack.i.h.bf16 %v4260_v12  ;;  %v4261_v19 = vunpack.i.l.bf16 %v4260_v12  ;;  %v1098_v13 = vpop.permute.xlu1 %1097 }
 0x193   :  { %v4257_v10 = vunpack.i.h.bf16 %v4255_v43  ;;  %v4256_v31 = vunpack.i.l.bf16 %v4255_v43  ;;  %v1051_v29 = vmax.f32 %v1017_v37, %v1047_v55  ;;  %v1086_v40 = vmax.f32 %v1052_v53, %v1082_v60 }
 0x194   :  { %v1088_v30 = vmax.f32 %v1054_v44, %v1084_v23  ;;  %vm7674_vm3 = vcmask 908288   ;;  %v1087_v18 = vmax.f32 %v1053_v47, %v1083_v22  ;;  %vm7677_vm6 = vnez %v7593_v15 }
 0x195   :  { %v1108_v20 = vsel %vm7674_vm3, %v4256_v31, %v4257_v10  ;;  %vm7675_vm12 = vmmov %vm7674_vm3  ;;  %v1085_v54 = vmax.f32 %v1051_v29, %v1081_v38  ;;  %vm7678_vm7 = vnez %v7601_v11  ;;  %vm7679_vm9 = vnez %v7596_v34 }
 0x196   :  { %v1110_v27 = vsel %vm7675_vm12, %v4261_v19, %v4262_v21  ;;  %vm7676_vm11 = vmmov %vm7674_vm3  ;;  %v1116_v33 = vsel %vm7677_vm6, %v1108_v20, 0.0  ;;  %vm7681_vm0 = vnez %v7588_v63  ;;  %v7434_v15 = vmov 33  }
 0x197   :  { %v1109_v45 = vsel %vm7676_vm11, %v4257_v10, %v4261_v19  ;;  %v1118_v25 = vsel %vm7678_vm7, %v1110_v27, 0.0  ;;  %vm7680_vm14 = vmmov %vm7674_vm3  ;;  %v1120_v32 = vmax.f32 %v1086_v40, %v1116_v33  ;;  %4296 = vset.pattern.permute.xlu0 %v7434_v15  ;;  %v7444_v11 = vmov 28   ;;  %v4491_v33 = vld [vmem:[#allocation2 + $0x10] sm:$0xff] }
 0x198   :  { %v1117_v42 = vsel %vm7679_vm9, %v1109_v45, 0.0  ;;  %v1107_v50 = vsel %vm7680_vm14, %v1098_v13, %v4256_v31  ;;  %v1122_v2 = vmax.f32 %v1088_v30, %v1118_v25  ;;  %4291 = vset.pattern.permute.xlu1 %v7444_v11  ;;  %v7425_v28 = vmov 36  }
 0x199   :  { %v1121_v62 = vmax.f32 %v1087_v18, %v1117_v42  ;;  %v1115_v1 = vsel %vm7681_vm0, %v1107_v50, 0.0  ;;  %1187 = vmatprep.mubr.f32.mxu0 %v1120_v32  ;;  %v7426_v24 = vmov 29   ;;  %v7419_v56 = vmov 39  }
 0x19a   :  { %v1119_v51 = vmax.f32 %v1085_v54, %v1115_v1  ;;  %1257 = vmatprep.mubr.f32.mxu1 %v1122_v2  ;;  %v7446_v59 = vmov 31   ;;  %v7423_v14 = vmov 32   ;;  %v7415_v35 = vmov 42  }
 0x19b   :  { %1258 = vmatmul.mubr.f32.vlgmr.msra.gmra.mrb[0].mxu1 %v1121_v62  ;;  %v7429_v17 = vmov 34   ;;  %v7410_v9 = vmov 45   ;;  %v7420_v37 = vmov 35   ;;  %v7404_v53 = vmov 48  }
 0x19c   :  { %1188 = vmatmul.mubr.f32.vlgmr.msra.gmra.mrb[0].mxu0 %v1119_v51  ;;  %v7422_v58 = vmov 37   ;;  %v7405_v44 = vmov 51   ;;  %v7418_v48 = vmov 38   ;;  %v7417_v12 = vmov 40  }
 0x19d   :  { %v7402_v43 = vmov 54   ;;  %v7416_v22 = vmov 41   ;;  %v7399_v21 = vmov 57   ;;  %v7414_v31 = vmov 43  }
 0x19e   :  { %v7396_v29 = vmov 58   ;;  %v7395_v20 = vmov 61   ;;  %v7394_v18 = vmov 64   ;;  %v7411_v54 = vmov 46  }
 0x19f   :  { %v5998_v47 = vpop.permute.xlu0 %1299  ;;  %v7406_v42 = vmov 47   ;;  %v7398_v50 = vmov 67   ;;  %v7408_v2 = vmov 49   ;;  %v7397_v1 = vmov 70  }
 0x1a0   :  { %v7401_v51 = vmov 50   ;;  %vm1293_vm2 = vcmask 72704   ;;  %vm1388_vm5 = vcmask 64512   ;;  %vm1483_vm3 = vcmask 56320  }
 0x1a1   :  { %vm7699_vm14 = vcmask 7168  }
 0x1a3   :  { %v5930_v34 = vpop.permute.xlu1 %1267  ;;  %v6004_v19 = vpop.permute.xlu0 %1289 }
 0x1a7   :  { %v6014_v40 = vpop.permute.xlu0 %1319 }
 0x1a8   :  { %v5934_v16 = vpop.permute.xlu1 %1309 }
 0x1ac   :  { %v6022_v27 = vpop.permute.xlu0 %1349 }
 0x1ad   :  { %v5942_v49 = vpop.permute.xlu1 %1329 }
 0x1b1   :  { %v6033_v25 = vpop.permute.xlu0 %1393 }
 0x1b2   :  { %v5948_v61 = vpop.permute.xlu1 %1339 }
 0x1b6   :  { %v6042_v62 = vpop.permute.xlu0 %1423 }
 0x1b7   :  { %v5954_v8 = vpop.permute.xlu1 %1359 }
 0x1bc   :  { %v5962_v36 = vpop.permute.xlu1 %1369 }
 0x1c1   :  { %v5969_v55 = vpop.permute.xlu1 %1403 }
 0x1c5   :  { %v5976_v60 = vpop.permute.xlu1 %1384 }
 0x1c9   :  { %v5983_v52 = vpop.permute.xlu1 %1413 }
 0x1ce   :  { %v5990_v38 = vpop.permute.xlu1 %1433 }
 0x1d3   :  { %v5996_v23 = vpop.permute.xlu1 %1443 }
 0x1d8   :  { %v6008_v10 = vpop.permute.xlu1 %1463 }
 0x1dd   :  { %v6016_v30 = vpop.permute.xlu1 %1488 }
 0x1e1   :  { %v6025_v45 = vpop.permute.xlu1 %1479 }
 0x1e5   :  { %v6030_v13 = vpop.permute.xlu1 %1518 }
 0x1ea   :  { %v6039_v32 = vpop.permute.xlu1 %1528 }
 0x26e   :  { %v3897_v0 = vpop.f32.mrb[0].mxu1 }
 0x26f   :  { %v3862_v46 = vpop.f32.mrb[0].mxu0  ;;  %v3898_v57 = vpop.f32.mrb[1].mxu1 }
 0x270   :  { %v3899_v26 = vadd.f32 %v3898_v57, %v3897_v0  ;;  %v3863_v39 = vpop.f32.mrb[1].mxu0  ;;  %v6048_v0 = vpop.permute.xlu1 %1548  ;;  %v7682_v57 = vmov 0  }
 0x271   :  { %v3864_v63 = vadd.f32 %v3863_v39, %v3862_v46  ;;  %v6051_v46 = vpop.permute.xlu0 %1453 }
 0x273   :  { %v5932_v4 = vadd.f32 %v3899_v26, %v3864_v63  ;;  %v7400_v26 = vmov 52  }
 0x274   :  { %v6056_v39 = vpop.permute.xlu1 %1558 }
 0x275   :  { %1386 = vrot.lane.b32.xlu0 %v5932_v4, %s4540_s4  ;;  %1291 = vrot.lane.b32.xlu1 %v5932_v4, %s4534_s22  ;;  %v6058_v63 = vpop.permute.xlu0 %1498 }
 0x279   :  { %1677 = vperm.xlu0 %4296, %v5735_v5   ;;  %1622 = vperm.xlu1 %4291, %v5735_v5  }
 0x27d   :  { %4299 = vset.pattern.permute.xlu0 %v7425_v28  ;;  %4292 = vset.pattern.permute.xlu1 %v7426_v24  ;;  %v7433_v24 = vmov 62  }
 0x27e   :  { %1707 = vperm.xlu0 %4299, %v5735_v5   ;;  %1632 = vperm.xlu1 %4292, %v5735_v5  }
 0x282   :  { %4302 = vset.pattern.permute.xlu0 %v7419_v56  ;;  %4294 = vset.pattern.permute.xlu1 %v7446_v59  ;;  %v7689_v56 = vld [vmem:[#allocation9_spill] sm:$0xff] }
 0x283   :  { %1737 = vperm.xlu0 %4302, %v5735_v5   ;;  %1652 = vperm.xlu1 %4294, %v5735_v5  }
 0x287   :  { %1576 = vrot.lane.b32.xlu0 %v5932_v4, %s4525_s23  ;;  %4295 = vset.pattern.permute.xlu1 %v7423_v14  ;;  %v7691_v14 = vld [vmem:[#allocation7_spill] sm:$0xff] }
 0x288   :  { %1667 = vperm.xlu1 %4295, %v5735_v5   ;;  %4305 = vset.pattern.permute.xlu0 %v7415_v35  ;;  %v7688_v35 = vld [vmem:[#allocation8_spill] sm:$0xff]  ;;  %v6123_v28 = vsub.s32 5, %v7691_v14  ;;  %v6137_v15 = vsub.s32 7, %v7691_v14 }
 0x28b   :  { %1782 = vperm.xlu0 %4305, %v5735_v5  }
 0x28c   :  { %4297 = vset.pattern.permute.xlu1 %v7429_v17 }
 0x28d   :  { %1687 = vperm.xlu1 %4297, %v5735_v5  }
 0x28f   :  { %4308 = vset.pattern.permute.xlu0 %v7410_v9 }
 0x290   :  { %1812 = vperm.xlu0 %4308, %v5735_v5  }
 0x291   :  { %4298 = vset.pattern.permute.xlu1 %v7420_v37 }
 0x292   :  { %1697 = vperm.xlu1 %4298, %v5735_v5  }
 0x294   :  { %4311 = vset.pattern.permute.xlu0 %v7404_v53 }
 0x295   :  { %1858 = vperm.xlu0 %4311, %v5735_v5  }
 0x296   :  { %4300 = vset.pattern.permute.xlu1 %v7422_v58 }
 0x297   :  { %1717 = vperm.xlu1 %4300, %v5735_v5  }
 0x299   :  { %1851 = vrot.lane.b32.xlu0 %v5483_v3, %s4570_s30 }
 0x29a   :  { %4314 = vset.pattern.permute.xlu0 %v7405_v44 }
 0x29b   :  { %1481 = vrot.lane.b32.xlu1 %v5932_v4, %s4550_s29 }
 0x29c   :  { %4301 = vset.pattern.permute.xlu1 %v7418_v48 }
 0x29d   :  { %1754 = vrot.lane.b32.xlu0 %v5932_v4, %s4528_s26 }
 0x29f   :  { %1727 = vperm.xlu1 %4301, %v5735_v5  }
 0x2a1   :  { %1888 = vperm.xlu0 %4314, %v5735_v5  }
 0x2a3   :  { %4303 = vset.pattern.permute.xlu1 %v7417_v12  ;;  %v7428_v12 = vmov 60  }
 0x2a4   :  { %1762 = vperm.xlu1 %4303, %v5735_v5  }
 0x2a5   :  { %4317 = vset.pattern.permute.xlu0 %v7402_v43 }
 0x2a6   :  { %1918 = vperm.xlu0 %4317, %v5735_v5  }
 0x2a8   :  { %4304 = vset.pattern.permute.xlu1 %v7416_v22 }
 0x2a9   :  { %1772 = vperm.xlu1 %4304, %v5735_v5  }
 0x2aa   :  { %4320 = vset.pattern.permute.xlu0 %v7399_v21  ;;  %v7407_v21 = vmov 55  }
 0x2ab   :  { %1960 = vperm.xlu0 %4320, %v5735_v5  }
 0x2ad   :  { %1756 = vrot.lane.b32.xlu1 %v5483_v3, %s4528_s26  ;;  %v7413_v3 = vmov 44  }
 0x2ae   :  { %4306 = vset.pattern.permute.xlu1 %v7414_v31 }
 0x2af   :  { %4321 = vset.pattern.permute.xlu0 %v7396_v29  ;;  %v6064_v29 = vpop.permute.xlu0 %1508 }
 0x2b0   :  { %1970 = vperm.xlu0 %4321, %v5735_v5  }
 0x2b1   :  { %1792 = vperm.xlu1 %4306, %v5735_v5  }
 0x2b3   :  { %v6073_v43 = vpop.permute.xlu0 %1538 }
 0x2b4   :  { %4324 = vset.pattern.permute.xlu0 %v7395_v20  ;;  %v6062_v20 = vpop.permute.xlu1 %1592 }
 0x2b5   :  { %2000 = vperm.xlu0 %4324, %v5735_v5   ;;  %4307 = vset.pattern.permute.xlu1 %v7413_v3 }
 0x2b6   :  { %1802 = vperm.xlu1 %4307, %v5735_v5  }
 0x2b9   :  { %4327 = vset.pattern.permute.xlu0 %v7394_v18  ;;  %v7403_v18 = vmov 53  }
 0x2ba   :  { %2042 = vperm.xlu0 %4327, %v5735_v5   ;;  %4309 = vset.pattern.permute.xlu1 %v7411_v54 }
 0x2bb   :  { %1822 = vperm.xlu1 %4309, %v5735_v5  }
 0x2be   :  { %2035 = vrot.lane.b32.xlu0 %v4491_v33, %s4583_s16 }
 0x2bf   :  { %4310 = vset.pattern.permute.xlu1 %v7406_v42  ;;  %4330 = vset.pattern.permute.xlu0 %v7398_v50 }
 0x2c0   :  { %1832 = vperm.xlu1 %4310, %v5735_v5  }
 0x2c2   :  { %2072 = vperm.xlu0 %4330, %v5735_v5  }
 0x2c4   :  { %4312 = vset.pattern.permute.xlu1 %v7408_v2  ;;  %v6085_v2 = vpop.permute.xlu0 %1582 }
 0x2c5   :  { %1868 = vperm.xlu1 %4312, %v5735_v5  }
 0x2c6   :  { %4333 = vset.pattern.permute.xlu0 %v7397_v1  ;;  %v7683_v1 = vld [vmem:[#allocation13_spill] sm:$0xff] }
 0x2c7   :  { %2102 = vperm.xlu0 %4333, %v5735_v5   ;;  %v1272_v50 = vshra.s32 %v7683_v1, 3  ;;  %v1271_v53 = vand.u32 7, %v7683_v1 }
 0x2c8   :  { %v6096_v54 = vpop.permute.xlu0 %1612 }
 0x2c9   :  { %4313 = vset.pattern.permute.xlu1 %v7401_v51  ;;  %v6071_v51 = vand.u32 7, %v1272_v50  ;;  %v7412_v50 = vmov 59  }
 0x2ca   :  { %1878 = vperm.xlu1 %4313, %v5735_v5  }
 0x2cb   :  { %4376 = vset.pattern.permute.xlu0 %v7682_v57  ;;  %v1276_v44 = vadd.s32 4294967295, %v6071_v51  ;;  %vm1567_vm11 = vcmp.ge.s32.totalorder %v6071_v51, 0  ;;  %vm1568_vm6 = vcmp.lt.s32.totalorder %v6071_v51, 8 }
 0x2cc   :  { %v6111_v3 = vpop.permute.xlu0 %1642  ;;  %vm6243_vm7 = vmand %vm1567_vm11, %vm1568_vm6 }
 0x2cd   :  { %vm1277_vm10 = vcmp.ge.s32.totalorder %v1276_v44, 0  ;;  %vm1278_vm13 = vcmp.lt.s32.totalorder %v1276_v44, 8 }
 0x2ce   :  { %4315 = vset.pattern.permute.xlu1 %v7400_v26  ;;  %v6069_v26 = vpop.permute.xlu1 %1574  ;;  %vm6089_vm8 = vmand %vm1277_vm10, %vm1278_vm13  ;;  %vm7702_vm10 = vcmask 1039360  }
 0x2cf   :  { %1898 = vperm.xlu1 %4315, %v5735_v5  }
 0x2d2   :  { %v6079_v42 = vpop.permute.xlu1 %1602 }
 0x2d3   :  { %4316 = vset.pattern.permute.xlu1 %v7403_v18  ;;  %v7409_v18 = vmov 56  }
 0x2d4   :  { %1908 = vperm.xlu1 %4316, %v5735_v5  }
 0x2d8   :  { %4318 = vset.pattern.permute.xlu1 %v7407_v21  ;;  %v6083_v21 = vadd.s32 4294967295, %v1271_v53 }
 0x2d9   :  { %1928 = vperm.xlu1 %4318, %v5735_v5  }
 0x2da   :  { %vm1281_vm15 = vcmp.ge.s32.totalorder %v6083_v21, 0 }
 0x2db   :  { %vm6102_vm4 = vmand %vm6089_vm8, %vm1281_vm15 }
 0x2dc   :  { %vm6251_vm9 = vmand %vm6243_vm7, %vm1281_vm15 }
 0x2dd   :  { %4319 = vset.pattern.permute.xlu1 %v7409_v18 }
 0x2de   :  { %1950 = vperm.xlu1 %4319, %v5735_v5  }
 0x2e2   :  { %1943 = vrot.lane.b32.xlu1 %v4491_v33, %s4593_s17 }
 0x2e3   :  { %4322 = vset.pattern.permute.xlu1 %v7412_v50 }
 0x2e6   :  { %1849 = vrot.lane.b32.xlu1 %v5932_v4, %s4570_s30 }
 0x2e7   :  { %v1292_v9 = vpop.permute.xlu1 %1291 }
 0x2e8   :  { %v1294_v33 = vsel %vm1293_vm2, %v6004_v19, %v1292_v9 }
 0x2e9   :  { %v1296_v50 = vsel %vm6102_vm4, %v1294_v33, 0.0  ;;  %v7690_v33 = vld [vmem:[#allocation10_spill] sm:$0xff] }
 0x2ea   :  { %1980 = vperm.xlu1 %4322, %v5735_v5   ;;  %v1305_v31 = vrot.slane %v1296_v50, %v4713_v7  ;;  %v1315_v22 = vrot.slane %v1296_v50, %v7688_v35  ;;  %v1325_v9 = vrot.slane %v1296_v50, %v7689_v56  ;;  %v1335_v58 = vrot.slane %v1296_v50, %v7690_v33 }
 0x2ec   :  { %v1306_v48 = vmul.f32 %v1305_v31, %v5998_v47  ;;  %v1316_v37 = vmul.f32 %v1315_v22, %v5934_v16  ;;  %v1326_v6 = vmul.f32 %v1325_v9, %v6014_v40  ;;  %v7692_v47 = vld [vmem:[#allocation11_spill] sm:$0xff]  ;;  %v1355_v22 = vrot.slane %v1296_v50, %v6123_v28 }
 0x2ed   :  { %v1345_v31 = vrot.slane %v1296_v50, %v7692_v47 }
 0x2ee   :  { %4323 = vset.pattern.permute.xlu1 %v7428_v12  ;;  %v1307_v19 = vadd.f32 %v1306_v48, %v5930_v34  ;;  %v1387_v12 = vpop.permute.xlu0 %1386  ;;  %v6130_v34 = vsub.s32 6, %v7691_v14  ;;  %v1336_v48 = vmul.f32 %v1335_v58, %v5942_v49  ;;  %v1356_v14 = vmul.f32 %v1355_v22, %v6022_v27 }
 0x2ef   :  { %1990 = vperm.xlu1 %4323, %v5735_v5   ;;  %v1346_v40 = vmul.f32 %v1345_v31, %v5948_v61  ;;  %v1375_v58 = vrot.slane %v1296_v50, %v6137_v15 }
 0x2f0   :  { %v1317_v17 = vadd.f32 %v1316_v37, %v1307_v19  ;;  %v1365_v9 = vrot.slane %v1296_v50, %v6130_v34 }
 0x2f2   :  { %v1327_v16 = vadd.f32 %v1326_v6, %v1317_v17  ;;  %v7436_v6 = vmov 63  }
 0x2f3   :  { %4325 = vset.pattern.permute.xlu1 %v7433_v24  ;;  %v1389_v24 = vsel %vm1388_vm5, %v5976_v60, %v1387_v12  ;;  %v1366_v60 = vmul.f32 %v1365_v9, %v5954_v8 }
 0x2f4   :  { %2010 = vperm.xlu1 %4325, %v5735_v5   ;;  %v1337_v37 = vadd.f32 %v1336_v48, %v1327_v16  ;;  %v6148_v49 = vsel %vm6089_vm8, %v1389_v24, 0.0  ;;  %v1376_v48 = vmul.f32 %v1375_v58, %v5962_v36  ;;  %v7443_v36 = vmov 66  }
 0x2f5   :  { %v1399_v12 = vrot.slane %v6148_v49, %v4713_v7  ;;  %v1409_v50 = vrot.slane %v6148_v49, %v7688_v35  ;;  %v7439_v58 = vmov 68  }
 0x2f6   :  { %v1347_v17 = vadd.f32 %v1346_v40, %v1337_v37  ;;  %v1419_v40 = vrot.slane %v6148_v49, %v7689_v56 }
 0x2f7   :  { %v1400_v27 = vmul.f32 %v1399_v12, %v6033_v25  ;;  %v1410_v37 = vmul.f32 %v1409_v50, %v5969_v55  ;;  %v1439_v12 = vrot.slane %v6148_v49, %v7692_v47  ;;  %v7438_v50 = vmov 69  }
 0x2f8   :  { %1941 = vrot.lane.b32.xlu1 %v5932_v4, %s4593_s17  ;;  %v6143_v19 = vpop.permute.xlu1 %1622  ;;  %v1357_v61 = vadd.f32 %v1356_v14, %v1347_v17  ;;  %v1420_v17 = vmul.f32 %v1419_v40, %v5983_v52  ;;  %v1429_v14 = vrot.slane %v6148_v49, %v7690_v33 }
 0x2f9   :  { %4326 = vset.pattern.permute.xlu1 %v7436_v6  ;;  %v7445_v6 = vmov 65  }
 0x2fa   :  { %v1367_v16 = vadd.f32 %v1366_v60, %v1357_v61  ;;  %v1430_v60 = vmul.f32 %v1429_v14, %v6042_v62  ;;  %v6195_v62 = vadd.s32 1, %v1271_v53 }
 0x2fc   :  { %2020 = vperm.xlu1 %4326, %v5735_v5   ;;  %v1377_v24 = vadd.f32 %v1376_v48, %v1367_v16  ;;  %v6185_v16 = vpop.permute.xlu0 %1677  ;;  %v1440_v48 = vmul.f32 %v1439_v12, %v5990_v38  ;;  %v1459_v38 = vrot.slane %v6148_v49, %v6130_v34  ;;  %vm1475_vm1 = vcmp.lt.s32.totalorder %v6195_v62, 8 }
 0x2fd   :  { %v6156_v31 = vpop.permute.xlu1 %1632  ;;  %vm6217_vm12 = vmand %vm6089_vm8, %vm1475_vm1 }
 0x2fe   :  { %v1401_v22 = vadd.f32 %v1400_v27, %v1377_v24  ;;  %v1449_v24 = vrot.slane %v6148_v49, %v6123_v28  ;;  %v1460_v53 = vmul.f32 %v1459_v38, %v6051_v46  ;;  %vm6344_vm0 = vmand %vm6243_vm7, %vm1475_vm1 }
 0x300   :  { %4328 = vset.pattern.permute.xlu1 %v7445_v6  ;;  %v1411_v9 = vadd.f32 %v1410_v37, %v1401_v22  ;;  %v1450_v37 = vmul.f32 %v1449_v24, %v5996_v23  ;;  %v6201_v40 = vpop.permute.xlu0 %1707  ;;  %v1469_v23 = vrot.slane %v6148_v49, %v6137_v15 }
 0x301   :  { %2052 = vperm.xlu1 %4328, %v5735_v5  }
 0x302   :  { %v6164_v8 = vpop.permute.xlu1 %1652  ;;  %v1421_v55 = vadd.f32 %v1420_v17, %v1411_v9  ;;  %v7437_v17 = vmov 71   ;;  %v1470_v49 = vmul.f32 %v1469_v23, %v6008_v10 }
 0x304   :  { %v1431_v52 = vadd.f32 %v1430_v60, %v1421_v55 }
 0x305   :  { %4329 = vset.pattern.permute.xlu1 %v7443_v36 }
 0x306   :  { %2062 = vperm.xlu1 %4329, %v5735_v5   ;;  %v1441_v22 = vadd.f32 %v1440_v48, %v1431_v52  ;;  %v6223_v48 = vpop.permute.xlu0 %1737 }
 0x307   :  { %v6171_v25 = vpop.permute.xlu1 %1667 }
 0x308   :  { %v1451_v14 = vadd.f32 %v1450_v37, %v1441_v22 }
 0x30a   :  { %2033 = vrot.lane.b32.xlu1 %v5932_v4, %s4583_s16  ;;  %v1461_v12 = vadd.f32 %v1460_v53, %v1451_v14  ;;  %v1577_v23 = vpop.permute.xlu0 %1576 }
 0x30b   :  { %4331 = vset.pattern.permute.xlu1 %v7439_v58 }
 0x30c   :  { %v6179_v61 = vpop.permute.xlu1 %1687  ;;  %v1471_v38 = vadd.f32 %v1470_v49, %v1461_v12  ;;  %v1578_v49 = vsel %vm7699_vm14, %v6069_v26, %v1577_v23  ;;  %vm1853_vm14 = vcmask 990208  }
 0x30e   :  { %2082 = vperm.xlu1 %4331, %v5735_v5  }
 0x311   :  { %v6190_v27 = vpop.permute.xlu1 %1697 }
 0x312   :  { %4332 = vset.pattern.permute.xlu1 %v7438_v50 }
 0x313   :  { %2092 = vperm.xlu1 %4332, %v5735_v5   ;;  %v4492_v5 = vld [vmem:[%s7265_s3] sm:$0xff] }
 0x316   :  { %v6203_v9 = vpop.permute.xlu1 %1717 }
 0x317   :  { %4334 = vset.pattern.permute.xlu1 %v7437_v17 }
 0x318   :  { %2112 = vperm.xlu1 %4334, %v4492_v5  }
 0x31a   :  { %v1482_v60 = vpop.permute.xlu1 %1481 }
 0x31b   :  { %v1484_v52 = vsel %vm1483_vm3, %v6025_v45, %v1482_v60 }
 0x31c   :  { %v1486_v46 = vsel %vm6217_vm12, %v1484_v52, 0.0  ;;  %4375 = vset.pattern.permute.xlu1 %v7682_v57 }
 0x31d   :  { %v1494_v24 = vrot.slane %v1486_v46, %v4713_v7  ;;  %v1504_v22 = vrot.slane %v1486_v46, %v7688_v35  ;;  %v1514_v45 = vrot.slane %v1486_v46, %v7689_v56  ;;  %v1524_v10 = vrot.slane %v1486_v46, %v7690_v33 }
 0x31e   :  { %v6231_v37 = vpop.permute.xlu1 %1727  ;;  %v1534_v17 = vrot.slane %v1486_v46, %v7692_v47  ;;  %v1564_v26 = vrot.slane %v1486_v46, %v6137_v15 }
 0x31f   :  { %v1495_v14 = vmul.f32 %v1494_v24, %v6016_v30  ;;  %v1505_v53 = vmul.f32 %v1504_v22, %v6058_v63  ;;  %v1515_v52 = vmul.f32 %v1514_v45, %v6064_v29  ;;  %v1525_v24 = vmul.f32 %v1524_v10, %v6030_v13 }
 0x320   :  { %v1544_v22 = vrot.slane %v1486_v46, %v6123_v28  ;;  %v1554_v45 = vrot.slane %v1486_v46, %v6130_v34 }
 0x321   :  { %v1496_v5 = vadd.f32 %v1495_v14, %v1471_v38  ;;  %v1535_v14 = vmul.f32 %v1534_v17, %v6039_v32 }
 0x322   :  { %v1545_v58 = vmul.f32 %v1544_v22, %v6073_v43  ;;  %v1555_v10 = vmul.f32 %v1554_v45, %v6048_v0  ;;  %v2122_v0 = vld [vmem:[%s7272_s10] sm:$0xff] }
 0x323   :  { %v1506_v60 = vadd.f32 %v1505_v53, %v1496_v5  ;;  %v6241_v12 = vpop.permute.xlu1 %1762  ;;  %v1580_v5 = vsel %vm6251_vm9, %v1578_v49, 0.0  ;;  %v1565_v49 = vmul.f32 %v1564_v26, %v6056_v39 }
 0x324   :  { %v1588_v23 = vrot.slane %v1580_v5, %v4713_v7  ;;  %v1598_v17 = vrot.slane %v1580_v5, %v7688_v35  ;;  %v1608_v43 = vrot.slane %v1580_v5, %v7689_v56  ;;  %v1618_v22 = vrot.slane %v1580_v5, %v7690_v33 }
 0x325   :  { %v1516_v29 = vadd.f32 %v1515_v52, %v1506_v60  ;;  %v6269_v60 = vpop.permute.xlu0 %1782  ;;  %v1628_v26 = vrot.slane %v1580_v5, %v7692_v47 }
 0x326   :  { %v1609_v45 = vmul.f32 %v1608_v43, %v6079_v42  ;;  %v2126_v42 = vld [vmem:[%s7272_s10 + $0x20] sm:$0xff]  ;;  %v2127_v43 = vld [vmem:[%s7272_s10 + $0x28] sm:$0xff] }
 0x327   :  { %v1526_v38 = vadd.f32 %v1525_v24, %v1516_v29  ;;  %v1589_v29 = vmul.f32 %v1588_v23, %v6085_v2  ;;  %v2124_v2 = vld [vmem:[%s7272_s10 + $0x10] sm:$0xff] }
 0x328   :  { %v6263_v53 = vpop.permute.xlu1 %1772 }
 0x329   :  { %v1536_v50 = vadd.f32 %v1535_v14, %v1526_v38  ;;  %v6287_v38 = vpop.permute.xlu0 %1812  ;;  %v2125_v14 = vld [vmem:[%s7272_s10 + $0x18] sm:$0xff] }
 0x32b   :  { %v1546_v13 = vadd.f32 %v1545_v58, %v1536_v50  ;;  %v2123_v58 = vld [vmem:[%s7272_s10 + $0x8] sm:$0xff]  ;;  %v1599_v50 = vmul.f32 %v1598_v17, %v6062_v20  ;;  %v1638_v17 = vrot.slane %v1580_v5, %v6123_v28 }
 0x32c   :  { %v6271_v32 = vpop.permute.xlu1 %1756  ;;  %v4043_v20 = vpack.c.bf16 %v2123_v58, %v2122_v0 }
 0x32d   :  { %v1556_v52 = vadd.f32 %v1555_v10, %v1546_v13  ;;  %v7441_v13 = vmov 0.0|0.0   ;;  %v1619_v10 = vmul.f32 %v1618_v22, %v6096_v54  ;;  %v1648_v54 = vrot.slane %v1580_v5, %v6130_v34  ;;  %v6312_v58 = vpop.permute.xlu0 %1858 }
 0x32e   :  { %4042 = vmatprep.subr.bf16.mxu0 %v7441_v13  ;;  %4066 = vmatprep.subr.bf16.mxu1 %v7441_v13  ;;  %v1658_v22 = vrot.slane %v1580_v5, %v6137_v15 }
 0x32f   :  { %v1566_v24 = vadd.f32 %v1565_v49, %v1556_v52  ;;  %4044 = vmatpush3.bf16.msra.mxu0 %v4043_v20 }
 0x330   :  { %v6277_v46 = vpop.permute.xlu1 %1792  ;;  %4045 = vmatprep.subr.bf16.mxu0 %v7441_v13 }
 0x331   :  { %v1590_v39 = vadd.f32 %v1589_v29, %v1566_v24  ;;  %v4046_v29 = vpack.c.bf16 %v2125_v14, %v2124_v2  ;;  %v1629_v24 = vmul.f32 %v1628_v26, %v6143_v19  ;;  %v4049_v2 = vpack.c.bf16 %v2127_v43, %v2126_v42  ;;  %v6325_v5 = vpop.permute.xlu0 %1851 }
 0x332   :  { %v1665_v14 = vsel %vm6243_vm7, %v5932_v4, 0.0  ;;  %v1649_v19 = vmul.f32 %v1648_v54, %v6111_v3 }
 0x333   :  { %v1600_v23 = vadd.f32 %v1599_v50, %v1590_v39  ;;  %v1639_v50 = vmul.f32 %v1638_v17, %v6156_v31  ;;  %4047 = vmatpush3.bf16.msra.mxu0 %v4046_v29  ;;  %v1659_v31 = vmul.f32 %v1658_v22, %v6164_v8  ;;  %v1693_v29 = vrot.slane %v1665_v14, %v7689_v56 }
 0x334   :  { %4048 = vmatprep.subr.bf16.mxu0 %v7441_v13  ;;  %v1703_v8 = vrot.slane %v1665_v14, %v7690_v33 }
 0x335   :  { %v1610_v52 = vadd.f32 %v1609_v45, %v1600_v23  ;;  %v6301_v49 = vpop.permute.xlu1 %1802  ;;  %v1673_v23 = vrot.slane %v1665_v14, %v4713_v7  ;;  %v1694_v43 = vmul.f32 %v1693_v29, %v6179_v61  ;;  %v1755_v54 = vpop.permute.xlu0 %1754 }
 0x336   :  { %v1758_v61 = vsel %vm7702_vm10, %v1755_v54, %v6271_v32 }
 0x337   :  { %v1620_v0 = vadd.f32 %v1619_v10, %v1610_v52  ;;  %4050 = vmatpush3.bf16.msra.mxu0 %v4049_v2  ;;  %v1683_v10 = vrot.slane %v1665_v14, %v7688_v35  ;;  %v1674_v4 = vmul.f32 %v1673_v23, %v6171_v25  ;;  %v1704_v25 = vmul.f32 %v1703_v8, %v6190_v27 }
 0x338   :  { %4051 = vmatprep.subr.bf16.mxu0 %v7441_v13  ;;  %v1723_v2 = vrot.slane %v1665_v14, %v6123_v28  ;;  %v1760_v27 = vsel %vm6344_vm0, %v1758_v61, 0.0 }
 0x339   :  { %v1630_v39 = vadd.f32 %v1629_v24, %v1620_v0  ;;  %v1684_v3 = vmul.f32 %v1683_v10, %v6185_v16  ;;  %v1743_v10 = vrot.slane %v1665_v14, %v6137_v15  ;;  %v1768_v32 = vrot.slane %v1760_v27, %v4713_v7 }
 0x33a   :  { %v6319_v45 = vpop.permute.xlu1 %1822  ;;  %v1778_v29 = vrot.slane %v1760_v27, %v7688_v35  ;;  %v1788_v8 = vrot.slane %v1760_v27, %v7689_v56 }
 0x33b   :  { %v1640_v26 = vadd.f32 %v1639_v50, %v1630_v39  ;;  %v1713_v50 = vrot.slane %v1665_v14, %v7692_v47 }
 0x33d   :  { %v1650_v20 = vadd.f32 %v1649_v19, %v1640_v26  ;;  %v1714_v39 = vmul.f32 %v1713_v50, %v6201_v40  ;;  %v1724_v26 = vmul.f32 %v1723_v2, %v6203_v9  ;;  %v1744_v40 = vmul.f32 %v1743_v10, %v6223_v48 }
 0x33e   :  { %v1769_v9 = vmul.f32 %v1768_v32, %v6241_v12  ;;  %v1808_v2 = vrot.slane %v1760_v27, %v7692_v47  ;;  %v1841_v12 = vadd.s32 1, %v6071_v51 }
 0x33f   :  { %v1660_v17 = vadd.f32 %v1659_v31, %v1650_v20  ;;  %v6330_v52 = vpop.permute.xlu1 %1832  ;;  %v1733_v20 = vrot.slane %v1665_v14, %v6130_v34 }
 0x340   :  { %vm1842_vm13 = vcmp.ge.s32.totalorder %v1841_v12, 0  ;;  %vm1843_vm11 = vcmp.lt.s32.totalorder %v1841_v12, 8 }
 0x341   :  { %v1675_v42 = vadd.f32 %v1674_v4, %v1660_v17  ;;  %v1734_v17 = vmul.f32 %v1733_v20, %v6231_v37  ;;  %v1789_v37 = vmul.f32 %v1788_v8, %v6269_v60  ;;  %vm6372_vm6 = vmand %vm1842_vm13, %vm1843_vm11  ;;  %vm2037_vm13 = vcmask 973824  }
 0x342   :  { %vm6382_vm10 = vmand %vm6372_vm6, %vm1281_vm15  ;;  %vm1945_vm15 = vcmask 982016  }
 0x343   :  { %v1685_v24 = vadd.f32 %v1684_v3, %v1675_v42  ;;  %vm6417_vm11 = vmand %vm6372_vm6, %vm1475_vm1  ;;  %vm4604_vm1 = vmmov 0  }
 0x344   :  { %v6336_v0 = vpop.permute.xlu1 %1868 }
 0x345   :  { %v1695_v22 = vadd.f32 %v1694_v43, %v1685_v24  ;;  %v1779_v24 = vmul.f32 %v1778_v29, %v6263_v53  ;;  %v1818_v53 = vrot.slane %v1760_v27, %v6123_v28 }
 0x347   :  { %v1705_v19 = vadd.f32 %v1704_v25, %v1695_v22  ;;  %v1798_v25 = vrot.slane %v1760_v27, %v7690_v33  ;;  %v1819_v60 = vmul.f32 %v1818_v53, %v6287_v38  ;;  %v1889_v38 = vpop.permute.xlu0 %1888 }
 0x349   :  { %v1715_v23 = vadd.f32 %v1714_v39, %v1705_v19  ;;  %v1879_v31 = vpop.permute.xlu1 %1878  ;;  %v1799_v48 = vmul.f32 %v1798_v25, %v6277_v46  ;;  %v1809_v19 = vmul.f32 %v1808_v2, %v6301_v49  ;;  %v1828_v46 = vrot.slane %v1760_v27, %v6130_v34 }
 0x34b   :  { %v1725_v4 = vadd.f32 %v1724_v26, %v1715_v23  ;;  %v1829_v51 = vmul.f32 %v1828_v46, %v6319_v45 }
 0x34d   :  { %v1735_v3 = vadd.f32 %v1734_v17, %v1725_v4 }
 0x34e   :  { %v1899_v42 = vpop.permute.xlu1 %1898 }
 0x34f   :  { %v1745_v43 = vadd.f32 %v1744_v40, %v1735_v3  ;;  %v1838_v40 = vrot.slane %v1760_v27, %v6137_v15 }
 0x351   :  { %v1770_v54 = vadd.f32 %v1769_v9, %v1745_v43  ;;  %v1839_v45 = vmul.f32 %v1838_v40, %v6330_v52 }
 0x353   :  { %v1780_v14 = vadd.f32 %v1779_v24, %v1770_v54  ;;  %v1909_v50 = vpop.permute.xlu1 %1908 }
 0x355   :  { %v1790_v22 = vadd.f32 %v1789_v37, %v1780_v14  ;;  %v1919_v14 = vpop.permute.xlu0 %1918 }
 0x357   :  { %v1800_v39 = vadd.f32 %v1799_v48, %v1790_v22 }
 0x358   :  { %v1929_v61 = vpop.permute.xlu1 %1928 }
 0x359   :  { %v1810_v23 = vadd.f32 %v1809_v19, %v1800_v39  ;;  %v1961_v19 = vpop.permute.xlu0 %1960 }
 0x35b   :  { %v1820_v4 = vadd.f32 %v1819_v60, %v1810_v23 }
 0x35d   :  { %v1951_v26 = vpop.permute.xlu1 %1950  ;;  %v1830_v32 = vadd.f32 %v1829_v51, %v1820_v4  ;;  %v1971_v51 = vpop.permute.xlu0 %1970 }
 0x35f   :  { %v1840_v8 = vadd.f32 %v1839_v45, %v1830_v32 }
 0x361   :  { %v1944_v20 = vpop.permute.xlu1 %1943 }
 0x365   :  { %v1850_v17 = vpop.permute.xlu1 %1849 }
 0x366   :  { %v1854_v3 = vsel %vm1853_vm14, %v1850_v17, %v6325_v5 }
 0x367   :  { %v1856_v29 = vsel %vm6382_vm10, %v1854_v3, 0.0 }
 0x368   :  { %v1864_v21 = vrot.slane %v1856_v29, %v4713_v7  ;;  %v1874_v43 = vrot.slane %v1856_v29, %v7688_v35  ;;  %v1884_v54 = vrot.slane %v1856_v29, %v7689_v56  ;;  %v1894_v5 = vrot.slane %v1856_v29, %v7690_v33 }
 0x369   :  { %v1981_v9 = vpop.permute.xlu1 %1980  ;;  %v1904_v52 = vrot.slane %v1856_v29, %v7692_v47  ;;  %v1914_v12 = vrot.slane %v1856_v29, %v6123_v28  ;;  %v1924_v23 = vrot.slane %v1856_v29, %v6130_v34 }
 0x36a   :  { %v1865_v24 = vmul.f32 %v1864_v21, %v6312_v58  ;;  %v1875_v37 = vmul.f32 %v1874_v43, %v6336_v0  ;;  %v1885_v22 = vmul.f32 %v1884_v54, %v1879_v31  ;;  %v1895_v2 = vmul.f32 %v1894_v5, %v1889_v38 }
 0x36b   :  { %v1905_v58 = vmul.f32 %v1904_v52, %v1899_v42  ;;  %v1915_v4 = vmul.f32 %v1914_v12, %v1909_v50  ;;  %v1925_v17 = vmul.f32 %v1924_v23, %v1919_v14  ;;  %v1934_v31 = vrot.slane %v1856_v29, %v6137_v15 }
 0x36c   :  { %v1866_v27 = vadd.f32 %v1865_v24, %v1840_v8  ;;  %v2001_v8 = vpop.permute.xlu0 %2000 }
 0x36d   :  { %v1935_v45 = vmul.f32 %v1934_v31, %v1929_v61 }
 0x36e   :  { %v1876_v25 = vadd.f32 %v1875_v37, %v1866_v27  ;;  %v1991_v48 = vpop.permute.xlu1 %1990 }
 0x370   :  { %v1886_v39 = vadd.f32 %v1885_v22, %v1876_v25  ;;  %v2043_v22 = vpop.permute.xlu0 %2042 }
 0x372   :  { %v1896_v53 = vadd.f32 %v1895_v2, %v1886_v39 }
 0x373   :  { %v2011_v60 = vpop.permute.xlu1 %2010 }
 0x374   :  { %v1906_v46 = vadd.f32 %v1905_v58, %v1896_v53 }
 0x376   :  { %v1916_v0 = vadd.f32 %v1915_v4, %v1906_v46 }
 0x377   :  { %v1942_v32 = vpop.permute.xlu1 %1941 }
 0x378   :  { %v1946_v40 = vsel %vm1945_vm15, %v1942_v32, %v1944_v20  ;;  %v1926_v3 = vadd.f32 %v1925_v17, %v1916_v0 }
 0x379   :  { %v1948_v38 = vsel %vm6372_vm6, %v1946_v40, 0.0 }
 0x37a   :  { %v1956_v42 = vrot.slane %v1948_v38, %v4713_v7  ;;  %v1966_v21 = vrot.slane %v1948_v38, %v7688_v35  ;;  %v1976_v24 = vrot.slane %v1948_v38, %v7689_v56  ;;  %v1936_v54 = vadd.f32 %v1935_v45, %v1926_v3 }
 0x37b   :  { %v2021_v43 = vpop.permute.xlu1 %2020  ;;  %v1986_v29 = vrot.slane %v1948_v38, %v7690_v33  ;;  %v1996_v5 = vrot.slane %v1948_v38, %v7692_v47  ;;  %v2006_v61 = vrot.slane %v1948_v38, %v6123_v28  ;;  %v2026_v23 = vrot.slane %v1948_v38, %v6137_v15 }
 0x37c   :  { %v1957_v50 = vmul.f32 %v1956_v42, %v1951_v26  ;;  %v1967_v14 = vmul.f32 %v1966_v21, %v1961_v19  ;;  %v1977_v37 = vmul.f32 %v1976_v24, %v1971_v51  ;;  %v2016_v26 = vrot.slane %v1948_v38, %v6130_v34 }
 0x37d   :  { %v1987_v52 = vmul.f32 %v1986_v29, %v1981_v9  ;;  %v1997_v2 = vmul.f32 %v1996_v5, %v1991_v48  ;;  %v2007_v58 = vmul.f32 %v2006_v61, %v2001_v8  ;;  %v2036_v9 = vpop.permute.xlu0 %2035  ;;  %v2027_v32 = vmul.f32 %v2026_v23, %v2021_v43 }
 0x37e   :  { %v1958_v27 = vadd.f32 %v1957_v50, %v1936_v54  ;;  %v2017_v4 = vmul.f32 %v2016_v26, %v2011_v60 }
 0x380   :  { %v2053_v20 = vpop.permute.xlu1 %2052  ;;  %v1968_v25 = vadd.f32 %v1967_v14, %v1958_v27 }
 0x381   :  { %v2073_v8 = vpop.permute.xlu0 %2072 }
 0x382   :  { %v1978_v39 = vadd.f32 %v1977_v37, %v1968_v25 }
 0x384   :  { %v1988_v12 = vadd.f32 %v1987_v52, %v1978_v39 }
 0x385   :  { %v2063_v53 = vpop.permute.xlu1 %2062  ;;  %v2103_v52 = vpop.permute.xlu0 %2102 }
 0x386   :  { %v1998_v19 = vadd.f32 %v1997_v2, %v1988_v12 }
 0x388   :  { %v2008_v48 = vadd.f32 %v2007_v58, %v1998_v19  ;;  %v2129_v58 = vld [vmem:[%s7272_s10 + $0x38] sm:$0xff] }
 0x389   :  { %v2034_v0 = vpop.permute.xlu1 %2033 }
 0x38a   :  { %v2038_v51 = vsel %vm2037_vm13, %v2034_v0, %v2036_v9  ;;  %v2018_v17 = vadd.f32 %v2017_v4, %v2008_v48  ;;  %v6438_v48 = vld [vmem:[#allocation2] sm:$0xff] }
 0x38b   :  { %v2040_v31 = vsel %vm6417_vm11, %v2038_v51, 0.0  ;;  %v2130_v51 = vld [vmem:[%s7272_s10 + $0x40] sm:$0xff] }
 0x38c   :  { %v2048_v40 = vrot.slane %v2040_v31, %v4713_v7  ;;  %v2058_v62 = vrot.slane %v2040_v31, %v7688_v35  ;;  %v2028_v3 = vadd.f32 %v2027_v32, %v2018_v17  ;;  %v2068_v45 = vrot.slane %v2040_v31, %v7689_v56  ;;  %v2131_v17 = vld [vmem:[%s7272_s10 + $0x48] sm:$0xff] }
 0x38d   :  { %v2083_v38 = vpop.permute.xlu1 %2082  ;;  %v2078_v60 = vrot.slane %v2040_v31, %v7690_v33  ;;  %v2088_v54 = vrot.slane %v2040_v31, %v7692_v47  ;;  %v2108_v37 = vrot.slane %v2040_v31, %v6130_v34  ;;  %v2118_v12 = vrot.slane %v2040_v31, %v6137_v15 }
 0x38e   :  { %v2049_v42 = vmul.f32 %v2048_v40, %v2043_v22  ;;  %v2059_v21 = vmul.f32 %v2058_v62, %v2053_v20  ;;  %v2069_v24 = vmul.f32 %v2068_v45, %v2063_v53  ;;  %v2098_v22 = vrot.slane %v2040_v31, %v6123_v28  ;;  %v2128_v53 = vld [vmem:[%s7272_s10 + $0x30] sm:$0xff]  ;;  %v2133_v62 = vld [vmem:[%s7272_s10 + $0x58] sm:$0xff] }
 0x38f   :  { %v2079_v43 = vmul.f32 %v2078_v60, %v2073_v8  ;;  %v2089_v25 = vmul.f32 %v2088_v54, %v2083_v38  ;;  %v2109_v2 = vmul.f32 %v2108_v37, %v2103_v52  ;;  %v4052_v9 = vpack.c.bf16 %v2129_v58, %v2128_v53  ;;  %v2132_v40 = vld [vmem:[%s7272_s10 + $0x50] sm:$0xff] }
 0x390   :  { %v2050_v50 = vadd.f32 %v2049_v42, %v2028_v3  ;;  %v4055_v32 = vpack.c.bf16 %v2131_v17, %v2130_v51  ;;  %v4058_v38 = vpack.c.bf16 %v2133_v62, %v2132_v40  ;;  %v2134_v3 = vld [vmem:[%s7272_s10 + $0x60] sm:$0xff]  ;;  %v2135_v42 = vld [vmem:[%s7272_s10 + $0x68] sm:$0xff]  ;;  %v2177_v45 = vld [vmem:[#allocation2 + $0x10] sm:$0xff]  ;;  %v7440_v60 = vmov 0.0  }
 0x391   :  { %4053 = vmatpush3.bf16.msra.mxu0 %v4052_v9  ;;  %3957 = vmatprep.mubr.msk.f32.mxu0 %vm4604_vm1, %v7440_v60  ;;  %v2136_v8 = vld [vmem:[%s7272_s10 + $0x70] sm:$0xff]  ;;  %v7711_v37 = vmov 2   ;;  %v7715_v52 = vmov 5   ;;  %v7722_v53 = vmov 22   ;;  %v7723_v58 = vmov 25  }
 0x392   :  { %v2060_v14 = vadd.f32 %v2059_v21, %v2050_v50  ;;  %v2093_v29 = vpop.permute.xlu1 %2092  ;;  %4054 = vmatprep.subr.bf16.mxu0 %v7441_v13  ;;  %v4061_v21 = vpack.c.bf16 %v2135_v42, %v2134_v3  ;;  %3968 = vmatprep.mubr.msk.f32.mxu1 %vm4604_vm1, %v7440_v60  ;;  %v7726_v9 = vmov 15   ;;  %v7728_v51 = vmov 18  }
 0x393   :  { %v2099_v20 = vmul.f32 %v2098_v22, %v2093_v29  ;;  %v2282_v29 = vld [vmem:[%s7268_s6] sm:$0xf]  ;;  %v7714_v22 = vmov 10   ;;  %s4608_s6 = smov 3   ;;  %v7729_v17 = vmov 20   ;;  %v7732_v40 = vmov 24  }
 0x394   :  { %v2070_v27 = vadd.f32 %v2069_v24, %v2060_v14  ;;  %v2137_v24 = vld [vmem:[%s7272_s10 + $0x78] sm:$0xff]  ;;  %v6489_v14 = vld [vmem:[%s7267_s5] sm:$0xf]  ;;  %s4607_s5 = smov 4   ;;  %v7733_v62 = vmov 27  }
 0x395   :  { %4056 = vmatpush3.bf16.msra.mxu0 %v4055_v32  ;;  %v4064_v54 = vpack.c.bf16 %v2137_v24, %v2136_v8  ;;  %v7731_v32 = vmov 23  }
 0x396   :  { %v2080_v5 = vadd.f32 %v2079_v43, %v2070_v27  ;;  %4057 = vmatprep.subr.bf16.mxu0 %v7441_v13  ;;  %v7709_v43 = vmov 3   ;;  %v7710_v27 = vmov 6  }
 0x397   :  { %v2113_v39 = vpop.permute.xlu1 %2112 }
 0x398   :  { %v2090_v61 = vadd.f32 %v2089_v25, %v2080_v5  ;;  %v2119_v23 = vmul.f32 %v2118_v12, %v2113_v39  ;;  %v7712_v5 = vmov 9   ;;  %v7713_v25 = vmov 4  }
 0x399   :  { %4059 = vmatpush3.bf16.msra.mxu0 %v4058_v38  ;;  %v7718_v39 = vmov 16   ;;  %v7721_v12 = vmov 11  }
 0x39a   :  { %v2100_v26 = vadd.f32 %v2099_v20, %v2090_v61  ;;  %4060 = vmatprep.subr.bf16.mxu0 %v7441_v13  ;;  %v7716_v61 = vmov 13   ;;  %v7717_v20 = vmov 7  }
 0x39c   :  { %v2110_v19 = vadd.f32 %v2109_v2, %v2100_v26  ;;  %v7719_v2 = vmov 8   ;;  %v7720_v26 = vmov 19  }
 0x39d   :  { %4062 = vmatpush3.bf16.msra.mxu0 %v4061_v21 }
 0x39e   :  { %v2120_v4 = vadd.f32 %v2119_v23, %v2110_v19  ;;  %4063 = vmatprep.subr.bf16.mxu0 %v7441_v13  ;;  %v7724_v19 = vmov 12   ;;  %v7725_v23 = vmov 14  }
 0x3a0   :  { %v6441_v0 = vmax.f32 %v2120_v4, 0.0  ;;  %v7727_v4 = vmov 17  }
 0x3a1   :  { %4065 = vmatpush3.bf16.msra.mxu0 %v4064_v54 }
 0x3a2   :  { %2138 = vst [vmem:[#allocation2 + $0x8] sm:$0xff] %v6441_v0  ;;  %v4340_v31 = vpack.i.bf16 %v6441_v0, %v6438_v48  ;;  %v4360_v50 = vpack.i.bf16 %v2177_v45, %v6441_v0  ;;  %v2175_v55 = vsel %vm6243_vm7, %v6441_v0, 0.0 }
 0x3a4   :  { %4341 = vrot.lane.b32.xlu0 %v4340_v31, %s4540_s4  ;;  %4336 = vrot.lane.b32.xlu1 %v4340_v31, %s4534_s22 }
 0x3a8   :  { %4351 = vrot.lane.b32.xlu0 %v4340_v31, %s4525_s23  ;;  %4346 = vrot.lane.b32.xlu1 %v4340_v31, %s4550_s29  ;;  %v7730_v31 = vmov 21  }
 0x3ac   :  { %4361 = vrot.lane.b32.xlu0 %v4360_v50, %s4570_s30  ;;  %4356 = vrot.lane.b32.xlu1 %v4360_v50, %s4528_s26  ;;  %s4606_s30 = smov 5  }
 0x3b0   :  { %4371 = vrot.lane.b32.xlu0 %v4360_v50, %s4583_s16  ;;  %4366 = vrot.lane.b32.xlu1 %v4360_v50, %s4593_s17  ;;  %s4609_s16 = smov 125   ;;  %s4610_s17 = smov 124  }
 0x3b4   :  { %2318 = vperm.xlu1 %4375, %v6489_v14   ;;  %2285 = vperm.xlu0 %4376, %v2282_v29  }
 0x3b8   :  { %4377 = vset.pattern.permute.xlu1 %v7605_v41  ;;  %4379 = vset.pattern.permute.xlu0 %v7709_v43 }
 0x3b9   :  { %2328 = vperm.xlu1 %4377, %v6489_v14   ;;  %2348 = vperm.xlu0 %4379, %v6489_v14  }
 0x3bd   :  { %2308 = vrot.lane.b32.xlu1 %v6438_v48, %s4606_s30  ;;  %4382 = vset.pattern.permute.xlu0 %v7710_v27 }
 0x3be   :  { %4378 = vset.pattern.permute.xlu1 %v7711_v37  ;;  %2378 = vperm.xlu0 %4382, %v6489_v14  }
 0x3c1   :  { %2338 = vperm.xlu1 %4378, %v6489_v14  }
 0x3c2   :  { %4385 = vset.pattern.permute.xlu0 %v7712_v5 }
 0x3c3   :  { %2422 = vperm.xlu0 %4385, %v6489_v14  }
 0x3c5   :  { %4380 = vset.pattern.permute.xlu1 %v7713_v25 }
 0x3c6   :  { %2358 = vperm.xlu1 %4380, %v6489_v14  }
 0x3c7   :  { %4386 = vset.pattern.permute.xlu0 %v7714_v22 }
 0x3c8   :  { %2432 = vperm.xlu0 %4386, %v6489_v14  }
 0x3ca   :  { %4381 = vset.pattern.permute.xlu1 %v7715_v52 }
 0x3cb   :  { %2368 = vperm.xlu1 %4381, %v6489_v14  }
 0x3cc   :  { %4389 = vset.pattern.permute.xlu0 %v7716_v61 }
 0x3cd   :  { %2462 = vperm.xlu0 %4389, %v6489_v14  }
 0x3cf   :  { %4383 = vset.pattern.permute.xlu1 %v7717_v20 }
 0x3d0   :  { %2388 = vperm.xlu1 %4383, %v6489_v14  }
 0x3d1   :  { %4392 = vset.pattern.permute.xlu0 %v7718_v39  ;;  %v7773_v39 = vmov 61  }
 0x3d2   :  { %2507 = vperm.xlu0 %4392, %v6489_v14  }
 0x3d4   :  { %4384 = vset.pattern.permute.xlu1 %v7719_v2 }
 0x3d5   :  { %2412 = vperm.xlu1 %4384, %v6489_v14  }
 0x3d6   :  { %4395 = vset.pattern.permute.xlu0 %v7720_v26 }
 0x3d7   :  { %2537 = vperm.xlu0 %4395, %v6489_v14  }
 0x3d9   :  { %2403 = vrot.lane.b32.xlu1 %v6438_v48, %s4607_s5 }
 0x3da   :  { %4387 = vset.pattern.permute.xlu1 %v7721_v12 }
 0x3db   :  { %4398 = vset.pattern.permute.xlu0 %v7722_v53 }
 0x3dc   :  { %2567 = vperm.xlu0 %4398, %v6489_v14  }
 0x3dd   :  { %2442 = vperm.xlu1 %4387, %v6489_v14  }
 0x3e0   :  { %4401 = vset.pattern.permute.xlu0 %v7723_v58  ;;  %v7769_v58 = vmov 56  }
 0x3e1   :  { %4388 = vset.pattern.permute.xlu1 %v7724_v19  ;;  %v7777_v19 = vmov 64  }
 0x3e2   :  { %2452 = vperm.xlu1 %4388, %v6489_v14  }
 0x3e6   :  { %4390 = vset.pattern.permute.xlu1 %v7725_v23 }
 0x3e7   :  { %2472 = vperm.xlu1 %4390, %v6489_v14  }
 0x3eb   :  { %4391 = vset.pattern.permute.xlu1 %v7726_v9 }
 0x3ec   :  { %2482 = vperm.xlu1 %4391, %v6489_v14  }
 0x3f0   :  { %4393 = vset.pattern.permute.xlu1 %v7727_v4 }
 0x3f1   :  { %2517 = vperm.xlu1 %4393, %v6489_v14  }
 0x3f5   :  { %2498 = vrot.lane.b32.xlu1 %v6438_v48, %s4608_s6 }
 0x3f6   :  { %4394 = vset.pattern.permute.xlu1 %v7728_v51 }
 0x3f9   :  { %2527 = vperm.xlu1 %4394, %v6489_v14  }
 0x3fd   :  { %4396 = vset.pattern.permute.xlu1 %v7729_v17 }
 0x3fe   :  { %2547 = vperm.xlu1 %4396, %v6489_v14  }
 0x402   :  { %4397 = vset.pattern.permute.xlu1 %v7730_v31 }
 0x403   :  { %2557 = vperm.xlu1 %4397, %v6489_v14  }
 0x407   :  { %4399 = vset.pattern.permute.xlu1 %v7731_v32  ;;  %v7772_v32 = vmov 60  }
 0x408   :  { %2577 = vperm.xlu1 %4399, %v6489_v14  }
 0x40c   :  { %4400 = vset.pattern.permute.xlu1 %v7732_v40 }
 0x40d   :  { %2601 = vperm.xlu1 %4400, %v6489_v14  }
 0x411   :  { %2593 = vrot.lane.b32.xlu1 %v6438_v48, %s4525_s23 }
 0x412   :  { %4403 = vset.pattern.permute.xlu1 %v7733_v62 }
 0x415   :  { %2631 = vperm.xlu1 %4403, %v6489_v14  }
 0x416   :  { %v4342_v38 = vpop.permute.xlu0 %4341  ;;  %v4337_v3 = vpop.permute.xlu1 %4336 }
 0x417   :  { %v4344_v42 = vunpack.i.h.bf16 %v4342_v38  ;;  %v4343_v45 = vunpack.i.l.bf16 %v4342_v38  ;;  %v4339_v21 = vunpack.i.h.bf16 %v4337_v3  ;;  %v4338_v50 = vunpack.i.l.bf16 %v4337_v3 }
 0x419   :  { %v2155_v8 = vsel %vm1388_vm5, %v4343_v45, %v4344_v42  ;;  %v2147_v24 = vsel %vm1293_vm2, %v4338_v50, %v4339_v21  ;;  %4404 = vset.pattern.permute.xlu1 %v7444_v11  ;;  %vm7734_vm2 = vcmask 7168   ;;  %v7735_v11 = vmov 30  }
 0x41a   :  { %v2149_v54 = vsel %vm6102_vm4, %v2147_v24, 0.0  ;;  %v4352_v48 = vpop.permute.xlu0 %4351  ;;  %v4347_v29 = vpop.permute.xlu1 %4346  ;;  %2641 = vperm.xlu1 %4404, %v6489_v14   ;;  %v2157_v3 = vsel %vm6089_vm8, %v2155_v8, 0.0  ;;  %vm7736_vm8 = vcmask 1039360   ;;  %vm2288_vm4 = vcmask 261120  }
 0x41b   :  { %v2150_v60 = vmax.f32 %v6441_v0, %v2149_v54  ;;  %v4354_v13 = vunpack.i.h.bf16 %v4352_v48  ;;  %v4353_v36 = vunpack.i.l.bf16 %v4352_v48  ;;  %v4349_v38 = vunpack.i.h.bf16 %v4347_v29 }
 0x41c   :  { %v4348_v42 = vunpack.i.l.bf16 %v4347_v29 }
 0x41d   :  { %v2158_v45 = vmax.f32 %v2150_v60, %v2157_v3  ;;  %v2171_v21 = vsel %vm7734_vm2, %v4353_v36, %v4354_v13 }
 0x41e   :  { %v2163_v50 = vsel %vm1483_vm3, %v4348_v42, %v4349_v38  ;;  %v4362_v44 = vpop.permute.xlu0 %4361  ;;  %v4357_v24 = vpop.permute.xlu1 %4356  ;;  %4406 = vset.pattern.permute.xlu1 %v7735_v11  ;;  %v2173_v60 = vsel %vm6251_vm9, %v2171_v21, 0.0  ;;  %v7765_v11 = vmov 53   ;;  %vm2312_vm9 = vcmask 39936  }
 0x41f   :  { %v2165_v6 = vsel %vm6217_vm12, %v2163_v50, 0.0  ;;  %v4364_v54 = vunpack.i.h.bf16 %v4362_v44  ;;  %v4363_v59 = vunpack.i.l.bf16 %v4362_v44  ;;  %v4359_v48 = vunpack.i.h.bf16 %v4357_v24  ;;  %2661 = vperm.xlu1 %4406, %v6489_v14  }
 0x420   :  { %v2166_v18 = vmax.f32 %v2158_v45, %v2165_v6  ;;  %v4358_v8 = vunpack.i.l.bf16 %v4357_v24  ;;  %v7737_v50 = vmov 31  }
 0x421   :  { %v2191_v3 = vsel %vm1853_vm14, %v4363_v59, %v4364_v54 }
 0x422   :  { %v2174_v36 = vmax.f32 %v2166_v18, %v2173_v60  ;;  %v2183_v13 = vsel %vm7736_vm8, %v4358_v8, %v4359_v48  ;;  %v4372_v29 = vpop.permute.xlu0 %4371  ;;  %v4367_v38 = vpop.permute.xlu1 %4366  ;;  %v2193_v59 = vsel %vm6382_vm10, %v2191_v3, 0.0  ;;  %v7739_v3 = vmov 26  }
 0x423   :  { %v4369_v42 = vunpack.i.h.bf16 %v4367_v38  ;;  %4407 = vset.pattern.permute.xlu1 %v7737_v50  ;;  %v4374_v6 = vunpack.i.h.bf16 %v4372_v29  ;;  %v4373_v45 = vunpack.i.l.bf16 %v4372_v29  ;;  %v4368_v24 = vunpack.i.l.bf16 %v4367_v38 }
 0x424   :  { %v2176_v44 = vmax.f32 %v2174_v36, %v2175_v55  ;;  %v2185_v63 = vsel %vm6344_vm0, %v2183_v13, 0.0  ;;  %v7738_v38 = vmov 33   ;;  %v7766_v50 = vmov 65  }
 0x425   :  { %v2199_v48 = vsel %vm1945_vm15, %v4368_v24, %v4369_v42  ;;  %v2207_v54 = vsel %vm2037_vm13, %v4373_v45, %v4374_v6  ;;  %v7740_v42 = vmov 34   ;;  %v7742_v6 = vmov 36  }
 0x426   :  { %v2186_v21 = vmax.f32 %v2176_v44, %v2185_v63  ;;  %v2201_v0 = vsel %vm6372_vm6, %v2199_v48, 0.0  ;;  %v2209_v8 = vsel %vm6417_vm11, %v2207_v54, 0.0  ;;  %v7741_v44 = vmov 29  }
 0x427   :  { %v7743_v45 = vmov 32   ;;  %v7744_v63 = vmov 37   ;;  %vm2407_vm6 = vcmask 31744   ;;  %vm2502_vm10 = vcmask 23552  }
 0x428   :  { %v2194_v30 = vmax.f32 %v2186_v21, %v2193_v59  ;;  %v7745_v21 = vmov 35   ;;  %v7746_v59 = vmov 39  }
 0x42a   :  { %v2202_v18 = vmax.f32 %v2194_v30, %v2201_v0  ;;  %v7747_v30 = vmov 38   ;;  %v7748_v0 = vmov 40  }
 0x42c   :  { %v2210_v60 = vmax.f32 %v2202_v18, %v2209_v8  ;;  %v7749_v8 = vmov 41  }
 0x42e   :  { %3958 = vmatmul.mubr.f32.vlgmr.msra.gmra.mrb[2].mxu0 %v2210_v60  ;;  %v7750_v60 = vmov 42  }
 0x433   :  { %v6587_v16 = vpop.permute.xlu1 %2318 }
 0x438   :  { %v6590_v13 = vpop.permute.xlu1 %2328 }
 0x43c   :  { %v6598_v10 = vpop.permute.xlu1 %2308 }
 0x440   :  { %v6602_v46 = vpop.permute.xlu1 %2338 }
 0x445   :  { %v6608_v55 = vpop.permute.xlu1 %2358 }
 0x44a   :  { %v6616_v24 = vpop.permute.xlu1 %2368 }
 0x44f   :  { %v6625_v48 = vpop.permute.xlu1 %2388 }
 0x454   :  { %v6630_v54 = vpop.permute.xlu1 %2412 }
 0x458   :  { %v6636_v18 = vpop.permute.xlu1 %2403 }
 0x501   :  { %v2277_v36 = vpop.f32.mrb[2].mxu0 }
 0x502   :  { %2289 = vst.msk [vmem:[#allocation2 + $0x8] sm:$0xff] %vm2288_vm4, %v2277_v36  ;;  %v3959_v49 = vpop.f32.mrb[3].mxu0  ;;  %v6643_v36 = vpop.permute.xlu1 %2442 }
 0x503   :  { %v7751_v49 = vmov 43  }
 0x509   :  { %v6592_v29 = vld [vmem:[#allocation2 + $0x8] sm:$0xff] }
 0x50a   :  { %2405 = vrot.lane.b32.xlu1 %v6592_v29, %s4607_s5  ;;  %2310 = vrot.lane.b32.xlu0 %v6592_v29, %s4606_s30  ;;  %s4615_s30 = smov [#allocation4]  }
 0x50e   :  { %2671 = vperm.xlu1 %4407, %v6489_v14   ;;  %2611 = vperm.xlu0 %4401, %v6489_v14  }
 0x512   :  { %4409 = vset.pattern.permute.xlu1 %v7738_v38  ;;  %4402 = vset.pattern.permute.xlu0 %v7739_v3  ;;  %v7761_v38 = vmov 57  }
 0x513   :  { %2696 = vperm.xlu1 %4409, %v6489_v14   ;;  %2621 = vperm.xlu0 %4402, %v6489_v14  }
 0x517   :  { %4410 = vset.pattern.permute.xlu1 %v7740_v42  ;;  %4405 = vset.pattern.permute.xlu0 %v7741_v44  ;;  %v7767_v44 = vmov 55  }
 0x518   :  { %2706 = vperm.xlu1 %4410, %v6489_v14   ;;  %2651 = vperm.xlu0 %4405, %v6489_v14  }
 0x51c   :  { %4412 = vset.pattern.permute.xlu1 %v7742_v6  ;;  %4408 = vset.pattern.permute.xlu0 %v7743_v45  ;;  %v7752_v6 = vmov 44  }
 0x51d   :  { %2726 = vperm.xlu1 %4412, %v6489_v14   ;;  %2686 = vperm.xlu0 %4408, %v6489_v14  }
 0x521   :  { %4413 = vset.pattern.permute.xlu1 %v7744_v63  ;;  %2500 = vrot.lane.b32.xlu0 %v6592_v29, %s4608_s6  ;;  %v6649_v63 = vpop.permute.xlu1 %2452 }
 0x522   :  { %2736 = vperm.xlu1 %4413, %v6489_v14   ;;  %4411 = vset.pattern.permute.xlu0 %v7745_v21 }
 0x525   :  { %2716 = vperm.xlu0 %4411, %v6489_v14  }
 0x526   :  { %4415 = vset.pattern.permute.xlu1 %v7746_v59  ;;  %v7753_v59 = vmov 46  }
 0x527   :  { %2756 = vperm.xlu1 %4415, %v6489_v14  }
 0x529   :  { %4414 = vset.pattern.permute.xlu0 %v7747_v30  ;;  %v7754_v30 = vmov 45  }
 0x52a   :  { %2746 = vperm.xlu0 %4414, %v6489_v14  }
 0x52b   :  { %4416 = vset.pattern.permute.xlu1 %v7748_v0  ;;  %v7755_v0 = vmov 49  }
 0x52c   :  { %2774 = vperm.xlu1 %4416, %v6489_v14  }
 0x52e   :  { %4417 = vset.pattern.permute.xlu0 %v7749_v8  ;;  %v6657_v8 = vpop.permute.xlu1 %2472 }
 0x52f   :  { %2784 = vperm.xlu0 %4417, %v6489_v14  }
 0x530   :  { %2595 = vrot.lane.b32.xlu1 %v6592_v29, %s4525_s23 }
 0x531   :  { %4418 = vset.pattern.permute.xlu1 %v7750_v60  ;;  %v7756_v60 = vmov 47  }
 0x533   :  { %4419 = vset.pattern.permute.xlu0 %v7751_v49  ;;  %v7757_v49 = vmov 51  }
 0x534   :  { %2794 = vperm.xlu1 %4418, %v6489_v14   ;;  %2804 = vperm.xlu0 %4419, %v6489_v14  }
 0x538   :  { %4420 = vset.pattern.permute.xlu1 %v7752_v6  ;;  %4422 = vset.pattern.permute.xlu0 %v7753_v59  ;;  %v6664_v6 = vpop.permute.xlu1 %2482  ;;  %v6666_v59 = vpop.permute.xlu0 %2285 }
 0x539   :  { %2814 = vperm.xlu1 %4420, %v6489_v14   ;;  %2834 = vperm.xlu0 %4422, %v6489_v14  }
 0x53c   :  { %v6672_v42 = vpop.permute.xlu1 %2517 }
 0x53d   :  { %4421 = vset.pattern.permute.xlu1 %v7754_v30  ;;  %4425 = vset.pattern.permute.xlu0 %v7755_v0  ;;  %v7758_v30 = vmov 48   ;;  %v7759_v0 = vmov 54  }
 0x53e   :  { %2824 = vperm.xlu1 %4421, %v6489_v14   ;;  %2876 = vperm.xlu0 %4425, %v6489_v14  }
 0x540   :  { %v6680_v45 = vpop.permute.xlu1 %2498 }
 0x542   :  { %4423 = vset.pattern.permute.xlu1 %v7756_v60  ;;  %4427 = vset.pattern.permute.xlu0 %v7757_v49  ;;  %v7760_v60 = vmov 50   ;;  %v6675_v49 = vpop.permute.xlu0 %2348 }
 0x543   :  { %2844 = vperm.xlu1 %4423, %v6489_v14   ;;  %2896 = vperm.xlu0 %4427, %v6489_v14  }
 0x546   :  { %v6685_v21 = vpop.permute.xlu0 %2378 }
 0x547   :  { %4424 = vset.pattern.permute.xlu1 %v7758_v30  ;;  %4430 = vset.pattern.permute.xlu0 %v7759_v0  ;;  %v7762_v30 = vmov 52   ;;  %v7763_v0 = vmov 59  }
 0x548   :  { %2866 = vperm.xlu1 %4424, %v6489_v14   ;;  %2926 = vperm.xlu0 %4430, %v6489_v14  }
 0x54c   :  { %4426 = vset.pattern.permute.xlu1 %v7760_v60  ;;  %4433 = vset.pattern.permute.xlu0 %v7761_v38  ;;  %v6688_v60 = vpop.permute.xlu1 %2527  ;;  %v7764_v38 = vmov 62  }
 0x54d   :  { %2886 = vperm.xlu1 %4426, %v6489_v14   ;;  %2964 = vperm.xlu0 %4433, %v6489_v14  }
 0x551   :  { %4428 = vset.pattern.permute.xlu1 %v7762_v30  ;;  %4435 = vset.pattern.permute.xlu0 %v7763_v0  ;;  %v6695_v30 = vpop.permute.xlu0 %2422  ;;  %v6697_v0 = vpop.permute.xlu1 %2547 }
 0x552   :  { %2906 = vperm.xlu1 %4428, %v6489_v14   ;;  %2984 = vperm.xlu0 %4435, %v6489_v14  }
 0x555   :  { %v6703_v62 = vpop.permute.xlu0 %2432 }
 0x556   :  { %2769 = vrot.lane.b32.xlu1 %v6592_v29, %s4528_s26  ;;  %4438 = vset.pattern.permute.xlu0 %v7764_v38  ;;  %v6706_v38 = vpop.permute.xlu1 %2557 }
 0x557   :  { %4429 = vset.pattern.permute.xlu1 %v7765_v11  ;;  %3014 = vperm.xlu0 %4438, %v6489_v14   ;;  %v7768_v11 = vmov 67  }
 0x559   :  { %v6712_v3 = vpop.permute.xlu0 %2462 }
 0x55a   :  { %2916 = vperm.xlu1 %4429, %v6489_v14   ;;  %v6715_v40 = vpop.permute.xlu1 %2577 }
 0x55b   :  { %4441 = vset.pattern.permute.xlu0 %v7766_v50  ;;  %v7770_v50 = vmov 70  }
 0x55c   :  { %3052 = vperm.xlu0 %4441, %v6489_v14  }
 0x55e   :  { %4431 = vset.pattern.permute.xlu1 %v7767_v44  ;;  %v7771_v44 = vmov 58  }
 0x55f   :  { %2936 = vperm.xlu1 %4431, %v6489_v14  }
 0x560   :  { %4443 = vset.pattern.permute.xlu0 %v7768_v11  ;;  %v6721_v11 = vpop.permute.xlu0 %2507 }
 0x561   :  { %3072 = vperm.xlu0 %4443, %v6489_v14  }
 0x563   :  { %4432 = vset.pattern.permute.xlu1 %v7769_v58  ;;  %v6724_v58 = vpop.permute.xlu1 %2601 }
 0x564   :  { %2954 = vperm.xlu1 %4432, %v6489_v14   ;;  %v6729_v53 = vpop.permute.xlu0 %2537 }
 0x565   :  { %4446 = vset.pattern.permute.xlu0 %v7770_v50  ;;  %v2291_v50 = vshra.s32 %v7683_v1, 2 }
 0x566   :  { %3102 = vperm.xlu0 %4446, %v6489_v14  }
 0x567   :  { %v6732_v26 = vand.u32 3, %v2291_v50  ;;  %v6734_v31 = vpop.permute.xlu1 %2593 }
 0x568   :  { %2861 = vrot.lane.b32.xlu1 %v6592_v29, %s4609_s16  ;;  %v6742_v51 = vpop.permute.xlu0 %2567 }
 0x569   :  { %4434 = vset.pattern.permute.xlu1 %v7771_v44  ;;  %v7448_v44 = vand.u32 3, %v7683_v1  ;;  %vm2586_vm13 = vcmp.ge.s32.totalorder %v6732_v26, 0  ;;  %vm2587_vm11 = vcmp.lt.s32.totalorder %v6732_v26, 4 }
 0x56a   :  { %4448 = vset.pattern.permute.xlu0 %v7682_v57  ;;  %v2295_v57 = vadd.s32 4294967295, %v6732_v26  ;;  %vm6873_vm2 = vmand %vm2586_vm13, %vm2587_vm11 }
 0x56b   :  { %v6739_v17 = vpop.permute.xlu1 %2631 }
 0x56c   :  { %2974 = vperm.xlu1 %4434, %v6489_v14   ;;  %vm2296_vm5 = vcmp.ge.s32.totalorder %v2295_v57, 0  ;;  %vm2297_vm3 = vcmp.lt.s32.totalorder %v2295_v57, 4 }
 0x56d   :  { %vm6750_vm12 = vmand %vm2296_vm5, %vm2297_vm3  ;;  %vm7786_vm5 = vcmask 7168  }
 0x56f   :  { %v6756_v4 = vpop.permute.xlu1 %2641 }
 0x570   :  { %4436 = vset.pattern.permute.xlu1 %v7772_v32  ;;  %v6746_v32 = vadd.s32 4294967295, %v7448_v44 }
 0x571   :  { %2994 = vperm.xlu1 %4436, %v6489_v14  }
 0x572   :  { %vm2300_vm7 = vcmp.ge.s32.totalorder %v6746_v32, 0 }
 0x573   :  { %vm2301_vm0 = vmand %vm6750_vm12, %vm2300_vm7  ;;  %v6764_v23 = vpop.permute.xlu1 %2661 }
 0x574   :  { %vm2589_vm8 = vmand %vm6873_vm2, %vm2300_vm7 }
 0x575   :  { %4437 = vset.pattern.permute.xlu1 %v7773_v39  ;;  %v7776_v39 = vmov 63  }
 0x576   :  { %3004 = vperm.xlu1 %4437, %v6489_v14  }
 0x57a   :  { %2949 = vrot.lane.b32.xlu1 %v6592_v29, %s4610_s17 }
 0x57b   :  { %4439 = vset.pattern.permute.xlu1 %v7776_v39 }
 0x57c   :  { %v2311_v9 = vpop.permute.xlu0 %2310 }
 0x57d   :  { %v2313_v57 = vsel %vm2312_vm9, %v6598_v10, %v2311_v9 }
 0x57e   :  { %3024 = vperm.xlu1 %4439, %v6489_v14   ;;  %v2315_v44 = vsel %vm2301_vm0, %v2313_v57, 0.0  ;;  %v7778_v57 = vmov 66  }
 0x57f   :  { %v2324_v12 = vrot.slane %v2315_v44, %v4713_v7  ;;  %v2334_v39 = vrot.slane %v2315_v44, %v7688_v35  ;;  %v2344_v2 = vrot.slane %v2315_v44, %v7689_v56  ;;  %v2354_v10 = vrot.slane %v2315_v44, %v7690_v33 }
 0x580   :  { %v2364_v20 = vrot.slane %v2315_v44, %v7692_v47 }
 0x581   :  { %v2325_v5 = vmul.f32 %v2324_v12, %v6587_v16  ;;  %v2335_v9 = vmul.f32 %v2334_v39, %v6590_v13  ;;  %v2345_v22 = vmul.f32 %v2344_v2, %v6602_v46  ;;  %v2374_v13 = vrot.slane %v2315_v44, %v6123_v28 }
 0x582   :  { %4440 = vset.pattern.permute.xlu1 %v7777_v19  ;;  %v2406_v19 = vpop.permute.xlu1 %2405  ;;  %v2365_v39 = vmul.f32 %v2364_v20, %v6608_v55  ;;  %v7779_v2 = vmov 68  }
 0x583   :  { %3042 = vperm.xlu1 %4440, %v6489_v14   ;;  %v2326_v27 = vadd.f32 %v2325_v5, %v6666_v59  ;;  %v2408_v12 = vsel %vm2407_vm6, %v6636_v18, %v2406_v19  ;;  %v2355_v5 = vmul.f32 %v2354_v10, %v6675_v49  ;;  %v2375_v18 = vmul.f32 %v2374_v13, %v6616_v24 }
 0x584   :  { %v2394_v49 = vrot.slane %v2315_v44, %v6137_v15 }
 0x585   :  { %v2336_v61 = vadd.f32 %v2335_v9, %v2326_v27 }
 0x587   :  { %4442 = vset.pattern.permute.xlu1 %v7778_v57  ;;  %v2346_v16 = vadd.f32 %v2345_v22, %v2336_v61  ;;  %v2384_v57 = vrot.slane %v2315_v44, %v6130_v34  ;;  %v2410_v22 = vsel %vm6750_vm12, %v2408_v12, 0.0  ;;  %v2395_v12 = vmul.f32 %v2394_v49, %v6625_v48 }
 0x588   :  { %3062 = vperm.xlu1 %4442, %v6489_v14   ;;  %v2418_v20 = vrot.slane %v2410_v22, %v4713_v7  ;;  %v2438_v44 = vrot.slane %v2410_v22, %v7689_v56  ;;  %v7781_v48 = vand.u32 3, %v7683_v1  ;;  %v2458_v49 = vrot.slane %v2410_v22, %v7692_v47 }
 0x589   :  { %v2356_v59 = vadd.f32 %v2355_v5, %v2346_v16  ;;  %v2385_v9 = vmul.f32 %v2384_v57, %v6685_v21  ;;  %v2428_v16 = vrot.slane %v2410_v22, %v7688_v35 }
 0x58a   :  { %v2419_v24 = vmul.f32 %v2418_v20, %v6630_v54  ;;  %v2439_v54 = vmul.f32 %v2438_v44, %v6703_v62  ;;  %v2459_v62 = vmul.f32 %v2458_v49, %v6649_v63 }
 0x58b   :  { %v2366_v61 = vadd.f32 %v2365_v39, %v2356_v59  ;;  %v7780_v59 = vmov 69   ;;  %v2429_v21 = vmul.f32 %v2428_v16, %v6695_v30  ;;  %v2448_v39 = vrot.slane %v2410_v22, %v7690_v33 }
 0x58c   :  { %3037 = vrot.lane.b32.xlu1 %v6592_v29, %s4611_s28 }
 0x58d   :  { %v6785_v27 = vpop.permute.xlu1 %2671  ;;  %4444 = vset.pattern.permute.xlu1 %v7779_v2  ;;  %v6788_v46 = vpop.permute.xlu0 %2611  ;;  %v2376_v55 = vadd.f32 %v2375_v18, %v2366_v61  ;;  %v6815_v18 = vadd.s32 1, %v7781_v48  ;;  %v2449_v30 = vmul.f32 %v2448_v39, %v6643_v36  ;;  %v3123_v36 = vld [vmem:[%s7273_s11 + $0x8] sm:$0xff] }
 0x58f   :  { %v2386_v5 = vadd.f32 %v2385_v9, %v2376_v55  ;;  %v7782_v55 = vmov 71   ;;  %v2468_v9 = vrot.slane %v2410_v22, %v6123_v28  ;;  %vm2494_vm14 = vcmp.lt.s32.totalorder %v6815_v18, 4 }
 0x590   :  { %3082 = vperm.xlu1 %4444, %v6489_v14   ;;  %vm2495_vm15 = vmand %vm6750_vm12, %vm2494_vm14 }
 0x591   :  { %v2396_v13 = vadd.f32 %v2395_v12, %v2386_v5  ;;  %v2469_v44 = vmul.f32 %v2468_v9, %v6712_v3  ;;  %v3125_v3 = vld [vmem:[%s7273_s11 + $0x18] sm:$0xff]  ;;  %vm2766_vm3 = vmand %vm6873_vm2, %vm2494_vm14 }
 0x592   :  { %v6797_v10 = vpop.permute.xlu1 %2696  ;;  %v6799_v19 = vpop.permute.xlu0 %2621 }
 0x593   :  { %v2420_v57 = vadd.f32 %v2419_v24, %v2396_v13  ;;  %v2488_v13 = vrot.slane %v2410_v22, %v6137_v15 }
 0x594   :  { %4445 = vset.pattern.permute.xlu1 %v7780_v59  ;;  %v2478_v59 = vrot.slane %v2410_v22, %v6130_v34  ;;  %v7783_v22 = vmov 0.0|0.0  }
 0x595   :  { %3092 = vperm.xlu1 %4445, %v6489_v14   ;;  %v2430_v20 = vadd.f32 %v2429_v21, %v2420_v57 }
 0x596   :  { %v2479_v57 = vmul.f32 %v2478_v59, %v6657_v8  ;;  %v2489_v8 = vmul.f32 %v2488_v13, %v6664_v6 }
 0x597   :  { %v6809_v2 = vpop.permute.xlu1 %2706  ;;  %v6811_v61 = vpop.permute.xlu0 %2651  ;;  %v2440_v16 = vadd.f32 %v2439_v54, %v2430_v20 }
 0x599   :  { %4447 = vset.pattern.permute.xlu1 %v7782_v55  ;;  %v2450_v24 = vadd.f32 %v2449_v30, %v2440_v16 }
 0x59a   :  { %3112 = vperm.xlu1 %4447, %v6489_v14   ;;  %v3122_v14 = vld [vmem:[%s7273_s11] sm:$0xff] }
 0x59b   :  { %v2460_v21 = vadd.f32 %v2459_v62, %v2450_v24  ;;  %v4067_v63 = vpack.c.bf16 %v3123_v36, %v3122_v14 }
 0x59c   :  { %v6823_v5 = vpop.permute.xlu1 %2726  ;;  %v6825_v12 = vpop.permute.xlu0 %2686 }
 0x59d   :  { %v2470_v48 = vadd.f32 %v2469_v44, %v2460_v21  ;;  %4068 = vmatpush3.bf16.msra.mxu1 %v4067_v63 }
 0x59e   :  { %4451 = vset.pattern.permute.xlu1 %v7709_v43  ;;  %v3124_v43 = vld [vmem:[%s7273_s11 + $0x10] sm:$0xff]  ;;  %4069 = vmatprep.subr.bf16.mxu1 %v7783_v22 }
 0x59f   :  { %v4070_v20 = vpack.c.bf16 %v3125_v3, %v3124_v43  ;;  %v2480_v55 = vadd.f32 %v2479_v57, %v2470_v48 }
 0x5a0   :  { %v2501_v39 = vpop.permute.xlu0 %2500 }
 0x5a1   :  { %v2503_v54 = vsel %vm2502_vm10, %v6680_v45, %v2501_v39  ;;  %v6846_v49 = vpop.permute.xlu1 %2736  ;;  %v2490_v9 = vadd.f32 %v2489_v8, %v2480_v55  ;;  %4071 = vmatpush3.bf16.msra.mxu1 %v4070_v20 }
 0x5a2   :  { %v2505_v50 = vsel %vm2495_vm15, %v2503_v54, 0.0  ;;  %4072 = vmatprep.subr.bf16.mxu1 %v7783_v22 }
 0x5a3   :  { %v2513_v45 = vrot.slane %v2505_v50, %v4713_v7  ;;  %v2523_v30 = vrot.slane %v2505_v50, %v7688_v35  ;;  %v2533_v62 = vrot.slane %v2505_v50, %v7689_v56  ;;  %v2543_v6 = vrot.slane %v2505_v50, %v7690_v33 }
 0x5a4   :  { %v2553_v13 = vrot.slane %v2505_v50, %v7692_v47  ;;  %v2563_v63 = vrot.slane %v2505_v50, %v6123_v28  ;;  %v2573_v48 = vrot.slane %v2505_v50, %v6130_v34  ;;  %v2583_v43 = vrot.slane %v2505_v50, %v6137_v15 }
 0x5a5   :  { %v2514_v16 = vmul.f32 %v2513_v45, %v6721_v11  ;;  %v2524_v14 = vmul.f32 %v2523_v30, %v6672_v42  ;;  %v2534_v44 = vmul.f32 %v2533_v62, %v6688_v60  ;;  %v2544_v21 = vmul.f32 %v2543_v6, %v6729_v53 }
 0x5a6   :  { %v6860_v59 = vpop.permute.xlu1 %2756  ;;  %v2554_v60 = vmul.f32 %v2553_v13, %v6697_v0  ;;  %v2564_v53 = vmul.f32 %v2563_v63, %v6706_v38  ;;  %v2574_v8 = vmul.f32 %v2573_v48, %v6742_v51  ;;  %v2584_v30 = vmul.f32 %v2583_v43, %v6715_v40 }
 0x5a7   :  { %v2515_v24 = vadd.f32 %v2514_v16, %v2490_v9  ;;  %v2853_v42 = vadd.s32 1, %v6732_v26 }
 0x5a9   :  { %v2525_v36 = vadd.f32 %v2524_v14, %v2515_v24  ;;  %vm2854_vm12 = vcmp.ge.s32.totalorder %v2853_v42, 0  ;;  %vm2855_vm9 = vcmp.lt.s32.totalorder %v2853_v42, 4 }
 0x5aa   :  { %vm6951_vm0 = vmand %vm2854_vm12, %vm2855_vm9  ;;  %vm7822_vm9 = vcmask 7168  }
 0x5ab   :  { %v2535_v11 = vadd.f32 %v2534_v44, %v2525_v36  ;;  %v6871_v39 = vpop.permute.xlu1 %2774  ;;  %vm2857_vm6 = vmand %vm6951_vm0, %vm2300_vm7 }
 0x5ac   :  { %vm3034_vm7 = vmand %vm6951_vm0, %vm2494_vm14 }
 0x5ad   :  { %v2545_v57 = vadd.f32 %v2544_v21, %v2535_v11 }
 0x5af   :  { %v2555_v54 = vadd.f32 %v2554_v60, %v2545_v57  ;;  %v2596_v3 = vpop.permute.xlu1 %2595 }
 0x5b0   :  { %v2597_v22 = vsel %vm7786_vm5, %v6734_v31, %v2596_v3 }
 0x5b1   :  { %v2565_v20 = vadd.f32 %v2564_v53, %v2555_v54  ;;  %v2599_v0 = vsel %vm2589_vm8, %v2597_v22, 0.0 }
 0x5b2   :  { %v2607_v55 = vrot.slane %v2599_v0, %v4713_v7  ;;  %v2617_v9 = vrot.slane %v2599_v0, %v7688_v35  ;;  %v2627_v62 = vrot.slane %v2599_v0, %v7689_v56  ;;  %v2637_v51 = vrot.slane %v2599_v0, %v7690_v33 }
 0x5b3   :  { %v2575_v45 = vadd.f32 %v2574_v8, %v2565_v20  ;;  %v6891_v16 = vpop.permute.xlu1 %2794  ;;  %v2647_v40 = vrot.slane %v2599_v0, %v7692_v47  ;;  %v2667_v63 = vrot.slane %v2599_v0, %v6130_v34  ;;  %v2677_v48 = vrot.slane %v2599_v0, %v6137_v15 }
 0x5b4   :  { %v2608_v38 = vmul.f32 %v2607_v55, %v6724_v58  ;;  %v2618_v31 = vmul.f32 %v2617_v9, %v6788_v46  ;;  %v2628_v36 = vmul.f32 %v2627_v62, %v6799_v19  ;;  %v2638_v13 = vmul.f32 %v2637_v51, %v6739_v17 }
 0x5b5   :  { %v2585_v50 = vadd.f32 %v2584_v30, %v2575_v45  ;;  %v2657_v58 = vrot.slane %v2599_v0, %v6123_v28  ;;  %v2648_v21 = vmul.f32 %v2647_v40, %v6756_v4  ;;  %v2684_v19 = vsel %vm6873_vm2, %v6592_v29, 0.0 }
 0x5b6   :  { %v2668_v17 = vmul.f32 %v2667_v63, %v6764_v23  ;;  %v2692_v4 = vrot.slane %v2684_v19, %v4713_v7  ;;  %v2678_v3 = vmul.f32 %v2677_v48, %v6785_v27  ;;  %v2702_v22 = vrot.slane %v2684_v19, %v7688_v35  ;;  %v2717_v23 = vpop.permute.xlu0 %2716 }
 0x5b7   :  { %v2609_v24 = vadd.f32 %v2608_v38, %v2585_v50  ;;  %v2658_v60 = vmul.f32 %v2657_v58, %v6811_v61  ;;  %v2712_v0 = vrot.slane %v2684_v19, %v7689_v56  ;;  %v2722_v30 = vrot.slane %v2684_v19, %v7690_v33 }
 0x5b8   :  { %v6897_v14 = vpop.permute.xlu1 %2814  ;;  %v2693_v61 = vmul.f32 %v2692_v4, %v6825_v12  ;;  %v2703_v8 = vmul.f32 %v2702_v22, %v6797_v10  ;;  %v2732_v27 = vrot.slane %v2684_v19, %v7692_v47  ;;  %v2742_v10 = vrot.slane %v2684_v19, %v6123_v28 }
 0x5b9   :  { %v2619_v6 = vadd.f32 %v2618_v31, %v2609_v24  ;;  %v2713_v45 = vmul.f32 %v2712_v0, %v6809_v2  ;;  %v2723_v38 = vmul.f32 %v2722_v30, %v2717_v23  ;;  %v2752_v2 = vrot.slane %v2684_v19, %v6130_v34 }
 0x5ba   :  { %v2733_v12 = vmul.f32 %v2732_v27, %v6823_v5  ;;  %v2743_v31 = vmul.f32 %v2742_v10, %v6846_v49  ;;  %v2762_v5 = vrot.slane %v2684_v19, %v6137_v15 }
 0x5bb   :  { %v2629_v44 = vadd.f32 %v2628_v36, %v2619_v6  ;;  %v2747_v6 = vpop.permute.xlu0 %2746 }
 0x5bc   :  { %v2763_v49 = vmul.f32 %v2762_v5, %v6860_v59 }
 0x5bd   :  { %v2639_v11 = vadd.f32 %v2638_v13, %v2629_v44  ;;  %v6905_v46 = vpop.permute.xlu1 %2824  ;;  %v2753_v44 = vmul.f32 %v2752_v2, %v2747_v6 }
 0x5bf   :  { %v2649_v57 = vadd.f32 %v2648_v21, %v2639_v11  ;;  %v2785_v11 = vpop.permute.xlu0 %2784 }
 0x5c1   :  { %v2659_v54 = vadd.f32 %v2658_v60, %v2649_v57 }
 0x5c2   :  { %v6913_v53 = vpop.permute.xlu1 %2844 }
 0x5c3   :  { %v2669_v43 = vadd.f32 %v2668_v17, %v2659_v54 }
 0x5c5   :  { %v2679_v20 = vadd.f32 %v2678_v3, %v2669_v43  ;;  %v2805_v3 = vpop.permute.xlu0 %2804 }
 0x5c7   :  { %v2694_v29 = vadd.f32 %v2693_v61, %v2679_v20  ;;  %v6921_v55 = vpop.permute.xlu1 %2866 }
 0x5c9   :  { %v2704_v9 = vadd.f32 %v2703_v8, %v2694_v29 }
 0x5cb   :  { %v2714_v50 = vadd.f32 %v2713_v45, %v2704_v9  ;;  %v2835_v45 = vpop.permute.xlu0 %2834 }
 0x5cc   :  { %v6926_v62 = vpop.permute.xlu1 %2886 }
 0x5cd   :  { %v2724_v24 = vadd.f32 %v2723_v38, %v2714_v50 }
 0x5cf   :  { %v2734_v51 = vadd.f32 %v2733_v12, %v2724_v24  ;;  %v2877_v24 = vpop.permute.xlu0 %2876 }
 0x5d1   :  { %v6932_v36 = vpop.permute.xlu1 %2906  ;;  %v2744_v40 = vadd.f32 %v2743_v31, %v2734_v51 }
 0x5d3   :  { %v2754_v58 = vadd.f32 %v2753_v44, %v2744_v40 }
 0x5d5   :  { %v2770_v13 = vpop.permute.xlu1 %2769  ;;  %v2764_v54 = vadd.f32 %v2763_v49, %v2754_v58 }
 0x5d6   :  { %v2772_v21 = vsel %vm2766_vm3, %v2770_v13, 0.0 }
 0x5d7   :  { %v2780_v63 = vrot.slane %v2772_v21, %v4713_v7  ;;  %v2790_v57 = vrot.slane %v2772_v21, %v7688_v35  ;;  %v2800_v48 = vrot.slane %v2772_v21, %v7689_v56  ;;  %v2810_v19 = vrot.slane %v2772_v21, %v7690_v33 }
 0x5d8   :  { %v2820_v59 = vrot.slane %v2772_v21, %v7692_v47  ;;  %v2840_v26 = vrot.slane %v2772_v21, %v6130_v34  ;;  %v2850_v38 = vrot.slane %v2772_v21, %v6137_v15 }
 0x5d9   :  { %v2781_v60 = vmul.f32 %v2780_v63, %v6871_v39  ;;  %v2917_v17 = vpop.permute.xlu1 %2916  ;;  %v2791_v4 = vmul.f32 %v2790_v57, %v2785_v11  ;;  %v2801_v22 = vmul.f32 %v2800_v48, %v6891_v16  ;;  %v2811_v8 = vmul.f32 %v2810_v19, %v2805_v3  ;;  %v2897_v11 = vpop.permute.xlu0 %2896 }
 0x5da   :  { %v2830_v39 = vrot.slane %v2772_v21, %v6123_v28  ;;  %v2821_v29 = vmul.f32 %v2820_v59, %v6897_v14  ;;  %v2841_v12 = vmul.f32 %v2840_v26, %v2835_v45  ;;  %v2851_v51 = vmul.f32 %v2850_v38, %v6913_v53 }
 0x5db   :  { %v2782_v43 = vadd.f32 %v2781_v60, %v2764_v54 }
 0x5dc   :  { %v2831_v16 = vmul.f32 %v2830_v39, %v6905_v46 }
 0x5dd   :  { %v2792_v61 = vadd.f32 %v2791_v4, %v2782_v43  ;;  %v2927_v4 = vpop.permute.xlu0 %2926 }
 0x5de   :  { %v2937_v20 = vpop.permute.xlu1 %2936 }
 0x5df   :  { %v2802_v0 = vadd.f32 %v2801_v22, %v2792_v61 }
 0x5e1   :  { %v2812_v23 = vadd.f32 %v2811_v8, %v2802_v0  ;;  %v2965_v39 = vpop.permute.xlu0 %2964 }
 0x5e3   :  { %v2822_v9 = vadd.f32 %v2821_v29, %v2812_v23  ;;  %v2955_v27 = vpop.permute.xlu1 %2954 }
 0x5e5   :  { %v2832_v50 = vadd.f32 %v2831_v16, %v2822_v9 }
 0x5e7   :  { %v2842_v14 = vadd.f32 %v2841_v12, %v2832_v50  ;;  %v2862_v10 = vpop.permute.xlu1 %2861  ;;  %v2985_v12 = vpop.permute.xlu0 %2984 }
 0x5e8   :  { %v2864_v31 = vsel %vm2857_vm6, %v2862_v10, 0.0 }
 0x5e9   :  { %v2872_v6 = vrot.slane %v2864_v31, %v4713_v7  ;;  %v2882_v46 = vrot.slane %v2864_v31, %v7688_v35  ;;  %v2852_v2 = vadd.f32 %v2851_v51, %v2842_v14  ;;  %v2892_v44 = vrot.slane %v2864_v31, %v7689_v56 }
 0x5ea   :  { %v2902_v13 = vrot.slane %v2864_v31, %v7690_v33  ;;  %v2912_v49 = vrot.slane %v2864_v31, %v7692_v47  ;;  %v2922_v60 = vrot.slane %v2864_v31, %v6123_v28  ;;  %v2932_v54 = vrot.slane %v2864_v31, %v6130_v34 }
 0x5eb   :  { %v2873_v40 = vmul.f32 %v2872_v6, %v6921_v55  ;;  %v2975_v5 = vpop.permute.xlu1 %2974  ;;  %v2883_v32 = vmul.f32 %v2882_v46, %v2877_v24  ;;  %v2893_v21 = vmul.f32 %v2892_v44, %v6926_v62  ;;  %v2942_v22 = vrot.slane %v2864_v31, %v6137_v15 }
 0x5ec   :  { %v2903_v57 = vmul.f32 %v2902_v13, %v2897_v11  ;;  %v2913_v55 = vmul.f32 %v2912_v49, %v6932_v36  ;;  %v2923_v19 = vmul.f32 %v2922_v60, %v2917_v17  ;;  %v2933_v59 = vmul.f32 %v2932_v54, %v2927_v4 }
 0x5ed   :  { %v2874_v58 = vadd.f32 %v2873_v40, %v2852_v2  ;;  %v2943_v29 = vmul.f32 %v2942_v22, %v2937_v20  ;;  %v3015_v40 = vpop.permute.xlu0 %3014 }
 0x5ef   :  { %v2884_v53 = vadd.f32 %v2883_v32, %v2874_v58 }
 0x5f0   :  { %v2995_v63 = vpop.permute.xlu1 %2994 }
 0x5f1   :  { %v2894_v48 = vadd.f32 %v2893_v21, %v2884_v53  ;;  %v3053_v53 = vpop.permute.xlu0 %3052 }
 0x5f3   :  { %v2904_v42 = vadd.f32 %v2903_v57, %v2894_v48 }
 0x5f5   :  { %v2914_v43 = vadd.f32 %v2913_v55, %v2904_v42  ;;  %v3005_v3 = vpop.permute.xlu1 %3004  ;;  %v3073_v30 = vpop.permute.xlu0 %3072 }
 0x5f7   :  { %v2924_v62 = vadd.f32 %v2923_v19, %v2914_v43 }
 0x5f9   :  { %v2934_v61 = vadd.f32 %v2933_v59, %v2924_v62  ;;  %v2950_v8 = vpop.permute.xlu1 %2949 }
 0x5fa   :  { %v2952_v0 = vsel %vm6951_vm0, %v2950_v8, 0.0 }
 0x5fb   :  { %v2960_v36 = vrot.slane %v2952_v0, %v4713_v7  ;;  %v2970_v26 = vrot.slane %v2952_v0, %v7688_v35  ;;  %v2944_v23 = vadd.f32 %v2943_v29, %v2934_v61  ;;  %v2980_v17 = vrot.slane %v2952_v0, %v7689_v56 }
 0x5fc   :  { %v2990_v38 = vrot.slane %v2952_v0, %v7690_v33  ;;  %v3000_v10 = vrot.slane %v2952_v0, %v7692_v47  ;;  %v3010_v51 = vrot.slane %v2952_v0, %v6123_v28 }
 0x5fd   :  { %v2961_v45 = vmul.f32 %v2960_v36, %v2955_v27  ;;  %v3025_v16 = vpop.permute.xlu1 %3024  ;;  %v2971_v9 = vmul.f32 %v2970_v26, %v2965_v39  ;;  %v2981_v14 = vmul.f32 %v2980_v17, %v2975_v5  ;;  %v3020_v27 = vrot.slane %v2952_v0, %v6130_v34  ;;  %v3103_v26 = vpop.permute.xlu0 %3102 }
 0x5fe   :  { %v2991_v20 = vmul.f32 %v2990_v38, %v2985_v12  ;;  %v3001_v46 = vmul.f32 %v3000_v10, %v2995_v63  ;;  %v3011_v44 = vmul.f32 %v3010_v51, %v3005_v3  ;;  %v3030_v5 = vrot.slane %v2952_v0, %v6137_v15 }
 0x5ff   :  { %v2962_v50 = vadd.f32 %v2961_v45, %v2944_v23  ;;  %v3021_v11 = vmul.f32 %v3020_v27, %v3015_v40  ;;  %v7789_v10 = vmov 0.0   ;;  %v7793_v51 = vmov 6  }
 0x600   :  { %v3031_v57 = vmul.f32 %v3030_v5, %v3025_v16  ;;  %v7796_v27 = vmov 11   ;;  %v7798_v40 = vmov 14  }
 0x601   :  { %v2972_v24 = vadd.f32 %v2971_v9, %v2962_v50 }
 0x602   :  { %v3043_v31 = vpop.permute.xlu1 %3042 }
 0x603   :  { %v2982_v6 = vadd.f32 %v2981_v14, %v2972_v24  ;;  %v7790_v24 = vmov 7  }
 0x605   :  { %v2992_v2 = vadd.f32 %v2991_v20, %v2982_v6  ;;  %v7794_v6 = vmov 8  }
 0x607   :  { %v3002_v32 = vadd.f32 %v3001_v46, %v2992_v2  ;;  %v3063_v13 = vpop.permute.xlu1 %3062  ;;  %v7795_v46 = vmov 9   ;;  %v7797_v2 = vmov 12  }
 0x609   :  { %v3012_v58 = vadd.f32 %v3011_v44, %v3002_v32  ;;  %v7799_v44 = vmov 15   ;;  %v7800_v32 = vmov 17  }
 0x60b   :  { %v3022_v21 = vadd.f32 %v3021_v11, %v3012_v58  ;;  %v3038_v49 = vpop.permute.xlu1 %3037 }
 0x60c   :  { %v3040_v63 = vsel %vm3034_vm7, %v3038_v49, 0.0 }
 0x60d   :  { %v3048_v60 = vrot.slane %v3040_v63, %v4713_v7  ;;  %v3058_v48 = vrot.slane %v3040_v63, %v7688_v35  ;;  %v3032_v55 = vadd.f32 %v3031_v57, %v3022_v21  ;;  %v3068_v42 = vrot.slane %v3040_v63, %v7689_v56 }
 0x60e   :  { %v3078_v19 = vrot.slane %v3040_v63, %v7690_v33  ;;  %v3088_v22 = vrot.slane %v3040_v63, %v7692_v47  ;;  %v3108_v39 = vrot.slane %v3040_v63, %v6130_v34  ;;  %v3098_v36 = vrot.slane %v3040_v63, %v6123_v28  ;;  %v7001_v28 = vld [vmem:[%s7269_s7] sm:$0xf]  ;;  %s4612_s7 = smov 2  }
 0x60f   :  { %v3049_v54 = vmul.f32 %v3048_v60, %v3043_v31  ;;  %v3083_v4 = vpop.permute.xlu1 %3082  ;;  %v3059_v43 = vmul.f32 %v3058_v48, %v3053_v53  ;;  %v3069_v3 = vmul.f32 %v3068_v42, %v3063_v13  ;;  %v3118_v38 = vrot.slane %v3040_v63, %v6137_v15  ;;  %3258 = vperm.xlu0 %4448, %v7001_v28   ;;  %v3224_v15 = vld [vmem:[%s7270_s8] sm:$0xf] }
 0x610   :  { %v3079_v8 = vmul.f32 %v3078_v19, %v3073_v30  ;;  %v3089_v29 = vmul.f32 %v3088_v22, %v3083_v4  ;;  %v3109_v16 = vmul.f32 %v3108_v39, %v3103_v26  ;;  %v3234_v34 = vld [vmem:[#allocation2] sm:$0xf]  ;;  %v7801_v13 = vmov 18  }
 0x611   :  { %v3050_v18 = vadd.f32 %v3049_v54, %v3032_v55  ;;  %v3220_v54 = vld [vmem:[%s7276_s14] sm:$0xf]  ;;  %v7803_v22 = vmov 16   ;;  %v7808_v39 = vmov 24   ;;  %v7812_v26 = vmov 29   ;;  %s4613_s14 = smov 126  }
 0x613   :  { %v3060_v62 = vadd.f32 %v3059_v43, %v3050_v18  ;;  %3227 = vperm.xlu0 %4448, %v3224_v15  }
 0x614   :  { %v3093_v59 = vpop.permute.xlu1 %3092 }
 0x615   :  { %v3070_v61 = vadd.f32 %v3069_v3, %v3060_v62  ;;  %v3099_v45 = vmul.f32 %v3098_v36, %v3093_v59  ;;  %v7802_v3 = vmov 20   ;;  %v7804_v62 = vmov 21  }
 0x616   :  { %v7805_v59 = vmov 19   ;;  %v7811_v36 = vmov 27  }
 0x617   :  { %v3080_v0 = vadd.f32 %v3079_v8, %v3070_v61  ;;  %4449 = vset.pattern.permute.xlu0 %v7605_v41  ;;  %v7791_v41 = vmov 10   ;;  %v7806_v61 = vmov 22   ;;  %v7807_v8 = vmov 23  }
 0x618   :  { %3268 = vperm.xlu0 %4449, %v7001_v28  }
 0x619   :  { %v3090_v23 = vadd.f32 %v3089_v29, %v3080_v0  ;;  %v3113_v17 = vpop.permute.xlu1 %3112  ;;  %v7809_v0 = vmov 26   ;;  %v7810_v29 = vmov 25  }
 0x61a   :  { %v3119_v47 = vmul.f32 %v3118_v38, %v3113_v17  ;;  %v7815_v17 = vmov 30   ;;  %v7818_v38 = vmov 33  }
 0x61b   :  { %v3100_v9 = vadd.f32 %v3099_v45, %v3090_v23  ;;  %v7813_v23 = vmov 28   ;;  %v7814_v45 = vmov 31  }
 0x61c   :  { %3249 = vrot.lane.b32.xlu0 %v3234_v34, %s4608_s6 }
 0x61d   :  { %v3110_v50 = vadd.f32 %v3109_v16, %v3100_v9  ;;  %4450 = vset.pattern.permute.xlu0 %v7711_v37  ;;  %v7792_v37 = vmov 13   ;;  %v7816_v16 = vmov 35   ;;  %v7817_v9 = vmov 32  }
 0x61f   :  { %v3120_v12 = vadd.f32 %v3119_v47, %v3110_v50  ;;  %v7819_v47 = vmov 34  }
 0x620   :  { %3278 = vperm.xlu0 %4450, %v7001_v28  }
 0x621   :  { %v3121_v14 = vmax.f32 %v3120_v12, 0.0 }
 0x623   :  { %3969 = vmatmul.mubr.msk.f32.vlgmr.msra.gmra.mrb[2].mxu1 %vm2288_vm4, %v3121_v14  ;;  %vm3204_vm4 = vcmask 1043456  }
 0x624   :  { %3975 = vmatprep.mubr.msk.f32.mxu1 %vm4604_vm1, %v7789_v10  ;;  %4452 = vset.pattern.permute.xlu0 %v7713_v25  ;;  %vm3200_vm1 = vcmask 60416  }
 0x625   :  { %3312 = vperm.xlu0 %4452, %v7001_v28  }
 0x629   :  { %4453 = vset.pattern.permute.xlu0 %v7715_v52 }
 0x62a   :  { %3322 = vperm.xlu0 %4453, %v7001_v28  }
 0x62e   :  { %4455 = vset.pattern.permute.xlu0 %v7790_v24 }
 0x62f   :  { %3342 = vperm.xlu0 %4455, %v7001_v28  }
 0x633   :  { %3358 = vrot.lane.b32.xlu0 %v3234_v34, %s4525_s23 }
 0x634   :  { %4458 = vset.pattern.permute.xlu0 %v7791_v41 }
 0x637   :  { %3386 = vperm.xlu0 %4458, %v7001_v28  }
 0x63b   :  { %4461 = vset.pattern.permute.xlu0 %v7792_v37 }
 0x68e   :  { %v3259_v50 = vpop.permute.xlu0 %3258 }
 0x692   :  { %v3228_v12 = vpop.permute.xlu0 %3227 }
 0x697   :  { %v3269_v14 = vpop.permute.xlu0 %3268 }
 0x69b   :  { %v3250_v15 = vpop.permute.xlu0 %3249 }
 0x69f   :  { %v3279_v24 = vpop.permute.xlu0 %3278 }
 0x6a4   :  { %v3313_v37 = vpop.permute.xlu0 %3312 }
 0x6f6   :  { %v3195_v31 = vpop.f32.mrb[2].mxu1 }
 0x6f7   :  { %v3199_v25 = vmul.f32 %v3195_v31, %v3195_v31  ;;  %v3970_v20 = vpop.f32.mrb[3].mxu1 }
 0x6f9   :  { %v3201_v52 = vsel %vm3200_vm1, %v3199_v25, 0.0  ;;  %v3323_v25 = vpop.permute.xlu0 %3322 }
 0x6fa   :  { %3202 = vadd.xlane.f32.xlu1 %v3201_v52 }
 0x6fd   :  { %v7103_v52 = vpop.permute.xlu0 %3342 }
 0x70b   :  { %3288 = vperm.xlu1 %4451, %v7001_v28  }
 0x70f   :  { %3303 = vrot.lane.b32.xlu1 %v3234_v34, %s4612_s7 }
 0x710   :  { %4454 = vset.pattern.permute.xlu1 %v7793_v51  ;;  %v3232_v51 = vshra.s32 %v7683_v1, 1 }
 0x713   :  { %3332 = vperm.xlu1 %4454, %v7001_v28  }
 0x717   :  { %4456 = vset.pattern.permute.xlu1 %v7794_v6 }
 0x718   :  { %3366 = vperm.xlu1 %4456, %v7001_v28  }
 0x71c   :  { %4457 = vset.pattern.permute.xlu1 %v7795_v46  ;;  %v3359_v46 = vpop.permute.xlu0 %3358 }
 0x71d   :  { %3376 = vperm.xlu1 %4457, %v7001_v28  }
 0x721   :  { %4459 = vset.pattern.permute.xlu1 %v7796_v27  ;;  %v3231_v27 = vand.u32 1, %v7683_v1 }
 0x722   :  { %3396 = vperm.xlu1 %4459, %v7001_v28  }
 0x726   :  { %4460 = vset.pattern.permute.xlu1 %v7797_v2 }
 0x727   :  { %3414 = vperm.xlu1 %4460, %v7001_v28  }
 0x72b   :  { %4462 = vset.pattern.permute.xlu1 %v7798_v40 }
 0x72c   :  { %3434 = vperm.xlu1 %4462, %v7001_v28  }
 0x730   :  { %4463 = vset.pattern.permute.xlu1 %v7799_v44  ;;  %v7114_v44 = vadd.s32 4294967295, %v3231_v27 }
 0x731   :  { %3444 = vperm.xlu1 %4463, %v7001_v28  }
 0x732   :  { %vm3241_vm8 = vcmp.ge.s32.totalorder %v7114_v44, 0 }
 0x735   :  { %4465 = vset.pattern.permute.xlu1 %v7800_v32  ;;  %v7116_v32 = vpop.permute.xlu0 %3386 }
 0x736   :  { %3469 = vperm.xlu1 %4465, %v7001_v28  }
 0x73a   :  { %4466 = vset.pattern.permute.xlu1 %v7801_v13 }
 0x787   :  { %v3203_v58 = vpop.xlane.xlu1 %3202 }
 0x788   :  { %v3205_v11 = vsel %vm3204_vm4, %v3203_v58, 0.0 }
 0x789   :  { %v3206_v5 = vrot.slane %v3205_v11, 4 }
 0x78b   :  { %v3207_v21 = vadd.f32 %v3206_v5, %v3205_v11  ;;  %v3289_v10 = vpop.permute.xlu1 %3288 }
 0x78d   :  { %v3208_v49 = vrot.slane %v3207_v21, 2 }
 0x78f   :  { %v3209_v53 = vadd.f32 %v3208_v49, %v3207_v21  ;;  %v3304_v34 = vpop.permute.xlu1 %3303 }
 0x791   :  { %v3210_v63 = vrot.slane %v3209_v53, 1 }
 0x793   :  { %v3211_v57 = vadd.f32 %v3210_v63, %v3209_v53  ;;  %v7097_v41 = vpop.permute.xlu1 %3332 }
 0x795   :  { %v3212_v60 = vmul.f32 0.0003125, %v3211_v57 }
 0x797   :  { %4484 = vrsqrt.f32 %v3212_v60  ;;  %vm3215_vm14 = vcmp.eq.f32.partialorder %v3212_v60, inf  ;;  %v3218_v42 = vand.u32 2147483648, %v3212_v60  ;;  %vm3217_vm15 = vcmp.eq.f32.partialorder %v3212_v60, 0.0 }
 0x7a1   :  { %v4485_v48 = vpop.eup %4484 }
 0x7a2   :  { %v3214_v55 = vmul.f32 %v4485_v48, %v3212_v60 }
 0x7a4   :  { %v3216_v4 = vsel %vm3215_vm14, %v3212_v60, %v3214_v55 }
 0x7a5   :  { %v3219_v19 = vsel %vm3217_vm15, %v3218_v42, %v3216_v4  ;;  %v7137_v42 = vadd.s32 1, %v3231_v27 }
 0x7a6   :  { %v3221_v18 = vmul.f32 %v3220_v54, %v3219_v19 }
 0x7a7   :  { %vm3354_vm3 = vcmp.lt.s32.totalorder %v7137_v42, 2 }
 0x7a8   :  { %v3222_v43 = vadd.f32 %v3221_v18, %v3195_v31  ;;  %v7099_v31 = vpop.permute.xlu1 %3366 }
 0x7aa   :  { %3230 = vst.msk [vmem:[#allocation2 + $0x8] sm:$0xf] %vm3200_vm1, %v3222_v43 }
 0x7ac   :  { %v7101_v20 = vpop.permute.xlu1 %3376 }
 0x7b0   :  { %v7106_v6 = vpop.permute.xlu1 %3396 }
 0x7b1   :  { %v7046_v30 = vld [vmem:[#allocation2 + $0x8] sm:$0xf] }
 0x7b2   :  { %3360 = vrot.lane.b32.xlu1 %v7046_v30, %s4525_s23  ;;  %3251 = vrot.lane.b32.xlu0 %v7046_v30, %s4608_s6 }
 0x7b4   :  { %v7112_v40 = vpop.permute.xlu1 %3414 }
 0x7b6   :  { %3479 = vperm.xlu1 %4466, %v7001_v28   ;;  %3424 = vperm.xlu0 %4461, %v7001_v28  }
 0x7b8   :  { %v7123_v58 = vpop.permute.xlu1 %3434 }
 0x7ba   :  { %4468 = vset.pattern.permute.xlu1 %v7802_v3  ;;  %3305 = vrot.lane.b32.xlu0 %v7046_v30, %s4612_s7 }
 0x7bb   :  { %3507 = vperm.xlu1 %4468, %v7001_v28   ;;  %4464 = vset.pattern.permute.xlu0 %v7803_v22 }
 0x7bc   :  { %v7130_v21 = vpop.permute.xlu1 %3444 }
 0x7be   :  { %3459 = vperm.xlu0 %4464, %v7001_v28  }
 0x7bf   :  { %4469 = vset.pattern.permute.xlu1 %v7804_v62 }
 0x7c0   :  { %3517 = vperm.xlu1 %4469, %v7001_v28   ;;  %v7133_v53 = vpop.permute.xlu1 %3469 }
 0x7c2   :  { %4467 = vset.pattern.permute.xlu0 %v7805_v59 }
 0x7c3   :  { %3489 = vperm.xlu0 %4467, %v7001_v28  }
 0x7c4   :  { %4470 = vset.pattern.permute.xlu1 %v7806_v61 }
 0x7c5   :  { %3527 = vperm.xlu1 %4470, %v7001_v28  }
 0x7c7   :  { %4471 = vset.pattern.permute.xlu0 %v7807_v8 }
 0x7c8   :  { %3537 = vperm.xlu0 %4471, %v7001_v28  }
 0x7c9   :  { %4472 = vset.pattern.permute.xlu1 %v7808_v39 }
 0x7ca   :  { %3556 = vperm.xlu1 %4472, %v7001_v28  }
 0x7cc   :  { %3502 = vrot.lane.b32.xlu0 %v7046_v30, %s4528_s26 }
 0x7cd   :  { %4474 = vset.pattern.permute.xlu0 %v7809_v0 }
 0x7ce   :  { %4473 = vset.pattern.permute.xlu1 %v7810_v29 }
 0x7cf   :  { %3566 = vperm.xlu1 %4473, %v7001_v28  }
 0x7d0   :  { %3576 = vperm.xlu0 %4474, %v7001_v28  }
 0x7d3   :  { %4475 = vset.pattern.permute.xlu1 %v7811_v36 }
 0x7d4   :  { %3586 = vperm.xlu1 %4475, %v7001_v28   ;;  %4477 = vset.pattern.permute.xlu0 %v7812_v26 }
 0x7d5   :  { %3614 = vperm.xlu0 %4477, %v7001_v28  }
 0x7d8   :  { %4476 = vset.pattern.permute.xlu1 %v7813_v23 }
 0x7d9   :  { %3604 = vperm.xlu1 %4476, %v7001_v28   ;;  %4479 = vset.pattern.permute.xlu0 %v7814_v45 }
 0x7da   :  { %3634 = vperm.xlu0 %4479, %v7001_v28  }
 0x7dd   :  { %4478 = vset.pattern.permute.xlu1 %v7815_v17 }
 0x7de   :  { %3624 = vperm.xlu1 %4478, %v7001_v28   ;;  %3647 = vrot.lane.b32.xlu0 %v7046_v30, %s4609_s16 }
 0x7df   :  { %4483 = vset.pattern.permute.xlu0 %v7816_v16 }
 0x7e2   :  { %4480 = vset.pattern.permute.xlu1 %v7817_v9  ;;  %3682 = vperm.xlu0 %4483, %v7001_v28  }
 0x7e3   :  { %3652 = vperm.xlu1 %4480, %v7001_v28  }
 0x7e7   :  { %3599 = vrot.lane.b32.xlu1 %v7046_v30, %s4613_s14 }
 0x7e8   :  { %4481 = vset.pattern.permute.xlu1 %v7818_v38 }
 0x7eb   :  { %3662 = vperm.xlu1 %4481, %v7001_v28  }
 0x7ef   :  { %4482 = vset.pattern.permute.xlu1 %v7819_v47 }
 0x7f0   :  { %3672 = vperm.xlu1 %4482, %v7001_v28   ;;  %v7108_v28 = vand.u32 1, %v3232_v51 }
 0x7f2   :  { %v3236_v2 = vadd.s32 4294967295, %v7108_v28  ;;  %vm3405_vm0 = vcmp.ge.s32.totalorder %v7108_v28, 0  ;;  %vm3406_vm6 = vcmp.lt.s32.totalorder %v7108_v28, 2 }
 0x7f3   :  { %vm7162_vm7 = vmand %vm3405_vm0, %vm3406_vm6 }
 0x7f4   :  { %vm3237_vm13 = vcmp.ge.s32.totalorder %v3236_v2, 0  ;;  %vm3238_vm11 = vcmp.lt.s32.totalorder %v3236_v2, 2  ;;  %vm3408_vm1 = vmand %vm7162_vm7, %vm3241_vm8 }
 0x7f5   :  { %vm7118_vm2 = vmand %vm3237_vm13, %vm3238_vm11 }
 0x7f6   :  { %vm3242_vm5 = vmand %vm7118_vm2, %vm3241_vm8 }
 0x7f7   :  { %vm3355_vm12 = vmand %vm7118_vm2, %vm3354_vm3 }
 0x7f8   :  { %vm3499_vm4 = vmand %vm7162_vm7, %vm3354_vm3 }
 0x824   :  { %v3252_v1 = vpop.permute.xlu0 %3251  ;;  %v3361_v48 = vpop.permute.xlu1 %3360 }
 0x825   :  { %v3253_v11 = vsel %vm2502_vm10, %v3250_v15, %v3252_v1  ;;  %vm3307_vm10 = vcmask 15360   ;;  %v3362_v0 = vsel %vm7822_vm9, %v3359_v46, %v3361_v48  ;;  %vm3800_vm9 = vcmask 74752  }
 0x826   :  { %v3255_v5 = vsel %vm3242_vm5, %v3253_v11, 0.0  ;;  %v3364_v17 = vsel %vm3355_vm12, %v3362_v0, 0.0  ;;  %v3412_v27 = vsel %vm3408_vm1, %v3362_v0, 0.0  ;;  %vm3698_vm5 = vcmask 58401  }
 0x827   :  { %v3264_v49 = vrot.slane %v3255_v5, %v4713_v7  ;;  %v3274_v57 = vrot.slane %v3255_v5, %v7688_v35  ;;  %v3284_v54 = vrot.slane %v3255_v5, %v7689_v56  ;;  %v3294_v3 = vrot.slane %v3255_v5, %v7690_v33 }
 0x828   :  { %v3372_v47 = vrot.slane %v3364_v17, %v4713_v7  ;;  %v3402_v13 = vrot.slane %v3364_v17, %v7690_v33  ;;  %v3440_v48 = vrot.slane %v3412_v27, %v7689_v56  ;;  %vm7827_vm12 = vcmask 130048  }
 0x829   :  { %v3265_v63 = vmul.f32 %v3264_v49, %v3259_v50  ;;  %v3275_v55 = vmul.f32 %v3274_v57, %v3269_v14  ;;  %v3285_v43 = vmul.f32 %v3284_v54, %v3279_v24  ;;  %v3295_v39 = vmul.f32 %v3294_v3, %v3289_v10 }
 0x82a   :  { %v3373_v51 = vmul.f32 %v3372_v47, %v7099_v31  ;;  %v3403_v57 = vmul.f32 %v3402_v13, %v7106_v6  ;;  %v3441_v6 = vmul.f32 %v3440_v48, %v7123_v58 }
 0x82b   :  { %v3266_v60 = vadd.f32 %v3265_v63, %v3228_v12  ;;  %v3420_v63 = vrot.slane %v3412_v27, %v4713_v7 }
 0x82d   :  { %v3276_v19 = vadd.f32 %v3275_v55, %v3266_v60  ;;  %v3421_v31 = vmul.f32 %v3420_v63, %v7112_v40  ;;  %v3430_v55 = vrot.slane %v3412_v27, %v7688_v35  ;;  %v3546_v40 = vadd.s32 1, %v7108_v28 }
 0x82f   :  { %v3286_v62 = vadd.f32 %v3285_v43, %v3276_v19  ;;  %v3450_v43 = vrot.slane %v3412_v27, %v7690_v33  ;;  %vm3547_vm14 = vcmp.ge.s32.totalorder %v3546_v40, 0  ;;  %vm3548_vm15 = vcmp.lt.s32.totalorder %v3546_v40, 2 }
 0x830   :  { %vm7199_vm13 = vmand %vm3547_vm14, %vm3548_vm15 }
 0x831   :  { %v3296_v26 = vadd.f32 %v3295_v39, %v3286_v62  ;;  %v3451_v39 = vmul.f32 %v3450_v43, %v7130_v21  ;;  %vm3550_vm11 = vmand %vm7199_vm13, %vm3241_vm8  ;;  %vm3692_vm8 = vcmask 24576  }
 0x835   :  { %v3425_v4 = vpop.permute.xlu0 %3424  ;;  %v7139_v18 = vpop.permute.xlu1 %3479 }
 0x836   :  { %v3431_v3 = vmul.f32 %v3430_v55, %v3425_v4 }
 0x839   :  { %v3306_v22 = vpop.permute.xlu0 %3305 }
 0x83a   :  { %v3308_v59 = vsel %vm3307_vm10, %v3304_v34, %v3306_v22  ;;  %v7143_v61 = vpop.permute.xlu1 %3507  ;;  %v3382_v34 = vrot.slane %v3364_v17, %v7688_v35  ;;  %vm3703_vm10 = vcmask 92226  }
 0x83b   :  { %v3310_v8 = vsel %vm7118_vm2, %v3308_v59, 0.0  ;;  %vm3644_vm2 = vmand %vm7199_vm13, %vm3354_vm3  ;;  %vm3708_vm3 = vcmask 126051  }
 0x83c   :  { %v3318_v29 = vrot.slane %v3310_v8, %v4713_v7  ;;  %v3328_v36 = vrot.slane %v3310_v8, %v7688_v35  ;;  %v3338_v45 = vrot.slane %v3310_v8, %v7689_v56  ;;  %v3348_v50 = vrot.slane %v3310_v8, %v7690_v33 }
 0x83d   :  { %v3460_v10 = vpop.permute.xlu0 %3459  ;;  %v3383_v2 = vmul.f32 %v3382_v34, %v7101_v20 }
 0x83e   :  { %v3319_v23 = vmul.f32 %v3318_v29, %v3313_v37  ;;  %v3329_v38 = vmul.f32 %v3328_v36, %v3323_v25  ;;  %v3339_v14 = vmul.f32 %v3338_v45, %v7097_v41  ;;  %v3349_v37 = vmul.f32 %v3348_v50, %v7103_v52 }
 0x83f   :  { %v7156_v16 = vpop.permute.xlu1 %3517  ;;  %v3392_v41 = vrot.slane %v3364_v17, %v7689_v56 }
 0x840   :  { %v3320_v9 = vadd.f32 %v3319_v23, %v3296_v26 }
 0x841   :  { %v3393_v49 = vmul.f32 %v3392_v41, %v7116_v32  ;;  %v3457_v32 = vsel %vm7162_vm7, %v7046_v30, 0.0 }
 0x842   :  { %v3330_v12 = vadd.f32 %v3329_v38, %v3320_v9  ;;  %v3490_v11 = vpop.permute.xlu0 %3489  ;;  %v3475_v59 = vrot.slane %v3457_v32, %v7688_v35  ;;  %v3465_v0 = vrot.slane %v3457_v32, %v4713_v7  ;;  %v3485_v26 = vrot.slane %v3457_v32, %v7689_v56 }
 0x843   :  { %v3495_v38 = vrot.slane %v3457_v32, %v7690_v33 }
 0x844   :  { %v3340_v24 = vadd.f32 %v3339_v14, %v3330_v12  ;;  %v7172_v25 = vpop.permute.xlu1 %3527  ;;  %v3466_v36 = vmul.f32 %v3465_v0, %v3460_v10  ;;  %v3476_v28 = vmul.f32 %v3475_v59, %v7133_v53  ;;  %v3486_v17 = vmul.f32 %v3485_v26, %v7139_v18 }
 0x845   :  { %v3496_v12 = vmul.f32 %v3495_v38, %v3490_v11 }
 0x846   :  { %v3350_v46 = vadd.f32 %v3349_v37, %v3340_v24 }
 0x847   :  { %v3538_v54 = vpop.permute.xlu0 %3537 }
 0x848   :  { %v3374_v1 = vadd.f32 %v3373_v51, %v3350_v46 }
 0x849   :  { %v3557_v5 = vpop.permute.xlu1 %3556 }
 0x84a   :  { %v3384_v52 = vadd.f32 %v3383_v2, %v3374_v1 }
 0x84b   :  { %v3503_v4 = vpop.permute.xlu0 %3502 }
 0x84c   :  { %v3394_v60 = vadd.f32 %v3393_v49, %v3384_v52  ;;  %v3505_v58 = vsel %vm3499_vm4, %v3503_v4, 0.0  ;;  %v3554_v24 = vsel %vm3550_vm11, %v3503_v4, 0.0 }
 0x84d   :  { %v3513_v50 = vrot.slane %v3505_v58, %v4713_v7  ;;  %v3523_v53 = vrot.slane %v3505_v58, %v7688_v35  ;;  %v3533_v18 = vrot.slane %v3505_v58, %v7689_v56  ;;  %v3543_v41 = vrot.slane %v3505_v58, %v7690_v33 }
 0x84e   :  { %v3404_v20 = vadd.f32 %v3403_v57, %v3394_v60  ;;  %v3567_v19 = vpop.permute.xlu1 %3566  ;;  %v3562_v27 = vrot.slane %v3554_v24, %v4713_v7  ;;  %v3582_v52 = vrot.slane %v3554_v24, %v7689_v56 }
 0x84f   :  { %v3514_v15 = vmul.f32 %v3513_v50, %v7143_v61  ;;  %v3577_v34 = vpop.permute.xlu0 %3576  ;;  %v3524_v51 = vmul.f32 %v3523_v53, %v7156_v16  ;;  %v3534_v44 = vmul.f32 %v3533_v18, %v7172_v25  ;;  %v3544_v1 = vmul.f32 %v3543_v41, %v3538_v54 }
 0x850   :  { %v3422_v22 = vadd.f32 %v3421_v31, %v3404_v20  ;;  %v3572_v61 = vrot.slane %v3554_v24, %v7688_v35  ;;  %v3563_v63 = vmul.f32 %v3562_v27, %v3557_v5  ;;  %v3583_v55 = vmul.f32 %v3582_v52, %v3577_v34 }
 0x851   :  { %v3592_v20 = vrot.slane %v3554_v24, %v7690_v33  ;;  %v3828_v24 = vld [vmem:[%s7275_s13] ss:$0 sm:$0xff] }
 0x852   :  { %v3432_v62 = vadd.f32 %v3431_v3, %v3422_v22  ;;  %v3573_v31 = vmul.f32 %v3572_v61, %v3567_v19 }
 0x853   :  { %v3587_v29 = vpop.permute.xlu1 %3586 }
 0x854   :  { %v3442_v8 = vadd.f32 %v3441_v6, %v3432_v62  ;;  %v3615_v2 = vpop.permute.xlu0 %3614  ;;  %v3593_v3 = vmul.f32 %v3592_v20, %v3587_v29 }
 0x856   :  { %v3452_v30 = vadd.f32 %v3451_v39, %v3442_v8 }
 0x858   :  { %v3467_v23 = vadd.f32 %v3466_v36, %v3452_v30  ;;  %v3605_v21 = vpop.permute.xlu1 %3604 }
 0x859   :  { %v3635_v48 = vpop.permute.xlu0 %3634 }
 0x85a   :  { %v3477_v9 = vadd.f32 %v3476_v28, %v3467_v23 }
 0x85c   :  { %v3487_v47 = vadd.f32 %v3486_v17, %v3477_v9 }
 0x85d   :  { %v3625_v14 = vpop.permute.xlu1 %3624  ;;  %v3648_v32 = vpop.permute.xlu0 %3647 }
 0x85e   :  { %v3497_v10 = vadd.f32 %v3496_v12, %v3487_v47  ;;  %v3650_v8 = vsel %vm3644_vm2, %v3648_v32, 0.0 }
 0x85f   :  { %v3658_v29 = vrot.slane %v3650_v8, %v4713_v7  ;;  %v3668_v28 = vrot.slane %v3650_v8, %v7688_v35  ;;  %v3688_v23 = vrot.slane %v3650_v8, %v7690_v33  ;;  %v3678_v17 = vrot.slane %v3650_v8, %v7689_v56 }
 0x860   :  { %v3515_v37 = vadd.f32 %v3514_v15, %v3497_v10 }
 0x861   :  { %v3683_v9 = vpop.permute.xlu0 %3682 }
 0x862   :  { %v3525_v46 = vadd.f32 %v3524_v51, %v3515_v37  ;;  %v3653_v13 = vpop.permute.xlu1 %3652  ;;  %v3689_v47 = vmul.f32 %v3688_v23, %v3683_v9 }
 0x863   :  { %v3659_v42 = vmul.f32 %v3658_v29, %v3653_v13 }
 0x864   :  { %v3535_v11 = vadd.f32 %v3534_v44, %v3525_v46 }
 0x866   :  { %v3545_v49 = vadd.f32 %v3544_v1, %v3535_v11  ;;  %v3600_v57 = vpop.permute.xlu1 %3599 }
 0x867   :  { %v3602_v16 = vsel %vm7199_vm13, %v3600_v57, 0.0 }
 0x868   :  { %v3564_v60 = vadd.f32 %v3563_v63, %v3545_v49  ;;  %v3610_v54 = vrot.slane %v3602_v16, %v4713_v7  ;;  %v3620_v22 = vrot.slane %v3602_v16, %v7688_v35  ;;  %v3630_v19 = vrot.slane %v3602_v16, %v7689_v56  ;;  %v3718_v7 = vld [vmem:[%s7274_s12] sm:$0xff]  ;;  %v3719_v35 = vld [vmem:[%s7274_s12 + $0x8] sm:$0xff] }
 0x869   :  { %v3640_v59 = vrot.slane %v3602_v16, %v7690_v33 }
 0x86a   :  { %v3574_v25 = vadd.f32 %v3573_v31, %v3564_v60  ;;  %v3611_v62 = vmul.f32 %v3610_v54, %v3605_v21  ;;  %v3621_v40 = vmul.f32 %v3620_v22, %v3615_v2  ;;  %v3663_v39 = vpop.permute.xlu1 %3662  ;;  %v3631_v4 = vmul.f32 %v3630_v19, %v3625_v14 }
 0x86b   :  { %v3641_v30 = vmul.f32 %v3640_v59, %v3635_v48  ;;  %v3669_v45 = vmul.f32 %v3668_v28, %v3663_v39  ;;  %v4073_v14 = vpack.c.bf16 %v3719_v35, %v3718_v7 }
 0x86c   :  { %v3584_v43 = vadd.f32 %v3583_v55, %v3574_v25 }
 0x86d   :  { %4074 = vmatpush3.bf16.msra.mxu1 %v4073_v14 }
 0x86e   :  { %v3594_v5 = vadd.f32 %v3593_v3, %v3584_v43 }
 0x86f   :  { %v3673_v26 = vpop.permute.xlu1 %3672 }
 0x870   :  { %v3612_v6 = vadd.f32 %v3611_v62, %v3594_v5  ;;  %v3679_v50 = vmul.f32 %v3678_v17, %v3673_v26 }
 0x872   :  { %v3622_v0 = vadd.f32 %v3621_v40, %v3612_v6 }
 0x874   :  { %v3632_v36 = vadd.f32 %v3631_v4, %v3622_v0 }
 0x876   :  { %v3642_v58 = vadd.f32 %v3641_v30, %v3632_v36 }
 0x878   :  { %v3660_v21 = vadd.f32 %v3659_v42, %v3642_v58 }
 0x87a   :  { %v3670_v38 = vadd.f32 %v3669_v45, %v3660_v21 }
 0x87c   :  { %v3680_v12 = vadd.f32 %v3679_v50, %v3670_v38 }
 0x87e   :  { %v3690_v53 = vadd.f32 %v3689_v47, %v3680_v12 }
 0x880   :  { %v3691_v33 = vmax.f32 %v3690_v53, 0.0 }
 0x882   :  { %3700 = vrot.lane.b32.xlu0 %v3691_v33, %s4540_s4  ;;  %3710 = vrot.lane.b32.xlu1 %v3691_v33, %s4610_s17  ;;  %3693 = vst.msk [vmem:[#allocation3] sm:$0x1] %vm3692_vm8, %v3691_v33 }
 0x886   :  { %3695 = vrot.lane.b32.xlu1 %v3691_v33, %s4607_s5  ;;  %s3819_s5 = sshll.u32 %s4615_s30, 4  ;;  %s3820_s5 = int_to_ptr.vmem [resolvable:$true] %s3819_s5 }
 0x887   :  { %s4493_s13 = scalar_lea.vmem %s3820_s5, 32  ;;  %p4498_p1 = scmp.lt.s32.totalorder %s3820_s5, %s3820_s5 }
 0x888   :  { %p4494_p0 = scmp.ne.s32.totalorder %s3820_s5, %s4493_s13  ;;  %p4499_p2 = scmp.lt.s32.totalorder %s4493_s13, %s4493_s13 }
 0x88a   :  { %3705 = vrot.lane.b32.xlu1 %v3691_v33, %s4614_s1  ;;  %p4500_p3 = por %p4499_p2, %p4498_p1 }
 0x88c   :  { %p4501_p4 = pnand %p4500_p3, %p4494_p0 }
 0x8f4   :  { %v3711_v56 = vpop.permute.xlu1 %3710  ;;  %v3701_v15 = vpop.permute.xlu0 %3700 }
 0x8f5   :  { %3713 = vst.msk [vmem:[#allocation3 + $0x1] sm:$0x1] %vm3692_vm8, %v3711_v56 }
 0x8f6   :  { %3714 = vst.msk [vmem:[#allocation3] sm:$0x2] %vm3698_vm5, %v3691_v33 }
 0x8f8   :  { %v3696_v10 = vpop.permute.xlu1 %3695 }
 0x8f9   :  { %3699 = vst.msk [vmem:[#allocation3 - $0x1] sm:$0x2] %vm3698_vm5, %v3696_v10 }
 0x8fa   :  { %3715 = vst.msk [vmem:[#allocation3 - $0x1] sm:$0x4] %vm3703_vm10, %v3696_v10  ;;  %3704 = vst.msk [vmem:[#allocation3 - $0x2] sm:$0x4] %vm3703_vm10, %v3701_v15 }
 0x8fb   :  { %3716 = vst.msk [vmem:[#allocation3 - $0x2] sm:$0x8] %vm3708_vm3, %v3701_v15 }
 0x8fc   :  { %v3706_v18 = vpop.permute.xlu1 %3705 }
 0x8fd   :  { %3709 = vst.msk [vmem:[#allocation3 - $0x3] sm:$0x8] %vm3708_vm3, %v3706_v18 }
 0x904   :  { %v3717_v34 = vld [vmem:[#allocation3] sm:$0x3] }
 0x905   :  { %3976 = vmatmul.mubr.msk.f32.vlgmr.msra.gmra.mrb[4].mxu1 %vm7827_vm12, %v3717_v34 }
 0x9d8   :  { %v3796_v37 = vpop.f32.mrb[4].mxu1 }
 0x9d9   :  { %v3797_v51 = vadd.f32 %v3828_v24, %v3796_v37  ;;  %v3977_v41 = vpop.f32.mrb[5].mxu1 }
 0x9db   :  { %v3801_v46 = vsel %vm3800_vm9, %v3797_v51, -inf }
 0x9dc   :  { %3802 = vmax.xlane.f32.xlu0 %v3801_v46 }
 0xa69   :  { %v3803_v44 = vpop.xlane.xlu0 %3802 }
 0xa6a   :  { %v3804_v27 = vsub.f32 %v3797_v51, %v3803_v44 }
 0xa6c   :  { %v3805_v2 = vmul.f32 1.442695, %v3804_v27 }
 0xa6e   :  { %4486 = vpow2.f32 %v3805_v2 }
 0xa78   :  { %v4487_v13 = vpop.eup %4486 }
 0xa79   :  { %v3807_v1 = vsel %vm3800_vm9, %v4487_v13, 0.0 }
 0xa7a   :  { %3808 = vadd.xlane.f32.xlu1 %v3807_v1 }
 0xb07   :  { %v3809_v11 = vpop.xlane.xlu1 %3808 }
 0xb08   :  { %4488 = vrcp.f32 %v3809_v11 }
 0xb12   :  { %v4489_v61 = vpop.eup %4488 }
 0xb13   :  { %v3811_v49 = vmul.f32 %v4489_v61, %v4487_v13 }
 0xb15   :  { %3812 = vst.msk [vmem:[#allocation4] sm:$0x3] %vm3800_vm9, %v3811_v49 }
 0xb16   :  { %4504 = shalt.err (!%p4501_p4)
}
 0xb17   :  { %s4505_s17 = scalar_lea.hbm %s7277_s15, 32 }
 0xb18   :  { %p4506_p5 = scmp.ne.s32.totalorder %s7277_s15, %s4505_s17  ;;  %p4509_p6 = scmp.lt.u32.totalorder %s4505_s17, %s7277_s15 }
 0xb1a   :  { %p4511_p7 = pnand %p4509_p6, %p4506_p5 }
 0xb1c   :  { %4514 = shalt.err (!%p4511_p7)
}
 0xb1d   :  { %3822 = dma.vmem_to_hbm [thread:$0]  %s3820_s5, 32, %s7277_s15, [#allocation5]  }
 0xb1e   :  { %4515 = dma.done.wait [#allocation5], 32  }
 0xb1f   :  { %4516 = vsyncadd [#allocation5], 4294967264 }
 0xb20   :  { %3826 = vsyncpa [#allocation5], 1 }

</bundles_post_ra>
